<compile_context>
chip_gen: v5e
topology: v5e:2x2
jax: 0.10.0
libtpu: 0.0.40
codegen_flags: <defaults>
</compile_context>

<pallas_src>
import numpy as np

import jax
import jax.numpy as jnp
from jax import lax
from jax.experimental import pallas as pl
from jax.experimental.pallas import tpu as pltpu

# ----------------------------- config ---------------------------------------
BS = 2          # batch size
NSLICE = 4      # n_slice_per_c
C_IN = 3        # in_chans
IMG = 16        # image_size
C1 = 16         # encoder stand-in stage-1 channels
C2 = 32         # encoder stand-in stage-2 channels (== features[-1] channels)
FEATS = 64      # true_encoder.num_features stand-in (lstm_embed)
HID = FEATS // 2
N_CLASSES = 2
PAD_OUT = 128   # lane-aligned padded logits width (sliced back in the wrapper)
BN_EPS = 1e-3   # timm tf_* (TF-ported) EfficientNetV2 BNs use eps=1e-3


def _conv_out(sz, k=3, s=2, p=1):
    return (sz + 2 * p - k) // s + 1


H1 = _conv_out(IMG)      # 8   (conv1 output spatial)
H2 = _conv_out(H1)       # 4   (conv2 output spatial)
P1 = H1 * H1             # 64  positions per image after conv1
P2 = H2 * H2             # 16  positions per image after conv2
IN_FLAT = C_IN * IMG * IMG   # 768, NCHW flatten order (cin, y, x)


# --------------------------- fused Pallas kernel -----------------------------
def _make_kernel(nb):
    """Kernel processing `nb` batch elements per program (batch folded into rows)."""
    T = NSLICE
    H = HID

    def silu(v):
        return v * jax.nn.sigmoid(v)

    def kernel(x_ref, m1_ref, b1_ref, m2_ref, b2_ref, wh_ref, bh_ref, pool_ref,
               wih_ref, bih_ref, whhf_ref, bhhf_ref, whhb_ref, bhhb_ref,
               wheadf_ref, wheadb_ref, bhead_ref, out_ref):
        # ---- encoder stage 1: pad + im2col + conv1 + BN1-scale as ONE GEMM --
        x = x_ref[...].reshape(nb * T, IN_FLAT)                       # (R, 768)
        y1 = silu(jnp.dot(x, m1_ref[...],
                          preferred_element_type=jnp.float32) + b1_ref[...])
        # y1: (R, P1*C1) = (R, 1024), lane-dense

        # ---- encoder stage 2: spatial gather + conv2 + BN-scale as ONE GEMM -
        y2 = silu(jnp.dot(y1, m2_ref[...],
                          preferred_element_type=jnp.float32) + b2_ref[...])
        # y2: (R, P2*C2) = (R, 512)

        # ---- conv_head (1x1) + bn2 scale: block-diagonal per-position GEMM --
        yh = silu(jnp.dot(y2, wh_ref[...],
                          preferred_element_type=jnp.float32) + bh_ref[...])
        # yh: (R, P2*FEATS) = (R, 1024)

        # ---- AdaptiveAvgPool2d(1) as a pooling GEMM (reduction on the MXU) --
        feat = jnp.dot(yh, pool_ref[...],
                       preferred_element_type=jnp.float32)            # (R, 64)

        # ---- bidirectional GRU (nn.GRU semantics, gate order r,z,n) ---------
        # Input projections for both directions, all gates: one GEMM.
        xproj = jnp.dot(feat, wih_ref[...],
                        preferred_element_type=jnp.float32) + bih_ref[...]  # (R, 6H)

        whh_f = whhf_ref[...]
        whh_b = whhb_ref[...]
        bhh_f = bhhf_ref[...]
        bhh_b = bhhb_ref[...]

        def gru_gate(xp, hp, h_prev):
            # xp/hp: (1, 3H) laid out [r | z | n]; biases already folded in.
            r = jax.nn.sigmoid(xp[:, 0:H] + hp[:, 0:H])
            z = jax.nn.sigmoid(xp[:, H:2 * H] + hp[:, H:2 * H])
            n = jnp.tanh(xp[:, 2 * H:3 * H] + r * hp[:, 2 * H:3 * H])
            return (1.0 - z) * n + z * h_prev

        outs_f = []
        outs_b = []
        for b in range(nb):                       # unrolled (nb <= 2)
            xp_b = xproj[b * T:(b + 1) * T]       # (T, 6H)
            hf = jnp.zeros((1, H), jnp.float32)
            hb = jnp.zeros((1, H), jnp.float32)
            of = [None] * T
            ob = [None] * T
            for s in range(T):                    # fully unrolled (T = 4)
                hgf = jnp.dot(hf, whh_f, preferred_element_type=jnp.float32) + bhh_f
                hgb = jnp.dot(hb, whh_b, preferred_element_type=jnp.float32) + bhh_b
                hf = gru_gate(xp_b[s:s + 1, 0:3 * H], hgf, hf)
                hb = gru_gate(xp_b[T - 1 - s:T - s, 3 * H:6 * H], hgb, hb)
                of[s] = hf
                ob[T - 1 - s] = hb
            outs_f.extend(of)
            outs_b.extend(ob)

        gf = jnp.concatenate(outs_f, axis=0)      # (R, H) forward hiddens
        gb = jnp.concatenate(outs_b, axis=0)      # (R, H) backward hiddens

        # ---- head: Dropout(0.1) identity in eval; Linear split into fwd/bwd
        #      halves so no lane concat is needed; 128-lane padded output. ----
        logits = (jnp.dot(gf, wheadf_ref[...], preferred_element_type=jnp.float32)
                  + jnp.dot(gb, wheadb_ref[...], preferred_element_type=jnp.float32)
                  + bhead_ref[...])               # (R, PAD_OUT)
        out_ref[...] = logits.reshape(nb, T, PAD_OUT).astype(out_ref.dtype)

    return kernel


_PACK_ORDER = ("m1", "b1", "m2", "b2", "wh", "bh", "pool",
               "wih", "bih", "whh_f", "bhh_f", "whh_b", "bhh_b",
               "whead_f", "whead_b", "bhead")


def _full_spec(shape):
    nd = len(shape)
    return pl.BlockSpec(shape, lambda b, _nd=nd: (0,) * _nd)


def _make_forward(n_prog, nb):
    kernel = _make_kernel(nb)

    def call(packed, xf):
        in_specs = [pl.BlockSpec((nb, NSLICE, IN_FLAT), lambda b: (b, 0, 0))]
        in_specs += [_full_spec(packed[k].shape) for k in _PACK_ORDER]
        return pl.pallas_call(
            kernel,
            out_shape=jax.ShapeDtypeStruct((BS, NSLICE, PAD_OUT), jnp.float32),
            grid=(n_prog,),
            in_specs=in_specs,
            out_specs=pl.BlockSpec((nb, NSLICE, PAD_OUT), lambda b: (b, 0, 0)),
            compiler_params=pltpu.CompilerParams(
                # v7x: 2-way batch split over its two TensorCores; single-TC
                # chips run a single program with the batch folded into rows.
                dimension_semantics=(("parallel",) if n_prog > 1 else ("arbitrary",)),
                vmem_limit_bytes=48 * 1024 * 1024),
        )(xf, *[packed[k] for k in _PACK_ORDER])

    @jax.jit
    def forward(packed, x):
        """x: (bs, n_slice, C, H, W) float32, PyTorch NCHW convention."""
        # M1's row ordering matches the NCHW flatten, so this is a pure
        # metadata reshape (no transpose, no extra XLA fusion).
        xf = x.reshape(BS, NSLICE, IN_FLAT)
        out = call(packed, xf)
        return out[:, :, :N_CLASSES]

    return forward


def _tensorcores_per_chip():
    try:
        kind = jax.devices()[0].device_kind.lower()
    except Exception:
        return 1
    return 2 if ("v7" in kind or "tpu7" in kind) else 1


# ----------------------- params / host-side packing --------------------------
def make_bn(key, c):
    k1, k2, k3, k4 = jax.random.split(key, 4)
    return {
        "gamma": 1.0 + 0.1 * jax.random.normal(k1, (c,)),
        "beta": 0.1 * jax.random.normal(k2, (c,)),
        "mean": 0.1 * jax.random.normal(k3, (c,)),
        "var": jax.random.uniform(k4, (c,), minval=0.5, maxval=1.5),
    }


def fold_bn(bn, eps=BN_EPS):
    scale = bn["gamma"] / jnp.sqrt(bn["var"] + eps)
    shift = bn["beta"] - bn["mean"] * scale
    return scale[None, :], shift[None, :]


def init_params(key):
    ks = iter(jax.random.split(key, 24))
    nxt = lambda: next(ks)
    p = {}
    # encoder stand-in (see TODO(synk) at top of file)
    p["conv1_w"] = jax.random.normal(nxt(), (3, 3, C_IN, C1)) / jnp.sqrt(9.0 * C_IN)
    p["bn1"] = make_bn(nxt(), C1)
    p["conv2_w"] = jax.random.normal(nxt(), (3, 3, C1, C2)) / jnp.sqrt(9.0 * C1)
    p["bn2s"] = make_bn(nxt(), C2)
    # conv_head (1x1, no bias) + bn2 (BatchNormAct2d -> BN + SiLU)
    p["conv_head_w"] = jax.random.normal(nxt(), (C2, FEATS)) / jnp.sqrt(float(C2))
    p["bn2"] = make_bn(nxt(), FEATS)
    # bidirectional GRU, gate order (r, z, n)
    s = 1.0 / jnp.sqrt(float(HID))
    for d in ("f", "b"):
        p[f"gru_wih_{d}"] = jax.random.normal(nxt(), (3, FEATS, HID)) * s
        p[f"gru_whh_{d}"] = jax.random.normal(nxt(), (3, HID, HID)) * s
        p[f"gru_bih_{d}"] = jax.random.normal(nxt(), (3, HID)) * s
        p[f"gru_bhh_{d}"] = jax.random.normal(nxt(), (3, HID)) * s
    # head: Dropout(0.1) (identity in eval) + Linear(FEATS, N_CLASSES)
    p["head_w"] = jax.random.normal(nxt(), (FEATS, N_CLASSES)) / jnp.sqrt(float(FEATS))
    p["head_b"] = 0.01 * jax.random.normal(nxt(), (N_CLASSES,))
    return jax.tree.map(lambda a: a.astype(jnp.float32), p)


def _build_m1(w1, s1):
    """Combined pad+im2col+conv1(+BN1 scale) matrix: (C_IN*IMG*IMG, P1*C1)."""
    w1n = np.asarray(w1)                              # (3,3,C_IN,C1) HWIO
    m1 = np.zeros((IN_FLAT, P1 * C1), np.float32)
    for i in range(H1):
        for j in range(H1):
            p = i * H1 + j
            for dy in range(3):
                for dx in range(3):
                    y = 2 * i + dy - 1
                    xx = 2 * j + dx - 1
                    if 0 <= y < IMG and 0 <= xx < IMG:
                        for cin in range(C_IN):
                            row = cin * IMG * IMG + y * IMG + xx   # NCHW flatten
                            m1[row, p * C1:(p + 1) * C1] += w1n[dy, dx, cin, :]
    m1 *= np.tile(np.asarray(s1).reshape(-1), P1)[None, :]
    return jnp.asarray(m1)


def _build_m2(w2, s2):
    """Combined gather+conv2(+BN scale) matrix: (P1*C1, P2*C2)."""
    w2n = np.asarray(w2)                              # (3,3,C1,C2) HWIO
    m2 = np.zeros((P1 * C1, P2 * C2), np.float32)
    for i in range(H2):
        for j in range(H2):
            p = i * H2 + j
            for dy in range(3):
                for dx in range(3):
                    hi = 2 * i + dy - 1
                    wi = 2 * j + dx - 1
                    if 0 <= hi < H1 and 0 <= wi < H1:
                        q = hi * H1 + wi
                        m2[q * C1:(q + 1) * C1, p * C2:(p + 1) * C2] += w2n[dy, dx]
    m2 *= np.tile(np.asarray(s2).reshape(-1), P2)[None, :]
    return jnp.asarray(m2)


def _build_wh(wh, sh):
    """Block-diagonal conv_head(+bn2 scale) matrix: (P2*C2, P2*FEATS)."""
    whn = np.asarray(wh) * np.asarray(sh).reshape(1, -1)   # (C2, FEATS)
    w = np.zeros((P2 * C2, P2 * FEATS), np.float32)
    for p in range(P2):
        w[p * C2:(p + 1) * C2, p * FEATS:(p + 1) * FEATS] = whn
    return jnp.asarray(w)


def _cat_gates(w3):   # (3, A, H) gate-stacked -> (A, 3H) laid out [r | z | n]
    return jnp.concatenate([w3[0], w3[1], w3[2]], axis=1)


def pack_params(p):
    """Fold BN stats/scales into the combined GEMM weights; pack GRU/head."""
    s1, b1 = fold_bn(p["bn1"])
    s2, b2 = fold_bn(p["bn2s"])
    shs, bhs = fold_bn(p["bn2"])

    m1 = _build_m1(p["conv1_w"], s1)
    m2 = _build_m2(p["conv2_w"], s2)
    wh = _build_wh(p["conv_head_w"], shs)
    pool = jnp.asarray(np.tile(np.eye(FEATS, dtype=np.float32), (P2, 1)) / float(P2))

    b1_full = jnp.tile(b1.reshape(-1), P1)[None, :]          # (1, P1*C1)
    b2_full = jnp.tile(b2.reshape(-1), P2)[None, :]          # (1, P2*C2)
    bh_full = jnp.tile(bhs.reshape(-1), P2)[None, :]         # (1, P2*FEATS)

    wih = jnp.concatenate([_cat_gates(p["gru_wih_f"]),
                           _cat_gates(p["gru_wih_b"])], axis=1)          # (F, 6H)
    bih = jnp.concatenate([p["gru_bih_f"].reshape(-1),
                           p["gru_bih_b"].reshape(-1)])[None, :]         # (1, 6H)
    whh_f = _cat_gates(p["gru_whh_f"])                                   # (H, 3H)
    whh_b = _cat_gates(p["gru_whh_b"])
    bhh_f = p["gru_bhh_f"].reshape(-1)[None, :]                          # (1, 3H)
    bhh_b = p["gru_bhh_b"].reshape(-1)[None, :]

    whead_f = jnp.zeros((HID, PAD_OUT), jnp.float32).at[:, :N_CLASSES].set(
        p["head_w"][:HID])
    whead_b = jnp.zeros((HID, PAD_OUT), jnp.float32).at[:, :N_CLASSES].set(
        p["head_w"][HID:])
    bhead = jnp.zeros((1, PAD_OUT), jnp.float32).at[0, :N_CLASSES].set(p["head_b"])

    packed = {
        "m1": m1, "b1": b1_full, "m2": m2, "b2": b2_full,
        "wh": wh, "bh": bh_full, "pool": pool,
        "wih": wih, "bih": bih,
        "whh_f": whh_f, "bhh_f": bhh_f, "whh_b": whh_b, "bhh_b": bhh_b,
        "whead_f": whead_f, "whead_b": whead_b, "bhead": bhead,
    }
    return jax.tree.map(lambda a: jnp.asarray(a, jnp.float32), packed)


# ----------------------- pure-JAX reference (for checking) -------------------
def reference_forward(params, x):
    with jax.default_matmul_precision("float32"):
        bs, t, c, h, w = x.shape
        xi = x.reshape(bs * t, c, h, w).transpose(0, 2, 3, 1)

        def conv_bn_silu(inp, wconv, bn):
            y = lax.conv_general_dilated(
                inp, wconv, window_strides=(2, 2), padding=[(1, 1), (1, 1)],
                dimension_numbers=("NHWC", "HWIO", "NHWC"))
            scale, shift = fold_bn(bn)
            y = y * scale[0] + shift[0]
            return y * jax.nn.sigmoid(y)

        y = conv_bn_silu(xi, params["conv1_w"], params["bn1"])
        y = conv_bn_silu(y, params["conv2_w"], params["bn2s"])
        y = jnp.einsum("nhwc,cd->nhwd", y, params["conv_head_w"])
        scale, shift = fold_bn(params["bn2"])
        y = y * scale[0] + shift[0]
        y = y * jax.nn.sigmoid(y)
        feat = y.mean(axis=(1, 2)).reshape(bs, t, FEATS)

        def run_dir(seq, wih, whh, bih, bhh, reverse):
            T_ = seq.shape[1]
            hstate = jnp.zeros((seq.shape[0], HID), jnp.float32)
            outs = [None] * T_
            order = range(T_ - 1, -1, -1) if reverse else range(T_)
            for ti in order:
                xt = seq[:, ti]
                r = jax.nn.sigmoid(xt @ wih[0] + bih[0] + hstate @ whh[0] + bhh[0])
                z = jax.nn.sigmoid(xt @ wih[1] + bih[1] + hstate @ whh[1] + bhh[1])
                n = jnp.tanh(xt @ wih[2] + bih[2] + r * (hstate @ whh[2] + bhh[2]))
                hstate = (1.0 - z) * n + z * hstate
                outs[ti] = hstate
            return jnp.stack(outs, axis=1)

        of = run_dir(feat, params["gru_wih_f"], params["gru_whh_f"],
                     params["gru_bih_f"], params["gru_bhh_f"], reverse=False)
        ob = run_dir(feat, params["gru_wih_b"], params["gru_whh_b"],
                     params["gru_bih_b"], params["gru_bhh_b"], reverse=True)
        g = jnp.concatenate([of, ob], axis=-1)
        return g @ params["head_w"] + params["head_b"]


# ------------------------------- main ----------------------------------------
if __name__ == "__main__":
    key = jax.random.PRNGKey(0)
    k_x, k_p = jax.random.split(key)
    x = jax.random.normal(k_x, (BS, NSLICE, C_IN, IMG, IMG), dtype=jnp.float32)
    params = init_params(k_p)
    packed = pack_params(params)

    # Per-generation grid strategy: v7x has 2 TensorCores -> 2-way parallel
    # batch split; v5e/v6e are single-TC -> one program, batch folded into rows.
    cores = _tensorcores_per_chip()
    n_prog = cores if (cores > 1 and BS % cores == 0) else 1
    nb = BS // n_prog
    forward = _make_forward(n_prog, nb)

    out = jax.block_until_ready(forward(packed, x))
    assert out.shape == (BS, NSLICE, N_CLASSES), out.shape
    assert bool(jnp.all(jnp.isfinite(out)))

    ref = jax.block_until_ready(reference_forward(params, x))
    max_err = float(jnp.max(jnp.abs(out - ref)))
    assert max_err < 5e-2, f"mismatch vs pure-JAX reference: {max_err}"

    print("KERNEL_OK")
</pallas_src>

<mosaic_0001>
module attributes {stable_mosaic.version = 11 : i64} {
  func.func @kernel(%arg0: i32, %arg1: memref<2x4x768xf32, #tpu.memory_space<vmem>>, %arg2: memref<768x1024xf32, #tpu.memory_space<vmem>>, %arg3: memref<1x1024xf32, #tpu.memory_space<vmem>>, %arg4: memref<1024x512xf32, #tpu.memory_space<vmem>>, %arg5: memref<1x512xf32, #tpu.memory_space<vmem>>, %arg6: memref<512x1024xf32, #tpu.memory_space<vmem>>, %arg7: memref<1x1024xf32, #tpu.memory_space<vmem>>, %arg8: memref<1024x64xf32, #tpu.memory_space<vmem>>, %arg9: memref<64x192xf32, #tpu.memory_space<vmem>>, %arg10: memref<1x192xf32, #tpu.memory_space<vmem>>, %arg11: memref<32x96xf32, #tpu.memory_space<vmem>>, %arg12: memref<1x96xf32, #tpu.memory_space<vmem>>, %arg13: memref<32x96xf32, #tpu.memory_space<vmem>>, %arg14: memref<1x96xf32, #tpu.memory_space<vmem>>, %arg15: memref<32x128xf32, #tpu.memory_space<vmem>>, %arg16: memref<32x128xf32, #tpu.memory_space<vmem>>, %arg17: memref<1x128xf32, #tpu.memory_space<vmem>>, %arg18: memref<2x4x128xf32, #tpu.memory_space<vmem>>) attributes {dimension_semantics = [#tpu.dimension_semantics<arbitrary>], iteration_bounds = array<i64: 1>, scalar_prefetch = 0 : i64, scratch_operands = 0 : i64, tpu.core_type = #tpu.core_type<tc>, window_params = [{transform_indices = @transform_0, window_bounds = array<i64: 2, 4, 768>}, {pipeline_mode = #tpu.pipeline_mode<synchronous>, transform_indices = @transform_1, window_bounds = array<i64: 768, 1024>}, {pipeline_mode = #tpu.pipeline_mode<synchronous>, transform_indices = @transform_2, window_bounds = array<i64: 1, 1024>}, {pipeline_mode = #tpu.pipeline_mode<synchronous>, transform_indices = @transform_3, window_bounds = array<i64: 1024, 512>}, {pipeline_mode = #tpu.pipeline_mode<synchronous>, transform_indices = @transform_4, window_bounds = array<i64: 1, 512>}, {pipeline_mode = #tpu.pipeline_mode<synchronous>, transform_indices = @transform_5, window_bounds = array<i64: 512, 1024>}, {pipeline_mode = #tpu.pipeline_mode<synchronous>, transform_indices = @transform_6, window_bounds = array<i64: 1, 1024>}, {pipeline_mode = #tpu.pipeline_mode<synchronous>, transform_indices = @transform_7, window_bounds = array<i64: 1024, 64>}, {pipeline_mode = #tpu.pipeline_mode<synchronous>, transform_indices = @transform_8, window_bounds = array<i64: 64, 192>}, {pipeline_mode = #tpu.pipeline_mode<synchronous>, transform_indices = @transform_9, window_bounds = array<i64: 1, 192>}, {pipeline_mode = #tpu.pipeline_mode<synchronous>, transform_indices = @transform_10, window_bounds = array<i64: 32, 96>}, {pipeline_mode = #tpu.pipeline_mode<synchronous>, transform_indices = @transform_11, window_bounds = array<i64: 1, 96>}, {pipeline_mode = #tpu.pipeline_mode<synchronous>, transform_indices = @transform_12, window_bounds = array<i64: 32, 96>}, {pipeline_mode = #tpu.pipeline_mode<synchronous>, transform_indices = @transform_13, window_bounds = array<i64: 1, 96>}, {pipeline_mode = #tpu.pipeline_mode<synchronous>, transform_indices = @transform_14, window_bounds = array<i64: 32, 128>}, {pipeline_mode = #tpu.pipeline_mode<synchronous>, transform_indices = @transform_15, window_bounds = array<i64: 32, 128>}, {pipeline_mode = #tpu.pipeline_mode<synchronous>, transform_indices = @transform_16, window_bounds = array<i64: 1, 128>}, {transform_indices = @transform_17, window_bounds = array<i64: 2, 4, 128>}]} {
    %c0 = arith.constant 0 : index
    %c0_0 = arith.constant 0 : index
    %c0_1 = arith.constant 0 : index
    %0 = vector.load %arg1[%c0, %c0_0, %c0_1] : memref<2x4x768xf32, #tpu.memory_space<vmem>>, vector<2x4x768xf32>
    %1 = vector.shape_cast %0 : vector<2x4x768xf32> to vector<8x768xf32>
    %c0_2 = arith.constant 0 : index
    %c0_3 = arith.constant 0 : index
    %2 = vector.load %arg2[%c0_2, %c0_3] : memref<768x1024xf32, #tpu.memory_space<vmem>>, vector<768x1024xf32>
    %cst = arith.constant dense<0.000000e+00> : vector<8x1024xf32>
    %3 = tpu.matmul %1, %2, %cst {dimension_numbers = #tpu.dot_dimension_numbers<[1], [0], [0], [1], [0, 0, 1, 1], [], []>} : vector<8x768xf32>, vector<768x1024xf32>, vector<8x1024xf32> -> vector<8x1024xf32>
    %c0_4 = arith.constant 0 : index
    %c0_5 = arith.constant 0 : index
    %4 = vector.load %arg3[%c0_4, %c0_5] : memref<1x1024xf32, #tpu.memory_space<vmem>>, vector<1x1024xf32>
    %5 = vector.broadcast %4 : vector<1x1024xf32> to vector<8x1024xf32>
    %6 = arith.addf %3, %5 : vector<8x1024xf32>
    %7 = arith.negf %6 : vector<8x1024xf32>
    %8 = math.exp %7 : vector<8x1024xf32>
    %cst_6 = arith.constant 1.000000e+00 : f32
    %9 = vector.broadcast %cst_6 : f32 to vector<8x1024xf32>
    %10 = arith.addf %9, %8 : vector<8x1024xf32>
    %11 = arith.divf %9, %10 : vector<8x1024xf32>
    %12 = arith.mulf %6, %11 : vector<8x1024xf32>
    %c0_7 = arith.constant 0 : index
    %c0_8 = arith.constant 0 : index
    %13 = vector.load %arg4[%c0_7, %c0_8] : memref<1024x512xf32, #tpu.memory_space<vmem>>, vector<1024x512xf32>
    %cst_9 = arith.constant dense<0.000000e+00> : vector<8x512xf32>
    %14 = tpu.matmul %12, %13, %cst_9 {dimension_numbers = #tpu.dot_dimension_numbers<[1], [0], [0], [1], [0, 0, 1, 1], [], []>} : vector<8x1024xf32>, vector<1024x512xf32>, vector<8x512xf32> -> vector<8x512xf32>
    %c0_10 = arith.constant 0 : index
    %c0_11 = arith.constant 0 : index
    %15 = vector.load %arg5[%c0_10, %c0_11] : memref<1x512xf32, #tpu.memory_space<vmem>>, vector<1x512xf32>
    %16 = vector.broadcast %15 : vector<1x512xf32> to vector<8x512xf32>
    %17 = arith.addf %14, %16 : vector<8x512xf32>
    %18 = arith.negf %17 : vector<8x512xf32>
    %19 = math.exp %18 : vector<8x512xf32>
    %cst_12 = arith.constant 1.000000e+00 : f32
    %20 = vector.broadcast %cst_12 : f32 to vector<8x512xf32>
    %21 = arith.addf %20, %19 : vector<8x512xf32>
    %22 = arith.divf %20, %21 : vector<8x512xf32>
    %23 = arith.mulf %17, %22 : vector<8x512xf32>
    %c0_13 = arith.constant 0 : index
    %c0_14 = arith.constant 0 : index
    %24 = vector.load %arg6[%c0_13, %c0_14] : memref<512x1024xf32, #tpu.memory_space<vmem>>, vector<512x1024xf32>
    %cst_15 = arith.constant dense<0.000000e+00> : vector<8x1024xf32>
    %25 = tpu.matmul %23, %24, %cst_15 {dimension_numbers = #tpu.dot_dimension_numbers<[1], [0], [0], [1], [0, 0, 1, 1], [], []>} : vector<8x512xf32>, vector<512x1024xf32>, vector<8x1024xf32> -> vector<8x1024xf32>
    %c0_16 = arith.constant 0 : index
    %c0_17 = arith.constant 0 : index
    %26 = vector.load %arg7[%c0_16, %c0_17] : memref<1x1024xf32, #tpu.memory_space<vmem>>, vector<1x1024xf32>
    %27 = vector.broadcast %26 : vector<1x1024xf32> to vector<8x1024xf32>
    %28 = arith.addf %25, %27 : vector<8x1024xf32>
    %29 = arith.negf %28 : vector<8x1024xf32>
    %30 = math.exp %29 : vector<8x1024xf32>
    %cst_18 = arith.constant 1.000000e+00 : f32
    %31 = vector.broadcast %cst_18 : f32 to vector<8x1024xf32>
    %32 = arith.addf %31, %30 : vector<8x1024xf32>
    %33 = arith.divf %31, %32 : vector<8x1024xf32>
    %34 = arith.mulf %28, %33 : vector<8x1024xf32>
    %c0_19 = arith.constant 0 : index
    %c0_20 = arith.constant 0 : index
    %35 = vector.load %arg8[%c0_19, %c0_20] : memref<1024x64xf32, #tpu.memory_space<vmem>>, vector<1024x64xf32>
    %cst_21 = arith.constant dense<0.000000e+00> : vector<8x64xf32>
    %36 = tpu.matmul %34, %35, %cst_21 {dimension_numbers = #tpu.dot_dimension_numbers<[1], [0], [0], [1], [0, 0, 1, 1], [], []>} : vector<8x1024xf32>, vector<1024x64xf32>, vector<8x64xf32> -> vector<8x64xf32>
    %c0_22 = arith.constant 0 : index
    %c0_23 = arith.constant 0 : index
    %37 = vector.load %arg9[%c0_22, %c0_23] : memref<64x192xf32, #tpu.memory_space<vmem>>, vector<64x192xf32>
    %cst_24 = arith.constant dense<0.000000e+00> : vector<8x192xf32>
    %38 = tpu.matmul %36, %37, %cst_24 {dimension_numbers = #tpu.dot_dimension_numbers<[1], [0], [0], [1], [0, 0, 1, 1], [], []>} : vector<8x64xf32>, vector<64x192xf32>, vector<8x192xf32> -> vector<8x192xf32>
    %c0_25 = arith.constant 0 : index
    %c0_26 = arith.constant 0 : index
    %39 = vector.load %arg10[%c0_25, %c0_26] : memref<1x192xf32, #tpu.memory_space<vmem>>, vector<1x192xf32>
    %40 = vector.broadcast %39 : vector<1x192xf32> to vector<8x192xf32>
    %41 = arith.addf %38, %40 : vector<8x192xf32>
    %c0_27 = arith.constant 0 : index
    %c0_28 = arith.constant 0 : index
    %42 = vector.load %arg11[%c0_27, %c0_28] : memref<32x96xf32, #tpu.memory_space<vmem>>, vector<32x96xf32>
    %c0_29 = arith.constant 0 : index
    %c0_30 = arith.constant 0 : index
    %43 = vector.load %arg13[%c0_29, %c0_30] : memref<32x96xf32, #tpu.memory_space<vmem>>, vector<32x96xf32>
    %c0_31 = arith.constant 0 : index
    %c0_32 = arith.constant 0 : index
    %44 = vector.load %arg12[%c0_31, %c0_32] : memref<1x96xf32, #tpu.memory_space<vmem>>, vector<1x96xf32>
    %c0_33 = arith.constant 0 : index
    %c0_34 = arith.constant 0 : index
    %45 = vector.load %arg14[%c0_33, %c0_34] : memref<1x96xf32, #tpu.memory_space<vmem>>, vector<1x96xf32>
    %46 = vector.extract_strided_slice %41 {offsets = [0, 0], sizes = [4, 192], strides = [1, 1]} : vector<8x192xf32> to vector<4x192xf32>
    %cst_35 = arith.constant 0.000000e+00 : f32
    %47 = vector.broadcast %cst_35 : f32 to vector<1x32xf32>
    %cst_36 = arith.constant 0.000000e+00 : f32
    %48 = vector.broadcast %cst_36 : f32 to vector<1x32xf32>
    %cst_37 = arith.constant dense<0.000000e+00> : vector<1x96xf32>
    %49 = tpu.matmul %47, %42, %cst_37 {dimension_numbers = #tpu.dot_dimension_numbers<[1], [0], [0], [1], [0, 0, 1, 1], [], []>} : vector<1x32xf32>, vector<32x96xf32>, vector<1x96xf32> -> vector<1x96xf32>
    %50 = arith.addf %49, %44 : vector<1x96xf32>
    %cst_38 = arith.constant dense<0.000000e+00> : vector<1x96xf32>
    %51 = tpu.matmul %48, %43, %cst_38 {dimension_numbers = #tpu.dot_dimension_numbers<[1], [0], [0], [1], [0, 0, 1, 1], [], []>} : vector<1x32xf32>, vector<32x96xf32>, vector<1x96xf32> -> vector<1x96xf32>
    %52 = arith.addf %51, %45 : vector<1x96xf32>
    %53 = vector.extract_strided_slice %46 {offsets = [0, 0], sizes = [1, 96], strides = [1, 1]} : vector<4x192xf32> to vector<1x96xf32>
    %54 = vector.extract_strided_slice %53 {offsets = [0, 0], sizes = [1, 32], strides = [1, 1]} : vector<1x96xf32> to vector<1x32xf32>
    %55 = vector.extract_strided_slice %50 {offsets = [0, 0], sizes = [1, 32], strides = [1, 1]} : vector<1x96xf32> to vector<1x32xf32>
    %56 = arith.addf %54, %55 : vector<1x32xf32>
    %57 = arith.negf %56 : vector<1x32xf32>
    %58 = math.exp %57 : vector<1x32xf32>
    %cst_39 = arith.constant 1.000000e+00 : f32
    %59 = vector.broadcast %cst_39 : f32 to vector<1x32xf32>
    %60 = arith.addf %59, %58 : vector<1x32xf32>
    %61 = arith.divf %59, %60 : vector<1x32xf32>
    %62 = vector.extract_strided_slice %53 {offsets = [0, 32], sizes = [1, 32], strides = [1, 1]} : vector<1x96xf32> to vector<1x32xf32>
    %63 = vector.extract_strided_slice %50 {offsets = [0, 32], sizes = [1, 32], strides = [1, 1]} : vector<1x96xf32> to vector<1x32xf32>
    %64 = arith.addf %62, %63 : vector<1x32xf32>
    %65 = arith.negf %64 : vector<1x32xf32>
    %66 = math.exp %65 : vector<1x32xf32>
    %cst_40 = arith.constant 1.000000e+00 : f32
    %67 = vector.broadcast %cst_40 : f32 to vector<1x32xf32>
    %68 = arith.addf %67, %66 : vector<1x32xf32>
    %69 = arith.divf %67, %68 : vector<1x32xf32>
    %70 = vector.extract_strided_slice %53 {offsets = [0, 64], sizes = [1, 32], strides = [1, 1]} : vector<1x96xf32> to vector<1x32xf32>
    %71 = vector.extract_strided_slice %50 {offsets = [0, 64], sizes = [1, 32], strides = [1, 1]} : vector<1x96xf32> to vector<1x32xf32>
    %72 = arith.mulf %61, %71 : vector<1x32xf32>
    %73 = arith.addf %70, %72 : vector<1x32xf32>
    %74 = math.tanh %73 : vector<1x32xf32>
    %cst_41 = arith.constant 1.000000e+00 : f32
    %75 = vector.broadcast %cst_41 : f32 to vector<1x32xf32>
    %76 = arith.subf %75, %69 : vector<1x32xf32>
    %77 = arith.mulf %76, %74 : vector<1x32xf32>
    %78 = arith.mulf %69, %47 : vector<1x32xf32>
    %79 = arith.addf %77, %78 : vector<1x32xf32>
    %80 = vector.extract_strided_slice %46 {offsets = [3, 96], sizes = [1, 96], strides = [1, 1]} : vector<4x192xf32> to vector<1x96xf32>
    %81 = vector.extract_strided_slice %80 {offsets = [0, 0], sizes = [1, 32], strides = [1, 1]} : vector<1x96xf32> to vector<1x32xf32>
    %82 = vector.extract_strided_slice %52 {offsets = [0, 0], sizes = [1, 32], strides = [1, 1]} : vector<1x96xf32> to vector<1x32xf32>
    %83 = arith.addf %81, %82 : vector<1x32xf32>
    %84 = arith.negf %83 : vector<1x32xf32>
    %85 = math.exp %84 : vector<1x32xf32>
    %cst_42 = arith.constant 1.000000e+00 : f32
    %86 = vector.broadcast %cst_42 : f32 to vector<1x32xf32>
    %87 = arith.addf %86, %85 : vector<1x32xf32>
    %88 = arith.divf %86, %87 : vector<1x32xf32>
    %89 = vector.extract_strided_slice %80 {offsets = [0, 32], sizes = [1, 32], strides = [1, 1]} : vector<1x96xf32> to vector<1x32xf32>
    %90 = vector.extract_strided_slice %52 {offsets = [0, 32], sizes = [1, 32], strides = [1, 1]} : vector<1x96xf32> to vector<1x32xf32>
    %91 = arith.addf %89, %90 : vector<1x32xf32>
    %92 = arith.negf %91 : vector<1x32xf32>
    %93 = math.exp %92 : vector<1x32xf32>
    %cst_43 = arith.constant 1.000000e+00 : f32
    %94 = vector.broadcast %cst_43 : f32 to vector<1x32xf32>
    %95 = arith.addf %94, %93 : vector<1x32xf32>
    %96 = arith.divf %94, %95 : vector<1x32xf32>
    %97 = vector.extract_strided_slice %80 {offsets = [0, 64], sizes = [1, 32], strides = [1, 1]} : vector<1x96xf32> to vector<1x32xf32>
    %98 = vector.extract_strided_slice %52 {offsets = [0, 64], sizes = [1, 32], strides = [1, 1]} : vector<1x96xf32> to vector<1x32xf32>
    %99 = arith.mulf %88, %98 : vector<1x32xf32>
    %100 = arith.addf %97, %99 : vector<1x32xf32>
    %101 = math.tanh %100 : vector<1x32xf32>
    %cst_44 = arith.constant 1.000000e+00 : f32
    %102 = vector.broadcast %cst_44 : f32 to vector<1x32xf32>
    %103 = arith.subf %102, %96 : vector<1x32xf32>
    %104 = arith.mulf %103, %101 : vector<1x32xf32>
    %105 = arith.mulf %96, %48 : vector<1x32xf32>
    %106 = arith.addf %104, %105 : vector<1x32xf32>
    %cst_45 = arith.constant dense<0.000000e+00> : vector<1x96xf32>
    %107 = tpu.matmul %79, %42, %cst_45 {dimension_numbers = #tpu.dot_dimension_numbers<[1], [0], [0], [1], [0, 0, 1, 1], [], []>} : vector<1x32xf32>, vector<32x96xf32>, vector<1x96xf32> -> vector<1x96xf32>
    %108 = arith.addf %107, %44 : vector<1x96xf32>
    %cst_46 = arith.constant dense<0.000000e+00> : vector<1x96xf32>
    %109 = tpu.matmul %106, %43, %cst_46 {dimension_numbers = #tpu.dot_dimension_numbers<[1], [0], [0], [1], [0, 0, 1, 1], [], []>} : vector<1x32xf32>, vector<32x96xf32>, vector<1x96xf32> -> vector<1x96xf32>
    %110 = arith.addf %109, %45 : vector<1x96xf32>
    %111 = vector.extract_strided_slice %46 {offsets = [1, 0], sizes = [1, 96], strides = [1, 1]} : vector<4x192xf32> to vector<1x96xf32>
    %112 = vector.extract_strided_slice %111 {offsets = [0, 0], sizes = [1, 32], strides = [1, 1]} : vector<1x96xf32> to vector<1x32xf32>
    %113 = vector.extract_strided_slice %108 {offsets = [0, 0], sizes = [1, 32], strides = [1, 1]} : vector<1x96xf32> to vector<1x32xf32>
    %114 = arith.addf %112, %113 : vector<1x32xf32>
    %115 = arith.negf %114 : vector<1x32xf32>
    %116 = math.exp %115 : vector<1x32xf32>
    %cst_47 = arith.constant 1.000000e+00 : f32
    %117 = vector.broadcast %cst_47 : f32 to vector<1x32xf32>
    %118 = arith.addf %117, %116 : vector<1x32xf32>
    %119 = arith.divf %117, %118 : vector<1x32xf32>
    %120 = vector.extract_strided_slice %111 {offsets = [0, 32], sizes = [1, 32], strides = [1, 1]} : vector<1x96xf32> to vector<1x32xf32>
    %121 = vector.extract_strided_slice %108 {offsets = [0, 32], sizes = [1, 32], strides = [1, 1]} : vector<1x96xf32> to vector<1x32xf32>
    %122 = arith.addf %120, %121 : vector<1x32xf32>
    %123 = arith.negf %122 : vector<1x32xf32>
    %124 = math.exp %123 : vector<1x32xf32>
    %cst_48 = arith.constant 1.000000e+00 : f32
    %125 = vector.broadcast %cst_48 : f32 to vector<1x32xf32>
    %126 = arith.addf %125, %124 : vector<1x32xf32>
    %127 = arith.divf %125, %126 : vector<1x32xf32>
    %128 = vector.extract_strided_slice %111 {offsets = [0, 64], sizes = [1, 32], strides = [1, 1]} : vector<1x96xf32> to vector<1x32xf32>
    %129 = vector.extract_strided_slice %108 {offsets = [0, 64], sizes = [1, 32], strides = [1, 1]} : vector<1x96xf32> to vector<1x32xf32>
    %130 = arith.mulf %119, %129 : vector<1x32xf32>
    %131 = arith.addf %128, %130 : vector<1x32xf32>
    %132 = math.tanh %131 : vector<1x32xf32>
    %cst_49 = arith.constant 1.000000e+00 : f32
    %133 = vector.broadcast %cst_49 : f32 to vector<1x32xf32>
    %134 = arith.subf %133, %127 : vector<1x32xf32>
    %135 = arith.mulf %134, %132 : vector<1x32xf32>
    %136 = arith.mulf %127, %79 : vector<1x32xf32>
    %137 = arith.addf %135, %136 : vector<1x32xf32>
    %138 = vector.extract_strided_slice %46 {offsets = [2, 96], sizes = [1, 96], strides = [1, 1]} : vector<4x192xf32> to vector<1x96xf32>
    %139 = vector.extract_strided_slice %138 {offsets = [0, 0], sizes = [1, 32], strides = [1, 1]} : vector<1x96xf32> to vector<1x32xf32>
    %140 = vector.extract_strided_slice %110 {offsets = [0, 0], sizes = [1, 32], strides = [1, 1]} : vector<1x96xf32> to vector<1x32xf32>
    %141 = arith.addf %139, %140 : vector<1x32xf32>
    %142 = arith.negf %141 : vector<1x32xf32>
    %143 = math.exp %142 : vector<1x32xf32>
    %cst_50 = arith.constant 1.000000e+00 : f32
    %144 = vector.broadcast %cst_50 : f32 to vector<1x32xf32>
    %145 = arith.addf %144, %143 : vector<1x32xf32>
    %146 = arith.divf %144, %145 : vector<1x32xf32>
    %147 = vector.extract_strided_slice %138 {offsets = [0, 32], sizes = [1, 32], strides = [1, 1]} : vector<1x96xf32> to vector<1x32xf32>
    %148 = vector.extract_strided_slice %110 {offsets = [0, 32], sizes = [1, 32], strides = [1, 1]} : vector<1x96xf32> to vector<1x32xf32>
    %149 = arith.addf %147, %148 : vector<1x32xf32>
    %150 = arith.negf %149 : vector<1x32xf32>
    %151 = math.exp %150 : vector<1x32xf32>
    %cst_51 = arith.constant 1.000000e+00 : f32
    %152 = vector.broadcast %cst_51 : f32 to vector<1x32xf32>
    %153 = arith.addf %152, %151 : vector<1x32xf32>
    %154 = arith.divf %152, %153 : vector<1x32xf32>
    %155 = vector.extract_strided_slice %138 {offsets = [0, 64], sizes = [1, 32], strides = [1, 1]} : vector<1x96xf32> to vector<1x32xf32>
    %156 = vector.extract_strided_slice %110 {offsets = [0, 64], sizes = [1, 32], strides = [1, 1]} : vector<1x96xf32> to vector<1x32xf32>
    %157 = arith.mulf %146, %156 : vector<1x32xf32>
    %158 = arith.addf %155, %157 : vector<1x32xf32>
    %159 = math.tanh %158 : vector<1x32xf32>
    %cst_52 = arith.constant 1.000000e+00 : f32
    %160 = vector.broadcast %cst_52 : f32 to vector<1x32xf32>
    %161 = arith.subf %160, %154 : vector<1x32xf32>
    %162 = arith.mulf %161, %159 : vector<1x32xf32>
    %163 = arith.mulf %154, %106 : vector<1x32xf32>
    %164 = arith.addf %162, %163 : vector<1x32xf32>
    %cst_53 = arith.constant dense<0.000000e+00> : vector<1x96xf32>
    %165 = tpu.matmul %137, %42, %cst_53 {dimension_numbers = #tpu.dot_dimension_numbers<[1], [0], [0], [1], [0, 0, 1, 1], [], []>} : vector<1x32xf32>, vector<32x96xf32>, vector<1x96xf32> -> vector<1x96xf32>
    %166 = arith.addf %165, %44 : vector<1x96xf32>
    %cst_54 = arith.constant dense<0.000000e+00> : vector<1x96xf32>
    %167 = tpu.matmul %164, %43, %cst_54 {dimension_numbers = #tpu.dot_dimension_numbers<[1], [0], [0], [1], [0, 0, 1, 1], [], []>} : vector<1x32xf32>, vector<32x96xf32>, vector<1x96xf32> -> vector<1x96xf32>
    %168 = arith.addf %167, %45 : vector<1x96xf32>
    %169 = vector.extract_strided_slice %46 {offsets = [2, 0], sizes = [1, 96], strides = [1, 1]} : vector<4x192xf32> to vector<1x96xf32>
    %170 = vector.extract_strided_slice %169 {offsets = [0, 0], sizes = [1, 32], strides = [1, 1]} : vector<1x96xf32> to vector<1x32xf32>
    %171 = vector.extract_strided_slice %166 {offsets = [0, 0], sizes = [1, 32], strides = [1, 1]} : vector<1x96xf32> to vector<1x32xf32>
    %172 = arith.addf %170, %171 : vector<1x32xf32>
    %173 = arith.negf %172 : vector<1x32xf32>
    %174 = math.exp %173 : vector<1x32xf32>
    %cst_55 = arith.constant 1.000000e+00 : f32
    %175 = vector.broadcast %cst_55 : f32 to vector<1x32xf32>
    %176 = arith.addf %175, %174 : vector<1x32xf32>
    %177 = arith.divf %175, %176 : vector<1x32xf32>
    %178 = vector.extract_strided_slice %169 {offsets = [0, 32], sizes = [1, 32], strides = [1, 1]} : vector<1x96xf32> to vector<1x32xf32>
    %179 = vector.extract_strided_slice %166 {offsets = [0, 32], sizes = [1, 32], strides = [1, 1]} : vector<1x96xf32> to vector<1x32xf32>
    %180 = arith.addf %178, %179 : vector<1x32xf32>
    %181 = arith.negf %180 : vector<1x32xf32>
    %182 = math.exp %181 : vector<1x32xf32>
    %cst_56 = arith.constant 1.000000e+00 : f32
    %183 = vector.broadcast %cst_56 : f32 to vector<1x32xf32>
    %184 = arith.addf %183, %182 : vector<1x32xf32>
    %185 = arith.divf %183, %184 : vector<1x32xf32>
    %186 = vector.extract_strided_slice %169 {offsets = [0, 64], sizes = [1, 32], strides = [1, 1]} : vector<1x96xf32> to vector<1x32xf32>
    %187 = vector.extract_strided_slice %166 {offsets = [0, 64], sizes = [1, 32], strides = [1, 1]} : vector<1x96xf32> to vector<1x32xf32>
    %188 = arith.mulf %177, %187 : vector<1x32xf32>
    %189 = arith.addf %186, %188 : vector<1x32xf32>
    %190 = math.tanh %189 : vector<1x32xf32>
    %cst_57 = arith.constant 1.000000e+00 : f32
    %191 = vector.broadcast %cst_57 : f32 to vector<1x32xf32>
    %192 = arith.subf %191, %185 : vector<1x32xf32>
    %193 = arith.mulf %192, %190 : vector<1x32xf32>
    %194 = arith.mulf %185, %137 : vector<1x32xf32>
    %195 = arith.addf %193, %194 : vector<1x32xf32>
    %196 = vector.extract_strided_slice %46 {offsets = [1, 96], sizes = [1, 96], strides = [1, 1]} : vector<4x192xf32> to vector<1x96xf32>
    %197 = vector.extract_strided_slice %196 {offsets = [0, 0], sizes = [1, 32], strides = [1, 1]} : vector<1x96xf32> to vector<1x32xf32>
    %198 = vector.extract_strided_slice %168 {offsets = [0, 0], sizes = [1, 32], strides = [1, 1]} : vector<1x96xf32> to vector<1x32xf32>
    %199 = arith.addf %197, %198 : vector<1x32xf32>
    %200 = arith.negf %199 : vector<1x32xf32>
    %201 = math.exp %200 : vector<1x32xf32>
    %cst_58 = arith.constant 1.000000e+00 : f32
    %202 = vector.broadcast %cst_58 : f32 to vector<1x32xf32>
    %203 = arith.addf %202, %201 : vector<1x32xf32>
    %204 = arith.divf %202, %203 : vector<1x32xf32>
    %205 = vector.extract_strided_slice %196 {offsets = [0, 32], sizes = [1, 32], strides = [1, 1]} : vector<1x96xf32> to vector<1x32xf32>
    %206 = vector.extract_strided_slice %168 {offsets = [0, 32], sizes = [1, 32], strides = [1, 1]} : vector<1x96xf32> to vector<1x32xf32>
    %207 = arith.addf %205, %206 : vector<1x32xf32>
    %208 = arith.negf %207 : vector<1x32xf32>
    %209 = math.exp %208 : vector<1x32xf32>
    %cst_59 = arith.constant 1.000000e+00 : f32
    %210 = vector.broadcast %cst_59 : f32 to vector<1x32xf32>
    %211 = arith.addf %210, %209 : vector<1x32xf32>
    %212 = arith.divf %210, %211 : vector<1x32xf32>
    %213 = vector.extract_strided_slice %196 {offsets = [0, 64], sizes = [1, 32], strides = [1, 1]} : vector<1x96xf32> to vector<1x32xf32>
    %214 = vector.extract_strided_slice %168 {offsets = [0, 64], sizes = [1, 32], strides = [1, 1]} : vector<1x96xf32> to vector<1x32xf32>
    %215 = arith.mulf %204, %214 : vector<1x32xf32>
    %216 = arith.addf %213, %215 : vector<1x32xf32>
    %217 = math.tanh %216 : vector<1x32xf32>
    %cst_60 = arith.constant 1.000000e+00 : f32
    %218 = vector.broadcast %cst_60 : f32 to vector<1x32xf32>
    %219 = arith.subf %218, %212 : vector<1x32xf32>
    %220 = arith.mulf %219, %217 : vector<1x32xf32>
    %221 = arith.mulf %212, %164 : vector<1x32xf32>
    %222 = arith.addf %220, %221 : vector<1x32xf32>
    %cst_61 = arith.constant dense<0.000000e+00> : vector<1x96xf32>
    %223 = tpu.matmul %195, %42, %cst_61 {dimension_numbers = #tpu.dot_dimension_numbers<[1], [0], [0], [1], [0, 0, 1, 1], [], []>} : vector<1x32xf32>, vector<32x96xf32>, vector<1x96xf32> -> vector<1x96xf32>
    %224 = arith.addf %223, %44 : vector<1x96xf32>
    %cst_62 = arith.constant dense<0.000000e+00> : vector<1x96xf32>
    %225 = tpu.matmul %222, %43, %cst_62 {dimension_numbers = #tpu.dot_dimension_numbers<[1], [0], [0], [1], [0, 0, 1, 1], [], []>} : vector<1x32xf32>, vector<32x96xf32>, vector<1x96xf32> -> vector<1x96xf32>
    %226 = arith.addf %225, %45 : vector<1x96xf32>
    %227 = vector.extract_strided_slice %46 {offsets = [3, 0], sizes = [1, 96], strides = [1, 1]} : vector<4x192xf32> to vector<1x96xf32>
    %228 = vector.extract_strided_slice %227 {offsets = [0, 0], sizes = [1, 32], strides = [1, 1]} : vector<1x96xf32> to vector<1x32xf32>
    %229 = vector.extract_strided_slice %224 {offsets = [0, 0], sizes = [1, 32], strides = [1, 1]} : vector<1x96xf32> to vector<1x32xf32>
    %230 = arith.addf %228, %229 : vector<1x32xf32>
    %231 = arith.negf %230 : vector<1x32xf32>
    %232 = math.exp %231 : vector<1x32xf32>
    %cst_63 = arith.constant 1.000000e+00 : f32
    %233 = vector.broadcast %cst_63 : f32 to vector<1x32xf32>
    %234 = arith.addf %233, %232 : vector<1x32xf32>
    %235 = arith.divf %233, %234 : vector<1x32xf32>
    %236 = vector.extract_strided_slice %227 {offsets = [0, 32], sizes = [1, 32], strides = [1, 1]} : vector<1x96xf32> to vector<1x32xf32>
    %237 = vector.extract_strided_slice %224 {offsets = [0, 32], sizes = [1, 32], strides = [1, 1]} : vector<1x96xf32> to vector<1x32xf32>
    %238 = arith.addf %236, %237 : vector<1x32xf32>
    %239 = arith.negf %238 : vector<1x32xf32>
    %240 = math.exp %239 : vector<1x32xf32>
    %cst_64 = arith.constant 1.000000e+00 : f32
    %241 = vector.broadcast %cst_64 : f32 to vector<1x32xf32>
    %242 = arith.addf %241, %240 : vector<1x32xf32>
    %243 = arith.divf %241, %242 : vector<1x32xf32>
    %244 = vector.extract_strided_slice %227 {offsets = [0, 64], sizes = [1, 32], strides = [1, 1]} : vector<1x96xf32> to vector<1x32xf32>
    %245 = vector.extract_strided_slice %224 {offsets = [0, 64], sizes = [1, 32], strides = [1, 1]} : vector<1x96xf32> to vector<1x32xf32>
    %246 = arith.mulf %235, %245 : vector<1x32xf32>
    %247 = arith.addf %244, %246 : vector<1x32xf32>
    %248 = math.tanh %247 : vector<1x32xf32>
    %cst_65 = arith.constant 1.000000e+00 : f32
    %249 = vector.broadcast %cst_65 : f32 to vector<1x32xf32>
    %250 = arith.subf %249, %243 : vector<1x32xf32>
    %251 = arith.mulf %250, %248 : vector<1x32xf32>
    %252 = arith.mulf %243, %195 : vector<1x32xf32>
    %253 = arith.addf %251, %252 : vector<1x32xf32>
    %254 = vector.extract_strided_slice %46 {offsets = [0, 96], sizes = [1, 96], strides = [1, 1]} : vector<4x192xf32> to vector<1x96xf32>
    %255 = vector.extract_strided_slice %254 {offsets = [0, 0], sizes = [1, 32], strides = [1, 1]} : vector<1x96xf32> to vector<1x32xf32>
    %256 = vector.extract_strided_slice %226 {offsets = [0, 0], sizes = [1, 32], strides = [1, 1]} : vector<1x96xf32> to vector<1x32xf32>
    %257 = arith.addf %255, %256 : vector<1x32xf32>
    %258 = arith.negf %257 : vector<1x32xf32>
    %259 = math.exp %258 : vector<1x32xf32>
    %cst_66 = arith.constant 1.000000e+00 : f32
    %260 = vector.broadcast %cst_66 : f32 to vector<1x32xf32>
    %261 = arith.addf %260, %259 : vector<1x32xf32>
    %262 = arith.divf %260, %261 : vector<1x32xf32>
    %263 = vector.extract_strided_slice %254 {offsets = [0, 32], sizes = [1, 32], strides = [1, 1]} : vector<1x96xf32> to vector<1x32xf32>
    %264 = vector.extract_strided_slice %226 {offsets = [0, 32], sizes = [1, 32], strides = [1, 1]} : vector<1x96xf32> to vector<1x32xf32>
    %265 = arith.addf %263, %264 : vector<1x32xf32>
    %266 = arith.negf %265 : vector<1x32xf32>
    %267 = math.exp %266 : vector<1x32xf32>
    %cst_67 = arith.constant 1.000000e+00 : f32
    %268 = vector.broadcast %cst_67 : f32 to vector<1x32xf32>
    %269 = arith.addf %268, %267 : vector<1x32xf32>
    %270 = arith.divf %268, %269 : vector<1x32xf32>
    %271 = vector.extract_strided_slice %254 {offsets = [0, 64], sizes = [1, 32], strides = [1, 1]} : vector<1x96xf32> to vector<1x32xf32>
    %272 = vector.extract_strided_slice %226 {offsets = [0, 64], sizes = [1, 32], strides = [1, 1]} : vector<1x96xf32> to vector<1x32xf32>
    %273 = arith.mulf %262, %272 : vector<1x32xf32>
    %274 = arith.addf %271, %273 : vector<1x32xf32>
    %275 = math.tanh %274 : vector<1x32xf32>
    %cst_68 = arith.constant 1.000000e+00 : f32
    %276 = vector.broadcast %cst_68 : f32 to vector<1x32xf32>
    %277 = arith.subf %276, %270 : vector<1x32xf32>
    %278 = arith.mulf %277, %275 : vector<1x32xf32>
    %279 = arith.mulf %270, %222 : vector<1x32xf32>
    %280 = arith.addf %278, %279 : vector<1x32xf32>
    %281 = vector.extract_strided_slice %41 {offsets = [4, 0], sizes = [4, 192], strides = [1, 1]} : vector<8x192xf32> to vector<4x192xf32>
    %cst_69 = arith.constant 0.000000e+00 : f32
    %282 = vector.broadcast %cst_69 : f32 to vector<1x32xf32>
    %cst_70 = arith.constant 0.000000e+00 : f32
    %283 = vector.broadcast %cst_70 : f32 to vector<1x32xf32>
    %cst_71 = arith.constant dense<0.000000e+00> : vector<1x96xf32>
    %284 = tpu.matmul %282, %42, %cst_71 {dimension_numbers = #tpu.dot_dimension_numbers<[1], [0], [0], [1], [0, 0, 1, 1], [], []>} : vector<1x32xf32>, vector<32x96xf32>, vector<1x96xf32> -> vector<1x96xf32>
    %285 = arith.addf %284, %44 : vector<1x96xf32>
    %cst_72 = arith.constant dense<0.000000e+00> : vector<1x96xf32>
    %286 = tpu.matmul %283, %43, %cst_72 {dimension_numbers = #tpu.dot_dimension_numbers<[1], [0], [0], [1], [0, 0, 1, 1], [], []>} : vector<1x32xf32>, vector<32x96xf32>, vector<1x96xf32> -> vector<1x96xf32>
    %287 = arith.addf %286, %45 : vector<1x96xf32>
    %288 = vector.extract_strided_slice %281 {offsets = [0, 0], sizes = [1, 96], strides = [1, 1]} : vector<4x192xf32> to vector<1x96xf32>
    %289 = vector.extract_strided_slice %288 {offsets = [0, 0], sizes = [1, 32], strides = [1, 1]} : vector<1x96xf32> to vector<1x32xf32>
    %290 = vector.extract_strided_slice %285 {offsets = [0, 0], sizes = [1, 32], strides = [1, 1]} : vector<1x96xf32> to vector<1x32xf32>
    %291 = arith.addf %289, %290 : vector<1x32xf32>
    %292 = arith.negf %291 : vector<1x32xf32>
    %293 = math.exp %292 : vector<1x32xf32>
    %cst_73 = arith.constant 1.000000e+00 : f32
    %294 = vector.broadcast %cst_73 : f32 to vector<1x32xf32>
    %295 = arith.addf %294, %293 : vector<1x32xf32>
    %296 = arith.divf %294, %295 : vector<1x32xf32>
    %297 = vector.extract_strided_slice %288 {offsets = [0, 32], sizes = [1, 32], strides = [1, 1]} : vector<1x96xf32> to vector<1x32xf32>
    %298 = vector.extract_strided_slice %285 {offsets = [0, 32], sizes = [1, 32], strides = [1, 1]} : vector<1x96xf32> to vector<1x32xf32>
    %299 = arith.addf %297, %298 : vector<1x32xf32>
    %300 = arith.negf %299 : vector<1x32xf32>
    %301 = math.exp %300 : vector<1x32xf32>
    %cst_74 = arith.constant 1.000000e+00 : f32
    %302 = vector.broadcast %cst_74 : f32 to vector<1x32xf32>
    %303 = arith.addf %302, %301 : vector<1x32xf32>
    %304 = arith.divf %302, %303 : vector<1x32xf32>
    %305 = vector.extract_strided_slice %288 {offsets = [0, 64], sizes = [1, 32], strides = [1, 1]} : vector<1x96xf32> to vector<1x32xf32>
    %306 = vector.extract_strided_slice %285 {offsets = [0, 64], sizes = [1, 32], strides = [1, 1]} : vector<1x96xf32> to vector<1x32xf32>
    %307 = arith.mulf %296, %306 : vector<1x32xf32>
    %308 = arith.addf %305, %307 : vector<1x32xf32>
    %309 = math.tanh %308 : vector<1x32xf32>
    %cst_75 = arith.constant 1.000000e+00 : f32
    %310 = vector.broadcast %cst_75 : f32 to vector<1x32xf32>
    %311 = arith.subf %310, %304 : vector<1x32xf32>
    %312 = arith.mulf %311, %309 : vector<1x32xf32>
    %313 = arith.mulf %304, %282 : vector<1x32xf32>
    %314 = arith.addf %312, %313 : vector<1x32xf32>
    %315 = vector.extract_strided_slice %281 {offsets = [3, 96], sizes = [1, 96], strides = [1, 1]} : vector<4x192xf32> to vector<1x96xf32>
    %316 = vector.extract_strided_slice %315 {offsets = [0, 0], sizes = [1, 32], strides = [1, 1]} : vector<1x96xf32> to vector<1x32xf32>
    %317 = vector.extract_strided_slice %287 {offsets = [0, 0], sizes = [1, 32], strides = [1, 1]} : vector<1x96xf32> to vector<1x32xf32>
    %318 = arith.addf %316, %317 : vector<1x32xf32>
    %319 = arith.negf %318 : vector<1x32xf32>
    %320 = math.exp %319 : vector<1x32xf32>
    %cst_76 = arith.constant 1.000000e+00 : f32
    %321 = vector.broadcast %cst_76 : f32 to vector<1x32xf32>
    %322 = arith.addf %321, %320 : vector<1x32xf32>
    %323 = arith.divf %321, %322 : vector<1x32xf32>
    %324 = vector.extract_strided_slice %315 {offsets = [0, 32], sizes = [1, 32], strides = [1, 1]} : vector<1x96xf32> to vector<1x32xf32>
    %325 = vector.extract_strided_slice %287 {offsets = [0, 32], sizes = [1, 32], strides = [1, 1]} : vector<1x96xf32> to vector<1x32xf32>
    %326 = arith.addf %324, %325 : vector<1x32xf32>
    %327 = arith.negf %326 : vector<1x32xf32>
    %328 = math.exp %327 : vector<1x32xf32>
    %cst_77 = arith.constant 1.000000e+00 : f32
    %329 = vector.broadcast %cst_77 : f32 to vector<1x32xf32>
    %330 = arith.addf %329, %328 : vector<1x32xf32>
    %331 = arith.divf %329, %330 : vector<1x32xf32>
    %332 = vector.extract_strided_slice %315 {offsets = [0, 64], sizes = [1, 32], strides = [1, 1]} : vector<1x96xf32> to vector<1x32xf32>
    %333 = vector.extract_strided_slice %287 {offsets = [0, 64], sizes = [1, 32], strides = [1, 1]} : vector<1x96xf32> to vector<1x32xf32>
    %334 = arith.mulf %323, %333 : vector<1x32xf32>
    %335 = arith.addf %332, %334 : vector<1x32xf32>
    %336 = math.tanh %335 : vector<1x32xf32>
    %cst_78 = arith.constant 1.000000e+00 : f32
    %337 = vector.broadcast %cst_78 : f32 to vector<1x32xf32>
    %338 = arith.subf %337, %331 : vector<1x32xf32>
    %339 = arith.mulf %338, %336 : vector<1x32xf32>
    %340 = arith.mulf %331, %283 : vector<1x32xf32>
    %341 = arith.addf %339, %340 : vector<1x32xf32>
    %cst_79 = arith.constant dense<0.000000e+00> : vector<1x96xf32>
    %342 = tpu.matmul %314, %42, %cst_79 {dimension_numbers = #tpu.dot_dimension_numbers<[1], [0], [0], [1], [0, 0, 1, 1], [], []>} : vector<1x32xf32>, vector<32x96xf32>, vector<1x96xf32> -> vector<1x96xf32>
    %343 = arith.addf %342, %44 : vector<1x96xf32>
    %cst_80 = arith.constant dense<0.000000e+00> : vector<1x96xf32>
    %344 = tpu.matmul %341, %43, %cst_80 {dimension_numbers = #tpu.dot_dimension_numbers<[1], [0], [0], [1], [0, 0, 1, 1], [], []>} : vector<1x32xf32>, vector<32x96xf32>, vector<1x96xf32> -> vector<1x96xf32>
    %345 = arith.addf %344, %45 : vector<1x96xf32>
    %346 = vector.extract_strided_slice %281 {offsets = [1, 0], sizes = [1, 96], strides = [1, 1]} : vector<4x192xf32> to vector<1x96xf32>
    %347 = vector.extract_strided_slice %346 {offsets = [0, 0], sizes = [1, 32], strides = [1, 1]} : vector<1x96xf32> to vector<1x32xf32>
    %348 = vector.extract_strided_slice %343 {offsets = [0, 0], sizes = [1, 32], strides = [1, 1]} : vector<1x96xf32> to vector<1x32xf32>
    %349 = arith.addf %347, %348 : vector<1x32xf32>
    %350 = arith.negf %349 : vector<1x32xf32>
    %351 = math.exp %350 : vector<1x32xf32>
    %cst_81 = arith.constant 1.000000e+00 : f32
    %352 = vector.broadcast %cst_81 : f32 to vector<1x32xf32>
    %353 = arith.addf %352, %351 : vector<1x32xf32>
    %354 = arith.divf %352, %353 : vector<1x32xf32>
    %355 = vector.extract_strided_slice %346 {offsets = [0, 32], sizes = [1, 32], strides = [1, 1]} : vector<1x96xf32> to vector<1x32xf32>
    %356 = vector.extract_strided_slice %343 {offsets = [0, 32], sizes = [1, 32], strides = [1, 1]} : vector<1x96xf32> to vector<1x32xf32>
    %357 = arith.addf %355, %356 : vector<1x32xf32>
    %358 = arith.negf %357 : vector<1x32xf32>
    %359 = math.exp %358 : vector<1x32xf32>
    %cst_82 = arith.constant 1.000000e+00 : f32
    %360 = vector.broadcast %cst_82 : f32 to vector<1x32xf32>
    %361 = arith.addf %360, %359 : vector<1x32xf32>
    %362 = arith.divf %360, %361 : vector<1x32xf32>
    %363 = vector.extract_strided_slice %346 {offsets = [0, 64], sizes = [1, 32], strides = [1, 1]} : vector<1x96xf32> to vector<1x32xf32>
    %364 = vector.extract_strided_slice %343 {offsets = [0, 64], sizes = [1, 32], strides = [1, 1]} : vector<1x96xf32> to vector<1x32xf32>
    %365 = arith.mulf %354, %364 : vector<1x32xf32>
    %366 = arith.addf %363, %365 : vector<1x32xf32>
    %367 = math.tanh %366 : vector<1x32xf32>
    %cst_83 = arith.constant 1.000000e+00 : f32
    %368 = vector.broadcast %cst_83 : f32 to vector<1x32xf32>
    %369 = arith.subf %368, %362 : vector<1x32xf32>
    %370 = arith.mulf %369, %367 : vector<1x32xf32>
    %371 = arith.mulf %362, %314 : vector<1x32xf32>
    %372 = arith.addf %370, %371 : vector<1x32xf32>
    %373 = vector.extract_strided_slice %281 {offsets = [2, 96], sizes = [1, 96], strides = [1, 1]} : vector<4x192xf32> to vector<1x96xf32>
    %374 = vector.extract_strided_slice %373 {offsets = [0, 0], sizes = [1, 32], strides = [1, 1]} : vector<1x96xf32> to vector<1x32xf32>
    %375 = vector.extract_strided_slice %345 {offsets = [0, 0], sizes = [1, 32], strides = [1, 1]} : vector<1x96xf32> to vector<1x32xf32>
    %376 = arith.addf %374, %375 : vector<1x32xf32>
    %377 = arith.negf %376 : vector<1x32xf32>
    %378 = math.exp %377 : vector<1x32xf32>
    %cst_84 = arith.constant 1.000000e+00 : f32
    %379 = vector.broadcast %cst_84 : f32 to vector<1x32xf32>
    %380 = arith.addf %379, %378 : vector<1x32xf32>
    %381 = arith.divf %379, %380 : vector<1x32xf32>
    %382 = vector.extract_strided_slice %373 {offsets = [0, 32], sizes = [1, 32], strides = [1, 1]} : vector<1x96xf32> to vector<1x32xf32>
    %383 = vector.extract_strided_slice %345 {offsets = [0, 32], sizes = [1, 32], strides = [1, 1]} : vector<1x96xf32> to vector<1x32xf32>
    %384 = arith.addf %382, %383 : vector<1x32xf32>
    %385 = arith.negf %384 : vector<1x32xf32>
    %386 = math.exp %385 : vector<1x32xf32>
    %cst_85 = arith.constant 1.000000e+00 : f32
    %387 = vector.broadcast %cst_85 : f32 to vector<1x32xf32>
    %388 = arith.addf %387, %386 : vector<1x32xf32>
    %389 = arith.divf %387, %388 : vector<1x32xf32>
    %390 = vector.extract_strided_slice %373 {offsets = [0, 64], sizes = [1, 32], strides = [1, 1]} : vector<1x96xf32> to vector<1x32xf32>
    %391 = vector.extract_strided_slice %345 {offsets = [0, 64], sizes = [1, 32], strides = [1, 1]} : vector<1x96xf32> to vector<1x32xf32>
    %392 = arith.mulf %381, %391 : vector<1x32xf32>
    %393 = arith.addf %390, %392 : vector<1x32xf32>
    %394 = math.tanh %393 : vector<1x32xf32>
    %cst_86 = arith.constant 1.000000e+00 : f32
    %395 = vector.broadcast %cst_86 : f32 to vector<1x32xf32>
    %396 = arith.subf %395, %389 : vector<1x32xf32>
    %397 = arith.mulf %396, %394 : vector<1x32xf32>
    %398 = arith.mulf %389, %341 : vector<1x32xf32>
    %399 = arith.addf %397, %398 : vector<1x32xf32>
    %cst_87 = arith.constant dense<0.000000e+00> : vector<1x96xf32>
    %400 = tpu.matmul %372, %42, %cst_87 {dimension_numbers = #tpu.dot_dimension_numbers<[1], [0], [0], [1], [0, 0, 1, 1], [], []>} : vector<1x32xf32>, vector<32x96xf32>, vector<1x96xf32> -> vector<1x96xf32>
    %401 = arith.addf %400, %44 : vector<1x96xf32>
    %cst_88 = arith.constant dense<0.000000e+00> : vector<1x96xf32>
    %402 = tpu.matmul %399, %43, %cst_88 {dimension_numbers = #tpu.dot_dimension_numbers<[1], [0], [0], [1], [0, 0, 1, 1], [], []>} : vector<1x32xf32>, vector<32x96xf32>, vector<1x96xf32> -> vector<1x96xf32>
    %403 = arith.addf %402, %45 : vector<1x96xf32>
    %404 = vector.extract_strided_slice %281 {offsets = [2, 0], sizes = [1, 96], strides = [1, 1]} : vector<4x192xf32> to vector<1x96xf32>
    %405 = vector.extract_strided_slice %404 {offsets = [0, 0], sizes = [1, 32], strides = [1, 1]} : vector<1x96xf32> to vector<1x32xf32>
    %406 = vector.extract_strided_slice %401 {offsets = [0, 0], sizes = [1, 32], strides = [1, 1]} : vector<1x96xf32> to vector<1x32xf32>
    %407 = arith.addf %405, %406 : vector<1x32xf32>
    %408 = arith.negf %407 : vector<1x32xf32>
    %409 = math.exp %408 : vector<1x32xf32>
    %cst_89 = arith.constant 1.000000e+00 : f32
    %410 = vector.broadcast %cst_89 : f32 to vector<1x32xf32>
    %411 = arith.addf %410, %409 : vector<1x32xf32>
    %412 = arith.divf %410, %411 : vector<1x32xf32>
    %413 = vector.extract_strided_slice %404 {offsets = [0, 32], sizes = [1, 32], strides = [1, 1]} : vector<1x96xf32> to vector<1x32xf32>
    %414 = vector.extract_strided_slice %401 {offsets = [0, 32], sizes = [1, 32], strides = [1, 1]} : vector<1x96xf32> to vector<1x32xf32>
    %415 = arith.addf %413, %414 : vector<1x32xf32>
    %416 = arith.negf %415 : vector<1x32xf32>
    %417 = math.exp %416 : vector<1x32xf32>
    %cst_90 = arith.constant 1.000000e+00 : f32
    %418 = vector.broadcast %cst_90 : f32 to vector<1x32xf32>
    %419 = arith.addf %418, %417 : vector<1x32xf32>
    %420 = arith.divf %418, %419 : vector<1x32xf32>
    %421 = vector.extract_strided_slice %404 {offsets = [0, 64], sizes = [1, 32], strides = [1, 1]} : vector<1x96xf32> to vector<1x32xf32>
    %422 = vector.extract_strided_slice %401 {offsets = [0, 64], sizes = [1, 32], strides = [1, 1]} : vector<1x96xf32> to vector<1x32xf32>
    %423 = arith.mulf %412, %422 : vector<1x32xf32>
    %424 = arith.addf %421, %423 : vector<1x32xf32>
    %425 = math.tanh %424 : vector<1x32xf32>
    %cst_91 = arith.constant 1.000000e+00 : f32
    %426 = vector.broadcast %cst_91 : f32 to vector<1x32xf32>
    %427 = arith.subf %426, %420 : vector<1x32xf32>
    %428 = arith.mulf %427, %425 : vector<1x32xf32>
    %429 = arith.mulf %420, %372 : vector<1x32xf32>
    %430 = arith.addf %428, %429 : vector<1x32xf32>
    %431 = vector.extract_strided_slice %281 {offsets = [1, 96], sizes = [1, 96], strides = [1, 1]} : vector<4x192xf32> to vector<1x96xf32>
    %432 = vector.extract_strided_slice %431 {offsets = [0, 0], sizes = [1, 32], strides = [1, 1]} : vector<1x96xf32> to vector<1x32xf32>
    %433 = vector.extract_strided_slice %403 {offsets = [0, 0], sizes = [1, 32], strides = [1, 1]} : vector<1x96xf32> to vector<1x32xf32>
    %434 = arith.addf %432, %433 : vector<1x32xf32>
    %435 = arith.negf %434 : vector<1x32xf32>
    %436 = math.exp %435 : vector<1x32xf32>
    %cst_92 = arith.constant 1.000000e+00 : f32
    %437 = vector.broadcast %cst_92 : f32 to vector<1x32xf32>
    %438 = arith.addf %437, %436 : vector<1x32xf32>
    %439 = arith.divf %437, %438 : vector<1x32xf32>
    %440 = vector.extract_strided_slice %431 {offsets = [0, 32], sizes = [1, 32], strides = [1, 1]} : vector<1x96xf32> to vector<1x32xf32>
    %441 = vector.extract_strided_slice %403 {offsets = [0, 32], sizes = [1, 32], strides = [1, 1]} : vector<1x96xf32> to vector<1x32xf32>
    %442 = arith.addf %440, %441 : vector<1x32xf32>
    %443 = arith.negf %442 : vector<1x32xf32>
    %444 = math.exp %443 : vector<1x32xf32>
    %cst_93 = arith.constant 1.000000e+00 : f32
    %445 = vector.broadcast %cst_93 : f32 to vector<1x32xf32>
    %446 = arith.addf %445, %444 : vector<1x32xf32>
    %447 = arith.divf %445, %446 : vector<1x32xf32>
    %448 = vector.extract_strided_slice %431 {offsets = [0, 64], sizes = [1, 32], strides = [1, 1]} : vector<1x96xf32> to vector<1x32xf32>
    %449 = vector.extract_strided_slice %403 {offsets = [0, 64], sizes = [1, 32], strides = [1, 1]} : vector<1x96xf32> to vector<1x32xf32>
    %450 = arith.mulf %439, %449 : vector<1x32xf32>
    %451 = arith.addf %448, %450 : vector<1x32xf32>
    %452 = math.tanh %451 : vector<1x32xf32>
    %cst_94 = arith.constant 1.000000e+00 : f32
    %453 = vector.broadcast %cst_94 : f32 to vector<1x32xf32>
    %454 = arith.subf %453, %447 : vector<1x32xf32>
    %455 = arith.mulf %454, %452 : vector<1x32xf32>
    %456 = arith.mulf %447, %399 : vector<1x32xf32>
    %457 = arith.addf %455, %456 : vector<1x32xf32>
    %cst_95 = arith.constant dense<0.000000e+00> : vector<1x96xf32>
    %458 = tpu.matmul %430, %42, %cst_95 {dimension_numbers = #tpu.dot_dimension_numbers<[1], [0], [0], [1], [0, 0, 1, 1], [], []>} : vector<1x32xf32>, vector<32x96xf32>, vector<1x96xf32> -> vector<1x96xf32>
    %459 = arith.addf %458, %44 : vector<1x96xf32>
    %cst_96 = arith.constant dense<0.000000e+00> : vector<1x96xf32>
    %460 = tpu.matmul %457, %43, %cst_96 {dimension_numbers = #tpu.dot_dimension_numbers<[1], [0], [0], [1], [0, 0, 1, 1], [], []>} : vector<1x32xf32>, vector<32x96xf32>, vector<1x96xf32> -> vector<1x96xf32>
    %461 = arith.addf %460, %45 : vector<1x96xf32>
    %462 = vector.extract_strided_slice %281 {offsets = [3, 0], sizes = [1, 96], strides = [1, 1]} : vector<4x192xf32> to vector<1x96xf32>
    %463 = vector.extract_strided_slice %462 {offsets = [0, 0], sizes = [1, 32], strides = [1, 1]} : vector<1x96xf32> to vector<1x32xf32>
    %464 = vector.extract_strided_slice %459 {offsets = [0, 0], sizes = [1, 32], strides = [1, 1]} : vector<1x96xf32> to vector<1x32xf32>
    %465 = arith.addf %463, %464 : vector<1x32xf32>
    %466 = arith.negf %465 : vector<1x32xf32>
    %467 = math.exp %466 : vector<1x32xf32>
    %cst_97 = arith.constant 1.000000e+00 : f32
    %468 = vector.broadcast %cst_97 : f32 to vector<1x32xf32>
    %469 = arith.addf %468, %467 : vector<1x32xf32>
    %470 = arith.divf %468, %469 : vector<1x32xf32>
    %471 = vector.extract_strided_slice %462 {offsets = [0, 32], sizes = [1, 32], strides = [1, 1]} : vector<1x96xf32> to vector<1x32xf32>
    %472 = vector.extract_strided_slice %459 {offsets = [0, 32], sizes = [1, 32], strides = [1, 1]} : vector<1x96xf32> to vector<1x32xf32>
    %473 = arith.addf %471, %472 : vector<1x32xf32>
    %474 = arith.negf %473 : vector<1x32xf32>
    %475 = math.exp %474 : vector<1x32xf32>
    %cst_98 = arith.constant 1.000000e+00 : f32
    %476 = vector.broadcast %cst_98 : f32 to vector<1x32xf32>
    %477 = arith.addf %476, %475 : vector<1x32xf32>
    %478 = arith.divf %476, %477 : vector<1x32xf32>
    %479 = vector.extract_strided_slice %462 {offsets = [0, 64], sizes = [1, 32], strides = [1, 1]} : vector<1x96xf32> to vector<1x32xf32>
    %480 = vector.extract_strided_slice %459 {offsets = [0, 64], sizes = [1, 32], strides = [1, 1]} : vector<1x96xf32> to vector<1x32xf32>
    %481 = arith.mulf %470, %480 : vector<1x32xf32>
    %482 = arith.addf %479, %481 : vector<1x32xf32>
    %483 = math.tanh %482 : vector<1x32xf32>
    %cst_99 = arith.constant 1.000000e+00 : f32
    %484 = vector.broadcast %cst_99 : f32 to vector<1x32xf32>
    %485 = arith.subf %484, %478 : vector<1x32xf32>
    %486 = arith.mulf %485, %483 : vector<1x32xf32>
    %487 = arith.mulf %478, %430 : vector<1x32xf32>
    %488 = arith.addf %486, %487 : vector<1x32xf32>
    %489 = vector.extract_strided_slice %281 {offsets = [0, 96], sizes = [1, 96], strides = [1, 1]} : vector<4x192xf32> to vector<1x96xf32>
    %490 = vector.extract_strided_slice %489 {offsets = [0, 0], sizes = [1, 32], strides = [1, 1]} : vector<1x96xf32> to vector<1x32xf32>
    %491 = vector.extract_strided_slice %461 {offsets = [0, 0], sizes = [1, 32], strides = [1, 1]} : vector<1x96xf32> to vector<1x32xf32>
    %492 = arith.addf %490, %491 : vector<1x32xf32>
    %493 = arith.negf %492 : vector<1x32xf32>
    %494 = math.exp %493 : vector<1x32xf32>
    %cst_100 = arith.constant 1.000000e+00 : f32
    %495 = vector.broadcast %cst_100 : f32 to vector<1x32xf32>
    %496 = arith.addf %495, %494 : vector<1x32xf32>
    %497 = arith.divf %495, %496 : vector<1x32xf32>
    %498 = vector.extract_strided_slice %489 {offsets = [0, 32], sizes = [1, 32], strides = [1, 1]} : vector<1x96xf32> to vector<1x32xf32>
    %499 = vector.extract_strided_slice %461 {offsets = [0, 32], sizes = [1, 32], strides = [1, 1]} : vector<1x96xf32> to vector<1x32xf32>
    %500 = arith.addf %498, %499 : vector<1x32xf32>
    %501 = arith.negf %500 : vector<1x32xf32>
    %502 = math.exp %501 : vector<1x32xf32>
    %cst_101 = arith.constant 1.000000e+00 : f32
    %503 = vector.broadcast %cst_101 : f32 to vector<1x32xf32>
    %504 = arith.addf %503, %502 : vector<1x32xf32>
    %505 = arith.divf %503, %504 : vector<1x32xf32>
    %506 = vector.extract_strided_slice %489 {offsets = [0, 64], sizes = [1, 32], strides = [1, 1]} : vector<1x96xf32> to vector<1x32xf32>
    %507 = vector.extract_strided_slice %461 {offsets = [0, 64], sizes = [1, 32], strides = [1, 1]} : vector<1x96xf32> to vector<1x32xf32>
    %508 = arith.mulf %497, %507 : vector<1x32xf32>
    %509 = arith.addf %506, %508 : vector<1x32xf32>
    %510 = math.tanh %509 : vector<1x32xf32>
    %cst_102 = arith.constant 1.000000e+00 : f32
    %511 = vector.broadcast %cst_102 : f32 to vector<1x32xf32>
    %512 = arith.subf %511, %505 : vector<1x32xf32>
    %513 = arith.mulf %512, %510 : vector<1x32xf32>
    %514 = arith.mulf %505, %457 : vector<1x32xf32>
    %515 = arith.addf %513, %514 : vector<1x32xf32>
    %516 = tpu.concatenate %79, %137, %195, %253, %314, %372, %430, %488 in 0 : vector<1x32xf32>, vector<1x32xf32>, vector<1x32xf32>, vector<1x32xf32>, vector<1x32xf32>, vector<1x32xf32>, vector<1x32xf32>, vector<1x32xf32> -> vector<8x32xf32>
    %517 = tpu.concatenate %280, %222, %164, %106, %515, %457, %399, %341 in 0 : vector<1x32xf32>, vector<1x32xf32>, vector<1x32xf32>, vector<1x32xf32>, vector<1x32xf32>, vector<1x32xf32>, vector<1x32xf32>, vector<1x32xf32> -> vector<8x32xf32>
    %c0_103 = arith.constant 0 : index
    %c0_104 = arith.constant 0 : index
    %518 = vector.load %arg15[%c0_103, %c0_104] : memref<32x128xf32, #tpu.memory_space<vmem>>, vector<32x128xf32>
    %cst_105 = arith.constant dense<0.000000e+00> : vector<8x128xf32>
    %519 = tpu.matmul %516, %518, %cst_105 {dimension_numbers = #tpu.dot_dimension_numbers<[1], [0], [0], [1], [0, 0, 1, 1], [], []>} : vector<8x32xf32>, vector<32x128xf32>, vector<8x128xf32> -> vector<8x128xf32>
    %c0_106 = arith.constant 0 : index
    %c0_107 = arith.constant 0 : index
    %520 = vector.load %arg16[%c0_106, %c0_107] : memref<32x128xf32, #tpu.memory_space<vmem>>, vector<32x128xf32>
    %cst_108 = arith.constant dense<0.000000e+00> : vector<8x128xf32>
    %521 = tpu.matmul %517, %520, %cst_108 {dimension_numbers = #tpu.dot_dimension_numbers<[1], [0], [0], [1], [0, 0, 1, 1], [], []>} : vector<8x32xf32>, vector<32x128xf32>, vector<8x128xf32> -> vector<8x128xf32>
    %522 = arith.addf %519, %521 : vector<8x128xf32>
    %c0_109 = arith.constant 0 : index
    %c0_110 = arith.constant 0 : index
    %523 = vector.load %arg17[%c0_109, %c0_110] : memref<1x128xf32, #tpu.memory_space<vmem>>, vector<1x128xf32>
    %524 = vector.broadcast %523 : vector<1x128xf32> to vector<8x128xf32>
    %525 = arith.addf %522, %524 : vector<8x128xf32>
    %526 = vector.shape_cast %525 : vector<8x128xf32> to vector<2x4x128xf32>
    %c0_111 = arith.constant 0 : index
    %c0_112 = arith.constant 0 : index
    %c0_113 = arith.constant 0 : index
    %527 = vector.load %arg18[%c0_111, %c0_112, %c0_113] : memref<2x4x128xf32, #tpu.memory_space<vmem>>, vector<2x4x128xf32>
    tpu.vector_store %arg18[%c0_111, %c0_112, %c0_113], %526 {strides = array<i32>} : memref<2x4x128xf32, #tpu.memory_space<vmem>>, vector<2x4x128xf32>,
    return
  }
  func.func @transform_0(%arg0: i32) -> (i32, i32, i32) {
    %c0_i32 = arith.constant 0 : i32
    %c0_i32_0 = arith.constant 0 : i32
    %c0_i32_1 = arith.constant 0 : i32
    return %arg0, %c0_i32, %c0_i32_0 : i32, i32, i32
  }
  func.func @transform_1(%arg0: i32) -> (i32, i32) {
    %c0_i32 = arith.constant 0 : i32
    %c0_i32_0 = arith.constant 0 : i32
    %c0_i32_1 = arith.constant 0 : i32
    return %c0_i32, %c0_i32_0 : i32, i32
  }
  func.func @transform_2(%arg0: i32) -> (i32, i32) {
    %c0_i32 = arith.constant 0 : i32
    %c0_i32_0 = arith.constant 0 : i32
    %c0_i32_1 = arith.constant 0 : i32
    return %c0_i32, %c0_i32_0 : i32, i32
  }
  func.func @transform_3(%arg0: i32) -> (i32, i32) {
    %c0_i32 = arith.constant 0 : i32
    %c0_i32_0 = arith.constant 0 : i32
    %c0_i32_1 = arith.constant 0 : i32
    return %c0_i32, %c0_i32_0 : i32, i32
  }
  func.func @transform_4(%arg0: i32) -> (i32, i32) {
    %c0_i32 = arith.constant 0 : i32
    %c0_i32_0 = arith.constant 0 : i32
    %c0_i32_1 = arith.constant 0 : i32
    return %c0_i32, %c0_i32_0 : i32, i32
  }
  func.func @transform_5(%arg0: i32) -> (i32, i32) {
    %c0_i32 = arith.constant 0 : i32
    %c0_i32_0 = arith.constant 0 : i32
    %c0_i32_1 = arith.constant 0 : i32
    return %c0_i32, %c0_i32_0 : i32, i32
  }
  func.func @transform_6(%arg0: i32) -> (i32, i32) {
    %c0_i32 = arith.constant 0 : i32
    %c0_i32_0 = arith.constant 0 : i32
    %c0_i32_1 = arith.constant 0 : i32
    return %c0_i32, %c0_i32_0 : i32, i32
  }
  func.func @transform_7(%arg0: i32) -> (i32, i32) {
    %c0_i32 = arith.constant 0 : i32
    %c0_i32_0 = arith.constant 0 : i32
    %c0_i32_1 = arith.constant 0 : i32
    return %c0_i32, %c0_i32_0 : i32, i32
  }
  func.func @transform_8(%arg0: i32) -> (i32, i32) {
    %c0_i32 = arith.constant 0 : i32
    %c0_i32_0 = arith.constant 0 : i32
    %c0_i32_1 = arith.constant 0 : i32
    return %c0_i32, %c0_i32_0 : i32, i32
  }
  func.func @transform_9(%arg0: i32) -> (i32, i32) {
    %c0_i32 = arith.constant 0 : i32
    %c0_i32_0 = arith.constant 0 : i32
    %c0_i32_1 = arith.constant 0 : i32
    return %c0_i32, %c0_i32_0 : i32, i32
  }
  func.func @transform_10(%arg0: i32) -> (i32, i32) {
    %c0_i32 = arith.constant 0 : i32
    %c0_i32_0 = arith.constant 0 : i32
    %c0_i32_1 = arith.constant 0 : i32
    return %c0_i32, %c0_i32_0 : i32, i32
  }
  func.func @transform_11(%arg0: i32) -> (i32, i32) {
    %c0_i32 = arith.constant 0 : i32
    %c0_i32_0 = arith.constant 0 : i32
    %c0_i32_1 = arith.constant 0 : i32
    return %c0_i32, %c0_i32_0 : i32, i32
  }
  func.func @transform_12(%arg0: i32) -> (i32, i32) {
    %c0_i32 = arith.constant 0 : i32
    %c0_i32_0 = arith.constant 0 : i32
    %c0_i32_1 = arith.constant 0 : i32
    return %c0_i32, %c0_i32_0 : i32, i32
  }
  func.func @transform_13(%arg0: i32) -> (i32, i32) {
    %c0_i32 = arith.constant 0 : i32
    %c0_i32_0 = arith.constant 0 : i32
    %c0_i32_1 = arith.constant 0 : i32
    return %c0_i32, %c0_i32_0 : i32, i32
  }
  func.func @transform_14(%arg0: i32) -> (i32, i32) {
    %c0_i32 = arith.constant 0 : i32
    %c0_i32_0 = arith.constant 0 : i32
    %c0_i32_1 = arith.constant 0 : i32
    return %c0_i32, %c0_i32_0 : i32, i32
  }
  func.func @transform_15(%arg0: i32) -> (i32, i32) {
    %c0_i32 = arith.constant 0 : i32
    %c0_i32_0 = arith.constant 0 : i32
    %c0_i32_1 = arith.constant 0 : i32
    return %c0_i32, %c0_i32_0 : i32, i32
  }
  func.func @transform_16(%arg0: i32) -> (i32, i32) {
    %c0_i32 = arith.constant 0 : i32
    %c0_i32_0 = arith.constant 0 : i32
    %c0_i32_1 = arith.constant 0 : i32
    return %c0_i32, %c0_i32_0 : i32, i32
  }
  func.func @transform_17(%arg0: i32) -> (i32, i32, i32) {
    %c0_i32 = arith.constant 0 : i32
    %c0_i32_0 = arith.constant 0 : i32
    %c0_i32_1 = arith.constant 0 : i32
    return %arg0, %c0_i32, %c0_i32_0 : i32, i32, i32
  }
}

</mosaic_0001>

<bundles_post_ra>
// kernel: forward.1
= control target key start
LH: loop header
LB: loop body
LE: loop exit
PB: predicated region body
PF: predicated region fallthrough
CT: control target
= control target key end

     0   :  { %s8599_s0 = inlined_call_operand.vmem [shape: f32[2,4,768], index: 0, kind: input, shape index: {}]   ;;  %s8600_s1 = inlined_call_operand.hbm [shape: f32[768,1024], index: 1, kind: input, shape index: {}]   ;;  %s8601_s2 = inlined_call_operand.hbm [shape: f32[1,1024], index: 2, kind: input, shape index: {}]   ;;  %s8602_s3 = inlined_call_operand.hbm [shape: f32[1024,512], index: 3, kind: input, shape index: {}]   ;;  %s8603_s4 = inlined_call_operand.hbm [shape: f32[1,512], index: 4, kind: input, shape index: {}]   ;;  %s8604_s5 = inlined_call_operand.hbm [shape: f32[512,1024], index: 5, kind: input, shape index: {}]   ;;  %s8605_s6 = inlined_call_operand.hbm [shape: f32[1,1024], index: 6, kind: input, shape index: {}]   ;;  %s8606_s7 = inlined_call_operand.vmem [shape: f32[1024,64], index: 7, kind: input, shape index: {}]   ;;  %s8607_s8 = inlined_call_operand.hbm [shape: f32[64,192], index: 8, kind: input, shape index: {}]   ;;  %s8608_s9 = inlined_call_operand.hbm [shape: f32[1,192], index: 9, kind: input, shape index: {}]   ;;  %s8609_s10 = inlined_call_operand.hbm [shape: f32[32,96], index: 10, kind: input, shape index: {}]   ;;  %s8610_s11 = inlined_call_operand.hbm [shape: f32[1,96], index: 11, kind: input, shape index: {}]   ;;  %s8611_s12 = inlined_call_operand.hbm [shape: f32[32,96], index: 12, kind: input, shape index: {}]   ;;  %s8612_s13 = inlined_call_operand.hbm [shape: f32[1,96], index: 13, kind: input, shape index: {}]   ;;  %s8613_s14 = inlined_call_operand.hbm [shape: f32[32,128], index: 14, kind: input, shape index: {}]   ;;  %s8614_s15 = inlined_call_operand.hbm [shape: f32[32,128], index: 15, kind: input, shape index: {}]   ;;  %s8615_s16 = inlined_call_operand.hbm [shape: f32[1,128], index: 16, kind: input, shape index: {}]   ;;  %s8616_s17 = inlined_call_operand.vmem [shape: f32[2,4,128], index: 17, kind: output, shape index: {}]  }
   0x1   :  { %8618 = sst [smem:[#allocation33_spill]] %s8599_s0 }
   0x2   :  { %8619 = sst [smem:[#allocation34_spill]] %s8600_s1 }
   0x3   :  { %22 = vsyncpa [#allocation3], 0 }
   0x4   :  { %23 = vsyncpa [#allocation5], 0 }
   0x5   :  { %24 = vsyncpa [#allocation8], 0 }
   0x6   :  { %25 = vsyncpa [#allocation11], 0 }
   0x7   :  { %26 = vsyncpa [#allocation14], 0 }
   0x8   :  { %27 = vsyncpa [#allocation17], 0 }
   0x9   :  { %28 = vsyncpa [#allocation20], 0  ;;  %s50_s26 = sshll.u32 %s8601_s2, 4  ;;  %s51_s26 = int_to_ptr.hbm [resolvable:$true] %s50_s26 }
   0xa   :  { %29 = vsyncpa [#allocation23], 0  ;;  %s7130_s27 = smov [#allocation4]   ;;  %s74_s30 = sshll.u32 %s8603_s4, 4  ;;  %s75_s30 = int_to_ptr.hbm [resolvable:$true] %s74_s30 }
   0xb   :  { %s52_s28 = sshll.u32 %s7130_s27, 4  ;;  %s7131_s18 = smov [#allocation7]   ;;  %s53_s28 = int_to_ptr.vmem [resolvable:$true] %s52_s28 }
   0xc   :  { %55 = dma.hbm_to_vmem [thread:$0]  %s51_s26, 128, %s53_s28, [#allocation5]  }
   0xd   :  { %s76_s19 = sshll.u32 %s7131_s18, 4  ;;  %s98_s21 = sshll.u32 %s8605_s6, 4  ;;  %s77_s19 = int_to_ptr.vmem [resolvable:$true] %s76_s19  ;;  %s99_s21 = int_to_ptr.hbm [resolvable:$true] %s98_s21 }
   0xe   :  { %79 = dma.hbm_to_vmem [thread:$0]  %s75_s30, 64, %s77_s19, [#allocation8]  }
   0xf   :  { %s124_s23 = sshll.u32 %s8608_s9, 4  ;;  %s7132_s24 = smov [#allocation10]   ;;  %s125_s23 = int_to_ptr.hbm [resolvable:$true] %s124_s23 }
  0x10   :  { %s100_s25 = sshll.u32 %s7132_s24, 4  ;;  %s7133_s4 = smov [#allocation13]   ;;  %s101_s25 = int_to_ptr.vmem [resolvable:$true] %s100_s25 }
  0x11   :  { %103 = dma.hbm_to_vmem [thread:$0]  %s99_s21, 128, %s101_s25, [#allocation11]  }
  0x12   :  { %s126_s26 = sshll.u32 %s7133_s4, 4  ;;  %s148_s29 = sshll.u32 %s8610_s11, 4  ;;  %s127_s26 = int_to_ptr.vmem [resolvable:$true] %s126_s26  ;;  %s149_s29 = int_to_ptr.hbm [resolvable:$true] %s148_s29 }
  0x13   :  { %129 = dma.hbm_to_vmem [thread:$0]  %s125_s23, 32, %s127_s26, [#allocation14]  }
  0x14   :  { %s172_s30 = sshll.u32 %s8612_s13, 4  ;;  %s7134_s18 = smov [#allocation16]   ;;  %s173_s30 = int_to_ptr.hbm [resolvable:$true] %s172_s30 }
  0x15   :  { %s150_s9 = sshll.u32 %s7134_s18, 4  ;;  %s7135_s19 = smov [#allocation19]   ;;  %s151_s9 = int_to_ptr.vmem [resolvable:$true] %s150_s9 }
  0x16   :  { %153 = dma.hbm_to_vmem [thread:$0]  %s149_s29, 16, %s151_s9, [#allocation17]  }
  0x17   :  { %s174_s1 = sshll.u32 %s7135_s19, 4  ;;  %s195_s11 = sshll.u32 %s8614_s15, 4  ;;  %s175_s1 = int_to_ptr.vmem [resolvable:$true] %s174_s1  ;;  %s196_s11 = int_to_ptr.hbm [resolvable:$true] %s195_s11 }
  0x18   :  { %177 = dma.hbm_to_vmem [thread:$0]  %s173_s30, 16, %s175_s1, [#allocation20]  }
  0x19   :  { %s7136_s2 = smov [#allocation22]   ;;  %s8620_s13 = sld [smem:[#allocation34_spill]] }
  0x1a   :  { %s197_s22 = sshll.u32 %s7136_s2, 4  ;;  %s7137_s4 = smov 128   ;;  %s198_s22 = int_to_ptr.vmem [resolvable:$true] %s197_s22 }
  0x1b   :  { %s7138_s26 = smov 8   ;;  %s7139_s27 = smov [#allocation2]  }
  0x1c   :  { %203 = dma.hbm_to_vmem [thread:$0]  %s196_s11, 512, %s198_s22, [#allocation23], %s7137_s4, %s7137_s4, %s7138_s26  }
  0x1d   :  { %s38_s28 = sshll.u32 %s7139_s27, 4  ;;  %s7140_s29 = smov 1024   ;;  %s39_s28 = int_to_ptr.vmem [resolvable:$true] %s38_s28 }
  0x1e   :  { %s7141_s15 = smov 64   ;;  %s60_s30 = sshll.u32 %s8602_s3, 4  ;;  %s61_s30 = int_to_ptr.hbm [resolvable:$true] %s60_s30 }
  0x1f   :  { %s36_s25 = sshll.u32 %s8620_s13, 4  ;;  %s7142_s18 = smov [#allocation6]   ;;  %s37_s25 = int_to_ptr.hbm [resolvable:$true] %s36_s25 }
  0x20   :  { %44 = dma.hbm_to_vmem [thread:$0]  %s37_s25, 98304, %s39_s28, [#allocation3], %s7140_s29, %s7140_s29, %s7141_s15  }
  0x21   :  { %s62_s9 = sshll.u32 %s7142_s18, 4  ;;  %s84_s20 = sshll.u32 %s8604_s5, 4  ;;  %s63_s9 = int_to_ptr.vmem [resolvable:$true] %s62_s9  ;;  %s85_s20 = int_to_ptr.hbm [resolvable:$true] %s84_s20 }
  0x22   :  { %s7143_s21 = smov 512   ;;  %s7144_s11 = smov 32  }
  0x23   :  { %68 = dma.hbm_to_vmem [thread:$0]  %s61_s30, 65536, %s63_s9, [#allocation5], %s7143_s21, %s7143_s21, %s7144_s11  }
  0x24   :  { %s7145_s2 = smov [#allocation9]   ;;  %s110_s13 = sshll.u32 %s8607_s8, 4  ;;  %s111_s13 = int_to_ptr.hbm [resolvable:$true] %s110_s13 }
  0x25   :  { %s86_s22 = sshll.u32 %s7145_s2, 4  ;;  %s7146_s3 = smov [#allocation12]   ;;  %s87_s22 = int_to_ptr.vmem [resolvable:$true] %s86_s22 }
  0x26   :  { %92 = dma.hbm_to_vmem [thread:$0]  %s85_s20, 65536, %s87_s22, [#allocation8], %s7140_s29, %s7140_s29, %s7141_s15  }
  0x27   :  { %s112_s25 = sshll.u32 %s7146_s3, 4  ;;  %s134_s28 = sshll.u32 %s8609_s10, 4  ;;  %s113_s25 = int_to_ptr.vmem [resolvable:$true] %s112_s25  ;;  %s135_s28 = int_to_ptr.hbm [resolvable:$true] %s134_s28 }
  0x28   :  { %s7147_s6 = smov 256   ;;  %s7148_s0 = smov 16  }
  0x29   :  { %118 = dma.hbm_to_vmem [thread:$0]  %s111_s13, 2048, %s113_s25, [#allocation11], %s7147_s6, %s7147_s6, %s7148_s0  }
  0x2a   :  { %s7149_s30 = smov [#allocation15]   ;;  %s158_s8 = sshll.u32 %s8611_s12, 4  ;;  %s159_s8 = int_to_ptr.hbm [resolvable:$true] %s158_s8 }
  0x2b   :  { %s136_s18 = sshll.u32 %s7149_s30, 4  ;;  %s182_s10 = sshll.u32 %s8613_s14, 4  ;;  %s137_s18 = int_to_ptr.vmem [resolvable:$true] %s136_s18  ;;  %s183_s10 = int_to_ptr.hbm [resolvable:$true] %s182_s10 }
  0x2c   :  { %142 = dma.hbm_to_vmem [thread:$0]  %s135_s28, 512, %s137_s18, [#allocation14], %s7137_s4, %s7137_s4, %s7138_s26  }
  0x2d   :  { %s7150_s20 = smov [#allocation18]   ;;  %s7151_s2 = smov [#allocation21]  }
  0x2e   :  { %s160_s21 = sshll.u32 %s7150_s20, 4  ;;  %s184_s12 = sshll.u32 %s7151_s2, 4  ;;  %s161_s21 = int_to_ptr.vmem [resolvable:$true] %s160_s21  ;;  %s185_s12 = int_to_ptr.vmem [resolvable:$true] %s184_s12 }
  0x2f   :  { %166 = dma.hbm_to_vmem [thread:$0]  %s159_s8, 512, %s161_s21, [#allocation17], %s7137_s4, %s7137_s4, %s7138_s26  }
  0x30   :  { %s209_s24 = sshll.u32 %s8615_s16, 4  ;;  %s7152_s14 = smov [#allocation24]   ;;  %s210_s24 = int_to_ptr.hbm [resolvable:$true] %s209_s24 }
  0x31   :  { %190 = dma.hbm_to_vmem [thread:$0]  %s183_s10, 512, %s185_s12, [#allocation20], %s7137_s4, %s7137_s4, %s7138_s26  }
  0x32   :  { %s211_s13 = sshll.u32 %s7152_s14, 4  ;;  %s212_s13 = int_to_ptr.vmem [resolvable:$true] %s211_s13 }
  0x33   :  { %214 = dma.hbm_to_vmem [thread:$0]  %s210_s24, 16, %s212_s13, [#allocation23]  }
  0x34   :  { %7114 = dma.done.wait [#allocation3], 98304  }
  0x35   :  { %7115 = vsyncadd [#allocation3], 4294868992 }
  0x36   :  { %7116 = dma.done.wait [#allocation5], 65664  }
  0x37   :  { %7117 = vsyncadd [#allocation5], 4294901632 }
  0x38   :  { %7118 = dma.done.wait [#allocation8], 65600  }
  0x39   :  { %7119 = vsyncadd [#allocation8], 4294901696 }
  0x3a   :  { %7120 = dma.done.wait [#allocation11], 2176  }
  0x3b   :  { %7121 = vsyncadd [#allocation11], 4294965120 }
  0x3c   :  { %7122 = dma.done.wait [#allocation14], 544  }
  0x3d   :  { %7123 = vsyncadd [#allocation14], 4294966752 }
  0x3e   :  { %7124 = dma.done.wait [#allocation17], 528  }
  0x3f   :  { %7125 = vsyncadd [#allocation17], 4294966768 }
  0x40   :  { %7126 = dma.done.wait [#allocation20], 528  }
  0x41   :  { %7127 = vsyncadd [#allocation20], 4294966768 }
  0x42   :  { %7128 = dma.done.wait [#allocation23], 528  }
  0x43   :  { %7129 = vsyncadd [#allocation23], 4294966768  ;;  %v401_v0 = vld [vmem:[#allocation2 + $0x3c0] sm:$0xff]  ;;  %s8621_s26 = sld [smem:[#allocation33_spill]] }
  0x44   :  { %v529_v1 = vld [vmem:[#allocation2 + $0x7c0] sm:$0xff]  ;;  %1096 = vmatpush.msra.mxu0 %v401_v0 }
  0x45   :  { %v657_v2 = vld [vmem:[#allocation2 + $0xbc0] sm:$0xff]  ;;  %1116 = vmatpush.msra.mxu1 %v529_v1 }
  0x46   :  { %v785_v3 = vld [vmem:[#allocation2 + $0xfc0] sm:$0xff]  ;;  %1136 = vmatpush.msra.mxu2 %v657_v2  ;;  %v402_v2 = vld [vmem:[#allocation2 + $0x3c8] sm:$0xff] }
  0x47   :  { %v393_v4 = vld [vmem:[#allocation2 + $0x380] sm:$0xff]  ;;  %1156 = vmatpush.msra.mxu3 %v785_v3  ;;  %v530_v3 = vld [vmem:[#allocation2 + $0x7c8] sm:$0xff] }
  0x48   :  { %v521_v5 = vld [vmem:[#allocation2 + $0x780] sm:$0xff]  ;;  %1097 = vmatpush.msra.mxu0 %v393_v4 }
  0x49   :  { %v649_v6 = vld [vmem:[#allocation2 + $0xb80] sm:$0xff]  ;;  %1117 = vmatpush.msra.mxu1 %v521_v5 }
  0x4a   :  { %v777_v7 = vld [vmem:[#allocation2 + $0xf80] sm:$0xff]  ;;  %1137 = vmatpush.msra.mxu2 %v649_v6  ;;  %v394_v6 = vld [vmem:[#allocation2 + $0x388] sm:$0xff] }
  0x4b   :  { %v385_v8 = vld [vmem:[#allocation2 + $0x340] sm:$0xff]  ;;  %1157 = vmatpush.msra.mxu3 %v777_v7  ;;  %v522_v7 = vld [vmem:[#allocation2 + $0x788] sm:$0xff] }
  0x4c   :  { %v513_v9 = vld [vmem:[#allocation2 + $0x740] sm:$0xff]  ;;  %1098 = vmatpush.msra.mxu0 %v385_v8 }
  0x4d   :  { %v641_v10 = vld [vmem:[#allocation2 + $0xb40] sm:$0xff]  ;;  %1118 = vmatpush.msra.mxu1 %v513_v9 }
  0x4e   :  { %v769_v11 = vld [vmem:[#allocation2 + $0xf40] sm:$0xff]  ;;  %1138 = vmatpush.msra.mxu2 %v641_v10  ;;  %v386_v10 = vld [vmem:[#allocation2 + $0x348] sm:$0xff] }
  0x4f   :  { %v377_v12 = vld [vmem:[#allocation2 + $0x300] sm:$0xff]  ;;  %1158 = vmatpush.msra.mxu3 %v769_v11  ;;  %v514_v11 = vld [vmem:[#allocation2 + $0x748] sm:$0xff] }
  0x50   :  { %v505_v13 = vld [vmem:[#allocation2 + $0x700] sm:$0xff]  ;;  %1099 = vmatpush.msra.mxu0 %v377_v12 }
  0x51   :  { %v633_v14 = vld [vmem:[#allocation2 + $0xb00] sm:$0xff]  ;;  %1119 = vmatpush.msra.mxu1 %v505_v13 }
  0x52   :  { %v761_v15 = vld [vmem:[#allocation2 + $0xf00] sm:$0xff]  ;;  %1139 = vmatpush.msra.mxu2 %v633_v14 }
  0x53   :  { %v369_v16 = vld [vmem:[#allocation2 + $0x2c0] sm:$0xff]  ;;  %1159 = vmatpush.msra.mxu3 %v761_v15  ;;  %v279_v15 = vld [vmem:[%s8621_s26 + $0x20] sm:$0xff] }
  0x54   :  { %v497_v17 = vld [vmem:[#allocation2 + $0x6c0] sm:$0xff]  ;;  %1100 = vmatpush.msra.mxu0 %v369_v16  ;;  %v378_v16 = vld [vmem:[#allocation2 + $0x308] sm:$0xff]  ;;  %1079 = vst [vmem:[#allocation1 + $0x11] ss:$2 sm:$0xff] %v279_v15 }
  0x55   :  { %v625_v18 = vld [vmem:[#allocation2 + $0xac0] sm:$0xff]  ;;  %1120 = vmatpush.msra.mxu1 %v497_v17  ;;  %v506_v17 = vld [vmem:[#allocation2 + $0x708] sm:$0xff] }
  0x56   :  { %v753_v19 = vld [vmem:[#allocation2 + $0xec0] sm:$0xff]  ;;  %1140 = vmatpush.msra.mxu2 %v625_v18 }
  0x57   :  { %v361_v20 = vld [vmem:[#allocation2 + $0x280] sm:$0xff]  ;;  %1160 = vmatpush.msra.mxu3 %v753_v19 }
  0x58   :  { %v489_v21 = vld [vmem:[#allocation2 + $0x680] sm:$0xff]  ;;  %1101 = vmatpush.msra.mxu0 %v361_v20  ;;  %v275_v20 = vld [vmem:[%s8621_s26] sm:$0xff] }
  0x59   :  { %v617_v22 = vld [vmem:[#allocation2 + $0xa80] sm:$0xff]  ;;  %1121 = vmatpush.msra.mxu1 %v489_v21  ;;  %v278_v21 = vld [vmem:[%s8621_s26 + $0x18] sm:$0xff]  ;;  %1073 = vst [vmem:[#allocation1] ss:$2 sm:$0xff] %v275_v20  ;;  %v642_v20 = vld [vmem:[#allocation2 + $0xb48] sm:$0xff] }
  0x5a   :  { %v745_v23 = vld [vmem:[#allocation2 + $0xe80] sm:$0xff]  ;;  %1141 = vmatpush.msra.mxu2 %v617_v22  ;;  %v370_v22 = vld [vmem:[#allocation2 + $0x2c8] sm:$0xff]  ;;  %1075 = vst [vmem:[#allocation1 + $0x1] ss:$2 sm:$0xff] %v278_v21 }
  0x5b   :  { %v353_v24 = vld [vmem:[#allocation2 + $0x240] sm:$0xff]  ;;  %1161 = vmatpush.msra.mxu3 %v745_v23  ;;  %v498_v23 = vld [vmem:[#allocation2 + $0x6c8] sm:$0xff] }
  0x5c   :  { %v481_v25 = vld [vmem:[#allocation2 + $0x640] sm:$0xff]  ;;  %1102 = vmatpush.msra.mxu0 %v353_v24  ;;  %v770_v21 = vld [vmem:[#allocation2 + $0xf48] sm:$0xff] }
  0x5d   :  { %v609_v26 = vld [vmem:[#allocation2 + $0xa40] sm:$0xff]  ;;  %1122 = vmatpush.msra.mxu1 %v481_v25 }
  0x5e   :  { %v737_v27 = vld [vmem:[#allocation2 + $0xe40] sm:$0xff]  ;;  %1142 = vmatpush.msra.mxu2 %v609_v26  ;;  %v362_v26 = vld [vmem:[#allocation2 + $0x288] sm:$0xff] }
  0x5f   :  { %v345_v28 = vld [vmem:[#allocation2 + $0x200] sm:$0xff]  ;;  %1162 = vmatpush.msra.mxu3 %v737_v27  ;;  %v490_v27 = vld [vmem:[#allocation2 + $0x688] sm:$0xff] }
  0x60   :  { %v473_v29 = vld [vmem:[#allocation2 + $0x600] sm:$0xff]  ;;  %1103 = vmatpush.msra.mxu0 %v345_v28 }
  0x61   :  { %v601_v30 = vld [vmem:[#allocation2 + $0xa00] sm:$0xff]  ;;  %1123 = vmatpush.msra.mxu1 %v473_v29 }
  0x62   :  { %v729_v31 = vld [vmem:[#allocation2 + $0xe00] sm:$0xff]  ;;  %1143 = vmatpush.msra.mxu2 %v601_v30  ;;  %v354_v30 = vld [vmem:[#allocation2 + $0x248] sm:$0xff] }
  0x63   :  { %v337_v32 = vld [vmem:[#allocation2 + $0x1c0] sm:$0xff]  ;;  %1163 = vmatpush.msra.mxu3 %v729_v31  ;;  %v482_v31 = vld [vmem:[#allocation2 + $0x648] sm:$0xff] }
  0x64   :  { %v465_v33 = vld [vmem:[#allocation2 + $0x5c0] sm:$0xff]  ;;  %1104 = vmatpush.msra.mxu0 %v337_v32 }
  0x65   :  { %v593_v34 = vld [vmem:[#allocation2 + $0x9c0] sm:$0xff]  ;;  %1124 = vmatpush.msra.mxu1 %v465_v33 }
  0x66   :  { %v721_v35 = vld [vmem:[#allocation2 + $0xdc0] sm:$0xff]  ;;  %1144 = vmatpush.msra.mxu2 %v593_v34  ;;  %v277_v34 = vld [vmem:[%s8621_s26 + $0x10] sm:$0xff] }
  0x67   :  { %v329_v36 = vld [vmem:[#allocation2 + $0x180] sm:$0xff]  ;;  %1164 = vmatpush.msra.mxu3 %v721_v35  ;;  %v346_v35 = vld [vmem:[#allocation2 + $0x208] sm:$0xff]  ;;  %1081 = vst [vmem:[#allocation1 + $0x20] ss:$2 sm:$0xff] %v277_v34 }
  0x68   :  { %v457_v37 = vld [vmem:[#allocation2 + $0x580] sm:$0xff]  ;;  %1105 = vmatpush.msra.mxu0 %v329_v36  ;;  %v474_v36 = vld [vmem:[#allocation2 + $0x608] sm:$0xff] }
  0x69   :  { %v585_v38 = vld [vmem:[#allocation2 + $0x980] sm:$0xff]  ;;  %1125 = vmatpush.msra.mxu1 %v457_v37  ;;  %v874_v34 = vld [vmem:[#allocation2 + $0x1288] sm:$0xff] }
  0x6a   :  { %v713_v39 = vld [vmem:[#allocation2 + $0xd80] sm:$0xff]  ;;  %1145 = vmatpush.msra.mxu2 %v585_v38 }
  0x6b   :  { %v321_v40 = vld [vmem:[#allocation2 + $0x140] sm:$0xff]  ;;  %1165 = vmatpush.msra.mxu3 %v713_v39 }
  0x6c   :  { %v449_v41 = vld [vmem:[#allocation2 + $0x540] sm:$0xff]  ;;  %1106 = vmatpush.msra.mxu0 %v321_v40  ;;  %v338_v40 = vld [vmem:[#allocation2 + $0x1c8] sm:$0xff] }
  0x6d   :  { %v577_v42 = vld [vmem:[#allocation2 + $0x940] sm:$0xff]  ;;  %1126 = vmatpush.msra.mxu1 %v449_v41  ;;  %v466_v41 = vld [vmem:[#allocation2 + $0x5c8] sm:$0xff] }
  0x6e   :  { %v705_v43 = vld [vmem:[#allocation2 + $0xd40] sm:$0xff]  ;;  %1146 = vmatpush.msra.mxu2 %v577_v42 }
  0x6f   :  { %v313_v44 = vld [vmem:[#allocation2 + $0x100] sm:$0xff]  ;;  %1166 = vmatpush.msra.mxu3 %v705_v43 }
  0x70   :  { %v441_v45 = vld [vmem:[#allocation2 + $0x500] sm:$0xff]  ;;  %1107 = vmatpush.msra.mxu0 %v313_v44  ;;  %v330_v44 = vld [vmem:[#allocation2 + $0x188] sm:$0xff] }
  0x71   :  { %v569_v46 = vld [vmem:[#allocation2 + $0x900] sm:$0xff]  ;;  %1127 = vmatpush.msra.mxu1 %v441_v45  ;;  %v458_v45 = vld [vmem:[#allocation2 + $0x588] sm:$0xff] }
  0x72   :  { %v697_v47 = vld [vmem:[#allocation2 + $0xd00] sm:$0xff]  ;;  %1147 = vmatpush.msra.mxu2 %v569_v46 }
  0x73   :  { %v305_v48 = vld [vmem:[#allocation2 + $0xc0] sm:$0xff]  ;;  %1167 = vmatpush.msra.mxu3 %v697_v47 }
  0x74   :  { %v433_v49 = vld [vmem:[#allocation2 + $0x4c0] sm:$0xff]  ;;  %1108 = vmatpush.msra.mxu0 %v305_v48  ;;  %v322_v48 = vld [vmem:[#allocation2 + $0x148] sm:$0xff] }
  0x75   :  { %v561_v50 = vld [vmem:[#allocation2 + $0x8c0] sm:$0xff]  ;;  %1128 = vmatpush.msra.mxu1 %v433_v49  ;;  %v450_v49 = vld [vmem:[#allocation2 + $0x548] sm:$0xff] }
  0x76   :  { %v689_v51 = vld [vmem:[#allocation2 + $0xcc0] sm:$0xff]  ;;  %1148 = vmatpush.msra.mxu2 %v561_v50 }
  0x77   :  { %v297_v52 = vld [vmem:[#allocation2 + $0x80] sm:$0xff]  ;;  %1168 = vmatpush.msra.mxu3 %v689_v51 }
  0x78   :  { %v425_v53 = vld [vmem:[#allocation2 + $0x480] sm:$0xff]  ;;  %1109 = vmatpush.msra.mxu0 %v297_v52 }
  0x79   :  { %v553_v54 = vld [vmem:[#allocation2 + $0x880] sm:$0xff]  ;;  %1129 = vmatpush.msra.mxu1 %v425_v53  ;;  %v314_v53 = vld [vmem:[#allocation2 + $0x108] sm:$0xff] }
  0x7a   :  { %v681_v55 = vld [vmem:[#allocation2 + $0xc80] sm:$0xff]  ;;  %1149 = vmatpush.msra.mxu2 %v553_v54  ;;  %v442_v54 = vld [vmem:[#allocation2 + $0x508] sm:$0xff] }
  0x7b   :  { %v289_v56 = vld [vmem:[#allocation2 + $0x40] sm:$0xff]  ;;  %1169 = vmatpush.msra.mxu3 %v681_v55  ;;  %v7325_v55 = vld.sshfl [vmem:[#allocation1] sm:$0xff pattern:$0x75316420] }
  0x7c   :  { %v417_v57 = vld [vmem:[#allocation2 + $0x440] sm:$0xff]  ;;  %1110 = vmatpush.msra.mxu0 %v289_v56 }
  0x7d   :  { %v545_v58 = vld [vmem:[#allocation2 + $0x840] sm:$0xff]  ;;  %1130 = vmatpush.msra.mxu1 %v417_v57 }
  0x7e   :  { %v673_v59 = vld [vmem:[#allocation2 + $0xc40] sm:$0xff]  ;;  %1150 = vmatpush.msra.mxu2 %v545_v58 }
  0x7f   :  { %v281_v60 = vld [vmem:[#allocation2] sm:$0xff]  ;;  %1170 = vmatpush.msra.mxu3 %v673_v59  ;;  %v306_v59 = vld [vmem:[#allocation2 + $0xc8] sm:$0xff] }
  0x80   :  { %v409_v61 = vld [vmem:[#allocation2 + $0x400] sm:$0xff]  ;;  %1111 = vmatpush.msra.mxu0 %v281_v60  ;;  %v434_v60 = vld [vmem:[#allocation2 + $0x4c8] sm:$0xff] }
  0x81   :  { %v537_v62 = vld [vmem:[#allocation2 + $0x800] sm:$0xff]  ;;  %1131 = vmatpush.msra.mxu1 %v409_v61  ;;  %1112 = vmatmul.f32.vlgmr.msra.gmra.mxu0 %v7325_v55 }
  0x82   :  { %v665_v63 = vld [vmem:[#allocation2 + $0xc00] sm:$0xff]  ;;  %1151 = vmatpush.msra.mxu2 %v537_v62 }
  0x83   :  { %v913_v0 = vld [vmem:[#allocation2 + $0x13c0] sm:$0xff]  ;;  %1171 = vmatpush.msra.mxu3 %v665_v63 }
  0x84   :  { %v1041_v1 = vld [vmem:[#allocation2 + $0x17c0] sm:$0xff]  ;;  %1176 = vmatpush.msrb.mxu0 %v913_v0  ;;  %1216 = vmatpush.msrb.mxu2 %v402_v2  ;;  %v298_v0 = vld [vmem:[#allocation2 + $0x88] sm:$0xff] }
  0x85   :  { %v905_v4 = vld [vmem:[#allocation2 + $0x1380] sm:$0xff]  ;;  %1196 = vmatpush.msrb.mxu1 %v1041_v1  ;;  %1236 = vmatpush.msrb.mxu3 %v530_v3  ;;  %v426_v1 = vld [vmem:[#allocation2 + $0x488] sm:$0xff] }
  0x86   :  { %v1033_v5 = vld [vmem:[#allocation2 + $0x1780] sm:$0xff]  ;;  %1177 = vmatpush.msrb.mxu0 %v905_v4  ;;  %1217 = vmatpush.msrb.mxu2 %v394_v6  ;;  %v290_v4 = vld [vmem:[#allocation2 + $0x48] sm:$0xff] }
  0x87   :  { %v897_v8 = vld [vmem:[#allocation2 + $0x1340] sm:$0xff]  ;;  %1197 = vmatpush.msrb.mxu1 %v1033_v5  ;;  %1237 = vmatpush.msrb.mxu3 %v522_v7  ;;  %v418_v5 = vld [vmem:[#allocation2 + $0x448] sm:$0xff] }
  0x88   :  { %v1025_v9 = vld [vmem:[#allocation2 + $0x1740] sm:$0xff]  ;;  %1178 = vmatpush.msrb.mxu0 %v897_v8  ;;  %1218 = vmatpush.msrb.mxu2 %v386_v10  ;;  %v282_v8 = vld [vmem:[#allocation2 + $0x8] sm:$0xff] }
  0x89   :  { %v889_v12 = vld [vmem:[#allocation2 + $0x1300] sm:$0xff]  ;;  %1198 = vmatpush.msrb.mxu1 %v1025_v9  ;;  %1238 = vmatpush.msrb.mxu3 %v514_v11  ;;  %v410_v9 = vld [vmem:[#allocation2 + $0x408] sm:$0xff] }
  0x8a   :  { %v1017_v13 = vld [vmem:[#allocation2 + $0x1700] sm:$0xff]  ;;  %1179 = vmatpush.msrb.mxu0 %v889_v12  ;;  %1219 = vmatpush.msrb.mxu2 %v378_v16  ;;  %v786_v11 = vld [vmem:[#allocation2 + $0xfc8] sm:$0xff] }
  0x8b   :  { %v276_v14 = vld [vmem:[%s8621_s26 + $0x8] sm:$0xff]  ;;  %1199 = vmatpush.msrb.mxu1 %v1017_v13  ;;  %1239 = vmatpush.msrb.mxu3 %v506_v17  ;;  %v658_v12 = vld [vmem:[#allocation2 + $0xbc8] sm:$0xff] }
  0x8c   :  { %v881_v18 = vld [vmem:[#allocation2 + $0x12c0] sm:$0xff]  ;;  %1077 = vst [vmem:[#allocation1 + $0x10] ss:$2 sm:$0xff] %v276_v14  ;;  %1220 = vmatpush.msrb.mxu2 %v370_v22  ;;  %v914_v13 = vld [vmem:[#allocation2 + $0x13c8] sm:$0xff] }
  0x8d   :  { %v1009_v19 = vld [vmem:[#allocation2 + $0x16c0] sm:$0xff]  ;;  %1180 = vmatpush.msrb.mxu0 %v881_v18  ;;  %1240 = vmatpush.msrb.mxu3 %v498_v23  ;;  %v1042_v14 = vld [vmem:[#allocation2 + $0x17c8] sm:$0xff] }
  0x8e   :  { %v873_v24 = vld [vmem:[#allocation2 + $0x1280] sm:$0xff]  ;;  %1200 = vmatpush.msrb.mxu1 %v1009_v19  ;;  %1221 = vmatpush.msrb.mxu2 %v362_v26  ;;  %v650_v16 = vld [vmem:[#allocation2 + $0xb88] sm:$0xff] }
  0x8f   :  { %v1001_v25 = vld [vmem:[#allocation2 + $0x1680] sm:$0xff]  ;;  %1181 = vmatpush.msrb.mxu0 %v873_v24  ;;  %1241 = vmatpush.msrb.mxu3 %v490_v27  ;;  %v778_v17 = vld [vmem:[#allocation2 + $0xf88] sm:$0xff] }
  0x90   :  { %v865_v28 = vld [vmem:[#allocation2 + $0x1240] sm:$0xff]  ;;  %1201 = vmatpush.msrb.mxu1 %v1001_v25  ;;  %1222 = vmatpush.msrb.mxu2 %v354_v30  ;;  %v906_v18 = vld [vmem:[#allocation2 + $0x1388] sm:$0xff] }
  0x91   :  { %v993_v29 = vld [vmem:[#allocation2 + $0x1640] sm:$0xff]  ;;  %1182 = vmatpush.msrb.mxu0 %v865_v28  ;;  %1242 = vmatpush.msrb.mxu3 %v482_v31  ;;  %v1034_v19 = vld [vmem:[#allocation2 + $0x1788] sm:$0xff] }
  0x92   :  { %v857_v32 = vld [vmem:[#allocation2 + $0x1200] sm:$0xff]  ;;  %1202 = vmatpush.msrb.mxu1 %v993_v29  ;;  %1223 = vmatpush.msrb.mxu2 %v346_v35  ;;  %v898_v22 = vld [vmem:[#allocation2 + $0x1348] sm:$0xff] }
  0x93   :  { %v985_v33 = vld [vmem:[#allocation2 + $0x1600] sm:$0xff]  ;;  %1183 = vmatpush.msrb.mxu0 %v857_v32  ;;  %1243 = vmatpush.msrb.mxu3 %v474_v36  ;;  %v7323_v50 = vld.sshfl [vmem:[#allocation1 + $0x10] sm:$0xff pattern:$0x75316420] }
  0x94   :  { %v280_v37 = vld [vmem:[%s8621_s26 + $0x28] sm:$0xff]  ;;  %1203 = vmatpush.msrb.mxu1 %v985_v33  ;;  %1224 = vmatpush.msrb.mxu2 %v338_v40  ;;  %v7328_v56 = vld.sshfl [vmem:[#allocation1 + $0x18] sm:$0xff pattern:$0x75316420]  ;;  %v1026_v23 = vld [vmem:[#allocation2 + $0x1748] sm:$0xff] }
  0x95   :  { %v849_v38 = vld [vmem:[#allocation2 + $0x11c0] sm:$0xff]  ;;  %1083 = vst [vmem:[#allocation1 + $0x21] ss:$2 sm:$0xff] %v280_v37  ;;  %1244 = vmatpush.msrb.mxu3 %v466_v41  ;;  %1152 = vmatmul.f32.vlgmr.msra.gmra.mxu2 %v7323_v50  ;;  %v634_v24 = vld [vmem:[#allocation2 + $0xb08] sm:$0xff] }
  0x96   :  { %v977_v39 = vld [vmem:[#allocation2 + $0x15c0] sm:$0xff]  ;;  %1184 = vmatpush.msrb.mxu0 %v849_v38  ;;  %1225 = vmatpush.msrb.mxu2 %v330_v44  ;;  %v762_v25 = vld [vmem:[#allocation2 + $0xf08] sm:$0xff] }
  0x97   :  { %v841_v42 = vld [vmem:[#allocation2 + $0x1180] sm:$0xff]  ;;  %1204 = vmatpush.msrb.mxu1 %v977_v39  ;;  %1245 = vmatpush.msrb.mxu3 %v458_v45  ;;  %v890_v26 = vld [vmem:[#allocation2 + $0x1308] sm:$0xff] }
  0x98   :  { %v969_v43 = vld [vmem:[#allocation2 + $0x1580] sm:$0xff]  ;;  %1185 = vmatpush.msrb.mxu0 %v841_v42  ;;  %1226 = vmatpush.msrb.mxu2 %v322_v48  ;;  %v1018_v27 = vld [vmem:[#allocation2 + $0x1708] sm:$0xff] }
  0x99   :  { %v833_v46 = vld [vmem:[#allocation2 + $0x1140] sm:$0xff]  ;;  %1205 = vmatpush.msrb.mxu1 %v969_v43  ;;  %1246 = vmatpush.msrb.mxu3 %v450_v49  ;;  %v626_v28 = vld [vmem:[#allocation2 + $0xac8] sm:$0xff] }
  0x9a   :  { %v961_v47 = vld [vmem:[#allocation2 + $0x1540] sm:$0xff]  ;;  %1186 = vmatpush.msrb.mxu0 %v833_v46  ;;  %1227 = vmatpush.msrb.mxu2 %v314_v53  ;;  %v754_v29 = vld [vmem:[#allocation2 + $0xec8] sm:$0xff] }
  0x9b   :  { %v825_v51 = vld [vmem:[#allocation2 + $0x1100] sm:$0xff]  ;;  %1206 = vmatpush.msrb.mxu1 %v961_v47  ;;  %1247 = vmatpush.msrb.mxu3 %v442_v54  ;;  %v882_v30 = vld [vmem:[#allocation2 + $0x12c8] sm:$0xff] }
  0x9c   :  { %v953_v52 = vld [vmem:[#allocation2 + $0x1500] sm:$0xff]  ;;  %1187 = vmatpush.msrb.mxu0 %v825_v51  ;;  %1172 = vmatmul.f32.vlgmr.msra.gmra.mxu3 %v7328_v56  ;;  %v7335_v10 = vld.sshfl [vmem:[#allocation1 + $0x20] sm:$0xff pattern:$0x75316420]  ;;  %v1010_v31 = vld [vmem:[#allocation2 + $0x16c8] sm:$0xff] }
  0x9d   :  { %v817_v57 = vld [vmem:[#allocation2 + $0x10c0] sm:$0xff]  ;;  %1207 = vmatpush.msrb.mxu1 %v953_v52  ;;  %1228 = vmatpush.msrb.mxu2 %v306_v59  ;;  %v618_v32 = vld [vmem:[#allocation2 + $0xa88] sm:$0xff] }
  0x9e   :  { %v945_v58 = vld [vmem:[#allocation2 + $0x14c0] sm:$0xff]  ;;  %1188 = vmatpush.msrb.mxu0 %v817_v57  ;;  %1248 = vmatpush.msrb.mxu3 %v434_v60  ;;  %v746_v33 = vld [vmem:[#allocation2 + $0xe88] sm:$0xff] }
  0x9f   :  { %v7331_v61 = vld.sshfl [vmem:[#allocation1 + $0x8] sm:$0xff pattern:$0x75316420]  ;;  %1208 = vmatpush.msrb.mxu1 %v945_v58  ;;  %1229 = vmatpush.msrb.mxu2 %v298_v0  ;;  %v1002_v35 = vld [vmem:[#allocation2 + $0x1688] sm:$0xff] }
  0xa0   :  { %v809_v62 = vld [vmem:[#allocation2 + $0x1080] sm:$0xff]  ;;  %1132 = vmatmul.f32.vlgmr.msra.gmra.mxu1 %v7331_v61  ;;  %1249 = vmatpush.msrb.mxu3 %v426_v1  ;;  %v610_v36 = vld [vmem:[#allocation2 + $0xa48] sm:$0xff] }
  0xa1   :  { %v937_v63 = vld [vmem:[#allocation2 + $0x1480] sm:$0xff]  ;;  %1189 = vmatpush.msrb.mxu0 %v809_v62  ;;  %1230 = vmatpush.msrb.mxu2 %v290_v4  ;;  %v738_v37 = vld [vmem:[#allocation2 + $0xe48] sm:$0xff] }
  0xa2   :  { %v801_v2 = vld [vmem:[#allocation2 + $0x1040] sm:$0xff]  ;;  %1209 = vmatpush.msrb.mxu1 %v937_v63  ;;  %1250 = vmatpush.msrb.mxu3 %v418_v5  ;;  %v866_v38 = vld [vmem:[#allocation2 + $0x1248] sm:$0xff] }
  0xa3   :  { %v929_v3 = vld [vmem:[#allocation2 + $0x1440] sm:$0xff]  ;;  %1190 = vmatpush.msrb.mxu0 %v801_v2  ;;  %1231 = vmatpush.msrb.mxu2 %v282_v8  ;;  %v994_v39 = vld [vmem:[#allocation2 + $0x1648] sm:$0xff] }
  0xa4   :  { %v793_v6 = vld [vmem:[#allocation2 + $0x1000] sm:$0xff]  ;;  %1210 = vmatpush.msrb.mxu1 %v929_v3  ;;  %1251 = vmatpush.msrb.mxu3 %v410_v9  ;;  %v602_v40 = vld [vmem:[#allocation2 + $0xa08] sm:$0xff] }
  0xa5   :  { %v921_v7 = vld [vmem:[#allocation2 + $0x1400] sm:$0xff]  ;;  %1191 = vmatpush.msrb.mxu0 %v793_v6  ;;  %1296 = vmatpush.msra.mxu2 %v914_v13  ;;  %v730_v41 = vld [vmem:[#allocation2 + $0xe08] sm:$0xff] }
  0xa6   :  { %1211 = vmatpush.msrb.mxu1 %v921_v7  ;;  %v7337_v15 = vld.sshfl [vmem:[#allocation1 + $0x28] sm:$0xff pattern:$0x75316420]  ;;  %1192 = vmatmul.f32.vlgmr.msrb.gmra.mxu0 %v7335_v10  ;;  %v858_v42 = vld [vmem:[#allocation2 + $0x1208] sm:$0xff] }
  0xa7   :  { %1256 = vmatpush.msra.mxu0 %v658_v12  ;;  %1316 = vmatpush.msra.mxu3 %v1042_v14  ;;  %v986_v43 = vld [vmem:[#allocation2 + $0x1608] sm:$0xff] }
  0xa8   :  { %1276 = vmatpush.msra.mxu1 %v786_v11  ;;  %1297 = vmatpush.msra.mxu2 %v906_v18  ;;  %v594_v44 = vld [vmem:[#allocation2 + $0x9c8] sm:$0xff]  ;;  %v403_v18 = vld [vmem:[#allocation2 + $0x3d0] sm:$0xff] }
  0xa9   :  { %1212 = vmatmul.f32.vlgmr.msrb.gmra.mxu1 %v7337_v15  ;;  %1257 = vmatpush.msra.mxu0 %v650_v16  ;;  %v722_v45 = vld [vmem:[#allocation2 + $0xdc8] sm:$0xff] }
  0xaa   :  { %1277 = vmatpush.msra.mxu1 %v778_v17  ;;  %1317 = vmatpush.msra.mxu3 %v1034_v19  ;;  %v850_v46 = vld [vmem:[#allocation2 + $0x11c8] sm:$0xff]  ;;  %v531_v19 = vld [vmem:[#allocation2 + $0x7d0] sm:$0xff] }
  0xab   :  { %1258 = vmatpush.msra.mxu0 %v642_v20  ;;  %1298 = vmatpush.msra.mxu2 %v898_v22  ;;  %v978_v47 = vld [vmem:[#allocation2 + $0x15c8] sm:$0xff]  ;;  %v659_v20 = vld [vmem:[#allocation2 + $0xbd0] sm:$0xff] }
  0xac   :  { %1278 = vmatpush.msra.mxu1 %v770_v21  ;;  %1318 = vmatpush.msra.mxu3 %v1026_v23  ;;  %v586_v48 = vld [vmem:[#allocation2 + $0x988] sm:$0xff]  ;;  %v787_v21 = vld [vmem:[#allocation2 + $0xfd0] sm:$0xff] }
  0xad   :  { %1259 = vmatpush.msra.mxu0 %v634_v24  ;;  %1299 = vmatpush.msra.mxu2 %v890_v26  ;;  %v714_v49 = vld [vmem:[#allocation2 + $0xd88] sm:$0xff]  ;;  %v395_v22 = vld [vmem:[#allocation2 + $0x390] sm:$0xff] }
  0xae   :  { %1279 = vmatpush.msra.mxu1 %v762_v25  ;;  %1319 = vmatpush.msra.mxu3 %v1018_v27  ;;  %v842_v51 = vld [vmem:[#allocation2 + $0x1188] sm:$0xff]  ;;  %v523_v23 = vld [vmem:[#allocation2 + $0x790] sm:$0xff] }
  0xaf   :  { %1260 = vmatpush.msra.mxu0 %v626_v28  ;;  %1300 = vmatpush.msra.mxu2 %v882_v30  ;;  %v970_v52 = vld [vmem:[#allocation2 + $0x1588] sm:$0xff]  ;;  %v651_v24 = vld [vmem:[#allocation2 + $0xb90] sm:$0xff] }
  0xb0   :  { %1280 = vmatpush.msra.mxu1 %v754_v29  ;;  %1320 = vmatpush.msra.mxu3 %v1010_v31  ;;  %v578_v53 = vld [vmem:[#allocation2 + $0x948] sm:$0xff]  ;;  %v779_v25 = vld [vmem:[#allocation2 + $0xf90] sm:$0xff] }
  0xb1   :  { %1261 = vmatpush.msra.mxu0 %v618_v32  ;;  %1301 = vmatpush.msra.mxu2 %v874_v34  ;;  %v706_v54 = vld [vmem:[#allocation2 + $0xd48] sm:$0xff]  ;;  %v387_v26 = vld [vmem:[#allocation2 + $0x350] sm:$0xff] }
  0xb2   :  { %1281 = vmatpush.msra.mxu1 %v746_v33  ;;  %1321 = vmatpush.msra.mxu3 %v1002_v35  ;;  %v834_v57 = vld [vmem:[#allocation2 + $0x1148] sm:$0xff]  ;;  %v515_v27 = vld [vmem:[#allocation2 + $0x750] sm:$0xff] }
  0xb3   :  { %1262 = vmatpush.msra.mxu0 %v610_v36  ;;  %1302 = vmatpush.msra.mxu2 %v866_v38  ;;  %v962_v58 = vld [vmem:[#allocation2 + $0x1548] sm:$0xff]  ;;  %v643_v28 = vld [vmem:[#allocation2 + $0xb50] sm:$0xff] }
  0xb4   :  { %1282 = vmatpush.msra.mxu1 %v738_v37  ;;  %1322 = vmatpush.msra.mxu3 %v994_v39  ;;  %v570_v59 = vld [vmem:[#allocation2 + $0x908] sm:$0xff]  ;;  %v771_v29 = vld [vmem:[#allocation2 + $0xf50] sm:$0xff] }
  0xb5   :  { %1263 = vmatpush.msra.mxu0 %v602_v40  ;;  %1303 = vmatpush.msra.mxu2 %v858_v42  ;;  %v698_v60 = vld [vmem:[#allocation2 + $0xd08] sm:$0xff]  ;;  %v379_v30 = vld [vmem:[#allocation2 + $0x310] sm:$0xff] }
  0xb6   :  { %1283 = vmatpush.msra.mxu1 %v730_v41  ;;  %1323 = vmatpush.msra.mxu3 %v986_v43  ;;  %v826_v62 = vld [vmem:[#allocation2 + $0x1108] sm:$0xff]  ;;  %v507_v31 = vld [vmem:[#allocation2 + $0x710] sm:$0xff] }
  0xb7   :  { %1264 = vmatpush.msra.mxu0 %v594_v44  ;;  %1304 = vmatpush.msra.mxu2 %v850_v46  ;;  %v954_v63 = vld [vmem:[#allocation2 + $0x1508] sm:$0xff]  ;;  %v635_v32 = vld [vmem:[#allocation2 + $0xb10] sm:$0xff] }
  0xb8   :  { %1284 = vmatpush.msra.mxu1 %v722_v45  ;;  %1324 = vmatpush.msra.mxu3 %v978_v47  ;;  %v562_v0 = vld [vmem:[#allocation2 + $0x8c8] sm:$0xff]  ;;  %v763_v33 = vld [vmem:[#allocation2 + $0xf10] sm:$0xff] }
  0xb9   :  { %1265 = vmatpush.msra.mxu0 %v586_v48  ;;  %1305 = vmatpush.msra.mxu2 %v842_v51  ;;  %v690_v1 = vld [vmem:[#allocation2 + $0xcc8] sm:$0xff]  ;;  %v371_v34 = vld [vmem:[#allocation2 + $0x2d0] sm:$0xff] }
  0xba   :  { %1285 = vmatpush.msra.mxu1 %v714_v49  ;;  %1325 = vmatpush.msra.mxu3 %v970_v52  ;;  %v818_v2 = vld [vmem:[#allocation2 + $0x10c8] sm:$0xff]  ;;  %v499_v35 = vld [vmem:[#allocation2 + $0x6d0] sm:$0xff] }
  0xbb   :  { %1266 = vmatpush.msra.mxu0 %v578_v53  ;;  %1306 = vmatpush.msra.mxu2 %v834_v57  ;;  %v946_v3 = vld [vmem:[#allocation2 + $0x14c8] sm:$0xff]  ;;  %v627_v36 = vld [vmem:[#allocation2 + $0xad0] sm:$0xff] }
  0xbc   :  { %1286 = vmatpush.msra.mxu1 %v706_v54  ;;  %1326 = vmatpush.msra.mxu3 %v962_v58  ;;  %v554_v4 = vld [vmem:[#allocation2 + $0x888] sm:$0xff]  ;;  %v755_v37 = vld [vmem:[#allocation2 + $0xed0] sm:$0xff] }
  0xbd   :  { %1267 = vmatpush.msra.mxu0 %v570_v59  ;;  %1307 = vmatpush.msra.mxu2 %v826_v62  ;;  %v682_v5 = vld [vmem:[#allocation2 + $0xc88] sm:$0xff]  ;;  %v363_v38 = vld [vmem:[#allocation2 + $0x290] sm:$0xff] }
  0xbe   :  { %1287 = vmatpush.msra.mxu1 %v698_v60  ;;  %1327 = vmatpush.msra.mxu3 %v954_v63  ;;  %v810_v6 = vld [vmem:[#allocation2 + $0x1088] sm:$0xff]  ;;  %v491_v39 = vld [vmem:[#allocation2 + $0x690] sm:$0xff] }
  0xbf   :  { %1232 = vmatmul.f32.vlgmr.msrb.gmra.mxu2 %v7325_v55  ;;  %1268 = vmatpush.msra.mxu0 %v562_v0  ;;  %v938_v7 = vld [vmem:[#allocation2 + $0x1488] sm:$0xff]  ;;  %v619_v40 = vld [vmem:[#allocation2 + $0xa90] sm:$0xff] }
  0xc0   :  { %1288 = vmatpush.msra.mxu1 %v690_v1  ;;  %1308 = vmatpush.msra.mxu2 %v818_v2  ;;  %v546_v8 = vld [vmem:[#allocation2 + $0x848] sm:$0xff]  ;;  %v747_v41 = vld [vmem:[#allocation2 + $0xe90] sm:$0xff] }
  0xc1   :  { %1328 = vmatpush.msra.mxu3 %v946_v3  ;;  %1269 = vmatpush.msra.mxu0 %v554_v4  ;;  %v674_v9 = vld [vmem:[#allocation2 + $0xc48] sm:$0xff]  ;;  %v355_v42 = vld [vmem:[#allocation2 + $0x250] sm:$0xff] }
  0xc2   :  { %1252 = vmatmul.f32.vlgmr.msrb.gmra.mxu3 %v7331_v61  ;;  %1289 = vmatpush.msra.mxu1 %v682_v5  ;;  %v802_v11 = vld [vmem:[#allocation2 + $0x1048] sm:$0xff]  ;;  %v483_v43 = vld [vmem:[#allocation2 + $0x650] sm:$0xff] }
  0xc3   :  { %v930_v12 = vld [vmem:[#allocation2 + $0x1448] sm:$0xff]  ;;  %1309 = vmatpush.msra.mxu2 %v810_v6  ;;  %1329 = vmatpush.msra.mxu3 %v938_v7  ;;  %v611_v44 = vld [vmem:[#allocation2 + $0xa50] sm:$0xff] }
  0xc4   :  { %v538_v13 = vld [vmem:[#allocation2 + $0x808] sm:$0xff]  ;;  %1270 = vmatpush.msra.mxu0 %v546_v8  ;;  %1290 = vmatpush.msra.mxu1 %v674_v9  ;;  %v739_v45 = vld [vmem:[#allocation2 + $0xe50] sm:$0xff] }
  0xc5   :  { %v666_v14 = vld [vmem:[#allocation2 + $0xc08] sm:$0xff]  ;;  %1310 = vmatpush.msra.mxu2 %v802_v11  ;;  %1330 = vmatpush.msra.mxu3 %v930_v12  ;;  %v347_v46 = vld [vmem:[#allocation2 + $0x210] sm:$0xff] }
  0xc6   :  { %v794_v16 = vld [vmem:[#allocation2 + $0x1008] sm:$0xff]  ;;  %1271 = vmatpush.msra.mxu0 %v538_v13  ;;  %1291 = vmatpush.msra.mxu1 %v666_v14  ;;  %v475_v47 = vld [vmem:[#allocation2 + $0x610] sm:$0xff] }
  0xc7   :  { %v922_v17 = vld [vmem:[#allocation2 + $0x1408] sm:$0xff]  ;;  %1311 = vmatpush.msra.mxu2 %v794_v16  ;;  %1272 = vmatmul.f32.vlgmr.msra.gmra.mxu0 %v7323_v50  ;;  %v603_v48 = vld [vmem:[#allocation2 + $0xa10] sm:$0xff] }
  0xc8   :  { %1331 = vmatpush.msra.mxu3 %v922_v17  ;;  %1312 = vmatmul.f32.vlgmr.msra.gmra.mxu2 %v7335_v10  ;;  %v731_v49 = vld [vmem:[#allocation2 + $0xe10] sm:$0xff] }
  0xc9   :  { %1336 = vmatpush.msrb.mxu0 %v403_v18  ;;  %1356 = vmatpush.msrb.mxu1 %v531_v19  ;;  %v339_v51 = vld [vmem:[#allocation2 + $0x1d0] sm:$0xff] }
  0xca   :  { %1376 = vmatpush.msrb.mxu2 %v659_v20  ;;  %1396 = vmatpush.msrb.mxu3 %v787_v21  ;;  %v467_v52 = vld [vmem:[#allocation2 + $0x5d0] sm:$0xff] }
  0xcb   :  { %1332 = vmatmul.f32.vlgmr.msra.gmra.mxu3 %v7337_v15  ;;  %1337 = vmatpush.msrb.mxu0 %v395_v22  ;;  %v595_v53 = vld [vmem:[#allocation2 + $0x9d0] sm:$0xff] }
  0xcc   :  { %1357 = vmatpush.msrb.mxu1 %v523_v23  ;;  %1377 = vmatpush.msrb.mxu2 %v651_v24  ;;  %v723_v54 = vld [vmem:[#allocation2 + $0xdd0] sm:$0xff] }
  0xcd   :  { %1397 = vmatpush.msrb.mxu3 %v779_v25  ;;  %1292 = vmatmul.f32.vlgmr.msra.gmra.mxu1 %v7328_v56  ;;  %v331_v57 = vld [vmem:[#allocation2 + $0x190] sm:$0xff] }
  0xce   :  { %1338 = vmatpush.msrb.mxu0 %v387_v26  ;;  %1358 = vmatpush.msrb.mxu1 %v515_v27  ;;  %v459_v58 = vld [vmem:[#allocation2 + $0x590] sm:$0xff]  ;;  %v404_v26 = vld [vmem:[#allocation2 + $0x3d8] sm:$0xff] }
  0xcf   :  { %1378 = vmatpush.msrb.mxu2 %v643_v28  ;;  %1398 = vmatpush.msrb.mxu3 %v771_v29  ;;  %v587_v59 = vld [vmem:[#allocation2 + $0x990] sm:$0xff]  ;;  %v532_v27 = vld [vmem:[#allocation2 + $0x7d8] sm:$0xff] }
  0xd0   :  { %1339 = vmatpush.msrb.mxu0 %v379_v30  ;;  %1359 = vmatpush.msrb.mxu1 %v507_v31  ;;  %v715_v60 = vld [vmem:[#allocation2 + $0xd90] sm:$0xff]  ;;  %v396_v30 = vld [vmem:[#allocation2 + $0x398] sm:$0xff] }
  0xd1   :  { %1379 = vmatpush.msrb.mxu2 %v635_v32  ;;  %1399 = vmatpush.msrb.mxu3 %v763_v33  ;;  %v323_v62 = vld [vmem:[#allocation2 + $0x150] sm:$0xff]  ;;  %v524_v31 = vld [vmem:[#allocation2 + $0x798] sm:$0xff] }
  0xd2   :  { %1340 = vmatpush.msrb.mxu0 %v371_v34  ;;  %1360 = vmatpush.msrb.mxu1 %v499_v35  ;;  %v451_v63 = vld [vmem:[#allocation2 + $0x550] sm:$0xff]  ;;  %v388_v34 = vld [vmem:[#allocation2 + $0x358] sm:$0xff] }
  0xd3   :  { %1380 = vmatpush.msrb.mxu2 %v627_v36  ;;  %1400 = vmatpush.msrb.mxu3 %v755_v37  ;;  %v579_v0 = vld [vmem:[#allocation2 + $0x950] sm:$0xff]  ;;  %v516_v35 = vld [vmem:[#allocation2 + $0x758] sm:$0xff] }
  0xd4   :  { %1341 = vmatpush.msrb.mxu0 %v363_v38  ;;  %1361 = vmatpush.msrb.mxu1 %v491_v39  ;;  %v707_v1 = vld [vmem:[#allocation2 + $0xd50] sm:$0xff]  ;;  %v380_v38 = vld [vmem:[#allocation2 + $0x318] sm:$0xff] }
  0xd5   :  { %1381 = vmatpush.msrb.mxu2 %v619_v40  ;;  %1401 = vmatpush.msrb.mxu3 %v747_v41  ;;  %v315_v2 = vld [vmem:[#allocation2 + $0x110] sm:$0xff]  ;;  %v508_v39 = vld [vmem:[#allocation2 + $0x718] sm:$0xff] }
  0xd6   :  { %1342 = vmatpush.msrb.mxu0 %v355_v42  ;;  %1362 = vmatpush.msrb.mxu1 %v483_v43  ;;  %v443_v3 = vld [vmem:[#allocation2 + $0x510] sm:$0xff]  ;;  %v372_v42 = vld [vmem:[#allocation2 + $0x2d8] sm:$0xff] }
  0xd7   :  { %1382 = vmatpush.msrb.mxu2 %v611_v44  ;;  %1402 = vmatpush.msrb.mxu3 %v739_v45  ;;  %v571_v4 = vld [vmem:[#allocation2 + $0x910] sm:$0xff]  ;;  %v500_v43 = vld [vmem:[#allocation2 + $0x6d8] sm:$0xff] }
  0xd8   :  { %1343 = vmatpush.msrb.mxu0 %v347_v46  ;;  %1363 = vmatpush.msrb.mxu1 %v475_v47  ;;  %v699_v5 = vld [vmem:[#allocation2 + $0xd10] sm:$0xff]  ;;  %v364_v46 = vld [vmem:[#allocation2 + $0x298] sm:$0xff] }
  0xd9   :  { %1383 = vmatpush.msrb.mxu2 %v603_v48  ;;  %1403 = vmatpush.msrb.mxu3 %v731_v49  ;;  %v307_v6 = vld [vmem:[#allocation2 + $0xd0] sm:$0xff]  ;;  %v492_v47 = vld [vmem:[#allocation2 + $0x698] sm:$0xff] }
  0xda   :  { %1344 = vmatpush.msrb.mxu0 %v339_v51  ;;  %1364 = vmatpush.msrb.mxu1 %v467_v52  ;;  %v435_v7 = vld [vmem:[#allocation2 + $0x4d0] sm:$0xff]  ;;  %v356_v51 = vld [vmem:[#allocation2 + $0x258] sm:$0xff] }
  0xdb   :  { %1384 = vmatpush.msrb.mxu2 %v595_v53  ;;  %1404 = vmatpush.msrb.mxu3 %v723_v54  ;;  %v563_v8 = vld [vmem:[#allocation2 + $0x8d0] sm:$0xff]  ;;  %v484_v52 = vld [vmem:[#allocation2 + $0x658] sm:$0xff] }
  0xdc   :  { %1345 = vmatpush.msrb.mxu0 %v331_v57  ;;  %1365 = vmatpush.msrb.mxu1 %v459_v58  ;;  %v691_v9 = vld [vmem:[#allocation2 + $0xcd0] sm:$0xff]  ;;  %v348_v57 = vld [vmem:[#allocation2 + $0x218] sm:$0xff] }
  0xdd   :  { %1385 = vmatpush.msrb.mxu2 %v587_v59  ;;  %1405 = vmatpush.msrb.mxu3 %v715_v60  ;;  %v299_v11 = vld [vmem:[#allocation2 + $0x90] sm:$0xff]  ;;  %v476_v58 = vld [vmem:[#allocation2 + $0x618] sm:$0xff] }
  0xde   :  { %1346 = vmatpush.msrb.mxu0 %v323_v62  ;;  %1366 = vmatpush.msrb.mxu1 %v451_v63  ;;  %v427_v12 = vld [vmem:[#allocation2 + $0x490] sm:$0xff]  ;;  %v340_v62 = vld [vmem:[#allocation2 + $0x1d8] sm:$0xff] }
  0xdf   :  { %1386 = vmatpush.msrb.mxu2 %v579_v0  ;;  %1406 = vmatpush.msrb.mxu3 %v707_v1  ;;  %v555_v13 = vld [vmem:[#allocation2 + $0x890] sm:$0xff]  ;;  %v468_v63 = vld [vmem:[#allocation2 + $0x5d8] sm:$0xff] }
  0xe0   :  { %1347 = vmatpush.msrb.mxu0 %v315_v2  ;;  %1367 = vmatpush.msrb.mxu1 %v443_v3  ;;  %v683_v14 = vld [vmem:[#allocation2 + $0xc90] sm:$0xff]  ;;  %v332_v2 = vld [vmem:[#allocation2 + $0x198] sm:$0xff] }
  0xe1   :  { %1387 = vmatpush.msrb.mxu2 %v571_v4  ;;  %1407 = vmatpush.msrb.mxu3 %v699_v5  ;;  %v291_v16 = vld [vmem:[#allocation2 + $0x50] sm:$0xff]  ;;  %v460_v3 = vld [vmem:[#allocation2 + $0x598] sm:$0xff] }
  0xe2   :  { %1348 = vmatpush.msrb.mxu0 %v307_v6  ;;  %1368 = vmatpush.msrb.mxu1 %v435_v7  ;;  %v419_v17 = vld [vmem:[#allocation2 + $0x450] sm:$0xff]  ;;  %v324_v6 = vld [vmem:[#allocation2 + $0x158] sm:$0xff] }
  0xe3   :  { %1388 = vmatpush.msrb.mxu2 %v563_v8  ;;  %1408 = vmatpush.msrb.mxu3 %v691_v9  ;;  %v547_v18 = vld [vmem:[#allocation2 + $0x850] sm:$0xff]  ;;  %v452_v7 = vld [vmem:[#allocation2 + $0x558] sm:$0xff] }
  0xe4   :  { %1349 = vmatpush.msrb.mxu0 %v299_v11  ;;  %1369 = vmatpush.msrb.mxu1 %v427_v12  ;;  %v675_v19 = vld [vmem:[#allocation2 + $0xc50] sm:$0xff]  ;;  %v316_v11 = vld [vmem:[#allocation2 + $0x118] sm:$0xff] }
  0xe5   :  { %1389 = vmatpush.msrb.mxu2 %v555_v13  ;;  %1409 = vmatpush.msrb.mxu3 %v683_v14  ;;  %v283_v20 = vld [vmem:[#allocation2 + $0x10] sm:$0xff]  ;;  %v444_v12 = vld [vmem:[#allocation2 + $0x518] sm:$0xff] }
  0xe6   :  { %v411_v21 = vld [vmem:[#allocation2 + $0x410] sm:$0xff]  ;;  %1350 = vmatpush.msrb.mxu0 %v291_v16  ;;  %1370 = vmatpush.msrb.mxu1 %v419_v17  ;;  %v308_v16 = vld [vmem:[#allocation2 + $0xd8] sm:$0xff] }
  0xe7   :  { %v539_v22 = vld [vmem:[#allocation2 + $0x810] sm:$0xff]  ;;  %1390 = vmatpush.msrb.mxu2 %v547_v18  ;;  %1410 = vmatpush.msrb.mxu3 %v675_v19  ;;  %v436_v17 = vld [vmem:[#allocation2 + $0x4d8] sm:$0xff] }
  0xe8   :  { %v667_v23 = vld [vmem:[#allocation2 + $0xc10] sm:$0xff]  ;;  %1351 = vmatpush.msrb.mxu0 %v283_v20  ;;  %1371 = vmatpush.msrb.mxu1 %v411_v21  ;;  %v300_v20 = vld [vmem:[#allocation2 + $0x98] sm:$0xff] }
  0xe9   :  { %v915_v24 = vld [vmem:[#allocation2 + $0x13d0] sm:$0xff]  ;;  %1391 = vmatpush.msrb.mxu2 %v539_v22  ;;  %1411 = vmatpush.msrb.mxu3 %v667_v23  ;;  %v428_v21 = vld [vmem:[#allocation2 + $0x498] sm:$0xff] }
  0xea   :  { %v1043_v25 = vld [vmem:[#allocation2 + $0x17d0] sm:$0xff]  ;;  %1416 = vmatpush.msra.mxu0 %v915_v24  ;;  %1392 = vmatmul.f32.vlgmr.msrb.gmra.mxu2 %v7323_v50  ;;  %v292_v23 = vld [vmem:[#allocation2 + $0x58] sm:$0xff] }
  0xeb   :  { %v907_v28 = vld [vmem:[#allocation2 + $0x1390] sm:$0xff]  ;;  %1436 = vmatpush.msra.mxu1 %v1043_v25  ;;  %1456 = vmatpush.msra.mxu2 %v404_v26  ;;  %v420_v24 = vld [vmem:[#allocation2 + $0x458] sm:$0xff] }
  0xec   :  { %v1035_v29 = vld [vmem:[#allocation2 + $0x1790] sm:$0xff]  ;;  %1476 = vmatpush.msra.mxu3 %v532_v27  ;;  %1417 = vmatpush.msra.mxu0 %v907_v28  ;;  %v284_v25 = vld [vmem:[#allocation2 + $0x18] sm:$0xff] }
  0xed   :  { %v899_v32 = vld [vmem:[#allocation2 + $0x1350] sm:$0xff]  ;;  %1437 = vmatpush.msra.mxu1 %v1035_v29  ;;  %1457 = vmatpush.msra.mxu2 %v396_v30  ;;  %v412_v26 = vld [vmem:[#allocation2 + $0x418] sm:$0xff] }
  0xee   :  { %v1027_v33 = vld [vmem:[#allocation2 + $0x1750] sm:$0xff]  ;;  %1477 = vmatpush.msra.mxu3 %v524_v31  ;;  %1418 = vmatpush.msra.mxu0 %v899_v32  ;;  %v788_v27 = vld [vmem:[#allocation2 + $0xfd8] sm:$0xff] }
  0xef   :  { %v891_v36 = vld [vmem:[#allocation2 + $0x1310] sm:$0xff]  ;;  %1438 = vmatpush.msra.mxu1 %v1027_v33  ;;  %1458 = vmatpush.msra.mxu2 %v388_v34  ;;  %v916_v28 = vld [vmem:[#allocation2 + $0x13d8] sm:$0xff] }
  0xf0   :  { %v1019_v37 = vld [vmem:[#allocation2 + $0x1710] sm:$0xff]  ;;  %1478 = vmatpush.msra.mxu3 %v516_v35  ;;  %1419 = vmatpush.msra.mxu0 %v891_v36  ;;  %v1044_v29 = vld [vmem:[#allocation2 + $0x17d8] sm:$0xff] }
  0xf1   :  { %v883_v40 = vld [vmem:[#allocation2 + $0x12d0] sm:$0xff]  ;;  %1439 = vmatpush.msra.mxu1 %v1019_v37  ;;  %1459 = vmatpush.msra.mxu2 %v380_v38  ;;  %v652_v30 = vld [vmem:[#allocation2 + $0xb98] sm:$0xff] }
  0xf2   :  { %v1011_v41 = vld [vmem:[#allocation2 + $0x16d0] sm:$0xff]  ;;  %1479 = vmatpush.msra.mxu3 %v508_v39  ;;  %1420 = vmatpush.msra.mxu0 %v883_v40  ;;  %v780_v31 = vld [vmem:[#allocation2 + $0xf98] sm:$0xff] }
  0xf3   :  { %v875_v44 = vld [vmem:[#allocation2 + $0x1290] sm:$0xff]  ;;  %1440 = vmatpush.msra.mxu1 %v1011_v41  ;;  %1460 = vmatpush.msra.mxu2 %v372_v42  ;;  %v908_v32 = vld [vmem:[#allocation2 + $0x1398] sm:$0xff] }
  0xf4   :  { %v1003_v45 = vld [vmem:[#allocation2 + $0x1690] sm:$0xff]  ;;  %1480 = vmatpush.msra.mxu3 %v500_v43  ;;  %1421 = vmatpush.msra.mxu0 %v875_v44  ;;  %v1036_v33 = vld [vmem:[#allocation2 + $0x1798] sm:$0xff] }
  0xf5   :  { %v867_v48 = vld [vmem:[#allocation2 + $0x1250] sm:$0xff]  ;;  %1441 = vmatpush.msra.mxu1 %v1003_v45  ;;  %1461 = vmatpush.msra.mxu2 %v364_v46  ;;  %v644_v34 = vld [vmem:[#allocation2 + $0xb58] sm:$0xff] }
  0xf6   :  { %v995_v49 = vld [vmem:[#allocation2 + $0x1650] sm:$0xff]  ;;  %1481 = vmatpush.msra.mxu3 %v492_v47  ;;  %1422 = vmatpush.msra.mxu0 %v867_v48  ;;  %v772_v35 = vld [vmem:[#allocation2 + $0xf58] sm:$0xff] }
  0xf7   :  { %v859_v53 = vld [vmem:[#allocation2 + $0x1210] sm:$0xff]  ;;  %1442 = vmatpush.msra.mxu1 %v995_v49  ;;  %1462 = vmatpush.msra.mxu2 %v356_v51  ;;  %v900_v36 = vld [vmem:[#allocation2 + $0x1358] sm:$0xff] }
  0xf8   :  { %v987_v54 = vld [vmem:[#allocation2 + $0x1610] sm:$0xff]  ;;  %1482 = vmatpush.msra.mxu3 %v484_v52  ;;  %1423 = vmatpush.msra.mxu0 %v859_v53  ;;  %v1028_v37 = vld [vmem:[#allocation2 + $0x1758] sm:$0xff] }
  0xf9   :  { %v851_v59 = vld [vmem:[#allocation2 + $0x11d0] sm:$0xff]  ;;  %1443 = vmatpush.msra.mxu1 %v987_v54  ;;  %1463 = vmatpush.msra.mxu2 %v348_v57  ;;  %v636_v38 = vld [vmem:[#allocation2 + $0xb18] sm:$0xff] }
  0xfa   :  { %v979_v60 = vld [vmem:[#allocation2 + $0x15d0] sm:$0xff]  ;;  %1483 = vmatpush.msra.mxu3 %v476_v58  ;;  %1424 = vmatpush.msra.mxu0 %v851_v59  ;;  %v892_v39 = vld [vmem:[#allocation2 + $0x1318] sm:$0xff] }
  0xfb   :  { %v843_v0 = vld [vmem:[#allocation2 + $0x1190] sm:$0xff]  ;;  %1444 = vmatpush.msra.mxu1 %v979_v60  ;;  %1464 = vmatpush.msra.mxu2 %v340_v62  ;;  %v1020_v40 = vld [vmem:[#allocation2 + $0x1718] sm:$0xff] }
  0xfc   :  { %v971_v1 = vld [vmem:[#allocation2 + $0x1590] sm:$0xff]  ;;  %1484 = vmatpush.msra.mxu3 %v468_v63  ;;  %1425 = vmatpush.msra.mxu0 %v843_v0  ;;  %v628_v41 = vld [vmem:[#allocation2 + $0xad8] sm:$0xff] }
  0xfd   :  { %v835_v4 = vld [vmem:[#allocation2 + $0x1150] sm:$0xff]  ;;  %1445 = vmatpush.msra.mxu1 %v971_v1  ;;  %1465 = vmatpush.msra.mxu2 %v332_v2  ;;  %v756_v42 = vld [vmem:[#allocation2 + $0xed8] sm:$0xff] }
  0xfe   :  { %v963_v5 = vld [vmem:[#allocation2 + $0x1550] sm:$0xff]  ;;  %1485 = vmatpush.msra.mxu3 %v460_v3  ;;  %1426 = vmatpush.msra.mxu0 %v835_v4  ;;  %v1012_v43 = vld [vmem:[#allocation2 + $0x16d8] sm:$0xff] }
  0xff   :  { %v827_v8 = vld [vmem:[#allocation2 + $0x1110] sm:$0xff]  ;;  %1446 = vmatpush.msra.mxu1 %v963_v5  ;;  %1466 = vmatpush.msra.mxu2 %v324_v6  ;;  %v620_v44 = vld [vmem:[#allocation2 + $0xa98] sm:$0xff] }
 0x100   :  { %v955_v9 = vld [vmem:[#allocation2 + $0x1510] sm:$0xff]  ;;  %1486 = vmatpush.msra.mxu3 %v452_v7  ;;  %1427 = vmatpush.msra.mxu0 %v827_v8  ;;  %v748_v45 = vld [vmem:[#allocation2 + $0xe98] sm:$0xff] }
 0x101   :  { %v819_v13 = vld [vmem:[#allocation2 + $0x10d0] sm:$0xff]  ;;  %1447 = vmatpush.msra.mxu1 %v955_v9  ;;  %1467 = vmatpush.msra.mxu2 %v316_v11  ;;  %v876_v46 = vld [vmem:[#allocation2 + $0x1298] sm:$0xff] }
 0x102   :  { %v947_v14 = vld [vmem:[#allocation2 + $0x14d0] sm:$0xff]  ;;  %1487 = vmatpush.msra.mxu3 %v444_v12  ;;  %1352 = vmatmul.f32.vlgmr.msrb.gmra.mxu0 %v7325_v55  ;;  %v1004_v47 = vld [vmem:[#allocation2 + $0x1698] sm:$0xff] }
 0x103   :  { %1412 = vmatmul.f32.vlgmr.msrb.gmra.mxu3 %v7328_v56  ;;  %1428 = vmatpush.msra.mxu0 %v819_v13  ;;  %v811_v18 = vld [vmem:[#allocation2 + $0x1090] sm:$0xff]  ;;  %v612_v48 = vld [vmem:[#allocation2 + $0xa58] sm:$0xff] }
 0x104   :  { %v939_v19 = vld [vmem:[#allocation2 + $0x1490] sm:$0xff]  ;;  %1448 = vmatpush.msra.mxu1 %v947_v14  ;;  %1468 = vmatpush.msra.mxu2 %v308_v16  ;;  %v740_v49 = vld [vmem:[#allocation2 + $0xe58] sm:$0xff] }
 0x105   :  { %1488 = vmatpush.msra.mxu3 %v436_v17  ;;  %1372 = vmatmul.f32.vlgmr.msrb.gmra.mxu1 %v7331_v61  ;;  %v803_v50 = vld [vmem:[#allocation2 + $0x1050] sm:$0xff]  ;;  %v660_v61 = vld [vmem:[#allocation2 + $0xbd8] sm:$0xff] }
 0x106   :  { %v931_v22 = vld [vmem:[#allocation2 + $0x1450] sm:$0xff]  ;;  %1429 = vmatpush.msra.mxu0 %v811_v18  ;;  %1449 = vmatpush.msra.mxu1 %v939_v19  ;;  %v868_v51 = vld [vmem:[#allocation2 + $0x1258] sm:$0xff] }
 0x107   :  { %1469 = vmatpush.msra.mxu2 %v300_v20  ;;  %1489 = vmatpush.msra.mxu3 %v428_v21  ;;  %v795_v55 = vld [vmem:[#allocation2 + $0x1010] sm:$0xff]  ;;  %v996_v52 = vld [vmem:[#allocation2 + $0x1658] sm:$0xff] }
 0x108   :  { %v923_v56 = vld [vmem:[#allocation2 + $0x1410] sm:$0xff]  ;;  %1430 = vmatpush.msra.mxu0 %v803_v50  ;;  %1450 = vmatpush.msra.mxu1 %v931_v22  ;;  %v604_v53 = vld [vmem:[#allocation2 + $0xa18] sm:$0xff] }
 0x109   :  { %1470 = vmatpush.msra.mxu2 %v292_v23  ;;  %1490 = vmatpush.msra.mxu3 %v420_v24  ;;  %v732_v54 = vld [vmem:[#allocation2 + $0xe18] sm:$0xff]  ;;  %v7356_v24 = vld.sshfl [vmem:[#allocation1 + $0x8] sm:$0xff pattern:$0x75316420] }
 0x10a   :  { %1431 = vmatpush.msra.mxu0 %v795_v55  ;;  %1451 = vmatpush.msra.mxu1 %v923_v56  ;;  %v860_v57 = vld [vmem:[#allocation2 + $0x1218] sm:$0xff] }
 0x10b   :  { %1471 = vmatpush.msra.mxu2 %v284_v25  ;;  %1491 = vmatpush.msra.mxu3 %v412_v26  ;;  %v988_v58 = vld [vmem:[#allocation2 + $0x1618] sm:$0xff] }
 0x10c   :  { %1432 = vmatmul.f32.vlgmr.msra.gmra.mxu0 %v7335_v10  ;;  %1516 = vmatpush.msrb.mxu1 %v788_v27  ;;  %v764_v10 = vld [vmem:[#allocation2 + $0xf18] sm:$0xff] }
 0x10d   :  { %1496 = vmatpush.msrb.mxu0 %v660_v61  ;;  %1536 = vmatpush.msrb.mxu2 %v916_v28  ;;  %v596_v59 = vld [vmem:[#allocation2 + $0x9d8] sm:$0xff]  ;;  %v405_v28 = vld [vmem:[#allocation2 + $0x3e0] sm:$0xff] }
 0x10e   :  { %1556 = vmatpush.msrb.mxu3 %v1044_v29  ;;  %1452 = vmatmul.f32.vlgmr.msra.gmra.mxu1 %v7337_v15  ;;  %v884_v15 = vld [vmem:[#allocation2 + $0x12d8] sm:$0xff]  ;;  %v533_v29 = vld [vmem:[#allocation2 + $0x7e0] sm:$0xff] }
 0x10f   :  { %1497 = vmatpush.msrb.mxu0 %v652_v30  ;;  %1517 = vmatpush.msrb.mxu1 %v780_v31  ;;  %v724_v60 = vld [vmem:[#allocation2 + $0xdd8] sm:$0xff]  ;;  %v661_v30 = vld [vmem:[#allocation2 + $0xbe0] sm:$0xff] }
 0x110   :  { %1537 = vmatpush.msrb.mxu2 %v908_v32  ;;  %1557 = vmatpush.msrb.mxu3 %v1036_v33  ;;  %v852_v62 = vld [vmem:[#allocation2 + $0x11d8] sm:$0xff]  ;;  %v789_v31 = vld [vmem:[#allocation2 + $0xfe0] sm:$0xff] }
 0x111   :  { %1498 = vmatpush.msrb.mxu0 %v644_v34  ;;  %1518 = vmatpush.msrb.mxu1 %v772_v35  ;;  %v980_v63 = vld [vmem:[#allocation2 + $0x15d8] sm:$0xff]  ;;  %v397_v33 = vld [vmem:[#allocation2 + $0x3a0] sm:$0xff] }
 0x112   :  { %1538 = vmatpush.msrb.mxu2 %v900_v36  ;;  %1558 = vmatpush.msrb.mxu3 %v1028_v37  ;;  %v588_v0 = vld [vmem:[#allocation2 + $0x998] sm:$0xff]  ;;  %v525_v34 = vld [vmem:[#allocation2 + $0x7a0] sm:$0xff]  ;;  %v7362_v36 = vld.sshfl [vmem:[#allocation1 + $0x10] sm:$0xff pattern:$0x75316420] }
 0x113   :  { %1499 = vmatpush.msrb.mxu0 %v636_v38  ;;  %1519 = vmatpush.msrb.mxu1 %v764_v10  ;;  %v716_v1 = vld [vmem:[#allocation2 + $0xd98] sm:$0xff]  ;;  %v653_v35 = vld [vmem:[#allocation2 + $0xba0] sm:$0xff] }
 0x114   :  { %1539 = vmatpush.msrb.mxu2 %v892_v39  ;;  %1559 = vmatpush.msrb.mxu3 %v1020_v40  ;;  %v844_v2 = vld [vmem:[#allocation2 + $0x1198] sm:$0xff]  ;;  %v781_v37 = vld [vmem:[#allocation2 + $0xfa0] sm:$0xff] }
 0x115   :  { %1500 = vmatpush.msrb.mxu0 %v628_v41  ;;  %1520 = vmatpush.msrb.mxu1 %v756_v42  ;;  %v972_v3 = vld [vmem:[#allocation2 + $0x1598] sm:$0xff]  ;;  %v7365_v38 = vld.sshfl [vmem:[#allocation1 + $0x28] sm:$0xff pattern:$0x75316420] }
 0x116   :  { %1540 = vmatpush.msrb.mxu2 %v884_v15  ;;  %1560 = vmatpush.msrb.mxu3 %v1012_v43  ;;  %v580_v4 = vld [vmem:[#allocation2 + $0x958] sm:$0xff]  ;;  %v389_v10 = vld [vmem:[#allocation2 + $0x360] sm:$0xff]  ;;  %v7368_v42 = vld.sshfl [vmem:[#allocation1 + $0x18] sm:$0xff pattern:$0x75316420] }
 0x117   :  { %1501 = vmatpush.msrb.mxu0 %v620_v44  ;;  %1521 = vmatpush.msrb.mxu1 %v748_v45  ;;  %v708_v5 = vld [vmem:[#allocation2 + $0xd58] sm:$0xff]  ;;  %v517_v39 = vld [vmem:[#allocation2 + $0x760] sm:$0xff] }
 0x118   :  { %1541 = vmatpush.msrb.mxu2 %v876_v46  ;;  %1561 = vmatpush.msrb.mxu3 %v1004_v47  ;;  %v836_v6 = vld [vmem:[#allocation2 + $0x1158] sm:$0xff]  ;;  %v645_v40 = vld [vmem:[#allocation2 + $0xb60] sm:$0xff] }
 0x119   :  { %1502 = vmatpush.msrb.mxu0 %v612_v48  ;;  %1522 = vmatpush.msrb.mxu1 %v740_v49  ;;  %v964_v7 = vld [vmem:[#allocation2 + $0x1558] sm:$0xff]  ;;  %v773_v41 = vld [vmem:[#allocation2 + $0xf60] sm:$0xff] }
 0x11a   :  { %1542 = vmatpush.msrb.mxu2 %v868_v51  ;;  %1562 = vmatpush.msrb.mxu3 %v996_v52  ;;  %v572_v8 = vld [vmem:[#allocation2 + $0x918] sm:$0xff]  ;;  %v381_v15 = vld [vmem:[#allocation2 + $0x320] sm:$0xff] }
 0x11b   :  { %1503 = vmatpush.msrb.mxu0 %v604_v53  ;;  %1523 = vmatpush.msrb.mxu1 %v732_v54  ;;  %v700_v9 = vld [vmem:[#allocation2 + $0xd18] sm:$0xff]  ;;  %v509_v43 = vld [vmem:[#allocation2 + $0x720] sm:$0xff] }
 0x11c   :  { %1543 = vmatpush.msrb.mxu2 %v860_v57  ;;  %1563 = vmatpush.msrb.mxu3 %v988_v58  ;;  %v828_v11 = vld [vmem:[#allocation2 + $0x1118] sm:$0xff]  ;;  %v637_v44 = vld [vmem:[#allocation2 + $0xb20] sm:$0xff] }
 0x11d   :  { %1504 = vmatpush.msrb.mxu0 %v596_v59  ;;  %1524 = vmatpush.msrb.mxu1 %v724_v60  ;;  %v956_v12 = vld [vmem:[#allocation2 + $0x1518] sm:$0xff]  ;;  %v765_v45 = vld [vmem:[#allocation2 + $0xf20] sm:$0xff] }
 0x11e   :  { %1544 = vmatpush.msrb.mxu2 %v852_v62  ;;  %1564 = vmatpush.msrb.mxu3 %v980_v63  ;;  %v564_v13 = vld [vmem:[#allocation2 + $0x8d8] sm:$0xff]  ;;  %v373_v46 = vld [vmem:[#allocation2 + $0x2e0] sm:$0xff] }
 0x11f   :  { %1505 = vmatpush.msrb.mxu0 %v588_v0  ;;  %1525 = vmatpush.msrb.mxu1 %v716_v1  ;;  %v692_v14 = vld [vmem:[#allocation2 + $0xcd8] sm:$0xff]  ;;  %v501_v47 = vld [vmem:[#allocation2 + $0x6e0] sm:$0xff] }
 0x120   :  { %1545 = vmatpush.msrb.mxu2 %v844_v2  ;;  %1565 = vmatpush.msrb.mxu3 %v972_v3  ;;  %v820_v16 = vld [vmem:[#allocation2 + $0x10d8] sm:$0xff]  ;;  %v629_v48 = vld [vmem:[#allocation2 + $0xae0] sm:$0xff] }
 0x121   :  { %1506 = vmatpush.msrb.mxu0 %v580_v4  ;;  %1526 = vmatpush.msrb.mxu1 %v708_v5  ;;  %v948_v17 = vld [vmem:[#allocation2 + $0x14d8] sm:$0xff]  ;;  %v757_v49 = vld [vmem:[#allocation2 + $0xee0] sm:$0xff] }
 0x122   :  { %1546 = vmatpush.msrb.mxu2 %v836_v6  ;;  %1566 = vmatpush.msrb.mxu3 %v964_v7  ;;  %v556_v18 = vld [vmem:[#allocation2 + $0x898] sm:$0xff]  ;;  %v365_v51 = vld [vmem:[#allocation2 + $0x2a0] sm:$0xff] }
 0x123   :  { %1507 = vmatpush.msrb.mxu0 %v572_v8  ;;  %1527 = vmatpush.msrb.mxu1 %v700_v9  ;;  %v7353_v19 = vld.sshfl [vmem:[#allocation1] sm:$0xff pattern:$0x75316420]  ;;  %v493_v52 = vld [vmem:[#allocation2 + $0x6a0] sm:$0xff] }
 0x124   :  { %1547 = vmatpush.msrb.mxu2 %v828_v11  ;;  %1567 = vmatpush.msrb.mxu3 %v956_v12  ;;  %v684_v20 = vld [vmem:[#allocation2 + $0xc98] sm:$0xff]  ;;  %v621_v53 = vld [vmem:[#allocation2 + $0xaa0] sm:$0xff] }
 0x125   :  { %1472 = vmatmul.f32.vlgmr.msra.gmra.mxu2 %v7353_v19  ;;  %1508 = vmatpush.msrb.mxu0 %v564_v13  ;;  %v812_v21 = vld [vmem:[#allocation2 + $0x1098] sm:$0xff]  ;;  %v749_v54 = vld [vmem:[#allocation2 + $0xea0] sm:$0xff] }
 0x126   :  { %1528 = vmatpush.msrb.mxu1 %v692_v14  ;;  %1548 = vmatpush.msrb.mxu2 %v820_v16  ;;  %v940_v50 = vld [vmem:[#allocation2 + $0x1498] sm:$0xff]  ;;  %v357_v57 = vld [vmem:[#allocation2 + $0x260] sm:$0xff] }
 0x127   :  { %1568 = vmatpush.msrb.mxu3 %v948_v17  ;;  %1509 = vmatpush.msrb.mxu0 %v556_v18  ;;  %v548_v22 = vld [vmem:[#allocation2 + $0x858] sm:$0xff]  ;;  %v485_v58 = vld [vmem:[#allocation2 + $0x660] sm:$0xff] }
 0x128   :  { %v676_v23 = vld [vmem:[#allocation2 + $0xc58] sm:$0xff]  ;;  %1492 = vmatmul.f32.vlgmr.msra.gmra.mxu3 %v7356_v24  ;;  %1529 = vmatpush.msrb.mxu1 %v684_v20  ;;  %v613_v59 = vld [vmem:[#allocation2 + $0xa60] sm:$0xff] }
 0x129   :  { %v804_v55 = vld [vmem:[#allocation2 + $0x1058] sm:$0xff]  ;;  %1549 = vmatpush.msrb.mxu2 %v812_v21  ;;  %1569 = vmatpush.msrb.mxu3 %v940_v50  ;;  %v741_v60 = vld [vmem:[#allocation2 + $0xe60] sm:$0xff] }
 0x12a   :  { %v932_v56 = vld [vmem:[#allocation2 + $0x1458] sm:$0xff]  ;;  %1510 = vmatpush.msrb.mxu0 %v548_v22  ;;  %1530 = vmatpush.msrb.mxu1 %v676_v23  ;;  %v349_v62 = vld [vmem:[#allocation2 + $0x220] sm:$0xff] }
 0x12b   :  { %v540_v25 = vld [vmem:[#allocation2 + $0x818] sm:$0xff]  ;;  %1550 = vmatpush.msrb.mxu2 %v804_v55  ;;  %1570 = vmatpush.msrb.mxu3 %v932_v56  ;;  %v477_v63 = vld [vmem:[#allocation2 + $0x620] sm:$0xff] }
 0x12c   :  { %v668_v26 = vld [vmem:[#allocation2 + $0xc18] sm:$0xff]  ;;  %1511 = vmatpush.msrb.mxu0 %v540_v25  ;;  %v605_v0 = vld [vmem:[#allocation2 + $0xa20] sm:$0xff] }
 0x12d   :  { %v796_v27 = vld [vmem:[#allocation2 + $0x1018] sm:$0xff]  ;;  %1531 = vmatpush.msrb.mxu1 %v668_v26  ;;  %1512 = vmatmul.f32.vlgmr.msrb.gmra.mxu0 %v7362_v36  ;;  %v733_v1 = vld [vmem:[#allocation2 + $0xe20] sm:$0xff] }
 0x12e   :  { %v924_v61 = vld [vmem:[#allocation2 + $0x1418] sm:$0xff]  ;;  %1551 = vmatpush.msrb.mxu2 %v796_v27  ;;  %1576 = vmatpush.msra.mxu0 %v405_v28  ;;  %v341_v2 = vld [vmem:[#allocation2 + $0x1e0] sm:$0xff] }
 0x12f   :  { %1571 = vmatpush.msrb.mxu3 %v924_v61  ;;  %v7359_v32 = vld.sshfl [vmem:[#allocation1 + $0x20] sm:$0xff pattern:$0x75316420]  ;;  %1596 = vmatpush.msra.mxu1 %v533_v29  ;;  %v469_v3 = vld [vmem:[#allocation2 + $0x5e0] sm:$0xff] }
 0x130   :  { %1552 = vmatmul.f32.vlgmr.msrb.gmra.mxu2 %v7359_v32  ;;  %1572 = vmatmul.f32.vlgmr.msrb.gmra.mxu3 %v7365_v38  ;;  %v597_v4 = vld [vmem:[#allocation2 + $0x9e0] sm:$0xff] }
 0x131   :  { %1616 = vmatpush.msra.mxu2 %v661_v30  ;;  %1636 = vmatpush.msra.mxu3 %v789_v31  ;;  %v725_v5 = vld [vmem:[#allocation2 + $0xde0] sm:$0xff] }
 0x132   :  { %1577 = vmatpush.msra.mxu0 %v397_v33  ;;  %1597 = vmatpush.msra.mxu1 %v525_v34  ;;  %v333_v6 = vld [vmem:[#allocation2 + $0x1a0] sm:$0xff] }
 0x133   :  { %1617 = vmatpush.msra.mxu2 %v653_v35  ;;  %1637 = vmatpush.msra.mxu3 %v781_v37  ;;  %v461_v7 = vld [vmem:[#allocation2 + $0x5a0] sm:$0xff] }
 0x134   :  { %1532 = vmatmul.f32.vlgmr.msrb.gmra.mxu1 %v7368_v42  ;;  %1578 = vmatpush.msra.mxu0 %v389_v10  ;;  %v589_v8 = vld [vmem:[#allocation2 + $0x9a0] sm:$0xff]  ;;  %v406_v10 = vld [vmem:[#allocation2 + $0x3e8] sm:$0xff] }
 0x135   :  { %1598 = vmatpush.msra.mxu1 %v517_v39  ;;  %1618 = vmatpush.msra.mxu2 %v645_v40  ;;  %v717_v9 = vld [vmem:[#allocation2 + $0xda0] sm:$0xff]  ;;  %v534_v39 = vld [vmem:[#allocation2 + $0x7e8] sm:$0xff] }
 0x136   :  { %1638 = vmatpush.msra.mxu3 %v773_v41  ;;  %1579 = vmatpush.msra.mxu0 %v381_v15  ;;  %v325_v11 = vld [vmem:[#allocation2 + $0x160] sm:$0xff]  ;;  %v398_v15 = vld [vmem:[#allocation2 + $0x3a8] sm:$0xff] }
 0x137   :  { %1599 = vmatpush.msra.mxu1 %v509_v43  ;;  %1619 = vmatpush.msra.mxu2 %v637_v44  ;;  %v453_v12 = vld [vmem:[#allocation2 + $0x560] sm:$0xff]  ;;  %v526_v43 = vld [vmem:[#allocation2 + $0x7a8] sm:$0xff] }
 0x138   :  { %1639 = vmatpush.msra.mxu3 %v765_v45  ;;  %1580 = vmatpush.msra.mxu0 %v373_v46  ;;  %v581_v13 = vld [vmem:[#allocation2 + $0x960] sm:$0xff]  ;;  %v390_v46 = vld [vmem:[#allocation2 + $0x368] sm:$0xff] }
 0x139   :  { %1600 = vmatpush.msra.mxu1 %v501_v47  ;;  %1620 = vmatpush.msra.mxu2 %v629_v48  ;;  %v709_v14 = vld [vmem:[#allocation2 + $0xd60] sm:$0xff]  ;;  %v518_v47 = vld [vmem:[#allocation2 + $0x768] sm:$0xff] }
 0x13a   :  { %1640 = vmatpush.msra.mxu3 %v757_v49  ;;  %1581 = vmatpush.msra.mxu0 %v365_v51  ;;  %v317_v16 = vld [vmem:[#allocation2 + $0x120] sm:$0xff]  ;;  %v382_v51 = vld [vmem:[#allocation2 + $0x328] sm:$0xff] }
 0x13b   :  { %1601 = vmatpush.msra.mxu1 %v493_v52  ;;  %1621 = vmatpush.msra.mxu2 %v621_v53  ;;  %v445_v17 = vld [vmem:[#allocation2 + $0x520] sm:$0xff]  ;;  %v510_v52 = vld [vmem:[#allocation2 + $0x728] sm:$0xff] }
 0x13c   :  { %1641 = vmatpush.msra.mxu3 %v749_v54  ;;  %1582 = vmatpush.msra.mxu0 %v357_v57  ;;  %v573_v18 = vld [vmem:[#allocation2 + $0x920] sm:$0xff]  ;;  %v374_v57 = vld [vmem:[#allocation2 + $0x2e8] sm:$0xff] }
 0x13d   :  { %1602 = vmatpush.msra.mxu1 %v485_v58  ;;  %1622 = vmatpush.msra.mxu2 %v613_v59  ;;  %v701_v20 = vld [vmem:[#allocation2 + $0xd20] sm:$0xff]  ;;  %v502_v58 = vld [vmem:[#allocation2 + $0x6e8] sm:$0xff] }
 0x13e   :  { %1642 = vmatpush.msra.mxu3 %v741_v60  ;;  %1583 = vmatpush.msra.mxu0 %v349_v62  ;;  %v309_v21 = vld [vmem:[#allocation2 + $0xe0] sm:$0xff]  ;;  %v366_v62 = vld [vmem:[#allocation2 + $0x2a8] sm:$0xff] }
 0x13f   :  { %1603 = vmatpush.msra.mxu1 %v477_v63  ;;  %1623 = vmatpush.msra.mxu2 %v605_v0  ;;  %v437_v50 = vld [vmem:[#allocation2 + $0x4e0] sm:$0xff]  ;;  %v494_v63 = vld [vmem:[#allocation2 + $0x6a8] sm:$0xff] }
 0x140   :  { %1643 = vmatpush.msra.mxu3 %v733_v1  ;;  %1584 = vmatpush.msra.mxu0 %v341_v2  ;;  %v565_v22 = vld [vmem:[#allocation2 + $0x8e0] sm:$0xff]  ;;  %v358_v2 = vld [vmem:[#allocation2 + $0x268] sm:$0xff] }
 0x141   :  { %1604 = vmatpush.msra.mxu1 %v469_v3  ;;  %1624 = vmatpush.msra.mxu2 %v597_v4  ;;  %v693_v23 = vld [vmem:[#allocation2 + $0xce0] sm:$0xff]  ;;  %v486_v3 = vld [vmem:[#allocation2 + $0x668] sm:$0xff] }
 0x142   :  { %1644 = vmatpush.msra.mxu3 %v725_v5  ;;  %1585 = vmatpush.msra.mxu0 %v333_v6  ;;  %v301_v55 = vld [vmem:[#allocation2 + $0xa0] sm:$0xff]  ;;  %v350_v6 = vld [vmem:[#allocation2 + $0x228] sm:$0xff] }
 0x143   :  { %1605 = vmatpush.msra.mxu1 %v461_v7  ;;  %1625 = vmatpush.msra.mxu2 %v589_v8  ;;  %v429_v56 = vld [vmem:[#allocation2 + $0x4a0] sm:$0xff]  ;;  %v478_v7 = vld [vmem:[#allocation2 + $0x628] sm:$0xff] }
 0x144   :  { %1645 = vmatpush.msra.mxu3 %v717_v9  ;;  %1586 = vmatpush.msra.mxu0 %v325_v11  ;;  %v557_v25 = vld [vmem:[#allocation2 + $0x8a0] sm:$0xff]  ;;  %v342_v11 = vld [vmem:[#allocation2 + $0x1e8] sm:$0xff] }
 0x145   :  { %1606 = vmatpush.msra.mxu1 %v453_v12  ;;  %1626 = vmatpush.msra.mxu2 %v581_v13  ;;  %v685_v26 = vld [vmem:[#allocation2 + $0xca0] sm:$0xff]  ;;  %v470_v12 = vld [vmem:[#allocation2 + $0x5e8] sm:$0xff] }
 0x146   :  { %1646 = vmatpush.msra.mxu3 %v709_v14  ;;  %1587 = vmatpush.msra.mxu0 %v317_v16  ;;  %v293_v27 = vld [vmem:[#allocation2 + $0x60] sm:$0xff]  ;;  %v334_v16 = vld [vmem:[#allocation2 + $0x1a8] sm:$0xff] }
 0x147   :  { %1607 = vmatpush.msra.mxu1 %v445_v17  ;;  %1627 = vmatpush.msra.mxu2 %v573_v18  ;;  %v421_v61 = vld [vmem:[#allocation2 + $0x460] sm:$0xff]  ;;  %v462_v17 = vld [vmem:[#allocation2 + $0x5a8] sm:$0xff] }
 0x148   :  { %1647 = vmatpush.msra.mxu3 %v701_v20  ;;  %1588 = vmatpush.msra.mxu0 %v309_v21  ;;  %v549_v28 = vld [vmem:[#allocation2 + $0x860] sm:$0xff]  ;;  %v326_v21 = vld [vmem:[#allocation2 + $0x168] sm:$0xff] }
 0x149   :  { %1608 = vmatpush.msra.mxu1 %v437_v50  ;;  %1628 = vmatpush.msra.mxu2 %v565_v22  ;;  %v677_v29 = vld [vmem:[#allocation2 + $0xc60] sm:$0xff]  ;;  %v454_v50 = vld [vmem:[#allocation2 + $0x568] sm:$0xff] }
 0x14a   :  { %1648 = vmatpush.msra.mxu3 %v693_v23  ;;  %1589 = vmatpush.msra.mxu0 %v301_v55  ;;  %v285_v30 = vld [vmem:[#allocation2 + $0x20] sm:$0xff]  ;;  %v318_v55 = vld [vmem:[#allocation2 + $0x128] sm:$0xff] }
 0x14b   :  { %1609 = vmatpush.msra.mxu1 %v429_v56  ;;  %1629 = vmatpush.msra.mxu2 %v557_v25  ;;  %v413_v31 = vld [vmem:[#allocation2 + $0x420] sm:$0xff]  ;;  %v446_v56 = vld [vmem:[#allocation2 + $0x528] sm:$0xff] }
 0x14c   :  { %1649 = vmatpush.msra.mxu3 %v685_v26  ;;  %1590 = vmatpush.msra.mxu0 %v293_v27  ;;  %v541_v33 = vld [vmem:[#allocation2 + $0x820] sm:$0xff]  ;;  %v310_v27 = vld [vmem:[#allocation2 + $0xe8] sm:$0xff] }
 0x14d   :  { %1610 = vmatpush.msra.mxu1 %v421_v61  ;;  %v669_v34 = vld [vmem:[#allocation2 + $0xc20] sm:$0xff]  ;;  %1630 = vmatpush.msra.mxu2 %v549_v28  ;;  %v438_v61 = vld [vmem:[#allocation2 + $0x4e8] sm:$0xff] }
 0x14e   :  { %1650 = vmatpush.msra.mxu3 %v677_v29  ;;  %v917_v35 = vld [vmem:[#allocation2 + $0x13e0] sm:$0xff]  ;;  %1591 = vmatpush.msra.mxu0 %v285_v30  ;;  %v302_v30 = vld [vmem:[#allocation2 + $0xa8] sm:$0xff] }
 0x14f   :  { %v1045_v37 = vld [vmem:[#allocation2 + $0x17e0] sm:$0xff]  ;;  %1611 = vmatpush.msra.mxu1 %v413_v31  ;;  %1631 = vmatpush.msra.mxu2 %v541_v33  ;;  %v430_v31 = vld [vmem:[#allocation2 + $0x4a8] sm:$0xff] }
 0x150   :  { %1651 = vmatpush.msra.mxu3 %v669_v34  ;;  %v909_v40 = vld [vmem:[#allocation2 + $0x13a0] sm:$0xff]  ;;  %1656 = vmatpush.msrb.mxu0 %v917_v35  ;;  %v294_v35 = vld [vmem:[#allocation2 + $0x68] sm:$0xff] }
 0x151   :  { %v1037_v41 = vld [vmem:[#allocation2 + $0x17a0] sm:$0xff]  ;;  %1676 = vmatpush.msrb.mxu1 %v1045_v37  ;;  %1696 = vmatpush.msrb.mxu2 %v406_v10  ;;  %v422_v37 = vld [vmem:[#allocation2 + $0x468] sm:$0xff] }
 0x152   :  { %1716 = vmatpush.msrb.mxu3 %v534_v39  ;;  %v901_v44 = vld [vmem:[#allocation2 + $0x1360] sm:$0xff]  ;;  %1657 = vmatpush.msrb.mxu0 %v909_v40  ;;  %v286_v40 = vld [vmem:[#allocation2 + $0x28] sm:$0xff] }
 0x153   :  { %v1029_v45 = vld [vmem:[#allocation2 + $0x1760] sm:$0xff]  ;;  %1677 = vmatpush.msrb.mxu1 %v1037_v41  ;;  %1697 = vmatpush.msrb.mxu2 %v398_v15  ;;  %v414_v41 = vld [vmem:[#allocation2 + $0x428] sm:$0xff] }
 0x154   :  { %1717 = vmatpush.msrb.mxu3 %v526_v43  ;;  %v893_v48 = vld [vmem:[#allocation2 + $0x1320] sm:$0xff]  ;;  %1658 = vmatpush.msrb.mxu0 %v901_v44  ;;  %v790_v15 = vld [vmem:[#allocation2 + $0xfe8] sm:$0xff] }
 0x155   :  { %v1021_v49 = vld [vmem:[#allocation2 + $0x1720] sm:$0xff]  ;;  %1678 = vmatpush.msrb.mxu1 %v1029_v45  ;;  %1698 = vmatpush.msrb.mxu2 %v390_v46  ;;  %v662_v43 = vld [vmem:[#allocation2 + $0xbe8] sm:$0xff] }
 0x156   :  { %1718 = vmatpush.msrb.mxu3 %v518_v47  ;;  %v885_v53 = vld [vmem:[#allocation2 + $0x12e0] sm:$0xff]  ;;  %1659 = vmatpush.msrb.mxu0 %v893_v48  ;;  %v918_v44 = vld [vmem:[#allocation2 + $0x13e8] sm:$0xff] }
 0x157   :  { %v1013_v54 = vld [vmem:[#allocation2 + $0x16e0] sm:$0xff]  ;;  %1679 = vmatpush.msrb.mxu1 %v1021_v49  ;;  %1699 = vmatpush.msrb.mxu2 %v382_v51  ;;  %v1046_v45 = vld [vmem:[#allocation2 + $0x17e8] sm:$0xff] }
 0x158   :  { %1719 = vmatpush.msrb.mxu3 %v510_v52  ;;  %v877_v59 = vld [vmem:[#allocation2 + $0x12a0] sm:$0xff]  ;;  %1660 = vmatpush.msrb.mxu0 %v885_v53  ;;  %v654_v46 = vld [vmem:[#allocation2 + $0xba8] sm:$0xff] }
 0x159   :  { %v1005_v60 = vld [vmem:[#allocation2 + $0x16a0] sm:$0xff]  ;;  %1680 = vmatpush.msrb.mxu1 %v1013_v54  ;;  %1700 = vmatpush.msrb.mxu2 %v374_v57  ;;  %v782_v47 = vld [vmem:[#allocation2 + $0xfa8] sm:$0xff] }
 0x15a   :  { %1720 = vmatpush.msrb.mxu3 %v502_v58  ;;  %v869_v0 = vld [vmem:[#allocation2 + $0x1260] sm:$0xff]  ;;  %1661 = vmatpush.msrb.mxu0 %v877_v59  ;;  %v910_v48 = vld [vmem:[#allocation2 + $0x13a8] sm:$0xff] }
 0x15b   :  { %v997_v1 = vld [vmem:[#allocation2 + $0x1660] sm:$0xff]  ;;  %1681 = vmatpush.msrb.mxu1 %v1005_v60  ;;  %1701 = vmatpush.msrb.mxu2 %v366_v62  ;;  %v1038_v49 = vld [vmem:[#allocation2 + $0x17a8] sm:$0xff] }
 0x15c   :  { %1721 = vmatpush.msrb.mxu3 %v494_v63  ;;  %v861_v4 = vld [vmem:[#allocation2 + $0x1220] sm:$0xff]  ;;  %1662 = vmatpush.msrb.mxu0 %v869_v0  ;;  %v646_v51 = vld [vmem:[#allocation2 + $0xb68] sm:$0xff] }
 0x15d   :  { %v989_v5 = vld [vmem:[#allocation2 + $0x1620] sm:$0xff]  ;;  %1682 = vmatpush.msrb.mxu1 %v997_v1  ;;  %1702 = vmatpush.msrb.mxu2 %v358_v2  ;;  %v774_v52 = vld [vmem:[#allocation2 + $0xf68] sm:$0xff] }
 0x15e   :  { %1722 = vmatpush.msrb.mxu3 %v486_v3  ;;  %v853_v8 = vld [vmem:[#allocation2 + $0x11e0] sm:$0xff]  ;;  %1663 = vmatpush.msrb.mxu0 %v861_v4  ;;  %v902_v53 = vld [vmem:[#allocation2 + $0x1368] sm:$0xff] }
 0x15f   :  { %v981_v9 = vld [vmem:[#allocation2 + $0x15e0] sm:$0xff]  ;;  %1683 = vmatpush.msrb.mxu1 %v989_v5  ;;  %1703 = vmatpush.msrb.mxu2 %v350_v6  ;;  %v1030_v54 = vld [vmem:[#allocation2 + $0x1768] sm:$0xff] }
 0x160   :  { %1723 = vmatpush.msrb.mxu3 %v478_v7  ;;  %v845_v13 = vld [vmem:[#allocation2 + $0x11a0] sm:$0xff]  ;;  %1664 = vmatpush.msrb.mxu0 %v853_v8  ;;  %v638_v57 = vld [vmem:[#allocation2 + $0xb28] sm:$0xff] }
 0x161   :  { %v973_v14 = vld [vmem:[#allocation2 + $0x15a0] sm:$0xff]  ;;  %1684 = vmatpush.msrb.mxu1 %v981_v9  ;;  %1704 = vmatpush.msrb.mxu2 %v342_v11  ;;  %v766_v58 = vld [vmem:[#allocation2 + $0xf28] sm:$0xff] }
 0x162   :  { %1724 = vmatpush.msrb.mxu3 %v470_v12  ;;  %v837_v18 = vld [vmem:[#allocation2 + $0x1160] sm:$0xff]  ;;  %1665 = vmatpush.msrb.mxu0 %v845_v13  ;;  %v894_v59 = vld [vmem:[#allocation2 + $0x1328] sm:$0xff] }
 0x163   :  { %v965_v20 = vld [vmem:[#allocation2 + $0x1560] sm:$0xff]  ;;  %1685 = vmatpush.msrb.mxu1 %v973_v14  ;;  %1705 = vmatpush.msrb.mxu2 %v334_v16  ;;  %v1022_v60 = vld [vmem:[#allocation2 + $0x1728] sm:$0xff] }
 0x164   :  { %1725 = vmatpush.msrb.mxu3 %v462_v17  ;;  %v829_v22 = vld [vmem:[#allocation2 + $0x1120] sm:$0xff]  ;;  %1666 = vmatpush.msrb.mxu0 %v837_v18  ;;  %v630_v62 = vld [vmem:[#allocation2 + $0xae8] sm:$0xff] }
 0x165   :  { %1686 = vmatpush.msrb.mxu1 %v965_v20  ;;  %v957_v23 = vld [vmem:[#allocation2 + $0x1520] sm:$0xff]  ;;  %1706 = vmatpush.msrb.mxu2 %v326_v21  ;;  %v758_v63 = vld [vmem:[#allocation2 + $0xee8] sm:$0xff] }
 0x166   :  { %1726 = vmatpush.msrb.mxu3 %v454_v50  ;;  %1632 = vmatmul.f32.vlgmr.msra.gmra.mxu2 %v7362_v36  ;;  %v821_v25 = vld [vmem:[#allocation2 + $0x10e0] sm:$0xff]  ;;  %v886_v0 = vld [vmem:[#allocation2 + $0x12e8] sm:$0xff] }
 0x167   :  { %1667 = vmatpush.msrb.mxu0 %v829_v22  ;;  %1687 = vmatpush.msrb.mxu1 %v957_v23  ;;  %v949_v26 = vld [vmem:[#allocation2 + $0x14e0] sm:$0xff]  ;;  %v1014_v1 = vld [vmem:[#allocation2 + $0x16e8] sm:$0xff] }
 0x168   :  { %1707 = vmatpush.msrb.mxu2 %v318_v55  ;;  %1727 = vmatpush.msrb.mxu3 %v446_v56  ;;  %v813_v28 = vld [vmem:[#allocation2 + $0x10a0] sm:$0xff]  ;;  %v622_v2 = vld [vmem:[#allocation2 + $0xaa8] sm:$0xff] }
 0x169   :  { %1592 = vmatmul.f32.vlgmr.msra.gmra.mxu0 %v7353_v19  ;;  %1652 = vmatmul.f32.vlgmr.msra.gmra.mxu3 %v7368_v42  ;;  %v941_v29 = vld [vmem:[#allocation2 + $0x14a0] sm:$0xff]  ;;  %v750_v3 = vld [vmem:[#allocation2 + $0xea8] sm:$0xff] }
 0x16a   :  { %1668 = vmatpush.msrb.mxu0 %v821_v25  ;;  %1688 = vmatpush.msrb.mxu1 %v949_v26  ;;  %v805_v33 = vld [vmem:[#allocation2 + $0x1060] sm:$0xff]  ;;  %v878_v4 = vld [vmem:[#allocation2 + $0x12a8] sm:$0xff] }
 0x16b   :  { %1708 = vmatpush.msrb.mxu2 %v310_v27  ;;  %1728 = vmatpush.msrb.mxu3 %v438_v61  ;;  %v933_v34 = vld [vmem:[#allocation2 + $0x1460] sm:$0xff]  ;;  %v1006_v5 = vld [vmem:[#allocation2 + $0x16a8] sm:$0xff] }
 0x16c   :  { %1612 = vmatmul.f32.vlgmr.msra.gmra.mxu1 %v7356_v24  ;;  %1669 = vmatpush.msrb.mxu0 %v813_v28  ;;  %v797_v10 = vld [vmem:[#allocation2 + $0x1020] sm:$0xff]  ;;  %v614_v6 = vld [vmem:[#allocation2 + $0xa68] sm:$0xff] }
 0x16d   :  { %1689 = vmatpush.msrb.mxu1 %v941_v29  ;;  %1709 = vmatpush.msrb.mxu2 %v302_v30  ;;  %v925_v39 = vld [vmem:[#allocation2 + $0x1420] sm:$0xff]  ;;  %v742_v7 = vld [vmem:[#allocation2 + $0xe68] sm:$0xff] }
 0x16e   :  { %1729 = vmatpush.msrb.mxu3 %v430_v31  ;;  %1670 = vmatpush.msrb.mxu0 %v805_v33  ;;  %v870_v8 = vld [vmem:[#allocation2 + $0x1268] sm:$0xff] }
 0x16f   :  { %1690 = vmatpush.msrb.mxu1 %v933_v34  ;;  %1710 = vmatpush.msrb.mxu2 %v294_v35  ;;  %v998_v9 = vld [vmem:[#allocation2 + $0x1668] sm:$0xff] }
 0x170   :  { %1730 = vmatpush.msrb.mxu3 %v422_v37  ;;  %1671 = vmatpush.msrb.mxu0 %v797_v10  ;;  %v606_v11 = vld [vmem:[#allocation2 + $0xa28] sm:$0xff] }
 0x171   :  { %1691 = vmatpush.msrb.mxu1 %v925_v39  ;;  %1711 = vmatpush.msrb.mxu2 %v286_v40  ;;  %v734_v12 = vld [vmem:[#allocation2 + $0xe28] sm:$0xff] }
 0x172   :  { %1731 = vmatpush.msrb.mxu3 %v414_v41  ;;  %1672 = vmatmul.f32.vlgmr.msrb.gmra.mxu0 %v7359_v32  ;;  %v862_v13 = vld [vmem:[#allocation2 + $0x1228] sm:$0xff] }
 0x173   :  { %1756 = vmatpush.msra.mxu1 %v790_v15  ;;  %1736 = vmatpush.msra.mxu0 %v662_v43  ;;  %v990_v14 = vld [vmem:[#allocation2 + $0x1628] sm:$0xff] }
 0x174   :  { %1776 = vmatpush.msra.mxu2 %v918_v44  ;;  %1796 = vmatpush.msra.mxu3 %v1046_v45  ;;  %v598_v16 = vld [vmem:[#allocation2 + $0x9e8] sm:$0xff] }
 0x175   :  { %1692 = vmatmul.f32.vlgmr.msrb.gmra.mxu1 %v7365_v38  ;;  %1737 = vmatpush.msra.mxu0 %v654_v46  ;;  %v726_v17 = vld [vmem:[#allocation2 + $0xde8] sm:$0xff] }
 0x176   :  { %1757 = vmatpush.msra.mxu1 %v782_v47  ;;  %1777 = vmatpush.msra.mxu2 %v910_v48  ;;  %v854_v18 = vld [vmem:[#allocation2 + $0x11e8] sm:$0xff]  ;;  %v407_v47 = vld [vmem:[#allocation2 + $0x3f0] sm:$0xff] }
 0x177   :  { %1797 = vmatpush.msra.mxu3 %v1038_v49  ;;  %1738 = vmatpush.msra.mxu0 %v646_v51  ;;  %v982_v20 = vld [vmem:[#allocation2 + $0x15e8] sm:$0xff]  ;;  %v535_v48 = vld [vmem:[#allocation2 + $0x7f0] sm:$0xff] }
 0x178   :  { %1758 = vmatpush.msra.mxu1 %v774_v52  ;;  %1778 = vmatpush.msra.mxu2 %v902_v53  ;;  %v590_v21 = vld [vmem:[#allocation2 + $0x9a8] sm:$0xff]  ;;  %v663_v49 = vld [vmem:[#allocation2 + $0xbf0] sm:$0xff] }
 0x179   :  { %1798 = vmatpush.msra.mxu3 %v1030_v54  ;;  %1739 = vmatpush.msra.mxu0 %v638_v57  ;;  %v718_v50 = vld [vmem:[#allocation2 + $0xda8] sm:$0xff]  ;;  %v399_v51 = vld [vmem:[#allocation2 + $0x3b0] sm:$0xff] }
 0x17a   :  { %1759 = vmatpush.msra.mxu1 %v766_v58  ;;  %1779 = vmatpush.msra.mxu2 %v894_v59  ;;  %v846_v22 = vld [vmem:[#allocation2 + $0x11a8] sm:$0xff]  ;;  %v527_v52 = vld [vmem:[#allocation2 + $0x7b0] sm:$0xff] }
 0x17b   :  { %1799 = vmatpush.msra.mxu3 %v1022_v60  ;;  %1740 = vmatpush.msra.mxu0 %v630_v62  ;;  %v974_v23 = vld [vmem:[#allocation2 + $0x15a8] sm:$0xff]  ;;  %v655_v53 = vld [vmem:[#allocation2 + $0xbb0] sm:$0xff] }
 0x17c   :  { %1760 = vmatpush.msra.mxu1 %v758_v63  ;;  %1780 = vmatpush.msra.mxu2 %v886_v0  ;;  %v582_v55 = vld [vmem:[#allocation2 + $0x968] sm:$0xff]  ;;  %v783_v54 = vld [vmem:[#allocation2 + $0xfb0] sm:$0xff] }
 0x17d   :  { %1800 = vmatpush.msra.mxu3 %v1014_v1  ;;  %1741 = vmatpush.msra.mxu0 %v622_v2  ;;  %v710_v56 = vld [vmem:[#allocation2 + $0xd68] sm:$0xff]  ;;  %v391_v57 = vld [vmem:[#allocation2 + $0x370] sm:$0xff] }
 0x17e   :  { %1761 = vmatpush.msra.mxu1 %v750_v3  ;;  %1781 = vmatpush.msra.mxu2 %v878_v4  ;;  %v838_v25 = vld [vmem:[#allocation2 + $0x1168] sm:$0xff]  ;;  %v519_v58 = vld [vmem:[#allocation2 + $0x770] sm:$0xff] }
 0x17f   :  { %1801 = vmatpush.msra.mxu3 %v1006_v5  ;;  %1742 = vmatpush.msra.mxu0 %v614_v6  ;;  %v966_v26 = vld [vmem:[#allocation2 + $0x1568] sm:$0xff]  ;;  %v647_v59 = vld [vmem:[#allocation2 + $0xb70] sm:$0xff] }
 0x180   :  { %1762 = vmatpush.msra.mxu1 %v742_v7  ;;  %1782 = vmatpush.msra.mxu2 %v870_v8  ;;  %v574_v27 = vld [vmem:[#allocation2 + $0x928] sm:$0xff]  ;;  %v775_v60 = vld [vmem:[#allocation2 + $0xf70] sm:$0xff] }
 0x181   :  { %1802 = vmatpush.msra.mxu3 %v998_v9  ;;  %1743 = vmatpush.msra.mxu0 %v606_v11  ;;  %v702_v61 = vld [vmem:[#allocation2 + $0xd28] sm:$0xff]  ;;  %v511_v62 = vld [vmem:[#allocation2 + $0x730] sm:$0xff] }
 0x182   :  { %1763 = vmatpush.msra.mxu1 %v734_v12  ;;  %1783 = vmatpush.msra.mxu2 %v862_v13  ;;  %v830_v28 = vld [vmem:[#allocation2 + $0x1128] sm:$0xff]  ;;  %v639_v63 = vld [vmem:[#allocation2 + $0xb30] sm:$0xff] }
 0x183   :  { %1803 = vmatpush.msra.mxu3 %v990_v14  ;;  %1744 = vmatpush.msra.mxu0 %v598_v16  ;;  %v958_v29 = vld [vmem:[#allocation2 + $0x1528] sm:$0xff]  ;;  %v767_v0 = vld [vmem:[#allocation2 + $0xf30] sm:$0xff] }
 0x184   :  { %1764 = vmatpush.msra.mxu1 %v726_v17  ;;  %1784 = vmatpush.msra.mxu2 %v854_v18  ;;  %v566_v30 = vld [vmem:[#allocation2 + $0x8e8] sm:$0xff]  ;;  %v631_v1 = vld [vmem:[#allocation2 + $0xaf0] sm:$0xff] }
 0x185   :  { %1804 = vmatpush.msra.mxu3 %v982_v20  ;;  %1745 = vmatpush.msra.mxu0 %v590_v21  ;;  %v694_v31 = vld [vmem:[#allocation2 + $0xce8] sm:$0xff]  ;;  %v759_v2 = vld [vmem:[#allocation2 + $0xef0] sm:$0xff] }
 0x186   :  { %1765 = vmatpush.msra.mxu1 %v718_v50  ;;  %1785 = vmatpush.msra.mxu2 %v846_v22  ;;  %v822_v33 = vld [vmem:[#allocation2 + $0x10e8] sm:$0xff]  ;;  %v367_v3 = vld [vmem:[#allocation2 + $0x2b0] sm:$0xff] }
 0x187   :  { %1805 = vmatpush.msra.mxu3 %v974_v23  ;;  %1746 = vmatpush.msra.mxu0 %v582_v55  ;;  %v950_v34 = vld [vmem:[#allocation2 + $0x14e8] sm:$0xff]  ;;  %v495_v4 = vld [vmem:[#allocation2 + $0x6b0] sm:$0xff] }
 0x188   :  { %1766 = vmatpush.msra.mxu1 %v710_v56  ;;  %1786 = vmatpush.msra.mxu2 %v838_v25  ;;  %v558_v35 = vld [vmem:[#allocation2 + $0x8a8] sm:$0xff]  ;;  %v751_v5 = vld [vmem:[#allocation2 + $0xeb0] sm:$0xff] }
 0x189   :  { %1806 = vmatpush.msra.mxu3 %v966_v26  ;;  %1747 = vmatpush.msra.mxu0 %v574_v27  ;;  %v686_v37 = vld [vmem:[#allocation2 + $0xca8] sm:$0xff]  ;;  %v359_v6 = vld [vmem:[#allocation2 + $0x270] sm:$0xff] }
 0x18a   :  { %1767 = vmatpush.msra.mxu1 %v702_v61  ;;  %1787 = vmatpush.msra.mxu2 %v830_v28  ;;  %v814_v10 = vld [vmem:[#allocation2 + $0x10a8] sm:$0xff]  ;;  %v487_v7 = vld [vmem:[#allocation2 + $0x670] sm:$0xff] }
 0x18b   :  { %1807 = vmatpush.msra.mxu3 %v958_v29  ;;  %1712 = vmatmul.f32.vlgmr.msrb.gmra.mxu2 %v7353_v19  ;;  %v942_v39 = vld [vmem:[#allocation2 + $0x14a8] sm:$0xff]  ;;  %v615_v8 = vld [vmem:[#allocation2 + $0xa70] sm:$0xff] }
 0x18c   :  { %1748 = vmatpush.msra.mxu0 %v566_v30  ;;  %1768 = vmatpush.msra.mxu1 %v694_v31  ;;  %v550_v40 = vld [vmem:[#allocation2 + $0x868] sm:$0xff]  ;;  %v743_v9 = vld [vmem:[#allocation2 + $0xe70] sm:$0xff] }
 0x18d   :  { %1788 = vmatpush.msra.mxu2 %v822_v33  ;;  %1808 = vmatpush.msra.mxu3 %v950_v34  ;;  %v678_v41 = vld [vmem:[#allocation2 + $0xc68] sm:$0xff]  ;;  %v351_v11 = vld [vmem:[#allocation2 + $0x230] sm:$0xff]  ;;  %v7383_v33 = vpop.f32.mrf.mxu0 }
 0x18e   :  { %1749 = vmatpush.msra.mxu0 %v558_v35  ;;  %1732 = vmatmul.f32.vlgmr.msrb.gmra.mxu3 %v7356_v24  ;;  %v806_v15 = vld [vmem:[#allocation2 + $0x1068] sm:$0xff]  ;;  %v791_v24 = vld [vmem:[#allocation2 + $0xff0] sm:$0xff] }
 0x18f   :  { %1769 = vmatpush.msra.mxu1 %v686_v37  ;;  %v934_v43 = vld [vmem:[#allocation2 + $0x1468] sm:$0xff]  ;;  %1789 = vmatpush.msra.mxu2 %v814_v10  ;;  %v479_v12 = vld [vmem:[#allocation2 + $0x630] sm:$0xff] }
 0x190   :  { %1809 = vmatpush.msra.mxu3 %v942_v39  ;;  %v542_v44 = vld [vmem:[#allocation2 + $0x828] sm:$0xff]  ;;  %1750 = vmatpush.msra.mxu0 %v550_v40  ;;  %v607_v13 = vld [vmem:[#allocation2 + $0xa30] sm:$0xff]  ;;  %v7385_v39 = vpop.f32.mrf.mxu2 }
 0x191   :  { %v670_v45 = vld [vmem:[#allocation2 + $0xc28] sm:$0xff]  ;;  %1770 = vmatpush.msra.mxu1 %v678_v41  ;;  %1790 = vmatpush.msra.mxu2 %v806_v15  ;;  %v735_v14 = vld [vmem:[#allocation2 + $0xe30] sm:$0xff] }
 0x192   :  { %v798_v19 = vld [vmem:[#allocation2 + $0x1028] sm:$0xff]  ;;  %1810 = vmatpush.msra.mxu3 %v934_v43  ;;  %1751 = vmatpush.msra.mxu0 %v542_v44  ;;  %v343_v16 = vld [vmem:[#allocation2 + $0x1f0] sm:$0xff]  ;;  %v7387_v44 = vpop.f32.mrf.mxu1 }
 0x193   :  { %v926_v46 = vld [vmem:[#allocation2 + $0x1428] sm:$0xff]  ;;  %1771 = vmatpush.msra.mxu1 %v670_v45  ;;  %1791 = vmatpush.msra.mxu2 %v798_v19  ;;  %v471_v17 = vld [vmem:[#allocation2 + $0x5f0] sm:$0xff] }
 0x194   :  { %1811 = vmatpush.msra.mxu3 %v926_v46  ;;  %1792 = vmatmul.f32.vlgmr.msra.gmra.mxu2 %v7359_v32  ;;  %v383_v32 = vld [vmem:[#allocation2 + $0x330] sm:$0xff] }
 0x195   :  { %1816 = vmatpush.msrb.mxu0 %v407_v47  ;;  %1836 = vmatpush.msrb.mxu1 %v535_v48  ;;  %v599_v18 = vld [vmem:[#allocation2 + $0x9f0] sm:$0xff]  ;;  %v7389_v48 = vpop.f32.mrf.mxu3 }
 0x196   :  { %1856 = vmatpush.msrb.mxu2 %v663_v49  ;;  %1876 = vmatpush.msrb.mxu3 %v791_v24  ;;  %v727_v20 = vld [vmem:[#allocation2 + $0xdf0] sm:$0xff] }
 0x197   :  { %1752 = vmatmul.f32.vlgmr.msra.gmra.mxu0 %v7362_v36  ;;  %1812 = vmatmul.f32.vlgmr.msra.gmra.mxu3 %v7365_v38  ;;  %v375_v36 = vld [vmem:[#allocation2 + $0x2f0] sm:$0xff] }
 0x198   :  { %1817 = vmatpush.msrb.mxu0 %v399_v51  ;;  %1837 = vmatpush.msrb.mxu1 %v527_v52  ;;  %v503_v38 = vld [vmem:[#allocation2 + $0x6f0] sm:$0xff] }
 0x199   :  { %1857 = vmatpush.msrb.mxu2 %v655_v53  ;;  %1877 = vmatpush.msrb.mxu3 %v783_v54  ;;  %v335_v21 = vld [vmem:[#allocation2 + $0x1b0] sm:$0xff]  ;;  %v408_v53 = vld [vmem:[#allocation2 + $0x3f8] sm:$0xff] }
 0x19a   :  { %1772 = vmatmul.f32.vlgmr.msra.gmra.mxu1 %v7368_v42  ;;  %1818 = vmatpush.msrb.mxu0 %v391_v57  ;;  %v623_v42 = vld [vmem:[#allocation2 + $0xab0] sm:$0xff]  ;;  %v536_v54 = vld [vmem:[#allocation2 + $0x7f8] sm:$0xff] }
 0x19b   :  { %1838 = vmatpush.msrb.mxu1 %v519_v58  ;;  %1858 = vmatpush.msrb.mxu2 %v647_v59  ;;  %v463_v50 = vld [vmem:[#allocation2 + $0x5b0] sm:$0xff]  ;;  %v7391_v59 = vpop.f32.mrf.mxu0 }
 0x19c   :  { %1878 = vmatpush.msrb.mxu3 %v775_v60  ;;  %1819 = vmatpush.msrb.mxu0 %v383_v32  ;;  %v591_v22 = vld [vmem:[#allocation2 + $0x9b0] sm:$0xff]  ;;  %v7393_v60 = vpop.f32.mrf.mxu2  ;;  %v400_v32 = vld [vmem:[#allocation2 + $0x3b8] sm:$0xff] }
 0x19d   :  { %1839 = vmatpush.msrb.mxu1 %v511_v62  ;;  %1859 = vmatpush.msrb.mxu2 %v639_v63  ;;  %v719_v23 = vld [vmem:[#allocation2 + $0xdb0] sm:$0xff]  ;;  %v528_v62 = vld [vmem:[#allocation2 + $0x7b8] sm:$0xff] }
 0x19e   :  { %1879 = vmatpush.msrb.mxu3 %v767_v0  ;;  %1820 = vmatpush.msrb.mxu0 %v375_v36  ;;  %v327_v55 = vld [vmem:[#allocation2 + $0x170] sm:$0xff]  ;;  %v392_v36 = vld [vmem:[#allocation2 + $0x378] sm:$0xff] }
 0x19f   :  { %1840 = vmatpush.msrb.mxu1 %v503_v38  ;;  %1860 = vmatpush.msrb.mxu2 %v631_v1  ;;  %v455_v56 = vld [vmem:[#allocation2 + $0x570] sm:$0xff]  ;;  %v520_v38 = vld [vmem:[#allocation2 + $0x778] sm:$0xff] }
 0x1a0   :  { %1880 = vmatpush.msrb.mxu3 %v759_v2  ;;  %1821 = vmatpush.msrb.mxu0 %v367_v3  ;;  %v583_v25 = vld [vmem:[#allocation2 + $0x970] sm:$0xff]  ;;  %v7395_v3 = vpop.f32.mrf.mxu1 }
 0x1a1   :  { %1841 = vmatpush.msrb.mxu1 %v495_v4  ;;  %1861 = vmatpush.msrb.mxu2 %v623_v42  ;;  %v711_v26 = vld [vmem:[#allocation2 + $0xd70] sm:$0xff]  ;;  %v7397_v4 = vpop.f32.mrf.mxu3  ;;  %v384_v42 = vld [vmem:[#allocation2 + $0x338] sm:$0xff] }
 0x1a2   :  { %1881 = vmatpush.msrb.mxu3 %v751_v5  ;;  %1822 = vmatpush.msrb.mxu0 %v359_v6  ;;  %v319_v27 = vld [vmem:[#allocation2 + $0x130] sm:$0xff]  ;;  %v512_v5 = vld [vmem:[#allocation2 + $0x738] sm:$0xff] }
 0x1a3   :  { %1842 = vmatpush.msrb.mxu1 %v487_v7  ;;  %1862 = vmatpush.msrb.mxu2 %v615_v8  ;;  %v447_v61 = vld [vmem:[#allocation2 + $0x530] sm:$0xff]  ;;  %v376_v8 = vld [vmem:[#allocation2 + $0x2f8] sm:$0xff] }
 0x1a4   :  { %1882 = vmatpush.msrb.mxu3 %v743_v9  ;;  %1823 = vmatpush.msrb.mxu0 %v351_v11  ;;  %v575_v28 = vld [vmem:[#allocation2 + $0x930] sm:$0xff]  ;;  %v504_v9 = vld [vmem:[#allocation2 + $0x6f8] sm:$0xff] }
 0x1a5   :  { %1843 = vmatpush.msrb.mxu1 %v479_v12  ;;  %1863 = vmatpush.msrb.mxu2 %v607_v13  ;;  %v703_v29 = vld [vmem:[#allocation2 + $0xd30] sm:$0xff]  ;;  %v7399_v13 = vpop.f32.mrf.mxu0 }
 0x1a6   :  { %1883 = vmatpush.msrb.mxu3 %v735_v14  ;;  %1824 = vmatpush.msrb.mxu0 %v343_v16  ;;  %v311_v30 = vld [vmem:[#allocation2 + $0xf0] sm:$0xff]  ;;  %v368_v14 = vld [vmem:[#allocation2 + $0x2b8] sm:$0xff] }
 0x1a7   :  { %1844 = vmatpush.msrb.mxu1 %v471_v17  ;;  %1864 = vmatpush.msrb.mxu2 %v599_v18  ;;  %v439_v31 = vld [vmem:[#allocation2 + $0x4f0] sm:$0xff]  ;;  %v496_v16 = vld [vmem:[#allocation2 + $0x6b8] sm:$0xff] }
 0x1a8   :  { %1884 = vmatpush.msrb.mxu3 %v727_v20  ;;  %1825 = vmatpush.msrb.mxu0 %v335_v21  ;;  %v567_v34 = vld [vmem:[#allocation2 + $0x8f0] sm:$0xff]  ;;  %v7401_v20 = vpop.f32.mrf.mxu2  ;;  %v360_v21 = vld [vmem:[#allocation2 + $0x278] sm:$0xff] }
 0x1a9   :  { %1845 = vmatpush.msrb.mxu1 %v463_v50  ;;  %1865 = vmatpush.msrb.mxu2 %v591_v22  ;;  %v695_v35 = vld [vmem:[#allocation2 + $0xcf0] sm:$0xff]  ;;  %v488_v50 = vld [vmem:[#allocation2 + $0x678] sm:$0xff] }
 0x1aa   :  { %1885 = vmatpush.msrb.mxu3 %v719_v23  ;;  %1826 = vmatpush.msrb.mxu0 %v327_v55  ;;  %v303_v37 = vld [vmem:[#allocation2 + $0xb0] sm:$0xff]  ;;  %v7403_v55 = vpop.f32.mrf.mxu1 }
 0x1ab   :  { %1846 = vmatpush.msrb.mxu1 %v455_v56  ;;  %1866 = vmatpush.msrb.mxu2 %v583_v25  ;;  %v431_v10 = vld [vmem:[#allocation2 + $0x4b0] sm:$0xff]  ;;  %v352_v56 = vld [vmem:[#allocation2 + $0x238] sm:$0xff] }
 0x1ac   :  { %1886 = vmatpush.msrb.mxu3 %v711_v26  ;;  %1827 = vmatpush.msrb.mxu0 %v319_v27  ;;  %v559_v40 = vld [vmem:[#allocation2 + $0x8b0] sm:$0xff]  ;;  %v480_v25 = vld [vmem:[#allocation2 + $0x638] sm:$0xff] }
 0x1ad   :  { %1847 = vmatpush.msrb.mxu1 %v447_v61  ;;  %1867 = vmatpush.msrb.mxu2 %v575_v28  ;;  %v687_v41 = vld [vmem:[#allocation2 + $0xcb0] sm:$0xff]  ;;  %v7405_v61 = vpop.f32.mrf.mxu3  ;;  %v344_v28 = vld [vmem:[#allocation2 + $0x1f8] sm:$0xff] }
 0x1ae   :  { %1887 = vmatpush.msrb.mxu3 %v703_v29  ;;  %1828 = vmatpush.msrb.mxu0 %v311_v30  ;;  %v295_v15 = vld [vmem:[#allocation2 + $0x70] sm:$0xff]  ;;  %v472_v29 = vld [vmem:[#allocation2 + $0x5f8] sm:$0xff] }
 0x1af   :  { %1848 = vmatpush.msrb.mxu1 %v439_v31  ;;  %1868 = vmatpush.msrb.mxu2 %v567_v34  ;;  %v423_v43 = vld [vmem:[#allocation2 + $0x470] sm:$0xff]  ;;  %v1353_v34 = vpop.f32.mrf.mxu0 }
 0x1b0   :  { %1888 = vmatpush.msrb.mxu3 %v695_v35  ;;  %1829 = vmatpush.msrb.mxu0 %v303_v37  ;;  %v551_v45 = vld [vmem:[#allocation2 + $0x870] sm:$0xff]  ;;  %v336_v35 = vld [vmem:[#allocation2 + $0x1b8] sm:$0xff] }
 0x1b1   :  { %1849 = vmatpush.msrb.mxu1 %v431_v10  ;;  %v679_v19 = vld [vmem:[#allocation2 + $0xc70] sm:$0xff]  ;;  %1869 = vmatpush.msrb.mxu2 %v559_v40  ;;  %v464_v37 = vld [vmem:[#allocation2 + $0x5b8] sm:$0xff] }
 0x1b2   :  { %1889 = vmatpush.msrb.mxu3 %v687_v41  ;;  %v287_v46 = vld [vmem:[#allocation2 + $0x30] sm:$0xff]  ;;  %1830 = vmatpush.msrb.mxu0 %v295_v15  ;;  %v7407_v41 = vpop.f32.mrf.mxu2  ;;  %v328_v15 = vld [vmem:[#allocation2 + $0x178] sm:$0xff] }
 0x1b3   :  { %v415_v47 = vld [vmem:[#allocation2 + $0x430] sm:$0xff]  ;;  %1850 = vmatpush.msrb.mxu1 %v423_v43  ;;  %1870 = vmatpush.msrb.mxu2 %v551_v45  ;;  %v456_v43 = vld [vmem:[#allocation2 + $0x578] sm:$0xff]  ;;  %v7409_v45 = vld [vmem:[#allocation4] sm:$0xff] }
 0x1b4   :  { %v543_v49 = vld [vmem:[#allocation2 + $0x830] sm:$0xff]  ;;  %1890 = vmatpush.msrb.mxu3 %v679_v19  ;;  %1831 = vmatpush.msrb.mxu0 %v287_v46  ;;  %v7411_v46 = vpop.f32.mrf.mxu1 }
 0x1b5   :  { %v671_v24 = vld [vmem:[#allocation2 + $0xc30] sm:$0xff]  ;;  %1851 = vmatpush.msrb.mxu1 %v415_v47  ;;  %1871 = vmatpush.msrb.mxu2 %v543_v49  ;;  %v320_v49 = vld [vmem:[#allocation2 + $0x138] sm:$0xff] }
 0x1b6   :  { %v919_v51 = vld [vmem:[#allocation2 + $0x13f0] sm:$0xff]  ;;  %1891 = vmatpush.msrb.mxu3 %v671_v24  ;;  %v448_v24 = vld [vmem:[#allocation2 + $0x538] sm:$0xff] }
 0x1b7   :  { %v1047_v52 = vld [vmem:[#allocation2 + $0x17f0] sm:$0xff]  ;;  %1896 = vmatpush.msra.mxu0 %v919_v51  ;;  %1936 = vmatpush.msra.mxu2 %v408_v53  ;;  %v1051_v51 = vperm.slane %v7409_v45, 0  ;;  %v7416_v53 = vld.sshfl [vmem:[#allocation1 + $0x10] sm:$0xff pattern:$0x75316420] }
 0x1b8   :  { %v911_v57 = vld [vmem:[#allocation2 + $0x13b0] sm:$0xff]  ;;  %1916 = vmatpush.msra.mxu1 %v1047_v52  ;;  %1956 = vmatpush.msra.mxu3 %v536_v54  ;;  %v7414_v52 = vpop.f32.mrf.mxu3 }
 0x1b9   :  { %v1039_v58 = vld [vmem:[#allocation2 + $0x17b0] sm:$0xff]  ;;  %1897 = vmatpush.msra.mxu0 %v911_v57  ;;  %1937 = vmatpush.msra.mxu2 %v400_v32  ;;  %v1052_v57 = vperm.slane %v7409_v45, 1  ;;  %v312_v32 = vld [vmem:[#allocation2 + $0xf8] sm:$0xff] }
 0x1ba   :  { %v903_v63 = vld [vmem:[#allocation2 + $0x1370] sm:$0xff]  ;;  %1917 = vmatpush.msra.mxu1 %v1039_v58  ;;  %1957 = vmatpush.msra.mxu3 %v528_v62  ;;  %v1053_v62 = vperm.slane %v7409_v45, 2 }
 0x1bb   :  { %v1031_v0 = vld [vmem:[#allocation2 + $0x1770] sm:$0xff]  ;;  %1898 = vmatpush.msra.mxu0 %v903_v63  ;;  %1938 = vmatpush.msra.mxu2 %v392_v36  ;;  %v7421_v63 = vld.sshfl [vmem:[#allocation1] sm:$0xff pattern:$0x75316420]  ;;  %v1054_v36 = vperm.slane %v7409_v45, 3 }
 0x1bc   :  { %v895_v1 = vld [vmem:[#allocation2 + $0x1330] sm:$0xff]  ;;  %1918 = vmatpush.msra.mxu1 %v1031_v0  ;;  %1958 = vmatpush.msra.mxu3 %v520_v38  ;;  %v440_v0 = vld [vmem:[#allocation2 + $0x4f8] sm:$0xff] }
 0x1bd   :  { %v1023_v2 = vld [vmem:[#allocation2 + $0x1730] sm:$0xff]  ;;  %1899 = vmatpush.msra.mxu0 %v895_v1  ;;  %1939 = vmatpush.msra.mxu2 %v384_v42  ;;  %v1114_v42 = vadd.f32 %v7383_v33, %v1051_v51  ;;  %v296_v33 = vld [vmem:[#allocation2 + $0x78] sm:$0xff] }
 0x1be   :  { %v887_v6 = vld [vmem:[#allocation2 + $0x12f0] sm:$0xff]  ;;  %1919 = vmatpush.msra.mxu1 %v1023_v2  ;;  %1959 = vmatpush.msra.mxu3 %v512_v5  ;;  %v7429_v5 = vpop.f32.mrf.mxu0  ;;  %v1032_v51 = vld [vmem:[#allocation2 + $0x1778] sm:$0xff] }
 0x1bf   :  { %v1015_v7 = vld [vmem:[#allocation2 + $0x16f0] sm:$0xff]  ;;  %1900 = vmatpush.msra.mxu0 %v887_v6  ;;  %1940 = vmatpush.msra.mxu2 %v376_v8  ;;  %v1473_v6 = vpop.f32.mrf.mxu2  ;;  %v432_v8 = vld [vmem:[#allocation2 + $0x4b8] sm:$0xff] }
 0x1c0   :  { %v879_v11 = vld [vmem:[#allocation2 + $0x12b0] sm:$0xff]  ;;  %1920 = vmatpush.msra.mxu1 %v1015_v7  ;;  %1960 = vmatpush.msra.mxu3 %v504_v9  ;;  %v304_v7 = vld [vmem:[#allocation2 + $0xb8] sm:$0xff]  ;;  %v1234_v9 = vadd.f32 %v7393_v60, %v1052_v57  ;;  %v7436_v60 = vpop.f32.mrf.mxu1 }
 0x1c1   :  { %v1007_v12 = vld [vmem:[#allocation2 + $0x16b0] sm:$0xff]  ;;  %1901 = vmatpush.msra.mxu0 %v879_v11  ;;  %1941 = vmatpush.msra.mxu2 %v368_v14  ;;  %v7432_v11 = vld.sshfl [vmem:[#allocation1 + $0x8] sm:$0xff pattern:$0x75316420]  ;;  %v640_v57 = vld [vmem:[#allocation2 + $0xb38] sm:$0xff] }
 0x1c2   :  { %v871_v17 = vld [vmem:[#allocation2 + $0x1270] sm:$0xff]  ;;  %1921 = vmatpush.msra.mxu1 %v1007_v12  ;;  %1961 = vmatpush.msra.mxu3 %v496_v16  ;;  %v1354_v16 = vadd.f32 %v1353_v34, %v1053_v62  ;;  %v1024_v62 = vld [vmem:[#allocation2 + $0x1738] sm:$0xff] }
 0x1c3   :  { %v999_v18 = vld [vmem:[#allocation2 + $0x1670] sm:$0xff]  ;;  %1902 = vmatpush.msra.mxu0 %v871_v17  ;;  %1942 = vmatpush.msra.mxu2 %v360_v21  ;;  %v424_v17 = vld [vmem:[#allocation2 + $0x478] sm:$0xff] }
 0x1c4   :  { %v863_v22 = vld [vmem:[#allocation2 + $0x1230] sm:$0xff]  ;;  %1922 = vmatpush.msra.mxu1 %v999_v18  ;;  %1962 = vmatpush.msra.mxu3 %v488_v50  ;;  %v1474_v18 = vadd.f32 %v1473_v6, %v1054_v36  ;;  %v632_v36 = vld [vmem:[#allocation2 + $0xaf8] sm:$0xff] }
 0x1c5   :  { %v991_v23 = vld [vmem:[#allocation2 + $0x1630] sm:$0xff]  ;;  %1903 = vmatpush.msra.mxu0 %v863_v22  ;;  %1943 = vmatpush.msra.mxu2 %v352_v56  ;;  %v1134_v22 = vadd.f32 %v7387_v44, %v1114_v42  ;;  %v288_v56 = vld [vmem:[#allocation2 + $0x38] sm:$0xff] }
 0x1c6   :  { %v855_v26 = vld [vmem:[#allocation2 + $0x11f0] sm:$0xff]  ;;  %1923 = vmatpush.msra.mxu1 %v991_v23  ;;  %1963 = vmatpush.msra.mxu3 %v480_v25  ;;  %v1493_v23 = vpop.f32.mrf.mxu3  ;;  %v416_v25 = vld [vmem:[#allocation2 + $0x438] sm:$0xff] }
 0x1c7   :  { %v983_v27 = vld [vmem:[#allocation2 + $0x15f0] sm:$0xff]  ;;  %1904 = vmatpush.msra.mxu0 %v855_v26  ;;  %1944 = vmatpush.msra.mxu2 %v344_v28  ;;  %v1254_v26 = vadd.f32 %v7397_v4, %v1234_v9  ;;  %v1374_v28 = vadd.f32 %v7411_v46, %v1354_v16  ;;  %v1048_v44 = vld [vmem:[#allocation2 + $0x17f8] sm:$0xff]  ;;  %v1154_v34 = vadd.f32 %v7385_v39, %v1134_v22  ;;  %v7446_v46 = vld.sshfl [vmem:[#allocation1 + $0x28] sm:$0xff pattern:$0x75316420] }
 0x1c8   :  { %v847_v30 = vld [vmem:[#allocation2 + $0x11b0] sm:$0xff]  ;;  %1924 = vmatpush.msra.mxu1 %v983_v27  ;;  %1964 = vmatpush.msra.mxu3 %v472_v29  ;;  %v792_v27 = vld [vmem:[#allocation2 + $0xff8] sm:$0xff] }
 0x1c9   :  { %v975_v31 = vld [vmem:[#allocation2 + $0x15b0] sm:$0xff]  ;;  %1905 = vmatpush.msra.mxu0 %v847_v30  ;;  %1945 = vmatpush.msra.mxu2 %v336_v35  ;;  %v664_v29 = vld [vmem:[#allocation2 + $0xbf8] sm:$0xff]  ;;  %v1513_v35 = vpop.f32.mrf.mxu0 }
 0x1ca   :  { %v839_v10 = vld [vmem:[#allocation2 + $0x1170] sm:$0xff]  ;;  %1925 = vmatpush.msra.mxu1 %v975_v31  ;;  %1965 = vmatpush.msra.mxu3 %v464_v37  ;;  %v920_v30 = vld [vmem:[#allocation2 + $0x13f8] sm:$0xff]  ;;  %v1494_v31 = vadd.f32 %v1493_v23, %v1474_v18 }
 0x1cb   :  { %v967_v40 = vld [vmem:[#allocation2 + $0x1570] sm:$0xff]  ;;  %1906 = vmatpush.msra.mxu0 %v839_v10  ;;  %1946 = vmatpush.msra.mxu2 %v328_v15  ;;  %v7441_v37 = vld.sshfl [vmem:[#allocation1 + $0x20] sm:$0xff pattern:$0x75316420] }
 0x1cc   :  { %v831_v19 = vld [vmem:[#allocation2 + $0x1130] sm:$0xff]  ;;  %1926 = vmatpush.msra.mxu1 %v967_v40  ;;  %1966 = vmatpush.msra.mxu3 %v456_v43  ;;  %v656_v4 = vld [vmem:[#allocation2 + $0xbb8] sm:$0xff]  ;;  %v1274_v40 = vadd.f32 %v7399_v13, %v1254_v26  ;;  %v1174_v13 = vadd.f32 %v7389_v48, %v1154_v34 }
 0x1cd   :  { %v959_v47 = vld [vmem:[#allocation2 + $0x1530] sm:$0xff]  ;;  %1872 = vmatmul.f32.vlgmr.msrb.gmra.mxu2 %v7416_v53  ;;  %1907 = vmatpush.msra.mxu0 %v831_v19  ;;  %v784_v10 = vld [vmem:[#allocation2 + $0xfb8] sm:$0xff]  ;;  %v1394_v19 = vadd.f32 %v7407_v41, %v1374_v28 }
 0x1ce   :  { %v823_v54 = vld [vmem:[#allocation2 + $0x10f0] sm:$0xff]  ;;  %1927 = vmatpush.msra.mxu1 %v959_v47  ;;  %1947 = vmatpush.msra.mxu2 %v320_v49  ;;  %v912_v15 = vld [vmem:[#allocation2 + $0x13b8] sm:$0xff]  ;;  %v1514_v49 = vadd.f32 %v1513_v35, %v1494_v31  ;;  %v1294_v41 = vadd.f32 %v7403_v55, %v1274_v40  ;;  %v1194_v6 = vadd.f32 %v7391_v59, %v1174_v13 }
 0x1cf   :  { %v951_v58 = vld [vmem:[#allocation2 + $0x14f0] sm:$0xff]  ;;  %1967 = vmatpush.msra.mxu3 %v448_v24  ;;  %1832 = vmatmul.f32.vlgmr.msrb.gmra.mxu0 %v7421_v63  ;;  %v1040_v43 = vld [vmem:[#allocation2 + $0x17b8] sm:$0xff] }
 0x1d0   :  { %v7425_v38 = vld.sshfl [vmem:[#allocation1 + $0x18] sm:$0xff pattern:$0x75316420]  ;;  %1908 = vmatpush.msra.mxu0 %v823_v54  ;;  %1928 = vmatpush.msra.mxu1 %v951_v58  ;;  %v648_v39 = vld [vmem:[#allocation2 + $0xb78] sm:$0xff]  ;;  %v1533_v54 = vpop.f32.mrf.mxu1  ;;  %v1314_v9 = vadd.f32 %v7401_v20, %v1294_v41 }
 0x1d1   :  { %1892 = vmatmul.f32.vlgmr.msrb.gmra.mxu3 %v7425_v38  ;;  %v815_v1 = vld [vmem:[#allocation2 + $0x10b0] sm:$0xff]  ;;  %1948 = vmatpush.msra.mxu2 %v312_v32  ;;  %v776_v47 = vld [vmem:[#allocation2 + $0xf78] sm:$0xff] }
 0x1d2   :  { %v943_v2 = vld [vmem:[#allocation2 + $0x14b0] sm:$0xff]  ;;  %1968 = vmatpush.msra.mxu3 %v440_v0  ;;  %1852 = vmatmul.f32.vlgmr.msrb.gmra.mxu1 %v7432_v11  ;;  %v904_v24 = vld [vmem:[#allocation2 + $0x1378] sm:$0xff]  ;;  %v1414_v0 = vadd.f32 %v7414_v52, %v1394_v19  ;;  %v7459_v23 = vadd.f32 %v7405_v61, %v1314_v9 }
 0x1d3   :  { %v807_v12 = vld [vmem:[#allocation2 + $0x1070] sm:$0xff]  ;;  %1909 = vmatpush.msra.mxu0 %v815_v1  ;;  %1929 = vmatpush.msra.mxu1 %v943_v2  ;;  %v768_v58 = vld [vmem:[#allocation2 + $0xf38] sm:$0xff]  ;;  %v1534_v2 = vadd.f32 %v1533_v54, %v1514_v49 }
 0x1d4   :  { %v935_v14 = vld [vmem:[#allocation2 + $0x1470] sm:$0xff]  ;;  %1949 = vmatpush.msra.mxu2 %v304_v7  ;;  %1969 = vmatpush.msra.mxu3 %v432_v8  ;;  %v896_v32 = vld [vmem:[#allocation2 + $0x1338] sm:$0xff]  ;;  %v1553_v7 = vpop.f32.mrf.mxu2 }
 0x1d5   :  { %v799_v21 = vld [vmem:[#allocation2 + $0x1030] sm:$0xff]  ;;  %1910 = vmatpush.msra.mxu0 %v807_v12  ;;  %1930 = vmatpush.msra.mxu1 %v935_v14  ;;  %v760_v1 = vld [vmem:[#allocation2 + $0xef8] sm:$0xff]  ;;  %v1434_v14 = vadd.f32 %v7429_v5, %v1414_v0 }
 0x1d6   :  { %v927_v50 = vld [vmem:[#allocation2 + $0x1430] sm:$0xff]  ;;  %1950 = vmatpush.msra.mxu2 %v296_v33  ;;  %1970 = vmatpush.msra.mxu3 %v424_v17  ;;  %v888_v48 = vld [vmem:[#allocation2 + $0x12f8] sm:$0xff]  ;;  %v1554_v17 = vadd.f32 %v1553_v7, %v1534_v2 }
 0x1d7   :  { %1911 = vmatpush.msra.mxu0 %v799_v21  ;;  %1931 = vmatpush.msra.mxu1 %v927_v50  ;;  %v1016_v42 = vld [vmem:[#allocation2 + $0x16f8] sm:$0xff]  ;;  %v7456_v21 = vadd.f32 %v7395_v3, %v1194_v6  ;;  %v1573_v50 = vpop.f32.mrf.mxu3 }
 0x1d8   :  { %1951 = vmatpush.msra.mxu2 %v288_v56  ;;  %1971 = vmatpush.msra.mxu3 %v416_v25  ;;  %v624_v55 = vld [vmem:[#allocation2 + $0xab8] sm:$0xff]  ;;  %v7462_v25 = vadd.f32 %v7436_v60, %v1434_v14 }
 0x1d9   :  { %1912 = vmatmul.f32.vlgmr.msra.gmra.mxu0 %v7441_v37  ;;  %1996 = vmatpush.msrb.mxu1 %v792_v27  ;;  %v752_v8 = vld [vmem:[#allocation2 + $0xeb8] sm:$0xff]  ;;  %v7464_v27 = vadd.f32 %v1573_v50, %v1554_v17  ;;  %v6444_v61 = vmul.f32 -1.442695, %v7456_v21 }
 0x1da   :  { %1976 = vmatpush.msrb.mxu0 %v664_v29  ;;  %2016 = vmatpush.msrb.mxu2 %v920_v30  ;;  %v880_v52 = vld [vmem:[#allocation2 + $0x12b8] sm:$0xff]  ;;  %v6446_v35 = vmul.f32 -1.442695, %v7462_v25 }
 0x1db   :  { %2036 = vmatpush.msrb.mxu3 %v1048_v44  ;;  %1932 = vmatmul.f32.vlgmr.msra.gmra.mxu1 %v7446_v46  ;;  %v1008_v12 = vld [vmem:[#allocation2 + $0x16b8] sm:$0xff]  ;;  %v6445_v44 = vmul.f32 -1.442695, %v7459_v23  ;;  %v6447_v40 = vmul.f32 -1.442695, %v7464_v27  ;;  %6530 = vpow2.f32 %v6444_v61  ;;  %v2464_v61 = vld [vmem:[#allocation6 + $0x7c0] sm:$0xff] }
 0x1dc   :  { %1977 = vmatpush.msrb.mxu0 %v656_v4  ;;  %1997 = vmatpush.msrb.mxu1 %v784_v10  ;;  %v616_v16 = vld [vmem:[#allocation2 + $0xa78] sm:$0xff] }
 0x1dd   :  { %2017 = vmatpush.msrb.mxu2 %v912_v15  ;;  %2037 = vmatpush.msrb.mxu3 %v1040_v43  ;;  %v744_v33 = vld [vmem:[#allocation2 + $0xe78] sm:$0xff]  ;;  %6532 = vpow2.f32 %v6445_v44  ;;  %v2460_v44 = vld [vmem:[#allocation6 + $0x7a0] sm:$0xff] }
 0x1de   :  { %1978 = vmatpush.msrb.mxu0 %v648_v39  ;;  %1998 = vmatpush.msrb.mxu1 %v776_v47  ;;  %v872_v59 = vld [vmem:[#allocation2 + $0x1278] sm:$0xff]  ;;  %6534 = vpow2.f32 %v6446_v35  ;;  %v2264_v35 = vld [vmem:[#allocation6 + $0x180] sm:$0xff] }
 0x1df   :  { %2018 = vmatpush.msrb.mxu2 %v904_v24  ;;  %2038 = vmatpush.msrb.mxu3 %v1032_v51  ;;  %v1000_v18 = vld [vmem:[#allocation2 + $0x1678] sm:$0xff]  ;;  %6536 = vpow2.f32 %v6447_v40  ;;  %v1055_v51 = vperm.slane %v7409_v45, 4  ;;  %v2456_v40 = vld [vmem:[#allocation6 + $0x780] sm:$0xff] }
 0x1e0   :  { %1979 = vmatpush.msrb.mxu0 %v640_v57  ;;  %1999 = vmatpush.msrb.mxu1 %v768_v58  ;;  %v608_v20 = vld [vmem:[#allocation2 + $0xa38] sm:$0xff] }
 0x1e1   :  { %2019 = vmatpush.msrb.mxu2 %v896_v32  ;;  %2039 = vmatpush.msrb.mxu3 %v1024_v62  ;;  %v736_v22 = vld [vmem:[#allocation2 + $0xe38] sm:$0xff]  ;;  %v6531_v62 = vpop.eup %6530 }
 0x1e2   :  { %1980 = vmatpush.msrb.mxu0 %v632_v36  ;;  %2000 = vmatpush.msrb.mxu1 %v760_v1  ;;  %v864_v5 = vld [vmem:[#allocation2 + $0x1238] sm:$0xff]  ;;  %v7473_v9 = vadd.f32 1.0, %v6531_v62 }
 0x1e3   :  { %2020 = vmatpush.msrb.mxu2 %v888_v48  ;;  %2040 = vmatpush.msrb.mxu3 %v1016_v42  ;;  %v992_v56 = vld [vmem:[#allocation2 + $0x1638] sm:$0xff]  ;;  %v6533_v1 = vpop.eup %6532 }
 0x1e4   :  { %1981 = vmatpush.msrb.mxu0 %v624_v55  ;;  %2001 = vmatpush.msrb.mxu1 %v752_v8  ;;  %v600_v26 = vld [vmem:[#allocation2 + $0x9f8] sm:$0xff]  ;;  %v6535_v6 = vpop.eup %6534  ;;  %v7475_v14 = vadd.f32 1.0, %v6533_v1  ;;  %6538 = vrcp.f32 %v7473_v9  ;;  %vm2093_vm0 = vweird.f32 %v7473_v9 }
 0x1e5   :  { %2021 = vmatpush.msrb.mxu2 %v880_v52  ;;  %2041 = vmatpush.msrb.mxu3 %v1008_v12  ;;  %v728_v3 = vld [vmem:[#allocation2 + $0xdf8] sm:$0xff]  ;;  %v6537_v8 = vpop.eup %6536  ;;  %v7477_v17 = vadd.f32 1.0, %v6535_v6  ;;  %v2248_v6 = vld [vmem:[#allocation6 + $0x100] sm:$0xff] }
 0x1e6   :  { %1982 = vmatpush.msrb.mxu0 %v616_v16  ;;  %2002 = vmatpush.msrb.mxu1 %v744_v33  ;;  %v856_v28 = vld [vmem:[#allocation2 + $0x11f8] sm:$0xff]  ;;  %v1593_v57 = vpop.f32.mrf.mxu0  ;;  %6540 = vrcp.f32 %v7475_v14  ;;  %vm2108_vm2 = vweird.f32 %v7475_v14 }
 0x1e7   :  { %2022 = vmatpush.msrb.mxu2 %v872_v59  ;;  %2042 = vmatpush.msrb.mxu3 %v1000_v18  ;;  %v984_v29 = vld [vmem:[#allocation2 + $0x15f8] sm:$0xff]  ;;  %v1594_v2 = vadd.f32 %v1593_v57, %v1055_v51  ;;  %v2276_v59 = vld [vmem:[#allocation6 + $0x1e0] sm:$0xff]  ;;  %v7479_v18 = vadd.f32 1.0, %v6537_v8  ;;  %6542 = vrcp.f32 %v7477_v17  ;;  %vm2123_vm4 = vweird.f32 %v7477_v17 }
 0x1e8   :  { %1983 = vmatpush.msrb.mxu0 %v608_v20  ;;  %2003 = vmatpush.msrb.mxu1 %v736_v22  ;;  %v592_v30 = vld [vmem:[#allocation2 + $0x9b8] sm:$0xff]  ;;  %v2340_v20 = vld [vmem:[#allocation6 + $0x3e0] sm:$0xff] }
 0x1e9   :  { %2023 = vmatpush.msrb.mxu2 %v864_v5  ;;  %2043 = vmatpush.msrb.mxu3 %v992_v56  ;;  %v720_v31 = vld [vmem:[#allocation2 + $0xdb8] sm:$0xff]  ;;  %v1613_v7 = vpop.f32.mrf.mxu1  ;;  %v1633_v50 = vpop.f32.mrf.mxu2  ;;  %v2404_v22 = vld [vmem:[#allocation6 + $0x5e0] sm:$0xff]  ;;  %6544 = vrcp.f32 %v7479_v18  ;;  %vm2138_vm7 = vweird.f32 %v7479_v18 }
 0x1ea   :  { %1984 = vmatpush.msrb.mxu0 %v600_v26  ;;  %2004 = vmatpush.msrb.mxu1 %v728_v3  ;;  %v848_v60 = vld [vmem:[#allocation2 + $0x11b8] sm:$0xff]  ;;  %v2468_v5 = vld [vmem:[#allocation6 + $0x7e0] sm:$0xff] }
 0x1eb   :  { %v976_v34 = vld [vmem:[#allocation2 + $0x15b8] sm:$0xff]  ;;  %2024 = vmatpush.msrb.mxu2 %v856_v28  ;;  %2044 = vmatpush.msrb.mxu3 %v984_v29  ;;  %v2272_v56 = vld [vmem:[#allocation6 + $0x1c0] sm:$0xff] }
 0x1ec   :  { %v584_v4 = vld [vmem:[#allocation2 + $0x978] sm:$0xff]  ;;  %1985 = vmatpush.msrb.mxu0 %v592_v30  ;;  %2005 = vmatpush.msrb.mxu1 %v720_v31  ;;  %v2336_v3 = vld [vmem:[#allocation6 + $0x3c0] sm:$0xff]  ;;  %v1653_v29 = vpop.f32.mrf.mxu3 }
 0x1ed   :  { %v712_v10 = vld [vmem:[#allocation2 + $0xd78] sm:$0xff]  ;;  %2025 = vmatpush.msrb.mxu2 %v848_v60  ;;  %2045 = vmatpush.msrb.mxu3 %v976_v34  ;;  %v2400_v28 = vld [vmem:[#allocation6 + $0x5c0] sm:$0xff]  ;;  %v7488_v60 = vpop.eup %6538 }
 0x1ee   :  { %v840_v15 = vld [vmem:[#allocation2 + $0x1178] sm:$0xff]  ;;  %1986 = vmatpush.msrb.mxu0 %v584_v4  ;;  %2006 = vmatpush.msrb.mxu1 %v712_v10  ;;  %v2332_v30 = vld [vmem:[#allocation6 + $0x3a0] sm:$0xff]  ;;  %v7491_v10 = vpop.eup %6540  ;;  %vm2094_vm1 = vweird.f32 %v7488_v60 }
 0x1ef   :  { %v968_v43 = vld [vmem:[#allocation2 + $0x1578] sm:$0xff]  ;;  %2026 = vmatpush.msrb.mxu2 %v840_v15  ;;  %1972 = vmatmul.f32.vlgmr.msra.gmra.mxu3 %v7432_v11  ;;  %v1614_v11 = vadd.f32 %v1613_v7, %v1594_v2  ;;  %v2396_v31 = vld [vmem:[#allocation6 + $0x5a0] sm:$0xff]  ;;  %v7493_v15 = vpop.eup %6542  ;;  %vm2109_vm3 = vweird.f32 %v7491_v10  ;;  %vm7532_vm6 = vmor %vm2093_vm0, %vm2094_vm1 }
 0x1f0   :  { %v576_v19 = vld [vmem:[#allocation2 + $0x938] sm:$0xff]  ;;  %2046 = vmatpush.msrb.mxu3 %v968_v43  ;;  %1952 = vmatmul.f32.vlgmr.msra.gmra.mxu2 %v7421_v63  ;;  %v2328_v4 = vld [vmem:[#allocation6 + $0x380] sm:$0xff]  ;;  %vm2124_vm5 = vweird.f32 %v7493_v15  ;;  %vm7548_vm9 = vmor %vm2108_vm2, %vm2109_vm3 }
 0x1f1   :  { %v704_v39 = vld [vmem:[#allocation2 + $0xd38] sm:$0xff]  ;;  %1987 = vmatpush.msrb.mxu0 %v576_v19  ;;  %v1634_v26 = vadd.f32 %v1633_v50, %v1614_v11  ;;  %v2260_v43 = vld [vmem:[#allocation6 + $0x160] sm:$0xff]  ;;  %vm7563_vm10 = vmor %vm2123_vm4, %vm2124_vm5 }
 0x1f2   :  { %v832_v47 = vld [vmem:[#allocation2 + $0x1138] sm:$0xff]  ;;  %2007 = vmatpush.msrb.mxu1 %v704_v39  ;;  %v2324_v19 = vld [vmem:[#allocation6 + $0x360] sm:$0xff]  ;;  %v7495_v39 = vpop.eup %6544  ;;  %v1693_v57 = vpop.f32.mrf.mxu1 }
 0x1f3   :  { %v960_v49 = vld [vmem:[#allocation2 + $0x1538] sm:$0xff]  ;;  %2027 = vmatpush.msrb.mxu2 %v832_v47  ;;  %v1654_v34 = vadd.f32 %v1653_v29, %v1634_v26  ;;  %v2388_v47 = vld [vmem:[#allocation6 + $0x560] sm:$0xff]  ;;  %v2134_v62 = vmul.f32 %v7495_v39, %v7479_v18  ;;  %vm2139_vm8 = vweird.f32 %v7495_v39 }
 0x1f4   :  { %v568_v24 = vld [vmem:[#allocation2 + $0x8f8] sm:$0xff]  ;;  %2047 = vmatpush.msrb.mxu3 %v960_v49  ;;  %v2452_v49 = vld [vmem:[#allocation6 + $0x760] sm:$0xff]  ;;  %vm7577_vm11 = vmor %vm2138_vm7, %vm2139_vm8 }
 0x1f5   :  { %v696_v13 = vld [vmem:[#allocation2 + $0xcf8] sm:$0xff]  ;;  %1988 = vmatpush.msrb.mxu0 %v568_v24  ;;  %v2256_v51 = vld [vmem:[#allocation6 + $0x140] sm:$0xff] }
 0x1f6   :  { %v824_v54 = vld [vmem:[#allocation2 + $0x10f8] sm:$0xff]  ;;  %2008 = vmatpush.msrb.mxu1 %v696_v13  ;;  %v2320_v13 = vld [vmem:[#allocation6 + $0x340] sm:$0xff] }
 0x1f7   :  { %v952_v58 = vld [vmem:[#allocation2 + $0x14f8] sm:$0xff]  ;;  %2028 = vmatpush.msrb.mxu2 %v824_v54  ;;  %v2104_v54 = vmul.f32 %v7491_v10, %v7475_v14  ;;  %v2380_v2 = vld [vmem:[#allocation6 + $0x520] sm:$0xff] }
 0x1f8   :  { %v560_v41 = vld [vmem:[#allocation2 + $0x8b8] sm:$0xff]  ;;  %2048 = vmatpush.msrb.mxu3 %v952_v58  ;;  %v2384_v58 = vld [vmem:[#allocation6 + $0x540] sm:$0xff] }
 0x1f9   :  { %v688_v32 = vld [vmem:[#allocation2 + $0xcb8] sm:$0xff]  ;;  %1989 = vmatpush.msrb.mxu0 %v560_v41  ;;  %v2448_v41 = vld [vmem:[#allocation6 + $0x740] sm:$0xff] }
 0x1fa   :  { %v816_v0 = vld [vmem:[#allocation2 + $0x10b8] sm:$0xff]  ;;  %2009 = vmatpush.msrb.mxu1 %v688_v32  ;;  %v2119_v32 = vmul.f32 %v7493_v15, %v7477_v17  ;;  %v2312_v7 = vld [vmem:[#allocation6 + $0x300] sm:$0xff] }
 0x1fb   :  { %v944_v36 = vld [vmem:[#allocation2 + $0x14b8] sm:$0xff]  ;;  %2029 = vmatpush.msrb.mxu2 %v816_v0  ;;  %v2252_v0 = vld [vmem:[#allocation6 + $0x120] sm:$0xff] }
 0x1fc   :  { %v552_v48 = vld [vmem:[#allocation2 + $0x878] sm:$0xff]  ;;  %2049 = vmatpush.msrb.mxu3 %v944_v36  ;;  %v2316_v36 = vld [vmem:[#allocation6 + $0x320] sm:$0xff] }
 0x1fd   :  { %v680_v42 = vld [vmem:[#allocation2 + $0xc78] sm:$0xff]  ;;  %1990 = vmatpush.msrb.mxu0 %v552_v48  ;;  %v2444_v48 = vld [vmem:[#allocation6 + $0x720] sm:$0xff] }
 0x1fe   :  { %v808_v55 = vld [vmem:[#allocation2 + $0x1078] sm:$0xff]  ;;  %2010 = vmatpush.msrb.mxu1 %v680_v42  ;;  %v2440_v8 = vld [vmem:[#allocation6 + $0x700] sm:$0xff] }
 0x1ff   :  { %v936_v63 = vld [vmem:[#allocation2 + $0x1478] sm:$0xff]  ;;  %2030 = vmatpush.msrb.mxu2 %v808_v55  ;;  %v2105_v55 = vsub.f32 1.0, %v2104_v54  ;;  %v2436_v50 = vld [vmem:[#allocation6 + $0x6e0] sm:$0xff] }
 0x200   :  { %v544_v52 = vld [vmem:[#allocation2 + $0x838] sm:$0xff]  ;;  %2050 = vmatpush.msrb.mxu3 %v936_v63  ;;  %v2376_v63 = vld [vmem:[#allocation6 + $0x500] sm:$0xff] }
 0x201   :  { %v672_v12 = vld [vmem:[#allocation2 + $0xc38] sm:$0xff]  ;;  %1991 = vmatpush.msrb.mxu0 %v544_v52  ;;  %v2120_v52 = vsub.f32 1.0, %v2119_v32  ;;  %v2106_v26 = vmul.f32 %v7491_v10, %v2105_v55  ;;  %v2292_v54 = vld [vmem:[#allocation6 + $0x260] sm:$0xff]  ;;  %v2144_v32 = vand.u32 2147483648, %v7479_v18 }
 0x202   :  { %v800_v16 = vld [vmem:[#allocation2 + $0x1038] sm:$0xff]  ;;  %2011 = vmatpush.msrb.mxu1 %v672_v12  ;;  %1992 = vmatmul.f32.vlgmr.msrb.gmra.mxu0 %v7416_v53  ;;  %v1673_v53 = vpop.f32.mrf.mxu0  ;;  %v2135_v12 = vsub.f32 1.0, %v2134_v62  ;;  %v2356_v62 = vld [vmem:[#allocation6 + $0x460] sm:$0xff] }
 0x203   :  { %v928_v33 = vld [vmem:[#allocation2 + $0x1438] sm:$0xff]  ;;  %2031 = vmatpush.msrb.mxu2 %v800_v16  ;;  %2738 = vmatpush.msra.mxu0 %v2276_v59  ;;  %v1674_v24 = vadd.f32 %v1673_v53, %v1654_v34  ;;  %v2244_v16 = vld [vmem:[#allocation6 + $0xe0] sm:$0xff]  ;;  %v2121_v29 = vmul.f32 %v7493_v15, %v2120_v52 }
 0x204   :  { %2051 = vmatpush.msrb.mxu3 %v928_v33  ;;  %2032 = vmatmul.f32.vlgmr.msrb.gmra.mxu2 %v7441_v37  ;;  %v2268_v37 = vld [vmem:[#allocation6 + $0x1a0] sm:$0xff] }
 0x205   :  { %2758 = vmatpush.msra.mxu1 %v2340_v20  ;;  %2778 = vmatpush.msra.mxu2 %v2404_v22  ;;  %v7505_v42 = vadd.f32 %v1693_v57, %v1674_v24  ;;  %v2308_v33 = vld [vmem:[#allocation6 + $0x2e0] sm:$0xff]  ;;  %v7537_v24 = vadd.f32 %v7493_v15, %v2121_v29 }
 0x206   :  { %2798 = vmatpush.msra.mxu3 %v2468_v5  ;;  %2739 = vmatpush.msra.mxu0 %v2272_v56  ;;  %v2372_v59 = vld [vmem:[#allocation6 + $0x4e0] sm:$0xff]  ;;  %v1056_v56 = vperm.slane %v7409_v45, 5  ;;  %v2097_v45 = vand.u32 2147483647, %v7473_v9 }
 0x207   :  { %2052 = vmatmul.f32.vlgmr.msrb.gmra.mxu3 %v7446_v46  ;;  %2759 = vmatpush.msra.mxu1 %v2336_v3  ;;  %v2392_v46 = vld [vmem:[#allocation6 + $0x580] sm:$0xff]  ;;  %v6448_v20 = vmul.f32 -1.442695, %v7505_v42 }
 0x208   :  { %2779 = vmatpush.msra.mxu2 %v2400_v28  ;;  %2799 = vmatpush.msra.mxu3 %v2464_v61  ;;  %v2240_v22 = vld [vmem:[#allocation6 + $0xc0] sm:$0xff]  ;;  %v2136_v61 = vmul.f32 %v7495_v39, %v2135_v12  ;;  %vm2098_vm12 = vcmp.eq.f32.partialorder %v2097_v45, 8.507059e+37 }
 0x209   :  { %2012 = vmatmul.f32.vlgmr.msrb.gmra.mxu1 %v7425_v38  ;;  %2740 = vmatpush.msra.mxu0 %v2268_v37  ;;  %v2089_v38 = vmul.f32 %v7488_v60, %v7473_v9  ;;  %v2304_v5 = vld [vmem:[#allocation6 + $0x2c0] sm:$0xff]  ;;  %6546 = vpow2.f32 %v6448_v20 }
 0x20a   :  { %2760 = vmatpush.msra.mxu1 %v2332_v30  ;;  %2780 = vmatpush.msra.mxu2 %v2396_v31  ;;  %v2368_v3 = vld [vmem:[#allocation6 + $0x4c0] sm:$0xff] }
 0x20b   :  { %2800 = vmatpush.msra.mxu3 %v2460_v44  ;;  %2741 = vmatpush.msra.mxu0 %v2264_v35  ;;  %v2090_v1 = vsub.f32 1.0, %v2089_v38  ;;  %v2432_v28 = vld [vmem:[#allocation6 + $0x6c0] sm:$0xff]  ;;  %v2099_v44 = vand.u32 2147483648, %v7473_v9 }
 0x20c   :  { %2761 = vmatpush.msra.mxu1 %v2328_v4  ;;  %2781 = vmatpush.msra.mxu2 %v2392_v46  ;;  %v2236_v37 = vld [vmem:[#allocation6 + $0xa0] sm:$0xff] }
 0x20d   :  { %2801 = vmatpush.msra.mxu3 %v2456_v40  ;;  %2742 = vmatpush.msra.mxu0 %v2260_v43  ;;  %v2091_v11 = vmul.f32 %v7488_v60, %v2090_v1  ;;  %v2300_v30 = vld [vmem:[#allocation6 + $0x2a0] sm:$0xff]  ;;  %v7523_v43 = vadd.f32 %v7491_v10, %v2106_v26 }
 0x20e   :  { %2762 = vmatpush.msra.mxu1 %v2324_v19  ;;  %2782 = vmatpush.msra.mxu2 %v2388_v47  ;;  %v2364_v34 = vld [vmem:[#allocation6 + $0x4a0] sm:$0xff]  ;;  %v1713_v4 = vpop.f32.mrf.mxu2  ;;  %v2114_v19 = vand.u32 2147483648, %v7475_v14 }
 0x20f   :  { %2802 = vmatpush.msra.mxu3 %v2452_v49  ;;  %2743 = vmatpush.msra.mxu0 %v2256_v51  ;;  %v7515_v31 = vadd.f32 %v7488_v60, %v2091_v11  ;;  %v2428_v35 = vld [vmem:[#allocation6 + $0x6a0] sm:$0xff]  ;;  %v1714_v40 = vadd.f32 %v1713_v4, %v1056_v56  ;;  %v7540_v51 = vadd.f32 %v7495_v39, %v2136_v61 }
 0x210   :  { %2763 = vmatpush.msra.mxu1 %v2320_v13  ;;  %2783 = vmatpush.msra.mxu2 %v2384_v58  ;;  %v2232_v53 = vld [vmem:[#allocation6 + $0x80] sm:$0xff]  ;;  %v2112_v58 = vand.u32 2147483647, %v7475_v14 }
 0x211   :  { %2803 = vmatpush.msra.mxu3 %v2448_v41  ;;  %2744 = vmatpush.msra.mxu0 %v2252_v0  ;;  %v2296_v46 = vld [vmem:[#allocation6 + $0x280] sm:$0xff]  ;;  %v1733_v57 = vpop.f32.mrf.mxu3  ;;  %v2129_v41 = vand.u32 2147483648, %v7477_v17  ;;  %v2096_v1 = vsel %vm7532_vm6, %v7488_v60, %v7515_v31  ;;  %v2111_v60 = vsel %vm7548_vm9, %v7491_v10, %v7523_v43  ;;  %v2126_v10 = vsel %vm7563_vm10, %v7493_v15, %v7537_v24 }
 0x212   :  { %2764 = vmatpush.msra.mxu1 %v2316_v36  ;;  %2784 = vmatpush.msra.mxu2 %v2380_v2  ;;  %v2360_v38 = vld [vmem:[#allocation6 + $0x480] sm:$0xff]  ;;  %v1734_v36 = vadd.f32 %v1733_v57, %v1714_v40  ;;  %v2127_v2 = vand.u32 2147483647, %v7477_v17  ;;  %vm2113_vm13 = vcmp.eq.f32.partialorder %v2112_v58, 8.507059e+37 }
 0x213   :  { %2804 = vmatpush.msra.mxu3 %v2444_v48  ;;  %2745 = vmatpush.msra.mxu0 %v2248_v6  ;;  %v2424_v47 = vld [vmem:[#allocation6 + $0x680] sm:$0xff]  ;;  %v2142_v48 = vand.u32 2147483647, %v7479_v18  ;;  %v2141_v18 = vsel %vm7577_vm11, %v7495_v39, %v7540_v51  ;;  %v2130_v20 = vor.u32 1.1754944e-38, %v2129_v41 }
 0x214   :  { %2765 = vmatpush.msra.mxu1 %v2312_v7  ;;  %2785 = vmatpush.msra.mxu2 %v2376_v63  ;;  %v2228_v13 = vld [vmem:[#allocation6 + $0x60] sm:$0xff]  ;;  %v1753_v55 = vpop.f32.mrf.mxu0  ;;  %v2100_v63 = vor.u32 1.1754944e-38, %v2099_v44  ;;  %vm2128_vm14 = vcmp.eq.f32.partialorder %v2127_v2, 8.507059e+37 }
 0x215   :  { %2805 = vmatpush.msra.mxu3 %v2440_v8  ;;  %2746 = vmatpush.msra.mxu0 %v2244_v16  ;;  %v2420_v0 = vld [vmem:[#allocation6 + $0x660] sm:$0xff]  ;;  %v1754_v12 = vadd.f32 %v1753_v55, %v1734_v36  ;;  %v6547_v16 = vpop.eup %6546  ;;  %vm2143_vm15 = vcmp.eq.f32.partialorder %v2142_v48, 8.507059e+37  ;;  %v2131_v61 = vsel %vm2128_vm14, %v2130_v20, %v2126_v10 }
 0x216   :  { %2766 = vmatpush.msra.mxu1 %v2308_v33  ;;  %2786 = vmatpush.msra.mxu2 %v2372_v59  ;;  %v2224_v6 = vld [vmem:[#allocation6 + $0x40] sm:$0xff]  ;;  %v2115_v33 = vor.u32 1.1754944e-38, %v2114_v19 }
 0x217   :  { %2806 = vmatpush.msra.mxu3 %v2436_v50  ;;  %2747 = vmatpush.msra.mxu0 %v2240_v22  ;;  %v2288_v7 = vld [vmem:[#allocation6 + $0x240] sm:$0xff]  ;;  %v2101_v50 = vsel %vm2098_vm12, %v2100_v63, %v2096_v1  ;;  %v2145_v22 = vor.u32 1.1754944e-38, %v2144_v32  ;;  %v1773_v26 = vpop.f32.mrf.mxu1  ;;  %v1793_v29 = vpop.f32.mrf.mxu2 }
 0x218   :  { %2767 = vmatpush.msra.mxu1 %v2304_v5  ;;  %2787 = vmatpush.msra.mxu2 %v2368_v3  ;;  %v2352_v17 = vld [vmem:[#allocation6 + $0x440] sm:$0xff]  ;;  %v2116_v3 = vsel %vm2113_vm13, %v2115_v33, %v2111_v60 }
 0x219   :  { %2807 = vmatpush.msra.mxu3 %v2432_v28  ;;  %2748 = vmatpush.msra.mxu0 %v2236_v37  ;;  %v2416_v52 = vld [vmem:[#allocation6 + $0x640] sm:$0xff]  ;;  %v1774_v28 = vadd.f32 %v1773_v26, %v1754_v12  ;;  %v2146_v37 = vsel %vm2143_vm15, %v2145_v22, %v2141_v18 }
 0x21a   :  { %2768 = vmatpush.msra.mxu1 %v2300_v30  ;;  %2788 = vmatpush.msra.mxu2 %v2364_v34  ;;  %v2220_v11 = vld [vmem:[#allocation6 + $0x20] sm:$0xff]  ;;  %v7589_v30 = vadd.f32 1.0, %v6547_v16  ;;  %v7592_v34 = vmul.f32 %v2101_v50, %v7456_v21  ;;  %v1813_v4 = vpop.f32.mrf.mxu3 }
 0x21b   :  { %2808 = vmatpush.msra.mxu3 %v2428_v35  ;;  %2749 = vmatpush.msra.mxu0 %v2232_v53  ;;  %v2284_v59 = vld [vmem:[#allocation6 + $0x220] sm:$0xff]  ;;  %v1794_v44 = vadd.f32 %v1793_v29, %v1774_v28  ;;  %v7595_v35 = vmul.f32 %v2116_v3, %v7459_v23  ;;  %v7598_v53 = vmul.f32 %v2131_v61, %v7462_v25  ;;  %v2237_v61 = vld [vmem:[#allocation6 + $0xa8] sm:$0xff] }
 0x21c   :  { %2769 = vmatpush.msra.mxu1 %v2296_v46  ;;  %2789 = vmatpush.msra.mxu2 %v2360_v38  ;;  %v2348_v5 = vld [vmem:[#allocation6 + $0x420] sm:$0xff]  ;;  %v7601_v46 = vmul.f32 %v2146_v37, %v7464_v27  ;;  %6548 = vrcp.f32 %v7589_v30  ;;  %vm2153_vm0 = vweird.f32 %v7589_v30 }
 0x21d   :  { %2809 = vmatpush.msra.mxu3 %v2424_v47  ;;  %2750 = vmatpush.msra.mxu0 %v2228_v13  ;;  %v2412_v56 = vld [vmem:[#allocation6 + $0x620] sm:$0xff]  ;;  %v7603_v19 = vadd.f32 %v1813_v4, %v1794_v44 }
 0x21e   :  { %2770 = vmatpush.msra.mxu1 %v2292_v54  ;;  %2790 = vmatpush.msra.mxu2 %v2356_v62  ;;  %v2216_v15 = vld [vmem:[#allocation6] sm:$0xff] }
 0x21f   :  { %2810 = vmatpush.msra.mxu3 %v2420_v0  ;;  %2751 = vmatpush.msra.mxu0 %v2224_v6  ;;  %v2280_v39 = vld [vmem:[#allocation6 + $0x200] sm:$0xff]  ;;  %v6449_v25 = vmul.f32 -1.442695, %v7603_v19 }
 0x220   :  { %2771 = vmatpush.msra.mxu1 %v2288_v7  ;;  %2791 = vmatpush.msra.mxu2 %v2352_v17  ;;  %v2344_v31 = vld [vmem:[#allocation6 + $0x400] sm:$0xff] }
 0x221   :  { %2811 = vmatpush.msra.mxu3 %v2416_v52  ;;  %2752 = vmatpush.msra.mxu0 %v2220_v11  ;;  %v2408_v45 = vld [vmem:[#allocation6 + $0x600] sm:$0xff]  ;;  %6550 = vpow2.f32 %v6449_v25 }
 0x222   :  { %2772 = vmatpush.msra.mxu1 %v2284_v59  ;;  %2792 = vmatpush.msra.mxu2 %v2348_v5  ;;  %v2532_v40 = vld [vmem:[#allocation6 + $0x9e0] sm:$0xff]  ;;  %v7611_v24 = vpop.eup %6548  ;;  %v2157_v5 = vand.u32 2147483647, %v7589_v30 }
 0x223   :  { %2812 = vmatpush.msra.mxu3 %v2412_v56  ;;  %2753 = vmatpush.msra.mxu0 %v2216_v15  ;;  %v2596_v43 = vld [vmem:[#allocation6 + $0xbe0] sm:$0xff]  ;;  %v2149_v58 = vmul.f32 %v7611_v24, %v7589_v30  ;;  %vm2154_vm1 = vweird.f32 %v7611_v24  ;;  %v2159_v56 = vand.u32 2147483648, %v7589_v30 }
 0x224   :  { %2773 = vmatpush.msra.mxu1 %v2280_v39  ;;  %2793 = vmatpush.msra.mxu2 %v2344_v31  ;;  %v2528_v21 = vld [vmem:[#allocation6 + $0x9c0] sm:$0xff]  ;;  %vm7632_vm4 = vmor %vm2153_vm0, %vm2154_vm1  ;;  %vm2158_vm6 = vcmp.eq.f32.partialorder %v2157_v5, 8.507059e+37 }
 0x225   :  { %2813 = vmatpush.msra.mxu3 %v2408_v45  ;;  %2754 = vmatmul.f32.vlgmr.msra.gmra.mxu0 %v7592_v34  ;;  %v2592_v23 = vld [vmem:[#allocation6 + $0xbc0] sm:$0xff]  ;;  %v2150_v2 = vsub.f32 1.0, %v2149_v58  ;;  %v2337_v58 = vld [vmem:[#allocation6 + $0x3c8] sm:$0xff] }
 0x226   :  { %2774 = vmatmul.f32.vlgmr.msra.gmra.mxu1 %v7595_v35  ;;  %2794 = vmatmul.f32.vlgmr.msra.gmra.mxu2 %v7598_v53  ;;  %v2524_v27 = vld [vmem:[#allocation6 + $0x9a0] sm:$0xff] }
 0x227   :  { %2814 = vmatmul.f32.vlgmr.msra.gmra.mxu3 %v7601_v46  ;;  %2818 = vmatpush.msrb.mxu0 %v2532_v40  ;;  %v2588_v38 = vld [vmem:[#allocation6 + $0xba0] sm:$0xff]  ;;  %v6551_v9 = vpop.eup %6550  ;;  %v2151_v8 = vmul.f32 %v7611_v24, %v2150_v2  ;;  %v2160_v40 = vor.u32 1.1754944e-38, %v2159_v56  ;;  %v2405_v2 = vld [vmem:[#allocation6 + $0x5e8] sm:$0xff] }
 0x228   :  { %2838 = vmatpush.msrb.mxu1 %v2596_v43  ;;  %v2520_v47 = vld [vmem:[#allocation6 + $0x980] sm:$0xff]  ;;  %v7615_v62 = vadd.f32 1.0, %v6551_v9  ;;  %v2277_v9 = vld [vmem:[#allocation6 + $0x1e8] sm:$0xff] }
 0x229   :  { %2819 = vmatpush.msrb.mxu0 %v2528_v21  ;;  %v2584_v49 = vld [vmem:[#allocation6 + $0xb80] sm:$0xff]  ;;  %v2152_v59 = vadd.f32 %v7611_v24, %v2151_v8  ;;  %v2253_v8 = vld [vmem:[#allocation6 + $0x128] sm:$0xff] }
 0x22a   :  { %2839 = vmatpush.msrb.mxu1 %v2592_v23  ;;  %v2660_v51 = vld [vmem:[#allocation6 + $0xde0] sm:$0xff]  ;;  %6552 = vrcp.f32 %v7615_v62  ;;  %v2174_v26 = vand.u32 2147483648, %v7615_v62  ;;  %vm2168_vm2 = vweird.f32 %v7615_v62  ;;  %v2172_v39 = vand.u32 2147483647, %v7615_v62 }
 0x22b   :  { %2820 = vmatpush.msrb.mxu0 %v2524_v27  ;;  %v2516_v13 = vld [vmem:[#allocation6 + $0x960] sm:$0xff]  ;;  %2858 = vmatpush.msrb.mxu2 %v2660_v51  ;;  %v2156_v31 = vsel %vm7632_vm4, %v7611_v24, %v2152_v59  ;;  %v2389_v59 = vld [vmem:[#allocation6 + $0x568] sm:$0xff] }
 0x22c   :  { %2840 = vmatpush.msrb.mxu1 %v2588_v38  ;;  %v2580_v54 = vld [vmem:[#allocation6 + $0xb60] sm:$0xff]  ;;  %v2175_v30 = vor.u32 1.1754944e-38, %v2174_v26  ;;  %vm2173_vm7 = vcmp.eq.f32.partialorder %v2172_v39, 8.507059e+37  ;;  %v2161_v27 = vsel %vm2158_vm6, %v2160_v40, %v2156_v31  ;;  %v2385_v26 = vld [vmem:[#allocation6 + $0x548] sm:$0xff] }
 0x22d   :  { %2821 = vmatpush.msrb.mxu0 %v2520_v47  ;;  %v2656_v57 = vld [vmem:[#allocation6 + $0xdc0] sm:$0xff]  ;;  %v2233_v40 = vld [vmem:[#allocation6 + $0x88] sm:$0xff] }
 0x22e   :  { %2841 = vmatpush.msrb.mxu1 %v2584_v49  ;;  %v2512_v41 = vld [vmem:[#allocation6 + $0x940] sm:$0xff]  ;;  %2859 = vmatpush.msrb.mxu2 %v2656_v57  ;;  %v7646_v57 = vmul.f32 %v2161_v27, %v7505_v42  ;;  %v2329_v42 = vld [vmem:[#allocation6 + $0x388] sm:$0xff] }
 0x22f   :  { %v2576_v32 = vld [vmem:[#allocation6 + $0xb40] sm:$0xff]  ;;  %2822 = vmatpush.msrb.mxu0 %v2516_v13  ;;  %v2341_v13 = vld [vmem:[#allocation6 + $0x3e8] sm:$0xff] }
 0x230   :  { %2842 = vmatpush.msrb.mxu1 %v2580_v54  ;;  %v2652_v0 = vld [vmem:[#allocation6 + $0xda0] sm:$0xff]  ;;  %v6553_v12 = vpop.eup %6552  ;;  %v2229_v27 = vld [vmem:[#allocation6 + $0x68] sm:$0xff] }
 0x231   :  { %v2508_v36 = vld [vmem:[#allocation6 + $0x920] sm:$0xff]  ;;  %2860 = vmatpush.msrb.mxu2 %v2652_v0  ;;  %2823 = vmatpush.msrb.mxu0 %v2512_v41  ;;  %v2164_v33 = vmul.f32 %v6553_v12, %v7615_v62  ;;  %vm2169_vm3 = vweird.f32 %v6553_v12  ;;  %v2269_v0 = vld [vmem:[#allocation6 + $0x1a8] sm:$0xff] }
 0x232   :  { %v2572_v1 = vld [vmem:[#allocation6 + $0xb20] sm:$0xff]  ;;  %2843 = vmatpush.msrb.mxu1 %v2576_v32  ;;  %vm2170_vm5 = vmor %vm2168_vm2, %vm2169_vm3  ;;  %v2273_v32 = vld [vmem:[#allocation6 + $0x1c8] sm:$0xff] }
 0x233   :  { %v2648_v14 = vld [vmem:[#allocation6 + $0xd80] sm:$0xff]  ;;  %2824 = vmatpush.msrb.mxu0 %v2508_v36  ;;  %v2165_v50 = vsub.f32 1.0, %v2164_v33  ;;  %v2265_v36 = vld [vmem:[#allocation6 + $0x188] sm:$0xff] }
 0x234   :  { %v2504_v48 = vld [vmem:[#allocation6 + $0x900] sm:$0xff]  ;;  %2861 = vmatpush.msrb.mxu2 %v2648_v14  ;;  %2844 = vmatpush.msrb.mxu1 %v2572_v1  ;;  %v2325_v14 = vld [vmem:[#allocation6 + $0x368] sm:$0xff] }
 0x235   :  { %v2568_v6 = vld [vmem:[#allocation6 + $0xb00] sm:$0xff]  ;;  %2825 = vmatpush.msrb.mxu0 %v2504_v48  ;;  %v2166_v15 = vmul.f32 %v6553_v12, %v2165_v50  ;;  %v2261_v48 = vld [vmem:[#allocation6 + $0x168] sm:$0xff] }
 0x236   :  { %v2644_v7 = vld [vmem:[#allocation6 + $0xd60] sm:$0xff]  ;;  %2845 = vmatpush.msrb.mxu1 %v2568_v6  ;;  %v2321_v6 = vld [vmem:[#allocation6 + $0x348] sm:$0xff] }
 0x237   :  { %v2500_v55 = vld [vmem:[#allocation6 + $0x8e0] sm:$0xff]  ;;  %2862 = vmatpush.msrb.mxu2 %v2644_v7  ;;  %v2167_v45 = vadd.f32 %v6553_v12, %v2166_v15  ;;  %v2401_v7 = vld [vmem:[#allocation6 + $0x5c8] sm:$0xff] }
 0x238   :  { %v2564_v63 = vld [vmem:[#allocation6 + $0xae0] sm:$0xff]  ;;  %2826 = vmatpush.msrb.mxu0 %v2500_v55  ;;  %v2257_v55 = vld [vmem:[#allocation6 + $0x148] sm:$0xff] }
 0x239   :  { %v2640_v60 = vld [vmem:[#allocation6 + $0xd40] sm:$0xff]  ;;  %2846 = vmatpush.msrb.mxu1 %v2564_v63  ;;  %v2171_v21 = vsel %vm2170_vm5, %v6553_v12, %v2167_v45  ;;  %v2317_v63 = vld [vmem:[#allocation6 + $0x328] sm:$0xff] }
 0x23a   :  { %v2496_v17 = vld [vmem:[#allocation6 + $0x8c0] sm:$0xff]  ;;  %2863 = vmatpush.msrb.mxu2 %v2640_v60  ;;  %v2176_v38 = vsel %vm2173_vm7, %v2175_v30, %v2171_v21  ;;  %v2397_v60 = vld [vmem:[#allocation6 + $0x5a8] sm:$0xff] }
 0x23b   :  { %v2560_v52 = vld [vmem:[#allocation6 + $0xac0] sm:$0xff]  ;;  %2827 = vmatpush.msrb.mxu0 %v2496_v17  ;;  %v7643_v51 = vmul.f32 %v2176_v38, %v7603_v19  ;;  %v2333_v19 = vld [vmem:[#allocation6 + $0x3a8] sm:$0xff] }
 0x23c   :  { %v2636_v16 = vld [vmem:[#allocation6 + $0xd20] sm:$0xff]  ;;  %2847 = vmatpush.msrb.mxu1 %v2560_v52  ;;  %v2313_v17 = vld [vmem:[#allocation6 + $0x308] sm:$0xff]  ;;  %v7650_v52 = vld [vmem:[#allocation4] sm:$0xff] }
 0x23d   :  { %v2492_v10 = vld [vmem:[#allocation6 + $0x8a0] sm:$0xff]  ;;  %2864 = vmatpush.msrb.mxu2 %v2636_v16  ;;  %v1057_v12 = vperm.slane %v7650_v52, 6  ;;  %v2393_v33 = vld [vmem:[#allocation6 + $0x588] sm:$0xff] }
 0x23e   :  { %v2556_v18 = vld [vmem:[#allocation6 + $0xaa0] sm:$0xff]  ;;  %2828 = vmatpush.msrb.mxu0 %v2492_v10  ;;  %v2249_v10 = vld [vmem:[#allocation6 + $0x108] sm:$0xff] }
 0x23f   :  { %v2632_v11 = vld [vmem:[#allocation6 + $0xd00] sm:$0xff]  ;;  %2848 = vmatpush.msrb.mxu1 %v2556_v18  ;;  %v2309_v18 = vld [vmem:[#allocation6 + $0x2e8] sm:$0xff] }
 0x240   :  { %v2488_v20 = vld [vmem:[#allocation6 + $0x880] sm:$0xff]  ;;  %2865 = vmatpush.msrb.mxu2 %v2632_v11  ;;  %v2245_v50 = vld [vmem:[#allocation6 + $0xe8] sm:$0xff] }
 0x241   :  { %v2552_v22 = vld [vmem:[#allocation6 + $0xa80] sm:$0xff]  ;;  %2829 = vmatpush.msrb.mxu0 %v2488_v20  ;;  %v2301_v15 = vld [vmem:[#allocation6 + $0x2a8] sm:$0xff] }
 0x242   :  { %v2628_v3 = vld [vmem:[#allocation6 + $0xce0] sm:$0xff]  ;;  %2849 = vmatpush.msrb.mxu1 %v2552_v22  ;;  %v2305_v22 = vld [vmem:[#allocation6 + $0x2c8] sm:$0xff] }
 0x243   :  { %v2484_v28 = vld [vmem:[#allocation6 + $0x860] sm:$0xff]  ;;  %2866 = vmatpush.msrb.mxu2 %v2628_v3  ;;  %v2241_v3 = vld [vmem:[#allocation6 + $0xc8] sm:$0xff] }
 0x244   :  { %v2548_v29 = vld [vmem:[#allocation6 + $0xa60] sm:$0xff]  ;;  %2830 = vmatpush.msrb.mxu0 %v2484_v28  ;;  %v2297_v45 = vld [vmem:[#allocation6 + $0x288] sm:$0xff] }
 0x245   :  { %v2624_v37 = vld [vmem:[#allocation6 + $0xcc0] sm:$0xff]  ;;  %2850 = vmatpush.msrb.mxu1 %v2548_v29  ;;  %v2381_v29 = vld [vmem:[#allocation6 + $0x528] sm:$0xff] }
 0x246   :  { %v2480_v44 = vld [vmem:[#allocation6 + $0x840] sm:$0xff]  ;;  %2867 = vmatpush.msrb.mxu2 %v2624_v37 }
 0x247   :  { %v2544_v4 = vld [vmem:[#allocation6 + $0xa40] sm:$0xff]  ;;  %2831 = vmatpush.msrb.mxu0 %v2480_v44 }
 0x248   :  { %v2620_v43 = vld [vmem:[#allocation6 + $0xca0] sm:$0xff]  ;;  %2851 = vmatpush.msrb.mxu1 %v2544_v4  ;;  %v2377_v4 = vld [vmem:[#allocation6 + $0x508] sm:$0xff] }
 0x249   :  { %v2476_v23 = vld [vmem:[#allocation6 + $0x820] sm:$0xff]  ;;  %2868 = vmatpush.msrb.mxu2 %v2620_v43  ;;  %v2293_v43 = vld [vmem:[#allocation6 + $0x268] sm:$0xff] }
 0x24a   :  { %v2540_v25 = vld [vmem:[#allocation6 + $0xa20] sm:$0xff]  ;;  %2832 = vmatpush.msrb.mxu0 %v2476_v23 }
 0x24b   :  { %v2616_v47 = vld [vmem:[#allocation6 + $0xc80] sm:$0xff]  ;;  %2852 = vmatpush.msrb.mxu1 %v2540_v25  ;;  %v2373_v25 = vld [vmem:[#allocation6 + $0x4e8] sm:$0xff] }
 0x24c   :  { %v2472_v49 = vld [vmem:[#allocation6 + $0x800] sm:$0xff]  ;;  %2869 = vmatpush.msrb.mxu2 %v2616_v47  ;;  %v1833_v20 = vpop.f32.mrf.mxu0  ;;  %v2289_v47 = vld [vmem:[#allocation6 + $0x248] sm:$0xff] }
 0x24d   :  { %v2536_v24 = vld [vmem:[#allocation6 + $0xa00] sm:$0xff]  ;;  %2833 = vmatpush.msrb.mxu0 %v2472_v49  ;;  %v1834_v5 = vadd.f32 %v1833_v20, %v1057_v12  ;;  %v2589_v12 = vld [vmem:[#allocation6 + $0xba8] sm:$0xff] }
 0x24e   :  { %v2612_v54 = vld [vmem:[#allocation6 + $0xc60] sm:$0xff]  ;;  %2853 = vmatpush.msrb.mxu1 %v2536_v24  ;;  %2834 = vmatmul.f32.vlgmr.msrb.gmra.mxu0 %v7646_v57  ;;  %v2369_v24 = vld [vmem:[#allocation6 + $0x4c8] sm:$0xff] }
 0x24f   :  { %2870 = vmatpush.msrb.mxu2 %v2612_v54  ;;  %v2608_v41 = vld [vmem:[#allocation6 + $0xc40] sm:$0xff]  ;;  %2898 = vmatpush.msra.mxu0 %v2277_v9  ;;  %v1853_v39 = vpop.f32.mrf.mxu1  ;;  %v2285_v9 = vld [vmem:[#allocation6 + $0x228] sm:$0xff] }
 0x250   :  { %2918 = vmatpush.msra.mxu1 %v2341_v13  ;;  %v2604_v62 = vld [vmem:[#allocation6 + $0xc20] sm:$0xff]  ;;  %v1854_v37 = vadd.f32 %v1853_v39, %v1834_v5  ;;  %v1873_v31 = vpop.f32.mrf.mxu2  ;;  %v2225_v13 = vld [vmem:[#allocation6 + $0x48] sm:$0xff] }
 0x251   :  { %2854 = vmatmul.f32.vlgmr.msrb.gmra.mxu1 %v7643_v51  ;;  %2871 = vmatpush.msrb.mxu2 %v2608_v41  ;;  %v2600_v1 = vld [vmem:[#allocation6 + $0xc00] sm:$0xff]  ;;  %v2513_v39 = vld [vmem:[#allocation6 + $0x948] sm:$0xff] }
 0x252   :  { %2919 = vmatpush.msra.mxu1 %v2337_v58  ;;  %2899 = vmatpush.msra.mxu0 %v2273_v32  ;;  %v2724_v16 = vld [vmem:[#allocation6 + $0xfe0] sm:$0xff]  ;;  %v1874_v30 = vadd.f32 %v1873_v31, %v1854_v37  ;;  %v2365_v32 = vld [vmem:[#allocation6 + $0x4a8] sm:$0xff] }
 0x253   :  { %2872 = vmatpush.msrb.mxu2 %v2604_v62  ;;  %2878 = vmatpush.msrb.mxu3 %v2724_v16  ;;  %v2720_v11 = vld [vmem:[#allocation6 + $0xfc0] sm:$0xff]  ;;  %v2569_v37 = vld [vmem:[#allocation6 + $0xb08] sm:$0xff] }
 0x254   :  { %2920 = vmatpush.msra.mxu1 %v2333_v19  ;;  %2900 = vmatpush.msra.mxu0 %v2269_v0  ;;  %v2716_v56 = vld [vmem:[#allocation6 + $0xfa0] sm:$0xff]  ;;  %v1893_v21 = vpop.f32.mrf.mxu3  ;;  %v2221_v19 = vld [vmem:[#allocation6 + $0x28] sm:$0xff] }
 0x255   :  { %2873 = vmatpush.msrb.mxu2 %v2600_v1  ;;  %2879 = vmatpush.msrb.mxu3 %v2720_v11  ;;  %v2712_v28 = vld [vmem:[#allocation6 + $0xf80] sm:$0xff]  ;;  %v1894_v38 = vadd.f32 %v1893_v21, %v1874_v30  ;;  %v2281_v0 = vld [vmem:[#allocation6 + $0x208] sm:$0xff] }
 0x256   :  { %2921 = vmatpush.msra.mxu1 %v2329_v42  ;;  %2901 = vmatpush.msra.mxu0 %v2265_v36  ;;  %v2708_v44 = vld [vmem:[#allocation6 + $0xf60] sm:$0xff]  ;;  %v1913_v54 = vpop.f32.mrf.mxu0  ;;  %v2361_v1 = vld [vmem:[#allocation6 + $0x488] sm:$0xff] }
 0x257   :  { %2938 = vmatpush.msra.mxu2 %v2405_v2  ;;  %2880 = vmatpush.msrb.mxu3 %v2716_v56  ;;  %v2704_v23 = vld [vmem:[#allocation6 + $0xf40] sm:$0xff]  ;;  %v1914_v58 = vadd.f32 %v1913_v54, %v1894_v38  ;;  %v2597_v2 = vld [vmem:[#allocation6 + $0xbe8] sm:$0xff] }
 0x258   :  { %2922 = vmatpush.msra.mxu1 %v2325_v14  ;;  %2902 = vmatpush.msra.mxu0 %v2261_v48  ;;  %v2700_v49 = vld [vmem:[#allocation6 + $0xf20] sm:$0xff]  ;;  %v1933_v62 = vpop.f32.mrf.mxu1  ;;  %v2217_v14 = vld [vmem:[#allocation6 + $0x8] sm:$0xff] }
 0x259   :  { %2939 = vmatpush.msra.mxu2 %v2401_v7  ;;  %2881 = vmatpush.msrb.mxu3 %v2712_v28  ;;  %v2696_v41 = vld [vmem:[#allocation6 + $0xf00] sm:$0xff]  ;;  %v7653_v42 = vadd.f32 %v1933_v62, %v1914_v58  ;;  %v2533_v7 = vld [vmem:[#allocation6 + $0x9e8] sm:$0xff] }
 0x25a   :  { %2923 = vmatpush.msra.mxu1 %v2321_v6  ;;  %2903 = vmatpush.msra.mxu0 %v2257_v55  ;;  %v2692_v36 = vld [vmem:[#allocation6 + $0xee0] sm:$0xff]  ;;  %v2357_v55 = vld [vmem:[#allocation6 + $0x468] sm:$0xff] }
 0x25b   :  { %2940 = vmatpush.msra.mxu2 %v2397_v60  ;;  %2882 = vmatpush.msrb.mxu3 %v2708_v44  ;;  %v6450_v48 = vmul.f32 -1.442695, %v7653_v42  ;;  %v2688_v6 = vld [vmem:[#allocation6 + $0xec0] sm:$0xff]  ;;  %v2573_v28 = vld [vmem:[#allocation6 + $0xb28] sm:$0xff] }
 0x25c   :  { %2924 = vmatpush.msra.mxu1 %v2317_v63  ;;  %2904 = vmatpush.msra.mxu0 %v2253_v8  ;;  %v2593_v63 = vld [vmem:[#allocation6 + $0xbc8] sm:$0xff]  ;;  %v2684_v60 = vld [vmem:[#allocation6 + $0xea0] sm:$0xff] }
 0x25d   :  { %2941 = vmatpush.msra.mxu2 %v2393_v33  ;;  %2883 = vmatpush.msrb.mxu3 %v2704_v23  ;;  %6554 = vpow2.f32 %v6450_v48  ;;  %v2529_v8 = vld [vmem:[#allocation6 + $0x9c8] sm:$0xff]  ;;  %v2680_v16 = vld [vmem:[#allocation6 + $0xe80] sm:$0xff] }
 0x25e   :  { %2925 = vmatpush.msra.mxu1 %v2313_v17  ;;  %2905 = vmatpush.msra.mxu0 %v2249_v10  ;;  %v2353_v17 = vld [vmem:[#allocation6 + $0x448] sm:$0xff]  ;;  %v2676_v11 = vld [vmem:[#allocation6 + $0xe60] sm:$0xff] }
 0x25f   :  { %2942 = vmatpush.msra.mxu2 %v2389_v59  ;;  %2884 = vmatpush.msrb.mxu3 %v2700_v49  ;;  %v2525_v33 = vld [vmem:[#allocation6 + $0x9a8] sm:$0xff]  ;;  %v2672_v5 = vld [vmem:[#allocation6 + $0xe40] sm:$0xff] }
 0x260   :  { %2926 = vmatpush.msra.mxu1 %v2309_v18  ;;  %2906 = vmatpush.msra.mxu0 %v2245_v50  ;;  %v2349_v10 = vld [vmem:[#allocation6 + $0x428] sm:$0xff] }
 0x261   :  { %2943 = vmatpush.msra.mxu2 %v2385_v26  ;;  %2885 = vmatpush.msrb.mxu3 %v2696_v41  ;;  %v2585_v18 = vld [vmem:[#allocation6 + $0xb88] sm:$0xff] }
 0x262   :  { %2927 = vmatpush.msra.mxu1 %v2305_v22  ;;  %2907 = vmatpush.msra.mxu0 %v2241_v3  ;;  %v2521_v59 = vld [vmem:[#allocation6 + $0x988] sm:$0xff] }
 0x263   :  { %2944 = vmatpush.msra.mxu2 %v2381_v29  ;;  %2886 = vmatpush.msrb.mxu3 %v2692_v36  ;;  %v2345_v50 = vld [vmem:[#allocation6 + $0x408] sm:$0xff]  ;;  %v6555_v20 = vpop.eup %6554 }
 0x264   :  { %2928 = vmatpush.msra.mxu1 %v2301_v15  ;;  %2908 = vmatpush.msra.mxu0 %v2237_v61  ;;  %v2581_v22 = vld [vmem:[#allocation6 + $0xb68] sm:$0xff]  ;;  %v7658_v56 = vadd.f32 1.0, %v6555_v20  ;;  %v2668_v15 = vld [vmem:[#allocation6 + $0xe20] sm:$0xff]  ;;  %v2278_v20 = vld [vmem:[#allocation6 + $0x1f0] sm:$0xff] }
 0x265   :  { %2945 = vmatpush.msra.mxu2 %v2377_v4  ;;  %2887 = vmatpush.msrb.mxu3 %v2688_v6  ;;  %v2517_v26 = vld [vmem:[#allocation6 + $0x968] sm:$0xff]  ;;  %v2664_v61 = vld [vmem:[#allocation6 + $0xe00] sm:$0xff] }
 0x266   :  { %2929 = vmatpush.msra.mxu1 %v2297_v45  ;;  %2909 = vmatpush.msra.mxu0 %v2233_v40  ;;  %v2577_v3 = vld [vmem:[#allocation6 + $0xb48] sm:$0xff]  ;;  %6556 = vrcp.f32 %v7658_v56  ;;  %v2189_v49 = vand.u32 2147483648, %v7658_v56  ;;  %vm2183_vm8 = vweird.f32 %v7658_v56  ;;  %v2187_v54 = vand.u32 2147483647, %v7658_v56 }
 0x267   :  { %2946 = vmatpush.msra.mxu2 %v2373_v25  ;;  %2888 = vmatpush.msrb.mxu3 %v2684_v60  ;;  %v2509_v29 = vld [vmem:[#allocation6 + $0x928] sm:$0xff] }
 0x268   :  { %2930 = vmatpush.msra.mxu1 %v2293_v43  ;;  %2910 = vmatpush.msra.mxu0 %v2229_v27  ;;  %v2469_v31 = vld [vmem:[#allocation6 + $0x7e8] sm:$0xff]  ;;  %v2190_v36 = vor.u32 1.1754944e-38, %v2189_v49  ;;  %vm2188_vm11 = vcmp.eq.f32.partialorder %v2187_v54, 8.507059e+37  ;;  %v2318_v54 = vld [vmem:[#allocation6 + $0x330] sm:$0xff] }
 0x269   :  { %2947 = vmatpush.msra.mxu2 %v2369_v24  ;;  %2889 = vmatpush.msrb.mxu3 %v2680_v16  ;;  %v2505_v45 = vld [vmem:[#allocation6 + $0x908] sm:$0xff] }
 0x26a   :  { %2931 = vmatpush.msra.mxu1 %v2289_v47  ;;  %2911 = vmatpush.msra.mxu0 %v2225_v13  ;;  %v2565_v44 = vld [vmem:[#allocation6 + $0xae8] sm:$0xff] }
 0x26b   :  { %2948 = vmatpush.msra.mxu2 %v2365_v32  ;;  %2890 = vmatpush.msrb.mxu3 %v2676_v11  ;;  %v2465_v4 = vld [vmem:[#allocation6 + $0x7c8] sm:$0xff]  ;;  %v1058_v32 = vperm.slane %v7650_v52, 7 }
 0x26c   :  { %2932 = vmatpush.msra.mxu1 %v2285_v9  ;;  %2912 = vmatpush.msra.mxu0 %v2221_v19  ;;  %v6557_v40 = vpop.eup %6556  ;;  %v2501_v30 = vld [vmem:[#allocation6 + $0x8e8] sm:$0xff] }
 0x26d   :  { %2949 = vmatpush.msra.mxu2 %v2361_v1  ;;  %2891 = vmatpush.msrb.mxu3 %v2672_v5  ;;  %v2179_v43 = vmul.f32 %v6557_v40, %v7658_v56  ;;  %v2561_v21 = vld [vmem:[#allocation6 + $0xac8] sm:$0xff]  ;;  %vm2184_vm9 = vweird.f32 %v6557_v40  ;;  %v2338_v5 = vld [vmem:[#allocation6 + $0x3d0] sm:$0xff] }
 0x26e   :  { %2933 = vmatpush.msra.mxu1 %v2281_v0  ;;  %2913 = vmatpush.msra.mxu0 %v2217_v14  ;;  %v2461_v23 = vld [vmem:[#allocation6 + $0x7a8] sm:$0xff]  ;;  %vm2185_vm10 = vmor %vm2183_vm8, %vm2184_vm9 }
 0x26f   :  { %2934 = vmatmul.f32.vlgmr.msra.gmra.mxu1 %v7595_v35  ;;  %2914 = vmatmul.f32.vlgmr.msra.gmra.mxu0 %v7592_v34  ;;  %v2497_v25 = vld [vmem:[#allocation6 + $0x8c8] sm:$0xff]  ;;  %v2180_v27 = vsub.f32 1.0, %v2179_v43 }
 0x270   :  { %2998 = vmatpush.msrb.mxu1 %v2597_v2  ;;  %2978 = vmatpush.msrb.mxu0 %v2533_v7  ;;  %v2557_v38 = vld [vmem:[#allocation6 + $0xaa8] sm:$0xff] }
 0x271   :  { %2950 = vmatpush.msra.mxu2 %v2357_v55  ;;  %2892 = vmatpush.msrb.mxu3 %v2668_v15  ;;  %v2457_v47 = vld [vmem:[#allocation6 + $0x788] sm:$0xff]  ;;  %v2181_v13 = vmul.f32 %v6557_v40, %v2180_v27 }
 0x272   :  { %2999 = vmatpush.msrb.mxu1 %v2593_v63  ;;  %2979 = vmatpush.msrb.mxu0 %v2529_v8  ;;  %v2493_v24 = vld [vmem:[#allocation6 + $0x8a8] sm:$0xff] }
 0x273   :  { %2951 = vmatpush.msra.mxu2 %v2353_v17  ;;  %2893 = vmatpush.msrb.mxu3 %v2664_v61  ;;  %v2553_v9 = vld [vmem:[#allocation6 + $0xa88] sm:$0xff]  ;;  %v2182_v19 = vadd.f32 %v6557_v40, %v2181_v13  ;;  %v1953_v48 = vpop.f32.mrf.mxu2  ;;  %v2270_v61 = vld [vmem:[#allocation6 + $0x1b0] sm:$0xff] }
 0x274   :  { %3000 = vmatpush.msrb.mxu1 %v2589_v12  ;;  %2980 = vmatpush.msrb.mxu0 %v2525_v33  ;;  %v2453_v58 = vld [vmem:[#allocation6 + $0x768] sm:$0xff]  ;;  %v1954_v55 = vadd.f32 %v1953_v48, %v1058_v32  ;;  %v1973_v12 = vpop.f32.mrf.mxu3  ;;  %v2314_v32 = vld [vmem:[#allocation6 + $0x310] sm:$0xff] }
 0x275   :  { %2952 = vmatpush.msra.mxu2 %v2349_v10  ;;  %2958 = vmatpush.msra.mxu3 %v2469_v31  ;;  %v2489_v41 = vld [vmem:[#allocation6 + $0x888] sm:$0xff]  ;;  %v2186_v14 = vsel %vm2185_vm10, %v6557_v40, %v2182_v19  ;;  %v2266_v40 = vld [vmem:[#allocation6 + $0x190] sm:$0xff] }
 0x276   :  { %3001 = vmatpush.msrb.mxu1 %v2585_v18  ;;  %2981 = vmatpush.msrb.mxu0 %v2521_v59  ;;  %v2549_v62 = vld [vmem:[#allocation6 + $0xa68] sm:$0xff]  ;;  %v2191_v7 = vsel %vm2188_vm11, %v2190_v36, %v2186_v14  ;;  %v1974_v10 = vadd.f32 %v1973_v12, %v1954_v55  ;;  %v2310_v36 = vld [vmem:[#allocation6 + $0x2f0] sm:$0xff] }
 0x277   :  { %2953 = vmatpush.msra.mxu2 %v2345_v50  ;;  %2959 = vmatpush.msra.mxu3 %v2465_v4  ;;  %v2449_v0 = vld [vmem:[#allocation6 + $0x748] sm:$0xff]  ;;  %v7669_v63 = vmul.f32 %v2191_v7, %v7653_v42  ;;  %v2342_v42 = vld [vmem:[#allocation6 + $0x3f0] sm:$0xff] }
 0x278   :  { %3002 = vmatpush.msrb.mxu1 %v2581_v22  ;;  %2982 = vmatpush.msrb.mxu0 %v2517_v26  ;;  %v2485_v1 = vld [vmem:[#allocation6 + $0x868] sm:$0xff]  ;;  %v2306_v7 = vld [vmem:[#allocation6 + $0x2d0] sm:$0xff] }
 0x279   :  { %2960 = vmatpush.msra.mxu3 %v2461_v23  ;;  %v2545_v2 = vld [vmem:[#allocation6 + $0xa48] sm:$0xff]  ;;  %2874 = vmatmul.f32.vlgmr.msrb.gmra.mxu2 %v7669_v63  ;;  %v2242_v55 = vld [vmem:[#allocation6 + $0xd0] sm:$0xff] }
 0x27a   :  { %3003 = vmatpush.msrb.mxu1 %v2577_v3  ;;  %2983 = vmatpush.msrb.mxu0 %v2513_v39  ;;  %v2445_v6 = vld [vmem:[#allocation6 + $0x728] sm:$0xff]  ;;  %v2274_v3 = vld [vmem:[#allocation6 + $0x1d0] sm:$0xff] }
 0x27b   :  { %2961 = vmatpush.msra.mxu3 %v2457_v47  ;;  %v2481_v52 = vld [vmem:[#allocation6 + $0x848] sm:$0xff]  ;;  %v2322_v47 = vld [vmem:[#allocation6 + $0x350] sm:$0xff] }
 0x27c   :  { %3004 = vmatpush.msrb.mxu1 %v2573_v28  ;;  %2984 = vmatpush.msrb.mxu0 %v2509_v29  ;;  %v2541_v60 = vld [vmem:[#allocation6 + $0xa28] sm:$0xff]  ;;  %v2334_v29 = vld [vmem:[#allocation6 + $0x3b0] sm:$0xff] }
 0x27d   :  { %2962 = vmatpush.msra.mxu3 %v2453_v58  ;;  %v2661_v8 = vld [vmem:[#allocation6 + $0xde8] sm:$0xff]  ;;  %v2254_v58 = vld [vmem:[#allocation6 + $0x130] sm:$0xff] }
 0x27e   :  { %3005 = vmatpush.msrb.mxu1 %v2569_v37  ;;  %2985 = vmatpush.msrb.mxu0 %v2505_v45  ;;  %v2477_v17 = vld [vmem:[#allocation6 + $0x828] sm:$0xff]  ;;  %v2330_v45 = vld [vmem:[#allocation6 + $0x390] sm:$0xff] }
 0x27f   :  { %2963 = vmatpush.msra.mxu3 %v2449_v0  ;;  %v2441_v16 = vld [vmem:[#allocation6 + $0x708] sm:$0xff]  ;;  %v1993_v59 = vpop.f32.mrf.mxu0  ;;  %3018 = vmatpush.msrb.mxu2 %v2661_v8  ;;  %v2302_v8 = vld [vmem:[#allocation6 + $0x2b0] sm:$0xff] }
 0x280   :  { %3006 = vmatpush.msrb.mxu1 %v2565_v44  ;;  %2986 = vmatpush.msrb.mxu0 %v2501_v30  ;;  %v2537_v33 = vld [vmem:[#allocation6 + $0xa08] sm:$0xff]  ;;  %v1994_v50 = vadd.f32 %v1993_v59, %v1974_v10 }
 0x281   :  { %2964 = vmatpush.msra.mxu3 %v2445_v6  ;;  %v2657_v18 = vld [vmem:[#allocation6 + $0xdc8] sm:$0xff]  ;;  %2954 = vmatmul.f32.vlgmr.msra.gmra.mxu2 %v7598_v53 }
 0x282   :  { %3007 = vmatpush.msrb.mxu1 %v2561_v21  ;;  %2987 = vmatpush.msrb.mxu0 %v2497_v25  ;;  %v2473_v11 = vld [vmem:[#allocation6 + $0x808] sm:$0xff]  ;;  %v2326_v21 = vld [vmem:[#allocation6 + $0x370] sm:$0xff] }
 0x283   :  { %2965 = vmatpush.msra.mxu3 %v2441_v16  ;;  %3019 = vmatpush.msrb.mxu2 %v2657_v18  ;;  %v2653_v22 = vld [vmem:[#allocation6 + $0xda8] sm:$0xff]  ;;  %v2262_v25 = vld [vmem:[#allocation6 + $0x170] sm:$0xff] }
 0x284   :  { %3008 = vmatpush.msrb.mxu1 %v2557_v38  ;;  %2988 = vmatpush.msrb.mxu0 %v2493_v24  ;;  %v2437_v26 = vld [vmem:[#allocation6 + $0x6e8] sm:$0xff]  ;;  %v2258_v24 = vld [vmem:[#allocation6 + $0x150] sm:$0xff] }
 0x285   :  { %v2649_v28 = vld [vmem:[#allocation6 + $0xd88] sm:$0xff]  ;;  %3020 = vmatpush.msrb.mxu2 %v2653_v22  ;;  %2966 = vmatpush.msra.mxu3 %v2437_v26  ;;  %v2298_v16 = vld [vmem:[#allocation6 + $0x290] sm:$0xff] }
 0x286   :  { %3009 = vmatpush.msrb.mxu1 %v2553_v9  ;;  %2989 = vmatpush.msrb.mxu0 %v2489_v41  ;;  %v2013_v56 = vpop.f32.mrf.mxu1  ;;  %v2645_v31 = vld [vmem:[#allocation6 + $0xd68] sm:$0xff]  ;;  %v2294_v18 = vld [vmem:[#allocation6 + $0x270] sm:$0xff] }
 0x287   :  { %v2014_v15 = vadd.f32 %v2013_v56, %v1994_v50  ;;  %v2033_v39 = vpop.f32.mrf.mxu2  ;;  %3021 = vmatpush.msrb.mxu2 %v2649_v28  ;;  %v2433_v4 = vld [vmem:[#allocation6 + $0x6c8] sm:$0xff]  ;;  %v2290_v50 = vld [vmem:[#allocation6 + $0x250] sm:$0xff] }
 0x288   :  { %3010 = vmatpush.msrb.mxu1 %v2549_v62  ;;  %2990 = vmatpush.msrb.mxu0 %v2485_v1  ;;  %v2641_v43 = vld [vmem:[#allocation6 + $0xd48] sm:$0xff]  ;;  %v2250_v62 = vld [vmem:[#allocation6 + $0x110] sm:$0xff] }
 0x289   :  { %v2034_v37 = vadd.f32 %v2033_v39, %v2014_v15  ;;  %3022 = vmatpush.msrb.mxu2 %v2645_v31  ;;  %v2429_v23 = vld [vmem:[#allocation6 + $0x6a8] sm:$0xff]  ;;  %2967 = vmatpush.msra.mxu3 %v2433_v4  ;;  %v2226_v22 = vld [vmem:[#allocation6 + $0x50] sm:$0xff] }
 0x28a   :  { %3011 = vmatpush.msrb.mxu1 %v2545_v2  ;;  %2991 = vmatpush.msrb.mxu0 %v2481_v52  ;;  %v2053_v44 = vpop.f32.mrf.mxu3  ;;  %v2637_v38 = vld [vmem:[#allocation6 + $0xd28] sm:$0xff]  ;;  %v2246_v2 = vld [vmem:[#allocation6 + $0xf0] sm:$0xff] }
 0x28b   :  { %v7674_v30 = vadd.f32 %v2053_v44, %v2034_v37  ;;  %3023 = vmatpush.msrb.mxu2 %v2641_v43  ;;  %v2425_v49 = vld [vmem:[#allocation6 + $0x688] sm:$0xff]  ;;  %2968 = vmatpush.msra.mxu3 %v2429_v23  ;;  %v2286_v56 = vld [vmem:[#allocation6 + $0x230] sm:$0xff] }
 0x28c   :  { %3012 = vmatpush.msrb.mxu1 %v2541_v60  ;;  %2992 = vmatpush.msrb.mxu0 %v2477_v17  ;;  %v2633_v13 = vld [vmem:[#allocation6 + $0xd08] sm:$0xff]  ;;  %v2238_v17 = vld [vmem:[#allocation6 + $0xb0] sm:$0xff] }
 0x28d   :  { %v6451_v27 = vmul.f32 -1.442695, %v7674_v30  ;;  %3024 = vmatpush.msrb.mxu2 %v2637_v38  ;;  %v2421_v9 = vld [vmem:[#allocation6 + $0x668] sm:$0xff]  ;;  %2969 = vmatpush.msra.mxu3 %v2425_v49  ;;  %v2406_v15 = vld [vmem:[#allocation6 + $0x5f0] sm:$0xff] }
 0x28e   :  { %3013 = vmatpush.msrb.mxu1 %v2537_v33  ;;  %2993 = vmatpush.msrb.mxu0 %v2473_v11  ;;  %v2629_v41 = vld [vmem:[#allocation6 + $0xce8] sm:$0xff]  ;;  %v2234_v33 = vld [vmem:[#allocation6 + $0x90] sm:$0xff] }
 0x28f   :  { %3014 = vmatmul.f32.vlgmr.msrb.gmra.mxu1 %v7643_v51  ;;  %2994 = vmatmul.f32.vlgmr.msrb.gmra.mxu0 %v7646_v57  ;;  %6558 = vpow2.f32 %v6451_v27  ;;  %v2417_v19 = vld [vmem:[#allocation6 + $0x648] sm:$0xff]  ;;  %v2230_v11 = vld [vmem:[#allocation6 + $0x70] sm:$0xff] }
 0x290   :  { %3078 = vmatpush.msra.mxu1 %v2342_v42  ;;  %3058 = vmatpush.msra.mxu0 %v2278_v20  ;;  %v2625_v0 = vld [vmem:[#allocation6 + $0xcc8] sm:$0xff]  ;;  %v2282_v28 = vld [vmem:[#allocation6 + $0x210] sm:$0xff] }
 0x291   :  { %3025 = vmatpush.msrb.mxu2 %v2633_v13  ;;  %2970 = vmatpush.msra.mxu3 %v2421_v9  ;;  %v2413_v1 = vld [vmem:[#allocation6 + $0x628] sm:$0xff]  ;;  %v2218_v37 = vld [vmem:[#allocation6 + $0x10] sm:$0xff] }
 0x292   :  { %3079 = vmatpush.msra.mxu1 %v2338_v5  ;;  %3059 = vmatpush.msra.mxu0 %v2274_v3  ;;  %v2621_v48 = vld [vmem:[#allocation6 + $0xca8] sm:$0xff]  ;;  %v2222_v3 = vld [vmem:[#allocation6 + $0x30] sm:$0xff] }
 0x293   :  { %3026 = vmatpush.msrb.mxu2 %v2629_v41  ;;  %2971 = vmatpush.msra.mxu3 %v2417_v19  ;;  %v2409_v52 = vld [vmem:[#allocation6 + $0x608] sm:$0xff]  ;;  %v2598_v31 = vld [vmem:[#allocation6 + $0xbf0] sm:$0xff] }
 0x294   :  { %3080 = vmatpush.msra.mxu1 %v2334_v29  ;;  %3060 = vmatpush.msra.mxu0 %v2270_v61  ;;  %v2617_v60 = vld [vmem:[#allocation6 + $0xc88] sm:$0xff]  ;;  %v2534_v44 = vld [vmem:[#allocation6 + $0x9f0] sm:$0xff] }
 0x295   :  { %v6559_v14 = vpop.eup %6558  ;;  %3027 = vmatpush.msrb.mxu2 %v2625_v0  ;;  %2972 = vmatpush.msra.mxu3 %v2413_v1  ;;  %v2613_v12 = vld [vmem:[#allocation6 + $0xc68] sm:$0xff]  ;;  %v2402_v4 = vld [vmem:[#allocation6 + $0x5d0] sm:$0xff] }
 0x296   :  { %3081 = vmatpush.msra.mxu1 %v2330_v45  ;;  %3061 = vmatpush.msra.mxu0 %v2266_v40  ;;  %v7678_v6 = vadd.f32 1.0, %v6559_v14  ;;  %v2609_v10 = vld [vmem:[#allocation6 + $0xc48] sm:$0xff]  ;;  %v2594_v43 = vld [vmem:[#allocation6 + $0xbd0] sm:$0xff] }
 0x297   :  { %3028 = vmatpush.msrb.mxu2 %v2621_v48  ;;  %2973 = vmatpush.msra.mxu3 %v2409_v52  ;;  %v2605_v59 = vld [vmem:[#allocation6 + $0xc28] sm:$0xff]  ;;  %v2530_v23 = vld [vmem:[#allocation6 + $0x9d0] sm:$0xff] }
 0x298   :  { %3082 = vmatpush.msra.mxu1 %v2326_v21  ;;  %3062 = vmatpush.msra.mxu0 %v2262_v25  ;;  %6560 = vrcp.f32 %v7678_v6  ;;  %v2601_v5 = vld [vmem:[#allocation6 + $0xc08] sm:$0xff]  ;;  %v2204_v39 = vand.u32 2147483648, %v7678_v6  ;;  %v2202_v61 = vand.u32 2147483647, %v7678_v6  ;;  %vm2198_vm13 = vweird.f32 %v7678_v6  ;;  %v2398_v25 = vld [vmem:[#allocation6 + $0x5b0] sm:$0xff] }
 0x299   :  { %3029 = vmatpush.msrb.mxu2 %v2617_v60  ;;  %v2590_v38 = vld [vmem:[#allocation6 + $0xbb0] sm:$0xff]  ;;  %v2713_v1 = vld [vmem:[#allocation6 + $0xf88] sm:$0xff] }
 0x29a   :  { %3083 = vmatpush.msra.mxu1 %v2322_v47  ;;  %3063 = vmatpush.msra.mxu0 %v2258_v24  ;;  %v2205_v40 = vor.u32 1.1754944e-38, %v2204_v39  ;;  %vm2203_vm15 = vcmp.eq.f32.partialorder %v2202_v61, 8.507059e+37  ;;  %v2526_v49 = vld [vmem:[#allocation6 + $0x9b0] sm:$0xff]  ;;  %v2725_v24 = vld [vmem:[#allocation6 + $0xfe8] sm:$0xff] }
 0x29b   :  { %3030 = vmatpush.msrb.mxu2 %v2613_v12  ;;  %v2586_v13 = vld [vmem:[#allocation6 + $0xb90] sm:$0xff] }
 0x29c   :  { %3084 = vmatpush.msra.mxu1 %v2318_v54  ;;  %3064 = vmatpush.msra.mxu0 %v2254_v58  ;;  %v2394_v54 = vld [vmem:[#allocation6 + $0x590] sm:$0xff]  ;;  %v2721_v58 = vld [vmem:[#allocation6 + $0xfc8] sm:$0xff] }
 0x29d   :  { %3031 = vmatpush.msrb.mxu2 %v2609_v10  ;;  %v2522_v9 = vld [vmem:[#allocation6 + $0x990] sm:$0xff] }
 0x29e   :  { %3085 = vmatpush.msra.mxu1 %v2314_v32  ;;  %3065 = vmatpush.msra.mxu0 %v2250_v62  ;;  %v6561_v42 = vpop.eup %6560  ;;  %v2582_v41 = vld [vmem:[#allocation6 + $0xb70] sm:$0xff] }
 0x29f   :  { %v2194_v20 = vmul.f32 %v6561_v42, %v7678_v6  ;;  %3032 = vmatpush.msrb.mxu2 %v2605_v59  ;;  %vm2199_vm12 = vweird.f32 %v6561_v42  ;;  %v2390_v32 = vld [vmem:[#allocation6 + $0x570] sm:$0xff]  ;;  %v2697_v59 = vld [vmem:[#allocation6 + $0xf08] sm:$0xff] }
 0x2a0   :  { %3086 = vmatpush.msra.mxu1 %v2310_v36  ;;  %3066 = vmatpush.msra.mxu0 %v2246_v2  ;;  %vm2200_vm14 = vmor %vm2198_vm13, %vm2199_vm12  ;;  %v2518_v19 = vld [vmem:[#allocation6 + $0x970] sm:$0xff] }
 0x2a1   :  { %v2195_v26 = vsub.f32 1.0, %v2194_v20  ;;  %3033 = vmatpush.msrb.mxu2 %v2601_v5  ;;  %v2578_v62 = vld [vmem:[#allocation6 + $0xb50] sm:$0xff] }
 0x2a2   :  { %3087 = vmatpush.msra.mxu1 %v2306_v7  ;;  %3067 = vmatpush.msra.mxu0 %v2242_v55  ;;  %v2386_v0 = vld [vmem:[#allocation6 + $0x550] sm:$0xff]  ;;  %v2709_v7 = vld [vmem:[#allocation6 + $0xf68] sm:$0xff] }
 0x2a3   :  { %v2196_v29 = vmul.f32 %v6561_v42, %v2195_v26  ;;  %3034 = vmatmul.f32.vlgmr.msrb.gmra.mxu2 %v7669_v63  ;;  %v2514_v36 = vld [vmem:[#allocation6 + $0x950] sm:$0xff] }
 0x2a4   :  { %3088 = vmatpush.msra.mxu1 %v2302_v8  ;;  %3068 = vmatpush.msra.mxu0 %v2238_v17  ;;  %v2574_v14 = vld [vmem:[#allocation6 + $0xb30] sm:$0xff]  ;;  %v2705_v8 = vld [vmem:[#allocation6 + $0xf48] sm:$0xff] }
 0x2a5   :  { %3098 = vmatpush.msra.mxu2 %v2406_v15  ;;  %v2197_v45 = vadd.f32 %v6561_v42, %v2196_v29  ;;  %v2382_v2 = vld [vmem:[#allocation6 + $0x530] sm:$0xff]  ;;  %v2685_v29 = vld [vmem:[#allocation6 + $0xea8] sm:$0xff] }
 0x2a6   :  { %3089 = vmatpush.msra.mxu1 %v2298_v16  ;;  %3069 = vmatpush.msra.mxu0 %v2234_v33  ;;  %v2510_v48 = vld [vmem:[#allocation6 + $0x930] sm:$0xff]  ;;  %v2701_v33 = vld [vmem:[#allocation6 + $0xf28] sm:$0xff] }
 0x2a7   :  { %v2201_v21 = vsel %vm2200_vm14, %v6561_v42, %v2197_v45  ;;  %3099 = vmatpush.msra.mxu2 %v2402_v4  ;;  %v2570_v6 = vld [vmem:[#allocation6 + $0xb10] sm:$0xff]  ;;  %v2681_v45 = vld [vmem:[#allocation6 + $0xe88] sm:$0xff] }
 0x2a8   :  { %3090 = vmatpush.msra.mxu1 %v2294_v18  ;;  %3070 = vmatpush.msra.mxu0 %v2230_v11  ;;  %v2206_v27 = vsel %vm2203_vm15, %v2205_v40, %v2201_v21  ;;  %v2506_v52 = vld [vmem:[#allocation6 + $0x910] sm:$0xff] }
 0x2a9   :  { %v7689_v47 = vmul.f32 %v2206_v27, %v7674_v30  ;;  %3100 = vmatpush.msra.mxu2 %v2398_v25  ;;  %v2717_v30 = vld [vmem:[#allocation6 + $0xfa8] sm:$0xff]  ;;  %v2378_v55 = vld [vmem:[#allocation6 + $0x510] sm:$0xff]  ;;  %v2279_v25 = vld [vmem:[#allocation6 + $0x1f8] sm:$0xff] }
 0x2aa   :  { %3091 = vmatpush.msra.mxu1 %v2290_v50  ;;  %3071 = vmatpush.msra.mxu0 %v2226_v22  ;;  %v2566_v60 = vld [vmem:[#allocation6 + $0xaf0] sm:$0xff]  ;;  %v2693_v22 = vld [vmem:[#allocation6 + $0xee8] sm:$0xff] }
 0x2ab   :  { %2894 = vmatmul.f32.vlgmr.msrb.gmra.mxu3 %v7689_v47  ;;  %3101 = vmatpush.msra.mxu2 %v2394_v54  ;;  %v2502_v17 = vld [vmem:[#allocation6 + $0x8f0] sm:$0xff]  ;;  %v2673_v54 = vld [vmem:[#allocation6 + $0xe48] sm:$0xff] }
 0x2ac   :  { %3092 = vmatpush.msra.mxu1 %v2286_v56  ;;  %3072 = vmatpush.msra.mxu0 %v2222_v3  ;;  %v2374_v12 = vld [vmem:[#allocation6 + $0x4f0] sm:$0xff]  ;;  %v2689_v3 = vld [vmem:[#allocation6 + $0xec8] sm:$0xff] }
 0x2ad   :  { %3038 = vmatpush.msrb.mxu3 %v2725_v24  ;;  %3102 = vmatpush.msra.mxu2 %v2390_v32  ;;  %v2562_v16 = vld [vmem:[#allocation6 + $0xad0] sm:$0xff]  ;;  %v2669_v32 = vld [vmem:[#allocation6 + $0xe28] sm:$0xff] }
 0x2ae   :  { %3093 = vmatpush.msra.mxu1 %v2282_v28  ;;  %3073 = vmatpush.msra.mxu0 %v2218_v37  ;;  %v2498_v10 = vld [vmem:[#allocation6 + $0x8d0] sm:$0xff] }
 0x2af   :  { %3094 = vmatmul.f32.vlgmr.msra.gmra.mxu1 %v7595_v35  ;;  %3074 = vmatmul.f32.vlgmr.msra.gmra.mxu0 %v7592_v34  ;;  %v2370_v18 = vld [vmem:[#allocation6 + $0x4d0] sm:$0xff] }
 0x2b0   :  { %3158 = vmatpush.msrb.mxu1 %v2598_v31  ;;  %3138 = vmatpush.msrb.mxu0 %v2534_v44  ;;  %v2558_v11 = vld [vmem:[#allocation6 + $0xab0] sm:$0xff] }
 0x2b1   :  { %3039 = vmatpush.msrb.mxu3 %v2721_v58  ;;  %3103 = vmatpush.msra.mxu2 %v2386_v0  ;;  %v2494_v42 = vld [vmem:[#allocation6 + $0x8b0] sm:$0xff]  ;;  %v2665_v0 = vld [vmem:[#allocation6 + $0xe08] sm:$0xff] }
 0x2b2   :  { %3159 = vmatpush.msrb.mxu1 %v2594_v43  ;;  %3139 = vmatpush.msrb.mxu0 %v2530_v23  ;;  %v2366_v50 = vld [vmem:[#allocation6 + $0x4b0] sm:$0xff]  ;;  %v2677_v43 = vld [vmem:[#allocation6 + $0xe68] sm:$0xff]  ;;  %v2343_v23 = vld [vmem:[#allocation6 + $0x3f8] sm:$0xff] }
 0x2b3   :  { %3040 = vmatpush.msrb.mxu3 %v2717_v30  ;;  %3104 = vmatpush.msra.mxu2 %v2382_v2  ;;  %v2554_v20 = vld [vmem:[#allocation6 + $0xa90] sm:$0xff]  ;;  %v2259_v2 = vld [vmem:[#allocation6 + $0x158] sm:$0xff] }
 0x2b4   :  { %3160 = vmatpush.msrb.mxu1 %v2590_v38  ;;  %3140 = vmatpush.msrb.mxu0 %v2526_v49  ;;  %v2490_v5 = vld [vmem:[#allocation6 + $0x890] sm:$0xff]  ;;  %v2339_v38 = vld [vmem:[#allocation6 + $0x3d8] sm:$0xff] }
 0x2b5   :  { %3041 = vmatpush.msrb.mxu3 %v2713_v1  ;;  %3105 = vmatpush.msra.mxu2 %v2378_v55  ;;  %v2362_v56 = vld [vmem:[#allocation6 + $0x490] sm:$0xff]  ;;  %v2275_v49 = vld [vmem:[#allocation6 + $0x1d8] sm:$0xff] }
 0x2b6   :  { %3161 = vmatpush.msrb.mxu1 %v2586_v13  ;;  %3141 = vmatpush.msrb.mxu0 %v2522_v9  ;;  %v2550_v26 = vld [vmem:[#allocation6 + $0xa70] sm:$0xff]  ;;  %v2335_v13 = vld [vmem:[#allocation6 + $0x3b8] sm:$0xff] }
 0x2b7   :  { %2974 = vmatmul.f32.vlgmr.msra.gmra.mxu3 %v7601_v46  ;;  %3106 = vmatpush.msra.mxu2 %v2374_v12  ;;  %v2486_v15 = vld [vmem:[#allocation6 + $0x870] sm:$0xff]  ;;  %v2271_v9 = vld [vmem:[#allocation6 + $0x1b8] sm:$0xff] }
 0x2b8   :  { %3162 = vmatpush.msrb.mxu1 %v2582_v41  ;;  %3142 = vmatpush.msrb.mxu0 %v2518_v19  ;;  %v2358_v39 = vld [vmem:[#allocation6 + $0x470] sm:$0xff]  ;;  %v2331_v41 = vld [vmem:[#allocation6 + $0x398] sm:$0xff] }
 0x2b9   :  { %3042 = vmatpush.msrb.mxu3 %v2709_v7  ;;  %3107 = vmatpush.msra.mxu2 %v2370_v18  ;;  %v2546_v28 = vld [vmem:[#allocation6 + $0xa50] sm:$0xff]  ;;  %v2267_v19 = vld [vmem:[#allocation6 + $0x198] sm:$0xff] }
 0x2ba   :  { %3163 = vmatpush.msrb.mxu1 %v2578_v62  ;;  %3143 = vmatpush.msrb.mxu0 %v2514_v36  ;;  %v2482_v61 = vld [vmem:[#allocation6 + $0x850] sm:$0xff]  ;;  %v2327_v62 = vld [vmem:[#allocation6 + $0x378] sm:$0xff] }
 0x2bb   :  { %3043 = vmatpush.msrb.mxu3 %v2705_v8  ;;  %3108 = vmatpush.msra.mxu2 %v2366_v50  ;;  %v2354_v37 = vld [vmem:[#allocation6 + $0x450] sm:$0xff]  ;;  %v2263_v36 = vld [vmem:[#allocation6 + $0x178] sm:$0xff] }
 0x2bc   :  { %3164 = vmatpush.msrb.mxu1 %v2574_v14  ;;  %3144 = vmatpush.msrb.mxu0 %v2510_v48  ;;  %v2542_v31 = vld [vmem:[#allocation6 + $0xa30] sm:$0xff]  ;;  %v2323_v1 = vld [vmem:[#allocation6 + $0x358] sm:$0xff] }
 0x2bd   :  { %3044 = vmatpush.msrb.mxu3 %v2701_v33  ;;  %3109 = vmatpush.msra.mxu2 %v2362_v56  ;;  %v2478_v44 = vld [vmem:[#allocation6 + $0x830] sm:$0xff] }
 0x2be   :  { %3165 = vmatpush.msrb.mxu1 %v2570_v6  ;;  %3145 = vmatpush.msrb.mxu0 %v2506_v52  ;;  %v2350_v4 = vld [vmem:[#allocation6 + $0x430] sm:$0xff]  ;;  %v2319_v6 = vld [vmem:[#allocation6 + $0x338] sm:$0xff] }
 0x2bf   :  { %3045 = vmatpush.msrb.mxu3 %v2697_v59  ;;  %3110 = vmatpush.msra.mxu2 %v2358_v39  ;;  %v2538_v40 = vld [vmem:[#allocation6 + $0xa10] sm:$0xff]  ;;  %v2255_v52 = vld [vmem:[#allocation6 + $0x138] sm:$0xff] }
 0x2c0   :  { %3166 = vmatpush.msrb.mxu1 %v2566_v60  ;;  %3146 = vmatpush.msrb.mxu0 %v2502_v17  ;;  %v2474_v21 = vld [vmem:[#allocation6 + $0x810] sm:$0xff]  ;;  %v2315_v60 = vld [vmem:[#allocation6 + $0x318] sm:$0xff] }
 0x2c1   :  { %3046 = vmatpush.msrb.mxu3 %v2693_v22  ;;  %3111 = vmatpush.msra.mxu2 %v2354_v37  ;;  %v2346_v27 = vld [vmem:[#allocation6 + $0x410] sm:$0xff]  ;;  %v2251_v17 = vld [vmem:[#allocation6 + $0x118] sm:$0xff] }
 0x2c2   :  { %3167 = vmatpush.msrb.mxu1 %v2562_v16  ;;  %3147 = vmatpush.msrb.mxu0 %v2498_v10  ;;  %v2662_v24 = vld [vmem:[#allocation6 + $0xdf0] sm:$0xff]  ;;  %v2311_v16 = vld [vmem:[#allocation6 + $0x2f8] sm:$0xff] }
 0x2c3   :  { %3047 = vmatpush.msrb.mxu3 %v2689_v3  ;;  %3112 = vmatpush.msra.mxu2 %v2350_v4  ;;  %v2658_v58 = vld [vmem:[#allocation6 + $0xdd0] sm:$0xff]  ;;  %v2247_v10 = vld [vmem:[#allocation6 + $0xf8] sm:$0xff] }
 0x2c4   :  { %3168 = vmatpush.msrb.mxu1 %v2558_v11  ;;  %3148 = vmatpush.msrb.mxu0 %v2494_v42  ;;  %v2654_v30 = vld [vmem:[#allocation6 + $0xdb0] sm:$0xff]  ;;  %v2307_v11 = vld [vmem:[#allocation6 + $0x2d8] sm:$0xff] }
 0x2c5   :  { %3048 = vmatpush.msrb.mxu3 %v2685_v29  ;;  %3113 = vmatpush.msra.mxu2 %v2346_v27  ;;  %v2470_v14 = vld [vmem:[#allocation6 + $0x7f0] sm:$0xff]  ;;  %v2243_v42 = vld [vmem:[#allocation6 + $0xd8] sm:$0xff] }
 0x2c6   :  { %3169 = vmatpush.msrb.mxu1 %v2554_v20  ;;  %3149 = vmatpush.msrb.mxu0 %v2490_v5  ;;  %v2650_v48 = vld [vmem:[#allocation6 + $0xd90] sm:$0xff]  ;;  %v2303_v20 = vld [vmem:[#allocation6 + $0x2b8] sm:$0xff] }
 0x2c7   :  { %3049 = vmatpush.msrb.mxu3 %v2681_v45  ;;  %3114 = vmatmul.f32.vlgmr.msra.gmra.mxu2 %v7598_v53  ;;  %v2466_v7 = vld [vmem:[#allocation6 + $0x7d0] sm:$0xff]  ;;  %v2239_v5 = vld [vmem:[#allocation6 + $0xb8] sm:$0xff] }
 0x2c8   :  { %3170 = vmatpush.msrb.mxu1 %v2550_v26  ;;  %3150 = vmatpush.msrb.mxu0 %v2486_v15  ;;  %v2646_v55 = vld [vmem:[#allocation6 + $0xd70] sm:$0xff]  ;;  %v2299_v26 = vld [vmem:[#allocation6 + $0x298] sm:$0xff] }
 0x2c9   :  { %3050 = vmatpush.msrb.mxu3 %v2677_v43  ;;  %3178 = vmatpush.msrb.mxu2 %v2662_v24  ;;  %v2462_v8 = vld [vmem:[#allocation6 + $0x7b0] sm:$0xff]  ;;  %v2235_v15 = vld [vmem:[#allocation6 + $0x98] sm:$0xff] }
 0x2ca   :  { %3171 = vmatpush.msrb.mxu1 %v2546_v28  ;;  %3151 = vmatpush.msrb.mxu0 %v2482_v61  ;;  %v2642_v12 = vld [vmem:[#allocation6 + $0xd50] sm:$0xff]  ;;  %v2295_v28 = vld [vmem:[#allocation6 + $0x278] sm:$0xff] }
 0x2cb   :  { %3051 = vmatpush.msrb.mxu3 %v2673_v54  ;;  %3179 = vmatpush.msrb.mxu2 %v2658_v58  ;;  %v2458_v33 = vld [vmem:[#allocation6 + $0x790] sm:$0xff]  ;;  %v2231_v61 = vld [vmem:[#allocation6 + $0x78] sm:$0xff] }
 0x2cc   :  { %3172 = vmatpush.msrb.mxu1 %v2542_v31  ;;  %3152 = vmatpush.msrb.mxu0 %v2478_v44  ;;  %v2638_v18 = vld [vmem:[#allocation6 + $0xd30] sm:$0xff]  ;;  %v2291_v31 = vld [vmem:[#allocation6 + $0x258] sm:$0xff] }
 0x2cd   :  { %3052 = vmatpush.msrb.mxu3 %v2669_v32  ;;  %3180 = vmatpush.msrb.mxu2 %v2654_v30  ;;  %v2454_v59 = vld [vmem:[#allocation6 + $0x770] sm:$0xff]  ;;  %v2227_v44 = vld [vmem:[#allocation6 + $0x58] sm:$0xff] }
 0x2ce   :  { %3173 = vmatpush.msrb.mxu1 %v2538_v40  ;;  %3153 = vmatpush.msrb.mxu0 %v2474_v21  ;;  %v2634_v50 = vld [vmem:[#allocation6 + $0xd10] sm:$0xff]  ;;  %v2287_v40 = vld [vmem:[#allocation6 + $0x238] sm:$0xff] }
 0x2cf   :  { %3174 = vmatmul.f32.vlgmr.msrb.gmra.mxu1 %v7643_v51  ;;  %3154 = vmatmul.f32.vlgmr.msrb.gmra.mxu0 %v7646_v57  ;;  %v2450_v22 = vld [vmem:[#allocation6 + $0x750] sm:$0xff]  ;;  %v2223_v21 = vld [vmem:[#allocation6 + $0x38] sm:$0xff] }
 0x2d0   :  { %3238 = vmatpush.msra.mxu1 %v2343_v23  ;;  %3218 = vmatpush.msra.mxu0 %v2279_v25  ;;  %v2630_v56 = vld [vmem:[#allocation6 + $0xcf0] sm:$0xff]  ;;  %v2283_v25 = vld [vmem:[#allocation6 + $0x218] sm:$0xff] }
 0x2d1   :  { %3053 = vmatpush.msrb.mxu3 %v2665_v0  ;;  %3181 = vmatpush.msrb.mxu2 %v2650_v48  ;;  %v2446_v3 = vld [vmem:[#allocation6 + $0x730] sm:$0xff]  ;;  %v2535_v24 = vld [vmem:[#allocation6 + $0x9f8] sm:$0xff] }
 0x2d2   :  { %3239 = vmatpush.msra.mxu1 %v2339_v38  ;;  %3219 = vmatpush.msra.mxu0 %v2275_v49  ;;  %v2626_v39 = vld [vmem:[#allocation6 + $0xcd0] sm:$0xff]  ;;  %v2219_v38 = vld [vmem:[#allocation6 + $0x18] sm:$0xff] }
 0x2d3   :  { %3054 = vmatmul.f32.vlgmr.msrb.gmra.mxu3 %v7689_v47  ;;  %3182 = vmatpush.msrb.mxu2 %v2646_v55  ;;  %v2442_v29 = vld [vmem:[#allocation6 + $0x710] sm:$0xff]  ;;  %v2531_v58 = vld [vmem:[#allocation6 + $0x9d8] sm:$0xff] }
 0x2d4   :  { %3240 = vmatpush.msra.mxu1 %v2335_v13  ;;  %3220 = vmatpush.msra.mxu0 %v2271_v9  ;;  %v2622_v37 = vld [vmem:[#allocation6 + $0xcb0] sm:$0xff]  ;;  %v2599_v13 = vld [vmem:[#allocation6 + $0xbf8] sm:$0xff] }
 0x2d5   :  { %3118 = vmatpush.msra.mxu3 %v2470_v14  ;;  %3183 = vmatpush.msrb.mxu2 %v2642_v12  ;;  %v2438_v45 = vld [vmem:[#allocation6 + $0x6f0] sm:$0xff]  ;;  %v2527_v30 = vld [vmem:[#allocation6 + $0x9b8] sm:$0xff] }
 0x2d6   :  { %3241 = vmatpush.msra.mxu1 %v2331_v41  ;;  %3221 = vmatpush.msra.mxu0 %v2267_v19  ;;  %v2618_v4 = vld [vmem:[#allocation6 + $0xc90] sm:$0xff]  ;;  %v2595_v41 = vld [vmem:[#allocation6 + $0xbd8] sm:$0xff] }
 0x2d7   :  { %3119 = vmatpush.msra.mxu3 %v2466_v7  ;;  %3184 = vmatpush.msrb.mxu2 %v2638_v18  ;;  %v2434_v43 = vld [vmem:[#allocation6 + $0x6d0] sm:$0xff]  ;;  %v2403_v14 = vld [vmem:[#allocation6 + $0x5d8] sm:$0xff] }
 0x2d8   :  { %3242 = vmatpush.msra.mxu1 %v2327_v62  ;;  %3222 = vmatpush.msra.mxu0 %v2263_v36  ;;  %v2614_v23 = vld [vmem:[#allocation6 + $0xc70] sm:$0xff]  ;;  %v2591_v62 = vld [vmem:[#allocation6 + $0xbb8] sm:$0xff] }
 0x2d9   :  { %3120 = vmatpush.msra.mxu3 %v2462_v8  ;;  %3185 = vmatpush.msrb.mxu2 %v2634_v50  ;;  %v2430_v27 = vld [vmem:[#allocation6 + $0x6b0] sm:$0xff]  ;;  %v2407_v36 = vld [vmem:[#allocation6 + $0x5f8] sm:$0xff] }
 0x2da   :  { %3243 = vmatpush.msra.mxu1 %v2323_v1  ;;  %3223 = vmatpush.msra.mxu0 %v2259_v2  ;;  %v2610_v49 = vld [vmem:[#allocation6 + $0xc50] sm:$0xff]  ;;  %v2523_v1 = vld [vmem:[#allocation6 + $0x998] sm:$0xff] }
 0x2db   :  { %3121 = vmatpush.msra.mxu3 %v2458_v33  ;;  %3186 = vmatpush.msrb.mxu2 %v2630_v56  ;;  %v2426_v54 = vld [vmem:[#allocation6 + $0x690] sm:$0xff]  ;;  %v2519_v2 = vld [vmem:[#allocation6 + $0x978] sm:$0xff] }
 0x2dc   :  { %3244 = vmatpush.msra.mxu1 %v2319_v6  ;;  %3224 = vmatpush.msra.mxu0 %v2255_v52  ;;  %v2606_v9 = vld [vmem:[#allocation6 + $0xc30] sm:$0xff]  ;;  %v2583_v48 = vld [vmem:[#allocation6 + $0xb78] sm:$0xff] }
 0x2dd   :  { %3122 = vmatpush.msra.mxu3 %v2454_v59  ;;  %3187 = vmatpush.msrb.mxu2 %v2626_v39  ;;  %v2422_v32 = vld [vmem:[#allocation6 + $0x670] sm:$0xff]  ;;  %v2399_v7 = vld [vmem:[#allocation6 + $0x5b8] sm:$0xff] }
 0x2de   :  { %3245 = vmatpush.msra.mxu1 %v2315_v60  ;;  %3225 = vmatpush.msra.mxu0 %v2251_v17  ;;  %v2602_v19 = vld [vmem:[#allocation6 + $0xc10] sm:$0xff]  ;;  %v2515_v52 = vld [vmem:[#allocation6 + $0x958] sm:$0xff] }
 0x2df   :  { %3123 = vmatpush.msra.mxu3 %v2450_v22  ;;  %3188 = vmatpush.msrb.mxu2 %v2622_v37  ;;  %v2418_v0 = vld [vmem:[#allocation6 + $0x650] sm:$0xff]  ;;  %v2579_v55 = vld [vmem:[#allocation6 + $0xb58] sm:$0xff] }
 0x2e0   :  { %3246 = vmatpush.msra.mxu1 %v2311_v16  ;;  %3226 = vmatpush.msra.mxu0 %v2247_v10  ;;  %v2410_v6 = vld [vmem:[#allocation6 + $0x610] sm:$0xff]  ;;  %v2395_v8 = vld [vmem:[#allocation6 + $0x598] sm:$0xff] }
 0x2e1   :  { %3124 = vmatpush.msra.mxu3 %v2446_v3  ;;  %3189 = vmatpush.msrb.mxu2 %v2618_v4  ;;  %v2726_v60 = vld [vmem:[#allocation6 + $0xff0] sm:$0xff]  ;;  %v2511_v17 = vld [vmem:[#allocation6 + $0x938] sm:$0xff] }
 0x2e2   :  { %3247 = vmatpush.msra.mxu1 %v2307_v11  ;;  %3227 = vmatpush.msra.mxu0 %v2243_v42  ;;  %v2575_v12 = vld [vmem:[#allocation6 + $0xb38] sm:$0xff]  ;;  %v2722_v16 = vld [vmem:[#allocation6 + $0xfd0] sm:$0xff] }
 0x2e3   :  { %3125 = vmatpush.msra.mxu3 %v2442_v29  ;;  %3190 = vmatpush.msrb.mxu2 %v2614_v23  ;;  %v2391_v33 = vld [vmem:[#allocation6 + $0x578] sm:$0xff]  ;;  %v2718_v11 = vld [vmem:[#allocation6 + $0xfb0] sm:$0xff] }
 0x2e4   :  { %3248 = vmatpush.msra.mxu1 %v2303_v20  ;;  %3228 = vmatpush.msra.mxu0 %v2239_v5  ;;  %v2507_v10 = vld [vmem:[#allocation6 + $0x918] sm:$0xff]  ;;  %v2714_v20 = vld [vmem:[#allocation6 + $0xf90] sm:$0xff] }
 0x2e5   :  { %3126 = vmatpush.msra.mxu3 %v2438_v45  ;;  %3191 = vmatpush.msrb.mxu2 %v2610_v49  ;;  %v2571_v18 = vld [vmem:[#allocation6 + $0xb18] sm:$0xff] }
 0x2e6   :  { %3249 = vmatpush.msra.mxu1 %v2299_v26  ;;  %3229 = vmatpush.msra.mxu0 %v2235_v15  ;;  %v2387_v59 = vld [vmem:[#allocation6 + $0x558] sm:$0xff]  ;;  %v2710_v26 = vld [vmem:[#allocation6 + $0xf70] sm:$0xff] }
 0x2e7   :  { %3127 = vmatpush.msra.mxu3 %v2434_v43  ;;  %3192 = vmatpush.msrb.mxu2 %v2606_v9  ;;  %v2503_v42 = vld [vmem:[#allocation6 + $0x8f8] sm:$0xff] }
 0x2e8   :  { %3250 = vmatpush.msra.mxu1 %v2295_v28  ;;  %3230 = vmatpush.msra.mxu0 %v2231_v61  ;;  %v2567_v50 = vld [vmem:[#allocation6 + $0xaf8] sm:$0xff]  ;;  %v2706_v28 = vld [vmem:[#allocation6 + $0xf50] sm:$0xff] }
 0x2e9   :  { %3128 = vmatpush.msra.mxu3 %v2430_v27  ;;  %3193 = vmatpush.msrb.mxu2 %v2602_v19  ;;  %v2383_v22 = vld [vmem:[#allocation6 + $0x538] sm:$0xff] }
 0x2ea   :  { %3251 = vmatpush.msra.mxu1 %v2291_v31  ;;  %3231 = vmatpush.msra.mxu0 %v2227_v44  ;;  %v2499_v5 = vld [vmem:[#allocation6 + $0x8d8] sm:$0xff]  ;;  %v2702_v31 = vld [vmem:[#allocation6 + $0xf30] sm:$0xff] }
 0x2eb   :  { %3129 = vmatpush.msra.mxu3 %v2426_v54  ;;  %3194 = vmatmul.f32.vlgmr.msrb.gmra.mxu2 %v7669_v63  ;;  %v2563_v56 = vld [vmem:[#allocation6 + $0xad8] sm:$0xff] }
 0x2ec   :  { %3252 = vmatpush.msra.mxu1 %v2287_v40  ;;  %3232 = vmatpush.msra.mxu0 %v2223_v21  ;;  %v2379_v3 = vld [vmem:[#allocation6 + $0x518] sm:$0xff]  ;;  %v2698_v40 = vld [vmem:[#allocation6 + $0xf10] sm:$0xff] }
 0x2ed   :  { %3130 = vmatpush.msra.mxu3 %v2422_v32  ;;  %3258 = vmatpush.msra.mxu2 %v2407_v36  ;;  %v2495_v15 = vld [vmem:[#allocation6 + $0x8b8] sm:$0xff]  ;;  %v2682_v32 = vld [vmem:[#allocation6 + $0xe90] sm:$0xff]  ;;  %v3570_v36 = vld [vmem:[#allocation9 + $0x380] sm:$0xff] }
 0x2ee   :  { %3253 = vmatpush.msra.mxu1 %v2283_v25  ;;  %3233 = vmatpush.msra.mxu0 %v2219_v38  ;;  %v2559_v39 = vld [vmem:[#allocation6 + $0xab8] sm:$0xff]  ;;  %v2694_v25 = vld [vmem:[#allocation6 + $0xef0] sm:$0xff] }
 0x2ef   :  { %3234 = vmatmul.f32.vlgmr.msra.gmra.mxu0 %v7592_v34  ;;  %3254 = vmatmul.f32.vlgmr.msra.gmra.mxu1 %v7595_v35  ;;  %v2587_v34 = vld [vmem:[#allocation6 + $0xb98] sm:$0xff]  ;;  %v2414_v35 = vld [vmem:[#allocation6 + $0x630] sm:$0xff] }
 0x2f0   :  { %3298 = vmatpush.msrb.mxu0 %v2535_v24  ;;  %3318 = vmatpush.msrb.mxu1 %v2599_v13  ;;  %v2375_v29 = vld [vmem:[#allocation6 + $0x4f8] sm:$0xff]  ;;  %v2690_v24 = vld [vmem:[#allocation6 + $0xed0] sm:$0xff] }
 0x2f1   :  { %3131 = vmatpush.msra.mxu3 %v2418_v0  ;;  %3259 = vmatpush.msra.mxu2 %v2403_v14  ;;  %v2491_v61 = vld [vmem:[#allocation6 + $0x898] sm:$0xff] }
 0x2f2   :  { %3299 = vmatpush.msrb.mxu0 %v2531_v58  ;;  %3319 = vmatpush.msrb.mxu1 %v2595_v41  ;;  %v2555_v37 = vld [vmem:[#allocation6 + $0xa98] sm:$0xff]  ;;  %v2686_v58 = vld [vmem:[#allocation6 + $0xeb0] sm:$0xff] }
 0x2f3   :  { %3132 = vmatpush.msra.mxu3 %v2414_v35  ;;  %3260 = vmatpush.msra.mxu2 %v2399_v7  ;;  %v2371_v45 = vld [vmem:[#allocation6 + $0x4d8] sm:$0xff]  ;;  %v3562_v35 = vld [vmem:[#allocation9 + $0x340] sm:$0xff] }
 0x2f4   :  { %3300 = vmatpush.msrb.mxu0 %v2527_v30  ;;  %3320 = vmatpush.msrb.mxu1 %v2591_v62  ;;  %v2487_v44 = vld [vmem:[#allocation6 + $0x878] sm:$0xff]  ;;  %v3578_v30 = vld [vmem:[#allocation9 + $0x3c0] sm:$0xff]  ;;  %v2678_v62 = vld [vmem:[#allocation6 + $0xe70] sm:$0xff] }
 0x2f5   :  { %3133 = vmatpush.msra.mxu3 %v2410_v6  ;;  %3261 = vmatpush.msra.mxu2 %v2395_v8  ;;  %v2551_v4 = vld [vmem:[#allocation6 + $0xa78] sm:$0xff]  ;;  %v3546_v6 = vld [vmem:[#allocation9 + $0x2c0] sm:$0xff] }
 0x2f6   :  { %3301 = vmatpush.msrb.mxu0 %v2523_v1  ;;  %3321 = vmatpush.msrb.mxu1 %v2587_v34  ;;  %v2367_v43 = vld [vmem:[#allocation6 + $0x4b8] sm:$0xff]  ;;  %v2674_v34 = vld [vmem:[#allocation6 + $0xe50] sm:$0xff]  ;;  %v3530_v8 = vld [vmem:[#allocation9 + $0x240] sm:$0xff] }
 0x2f7   :  { %3134 = vmatmul.f32.vlgmr.msra.gmra.mxu3 %v7601_v46  ;;  %3262 = vmatpush.msra.mxu2 %v2391_v33  ;;  %v2483_v21 = vld [vmem:[#allocation6 + $0x858] sm:$0xff]  ;;  %v3522_v33 = vld [vmem:[#allocation9 + $0x200] sm:$0xff] }
 0x2f8   :  { %3302 = vmatpush.msrb.mxu0 %v2519_v2  ;;  %3322 = vmatpush.msrb.mxu1 %v2583_v48  ;;  %v2547_v23 = vld [vmem:[#allocation6 + $0xa58] sm:$0xff]  ;;  %v2670_v2 = vld [vmem:[#allocation6 + $0xe30] sm:$0xff] }
 0x2f9   :  { %3198 = vmatpush.msrb.mxu3 %v2726_v60  ;;  %3263 = vmatpush.msra.mxu2 %v2387_v59  ;;  %v2363_v27 = vld [vmem:[#allocation6 + $0x498] sm:$0xff]  ;;  %v2666_v48 = vld [vmem:[#allocation6 + $0xe10] sm:$0xff] }
 0x2fa   :  { %3303 = vmatpush.msrb.mxu0 %v2515_v52  ;;  %3323 = vmatpush.msrb.mxu1 %v2579_v55  ;;  %v2479_v38 = vld [vmem:[#allocation6 + $0x838] sm:$0xff]  ;;  %v3538_v55 = vld [vmem:[#allocation9 + $0x280] sm:$0xff] }
 0x2fb   :  { %3199 = vmatpush.msrb.mxu3 %v2722_v16  ;;  %3264 = vmatpush.msra.mxu2 %v2383_v22  ;;  %v2543_v49 = vld [vmem:[#allocation6 + $0xa38] sm:$0xff]  ;;  %v7705_v16 = vld [vmem:[#allocation7] sm:$0xf]  ;;  %v3506_v22 = vld [vmem:[#allocation9 + $0x180] sm:$0xff] }
 0x2fc   :  { %3304 = vmatpush.msrb.mxu0 %v2511_v17  ;;  %3324 = vmatpush.msrb.mxu1 %v2575_v12  ;;  %v2359_v13 = vld [vmem:[#allocation6 + $0x478] sm:$0xff]  ;;  %v2730_v59 = vperm.slane %v7705_v16, 0 }
 0x2fd   :  { %3200 = vmatpush.msrb.mxu3 %v2718_v11  ;;  %3265 = vmatpush.msra.mxu2 %v2379_v3  ;;  %v2475_v54 = vld [vmem:[#allocation6 + $0x818] sm:$0xff]  ;;  %v3514_v11 = vld [vmem:[#allocation9 + $0x1c0] sm:$0xff] }
 0x2fe   :  { %3305 = vmatpush.msrb.mxu0 %v2507_v10  ;;  %3325 = vmatpush.msrb.mxu1 %v2571_v18  ;;  %v2539_v9 = vld [vmem:[#allocation6 + $0xa18] sm:$0xff]  ;;  %v3706_v3 = vld [vmem:[#allocation9 + $0x7c0] sm:$0xff] }
 0x2ff   :  { %3201 = vmatpush.msrb.mxu3 %v2714_v20  ;;  %3266 = vmatpush.msra.mxu2 %v2375_v29  ;;  %v2355_v41 = vld [vmem:[#allocation6 + $0x458] sm:$0xff]  ;;  %v2755_v20 = vpop.f32.mrf.mxu0  ;;  %v3490_v29 = vld [vmem:[#allocation9 + $0x100] sm:$0xff] }
 0x300   :  { %3306 = vmatpush.msrb.mxu0 %v2503_v42  ;;  %3326 = vmatpush.msrb.mxu1 %v2567_v50  ;;  %v2351_v19 = vld [vmem:[#allocation6 + $0x438] sm:$0xff] }
 0x301   :  { %3202 = vmatpush.msrb.mxu3 %v2710_v26  ;;  %3267 = vmatpush.msra.mxu2 %v2371_v45  ;;  %v2347_v0 = vld [vmem:[#allocation6 + $0x418] sm:$0xff]  ;;  %v3498_v26 = vld [vmem:[#allocation9 + $0x140] sm:$0xff]  ;;  %v2775_v45 = vpop.f32.mrf.mxu1 }
 0x302   :  { %3307 = vmatpush.msrb.mxu0 %v2499_v5  ;;  %3327 = vmatpush.msrb.mxu1 %v2563_v56  ;;  %v2663_v1 = vld [vmem:[#allocation6 + $0xdf8] sm:$0xff] }
 0x303   :  { %3203 = vmatpush.msrb.mxu3 %v2706_v28  ;;  %3268 = vmatpush.msra.mxu2 %v2367_v43  ;;  %v2659_v14 = vld [vmem:[#allocation6 + $0xdd8] sm:$0xff] }
 0x304   :  { %3308 = vmatpush.msrb.mxu0 %v2495_v15  ;;  %3328 = vmatpush.msrb.mxu1 %v2559_v39  ;;  %v2471_v7 = vld [vmem:[#allocation6 + $0x7f8] sm:$0xff]  ;;  %v2756_v15 = vadd.f32 %v2755_v20, %v2730_v59  ;;  %v3626_v59 = vld [vmem:[#allocation9 + $0x540] sm:$0xff] }
 0x305   :  { %3204 = vmatpush.msrb.mxu3 %v2702_v31  ;;  %3269 = vmatpush.msra.mxu2 %v2363_v27  ;;  %v2651_v52 = vld [vmem:[#allocation6 + $0xd98] sm:$0xff]  ;;  %v3682_v27 = vld [vmem:[#allocation9 + $0x700] sm:$0xff] }
 0x306   :  { %3309 = vmatpush.msrb.mxu0 %v2491_v61  ;;  %3329 = vmatpush.msrb.mxu1 %v2555_v37  ;;  %v2647_v60 = vld [vmem:[#allocation6 + $0xd78] sm:$0xff]  ;;  %v3698_v61 = vld [vmem:[#allocation9 + $0x780] sm:$0xff]  ;;  %v2776_v43 = vadd.f32 %v2775_v45, %v2756_v15  ;;  %v3523_v15 = vld [vmem:[#allocation9 + $0x208] sm:$0xff] }
 0x307   :  { %3205 = vmatpush.msrb.mxu3 %v2698_v40  ;;  %3270 = vmatpush.msra.mxu2 %v2359_v13  ;;  %v2463_v17 = vld [vmem:[#allocation6 + $0x7b8] sm:$0xff]  ;;  %v3690_v40 = vld [vmem:[#allocation9 + $0x740] sm:$0xff]  ;;  %v3507_v45 = vld [vmem:[#allocation9 + $0x188] sm:$0xff] }
 0x308   :  { %3310 = vmatpush.msrb.mxu0 %v2487_v44  ;;  %3330 = vmatpush.msrb.mxu1 %v2551_v4  ;;  %v2643_v12 = vld [vmem:[#allocation6 + $0xd58] sm:$0xff]  ;;  %v2795_v44 = vpop.f32.mrf.mxu2  ;;  %v3482_v4 = vld [vmem:[#allocation9 + $0xc0] sm:$0xff] }
 0x309   :  { %3206 = vmatpush.msrb.mxu3 %v2694_v25  ;;  %3271 = vmatpush.msra.mxu2 %v2355_v41  ;;  %v2459_v10 = vld [vmem:[#allocation6 + $0x798] sm:$0xff]  ;;  %v3474_v25 = vld [vmem:[#allocation9 + $0x80] sm:$0xff]  ;;  %v2815_v41 = vpop.f32.mrf.mxu3 }
 0x30a   :  { %3311 = vmatpush.msrb.mxu0 %v2483_v21  ;;  %3331 = vmatpush.msrb.mxu1 %v2547_v23  ;;  %v2639_v18 = vld [vmem:[#allocation6 + $0xd38] sm:$0xff]  ;;  %v3466_v13 = vld [vmem:[#allocation9 + $0x40] sm:$0xff] }
 0x30b   :  { %3207 = vmatpush.msrb.mxu3 %v2690_v24  ;;  %3272 = vmatpush.msra.mxu2 %v2351_v19  ;;  %v2455_v42 = vld [vmem:[#allocation6 + $0x778] sm:$0xff]  ;;  %v3458_v19 = vld [vmem:[#allocation9] sm:$0xff] }
 0x30c   :  { %3312 = vmatpush.msrb.mxu0 %v2479_v38  ;;  %3332 = vmatpush.msrb.mxu1 %v2543_v49  ;;  %v2635_v50 = vld [vmem:[#allocation6 + $0xd18] sm:$0xff]  ;;  %v2796_v38 = vadd.f32 %v2795_v44, %v2776_v43  ;;  %v3618_v20 = vld [vmem:[#allocation9 + $0x500] sm:$0xff]  ;;  %v3707_v43 = vld [vmem:[#allocation9 + $0x7c8] sm:$0xff] }
 0x30d   :  { %3208 = vmatpush.msrb.mxu3 %v2686_v58  ;;  %3273 = vmatpush.msra.mxu2 %v2347_v0  ;;  %v2451_v5 = vld [vmem:[#allocation6 + $0x758] sm:$0xff]  ;;  %v3586_v44 = vld [vmem:[#allocation9 + $0x400] sm:$0xff] }
 0x30e   :  { %3313 = vmatpush.msrb.mxu0 %v2475_v54  ;;  %3333 = vmatpush.msrb.mxu1 %v2539_v9  ;;  %v2631_v56 = vld [vmem:[#allocation6 + $0xcf8] sm:$0xff]  ;;  %v3674_v54 = vld [vmem:[#allocation9 + $0x6c0] sm:$0xff] }
 0x30f   :  { %3314 = vmatmul.f32.vlgmr.msrb.gmra.mxu0 %v7646_v57  ;;  %3334 = vmatmul.f32.vlgmr.msrb.gmra.mxu1 %v7643_v51  ;;  %v3554_v57 = vld [vmem:[#allocation9 + $0x300] sm:$0xff]  ;;  %v2655_v51 = vld [vmem:[#allocation6 + $0xdb8] sm:$0xff] }
 0x310   :  { %3209 = vmatpush.msrb.mxu3 %v2682_v32  ;;  %3988 = vmatpush.msra.mxu0 %v3578_v30  ;;  %v2447_v39 = vld [vmem:[#allocation6 + $0x738] sm:$0xff]  ;;  %v2835_v32 = vpop.f32.mrf.mxu0  ;;  %v3666_v30 = vld [vmem:[#allocation9 + $0x680] sm:$0xff] }
 0x311   :  { %3274 = vmatmul.f32.vlgmr.msra.gmra.mxu2 %v7598_v53  ;;  %v2467_v53 = vld [vmem:[#allocation6 + $0x7d8] sm:$0xff]  ;;  %4008 = vmatpush.msra.mxu1 %v3706_v3  ;;  %v3602_v3 = vld [vmem:[#allocation9 + $0x480] sm:$0xff] }
 0x312   :  { %3210 = vmatpush.msrb.mxu3 %v2678_v62  ;;  %3989 = vmatpush.msra.mxu0 %v3570_v36  ;;  %v2627_v28 = vld [vmem:[#allocation6 + $0xcd8] sm:$0xff]  ;;  %v2816_v62 = vadd.f32 %v2815_v41, %v2796_v38  ;;  %v3491_v38 = vld [vmem:[#allocation9 + $0x108] sm:$0xff] }
 0x313   :  { %3338 = vmatpush.msrb.mxu2 %v2663_v1  ;;  %v2443_v37 = vld [vmem:[#allocation6 + $0x718] sm:$0xff]  ;;  %4009 = vmatpush.msra.mxu1 %v3698_v61  ;;  %v2855_v1 = vpop.f32.mrf.mxu1  ;;  %v3683_v41 = vld [vmem:[#allocation9 + $0x708] sm:$0xff] }
 0x314   :  { %3211 = vmatpush.msrb.mxu3 %v2674_v34  ;;  %3990 = vmatpush.msra.mxu0 %v3562_v35  ;;  %v2623_v31 = vld [vmem:[#allocation6 + $0xcb8] sm:$0xff]  ;;  %v3579_v34 = vld [vmem:[#allocation9 + $0x3c8] sm:$0xff]  ;;  %v3658_v35 = vld [vmem:[#allocation9 + $0x640] sm:$0xff] }
 0x315   :  { %3339 = vmatpush.msrb.mxu2 %v2659_v14  ;;  %v2439_v21 = vld [vmem:[#allocation6 + $0x6f8] sm:$0xff]  ;;  %4010 = vmatpush.msra.mxu1 %v3690_v40  ;;  %v2836_v14 = vadd.f32 %v2835_v32, %v2816_v62 }
 0x316   :  { %3212 = vmatpush.msrb.mxu3 %v2670_v2  ;;  %3991 = vmatpush.msra.mxu0 %v3554_v57  ;;  %v2619_v23 = vld [vmem:[#allocation6 + $0xc98] sm:$0xff] }
 0x317   :  { %3340 = vmatpush.msrb.mxu2 %v2655_v51  ;;  %v2435_v49 = vld [vmem:[#allocation6 + $0x6d8] sm:$0xff]  ;;  %4011 = vmatpush.msra.mxu1 %v3682_v27  ;;  %v2875_v51 = vpop.f32.mrf.mxu2 }
 0x318   :  { %3213 = vmatpush.msrb.mxu3 %v2666_v48  ;;  %3992 = vmatpush.msra.mxu0 %v3546_v6  ;;  %v2615_v24 = vld [vmem:[#allocation6 + $0xc78] sm:$0xff]  ;;  %v3571_v48 = vld [vmem:[#allocation9 + $0x388] sm:$0xff]  ;;  %v3650_v6 = vld [vmem:[#allocation9 + $0x600] sm:$0xff] }
 0x319   :  { %3214 = vmatmul.f32.vlgmr.msrb.gmra.mxu3 %v7689_v47  ;;  %3341 = vmatpush.msrb.mxu2 %v2651_v52  ;;  %v2431_v9 = vld [vmem:[#allocation6 + $0x6b8] sm:$0xff] }
 0x31a   :  { %3278 = vmatpush.msra.mxu3 %v2471_v7  ;;  %3993 = vmatpush.msra.mxu0 %v3538_v55  ;;  %v2611_v58 = vld [vmem:[#allocation6 + $0xc58] sm:$0xff]  ;;  %v2856_v7 = vadd.f32 %v2855_v1, %v2836_v14  ;;  %v3563_v55 = vld [vmem:[#allocation9 + $0x348] sm:$0xff] }
 0x31b   :  { %3342 = vmatpush.msrb.mxu2 %v2647_v60  ;;  %4012 = vmatpush.msra.mxu1 %v3674_v54  ;;  %v2427_v0 = vld [vmem:[#allocation6 + $0x698] sm:$0xff]  ;;  %v2935_v54 = vpop.f32.mrf.mxu1  ;;  %v3675_v1 = vld [vmem:[#allocation9 + $0x6c8] sm:$0xff] }
 0x31c   :  { %3279 = vmatpush.msra.mxu3 %v2467_v53  ;;  %3994 = vmatpush.msra.mxu0 %v3530_v8  ;;  %v2607_v36 = vld [vmem:[#allocation6 + $0xc38] sm:$0xff]  ;;  %v3642_v53 = vld [vmem:[#allocation9 + $0x5c0] sm:$0xff]  ;;  %v2876_v60 = vadd.f32 %v2875_v51, %v2856_v7 }
 0x31d   :  { %3343 = vmatpush.msrb.mxu2 %v2643_v12  ;;  %4013 = vmatpush.msra.mxu1 %v3666_v30  ;;  %v2423_v2 = vld [vmem:[#allocation6 + $0x678] sm:$0xff]  ;;  %v3555_v12 = vld [vmem:[#allocation9 + $0x308] sm:$0xff] }
 0x31e   :  { %3280 = vmatpush.msra.mxu3 %v2463_v17  ;;  %3995 = vmatpush.msra.mxu0 %v3522_v33  ;;  %v2603_v57 = vld [vmem:[#allocation6 + $0xc18] sm:$0xff]  ;;  %v3634_v33 = vld [vmem:[#allocation9 + $0x580] sm:$0xff]  ;;  %v3475_v30 = vld [vmem:[#allocation9 + $0x88] sm:$0xff] }
 0x31f   :  { %3344 = vmatpush.msrb.mxu2 %v2639_v18  ;;  %4014 = vmatpush.msra.mxu1 %v3658_v35  ;;  %v2419_v52 = vld [vmem:[#allocation6 + $0x658] sm:$0xff]  ;;  %v3467_v35 = vld [vmem:[#allocation9 + $0x48] sm:$0xff] }
 0x320   :  { %3281 = vmatpush.msra.mxu3 %v2459_v10  ;;  %3996 = vmatpush.msra.mxu0 %v3514_v11  ;;  %v2415_v8 = vld [vmem:[#allocation6 + $0x638] sm:$0xff]  ;;  %v3547_v11 = vld [vmem:[#allocation9 + $0x2c8] sm:$0xff] }
 0x321   :  { %3345 = vmatpush.msrb.mxu2 %v2635_v50  ;;  %4015 = vmatpush.msra.mxu1 %v3650_v6  ;;  %v2411_v10 = vld [vmem:[#allocation6 + $0x618] sm:$0xff]  ;;  %v3459_v6 = vld [vmem:[#allocation9 + $0x8] sm:$0xff] }
 0x322   :  { %3282 = vmatpush.msra.mxu3 %v2455_v42  ;;  %3997 = vmatpush.msra.mxu0 %v3506_v22  ;;  %v2727_v42 = vld [vmem:[#allocation6 + $0xff8] sm:$0xff] }
 0x323   :  { %3346 = vmatpush.msrb.mxu2 %v2631_v56  ;;  %4016 = vmatpush.msra.mxu1 %v3642_v53  ;;  %v2723_v22 = vld [vmem:[#allocation6 + $0xfd8] sm:$0xff]  ;;  %v3531_v56 = vld [vmem:[#allocation9 + $0x248] sm:$0xff] }
 0x324   :  { %3283 = vmatpush.msra.mxu3 %v2451_v5  ;;  %3998 = vmatpush.msra.mxu0 %v3498_v26  ;;  %v3610_v5 = vld [vmem:[#allocation9 + $0x4c0] sm:$0xff]  ;;  %v2719_v26 = vld [vmem:[#allocation6 + $0xfb8] sm:$0xff]  ;;  %v3659_v53 = vld [vmem:[#allocation9 + $0x648] sm:$0xff] }
 0x325   :  { %3347 = vmatpush.msrb.mxu2 %v2627_v28  ;;  %4017 = vmatpush.msra.mxu1 %v3634_v33  ;;  %v3594_v28 = vld [vmem:[#allocation9 + $0x440] sm:$0xff]  ;;  %v2711_v61 = vld [vmem:[#allocation6 + $0xf78] sm:$0xff] }
 0x326   :  { %3284 = vmatpush.msra.mxu3 %v2447_v39  ;;  %3999 = vmatpush.msra.mxu0 %v3490_v29  ;;  %v2715_v39 = vld [vmem:[#allocation6 + $0xf98] sm:$0xff]  ;;  %v3515_v29 = vld [vmem:[#allocation9 + $0x1c8] sm:$0xff] }
 0x327   :  { %3348 = vmatpush.msrb.mxu2 %v2623_v31  ;;  %4018 = vmatpush.msra.mxu1 %v3626_v59  ;;  %v2707_v40 = vld [vmem:[#allocation6 + $0xf58] sm:$0xff] }
 0x328   :  { %3285 = vmatpush.msra.mxu3 %v2443_v37  ;;  %4000 = vmatpush.msra.mxu0 %v3482_v4  ;;  %v2731_v37 = vperm.slane %v7705_v16, 1  ;;  %v2915_v4 = vpop.f32.mrf.mxu0  ;;  %v2675_v59 = vld [vmem:[#allocation6 + $0xe58] sm:$0xff] }
 0x329   :  { %3349 = vmatpush.msrb.mxu2 %v2619_v23  ;;  %4019 = vmatpush.msra.mxu1 %v3618_v20  ;;  %v2703_v23 = vld [vmem:[#allocation6 + $0xf38] sm:$0xff] }
 0x32a   :  { %3286 = vmatpush.msra.mxu3 %v2439_v21  ;;  %4001 = vmatpush.msra.mxu0 %v3474_v25  ;;  %v3499_v21 = vld [vmem:[#allocation9 + $0x148] sm:$0xff]  ;;  %v2916_v27 = vadd.f32 %v2915_v4, %v2731_v37  ;;  %v3548_v4 = vld [vmem:[#allocation9 + $0x2d0] sm:$0xff] }
 0x32b   :  { %3350 = vmatpush.msrb.mxu2 %v2615_v24  ;;  %4020 = vmatpush.msra.mxu1 %v3610_v5  ;;  %v3699_v25 = vld [vmem:[#allocation9 + $0x788] sm:$0xff]  ;;  %v3580_v5 = vld [vmem:[#allocation9 + $0x3d0] sm:$0xff] }
 0x32c   :  { %3287 = vmatpush.msra.mxu3 %v2435_v49  ;;  %4002 = vmatpush.msra.mxu0 %v3466_v13  ;;  %v2699_v49 = vld [vmem:[#allocation6 + $0xf18] sm:$0xff]  ;;  %v3691_v24 = vld [vmem:[#allocation9 + $0x748] sm:$0xff] }
 0x32d   :  { %3351 = vmatpush.msrb.mxu2 %v2611_v58  ;;  %4021 = vmatpush.msra.mxu1 %v3602_v3  ;;  %v3483_v13 = vld [vmem:[#allocation9 + $0xc8] sm:$0xff]  ;;  %v2695_v58 = vld [vmem:[#allocation6 + $0xef8] sm:$0xff] }
 0x32e   :  { %3288 = vmatpush.msra.mxu3 %v2431_v9  ;;  %4003 = vmatpush.msra.mxu0 %v3458_v19  ;;  %v2895_v17 = vpop.f32.mrf.mxu3  ;;  %v2955_v9 = vpop.f32.mrf.mxu2  ;;  %v2936_v19 = vadd.f32 %v2935_v54, %v2916_v27  ;;  %v2667_v3 = vld [vmem:[#allocation6 + $0xe18] sm:$0xff]  ;;  %v3826_v27 = vld [vmem:[#allocation9 + $0xb80] sm:$0xff] }
 0x32f   :  { %3352 = vmatpush.msrb.mxu2 %v2607_v36  ;;  %v7709_v18 = vadd.f32 %v2895_v17, %v2876_v60  ;;  %4022 = vmatpush.msra.mxu1 %v3594_v28  ;;  %v2691_v36 = vld [vmem:[#allocation6 + $0xed8] sm:$0xff] }
 0x330   :  { %3289 = vmatpush.msra.mxu3 %v2427_v0  ;;  %4068 = vmatpush.msrb.mxu0 %v3579_v34  ;;  %v2956_v34 = vadd.f32 %v2955_v9, %v2936_v19  ;;  %v2995_v60 = vpop.f32.mrf.mxu0  ;;  %v2679_v17 = vld [vmem:[#allocation6 + $0xe78] sm:$0xff]  ;;  %v3794_v19 = vld [vmem:[#allocation9 + $0xa80] sm:$0xff] }
 0x331   :  { %3353 = vmatpush.msrb.mxu2 %v2603_v57  ;;  %v6452_v50 = vmul.f32 -1.442695, %v7709_v18  ;;  %4023 = vmatpush.msra.mxu1 %v3586_v44  ;;  %v3667_v57 = vld [vmem:[#allocation9 + $0x688] sm:$0xff] }
 0x332   :  { %3290 = vmatpush.msra.mxu3 %v2423_v2  ;;  %3354 = vmatmul.f32.vlgmr.msrb.gmra.mxu2 %v7669_v63  ;;  %v3539_v63 = vld [vmem:[#allocation9 + $0x288] sm:$0xff]  ;;  %v2687_v2 = vld [vmem:[#allocation6 + $0xeb8] sm:$0xff] }
 0x333   :  { %4069 = vmatpush.msrb.mxu0 %v3571_v48  ;;  %6562 = vpow2.f32 %v6452_v50  ;;  %4088 = vmatpush.msrb.mxu1 %v3707_v43  ;;  %v3603_v44 = vld [vmem:[#allocation9 + $0x488] sm:$0xff] }
 0x334   :  { %3291 = vmatpush.msra.mxu3 %v2419_v52  ;;  %v3595_v43 = vld [vmem:[#allocation9 + $0x448] sm:$0xff] }
 0x335   :  { %4070 = vmatpush.msrb.mxu0 %v3563_v55  ;;  %4089 = vmatpush.msrb.mxu1 %v3699_v25  ;;  %v2683_v55 = vld [vmem:[#allocation6 + $0xe98] sm:$0xff]  ;;  %v3834_v25 = vld [vmem:[#allocation9 + $0xbc0] sm:$0xff] }
 0x336   :  { %3292 = vmatpush.msra.mxu3 %v2415_v8  ;;  %v3035_v28 = vpop.f32.mrf.mxu2  ;;  %4028 = vmatpush.msra.mxu2 %v3834_v25 }
 0x337   :  { %4071 = vmatpush.msrb.mxu0 %v3555_v12  ;;  %4090 = vmatpush.msrb.mxu1 %v3691_v24  ;;  %v3651_v12 = vld [vmem:[#allocation9 + $0x608] sm:$0xff]  ;;  %v3516_v24 = vld [vmem:[#allocation9 + $0x1d0] sm:$0xff] }
 0x338   :  { %3293 = vmatpush.msra.mxu3 %v2411_v10  ;;  %4029 = vmatpush.msra.mxu2 %v3826_v27  ;;  %v3501_v27 = vld [vmem:[#allocation9 + $0x158] sm:$0xff] }
 0x339   :  { %3294 = vmatmul.f32.vlgmr.msra.gmra.mxu3 %v7601_v46  ;;  %4072 = vmatpush.msrb.mxu0 %v3547_v11  ;;  %v6563_v46 = vpop.eup %6562 }
 0x33a   :  { %3358 = vmatpush.msrb.mxu3 %v2727_v42  ;;  %v7714_v31 = vadd.f32 1.0, %v6563_v46  ;;  %v2975_v0 = vpop.f32.mrf.mxu3  ;;  %4091 = vmatpush.msrb.mxu1 %v3683_v41  ;;  %v3643_v42 = vld [vmem:[#allocation9 + $0x5c8] sm:$0xff]  ;;  %v3802_v41 = vld [vmem:[#allocation9 + $0xac0] sm:$0xff] }
 0x33b   :  { %4073 = vmatpush.msrb.mxu0 %v3539_v63  ;;  %v2976_v48 = vadd.f32 %v2975_v0, %v2956_v34  ;;  %v3015_v63 = vpop.f32.mrf.mxu1  ;;  %v3619_v46 = vld [vmem:[#allocation9 + $0x508] sm:$0xff]  ;;  %v3786_v0 = vld [vmem:[#allocation9 + $0xa40] sm:$0xff] }
 0x33c   :  { %3359 = vmatpush.msrb.mxu3 %v2723_v22  ;;  %6564 = vrcp.f32 %v7714_v31  ;;  %4092 = vmatpush.msrb.mxu1 %v3675_v1  ;;  %v3405_v51 = vand.u32 2147483648, %v7714_v31  ;;  %v3403_v52 = vand.u32 2147483647, %v7714_v31  ;;  %vm3399_vm1 = vweird.f32 %v7714_v31  ;;  %v2671_v22 = vld [vmem:[#allocation6 + $0xe38] sm:$0xff]  ;;  %v3778_v34 = vld [vmem:[#allocation9 + $0xa00] sm:$0xff] }
 0x33d   :  { %4074 = vmatpush.msrb.mxu0 %v3531_v56  ;;  %v2996_v10 = vadd.f32 %v2995_v60, %v2976_v48  ;;  %v3635_v56 = vld [vmem:[#allocation9 + $0x588] sm:$0xff]  ;;  %v3476_v1 = vld [vmem:[#allocation9 + $0x90] sm:$0xff] }
 0x33e   :  { %3360 = vmatpush.msrb.mxu3 %v2719_v26  ;;  %4093 = vmatpush.msrb.mxu1 %v3667_v57  ;;  %v3406_v33 = vor.u32 1.1754944e-38, %v3405_v51  ;;  %vm3404_vm3 = vcmp.eq.f32.partialorder %v3403_v52, 8.507059e+37  ;;  %v3762_v51 = vld [vmem:[#allocation9 + $0x980] sm:$0xff] }
 0x33f   :  { %4075 = vmatpush.msrb.mxu0 %v3523_v15  ;;  %v3016_v26 = vadd.f32 %v3015_v63, %v2996_v10  ;;  %v3572_v15 = vld [vmem:[#allocation9 + $0x390] sm:$0xff]  ;;  %v3730_v63 = vld [vmem:[#allocation9 + $0x880] sm:$0xff] }
 0x340   :  { %3361 = vmatpush.msrb.mxu3 %v2715_v39  ;;  %4094 = vmatpush.msrb.mxu1 %v3659_v53  ;;  %v3627_v39 = vld [vmem:[#allocation9 + $0x548] sm:$0xff]  ;;  %v3581_v53 = vld [vmem:[#allocation9 + $0x3d8] sm:$0xff] }
 0x341   :  { %4076 = vmatpush.msrb.mxu0 %v3515_v29  ;;  %v3564_v29 = vld [vmem:[#allocation9 + $0x350] sm:$0xff] }
 0x342   :  { %3362 = vmatpush.msrb.mxu3 %v2711_v61  ;;  %v6565_v32 = vpop.eup %6564  ;;  %4095 = vmatpush.msrb.mxu1 %v3651_v12  ;;  %v3611_v61 = vld [vmem:[#allocation9 + $0x4c8] sm:$0xff]  ;;  %v3573_v12 = vld [vmem:[#allocation9 + $0x398] sm:$0xff] }
 0x343   :  { %4077 = vmatpush.msrb.mxu0 %v3507_v45  ;;  %v3395_v62 = vmul.f32 %v6565_v32, %v7714_v31  ;;  %vm3400_vm0 = vweird.f32 %v6565_v32  ;;  %v3556_v31 = vld [vmem:[#allocation9 + $0x310] sm:$0xff] }
 0x344   :  { %3363 = vmatpush.msrb.mxu3 %v2707_v40  ;;  %vm3401_vm2 = vmor %vm3399_vm1, %vm3400_vm0  ;;  %4096 = vmatpush.msrb.mxu1 %v3643_v42 }
 0x345   :  { %4078 = vmatpush.msrb.mxu0 %v3499_v21  ;;  %v3396_v14 = vsub.f32 1.0, %v3395_v62  ;;  %v3540_v21 = vld [vmem:[#allocation9 + $0x290] sm:$0xff] }
 0x346   :  { %3364 = vmatpush.msrb.mxu3 %v2703_v23  ;;  %4097 = vmatpush.msrb.mxu1 %v3635_v56  ;;  %v3587_v23 = vld [vmem:[#allocation9 + $0x408] sm:$0xff]  ;;  %v3484_v62 = vld [vmem:[#allocation9 + $0xd0] sm:$0xff]  ;;  %v3722_v56 = vld [vmem:[#allocation9 + $0x840] sm:$0xff] }
 0x347   :  { %4079 = vmatpush.msrb.mxu0 %v3491_v38  ;;  %v3397_v7 = vmul.f32 %v6565_v32, %v3396_v14  ;;  %v3524_v38 = vld [vmem:[#allocation9 + $0x210] sm:$0xff]  ;;  %v3770_v14 = vld [vmem:[#allocation9 + $0x9c0] sm:$0xff] }
 0x348   :  { %3365 = vmatpush.msrb.mxu3 %v2699_v49  ;;  %4098 = vmatpush.msrb.mxu1 %v3627_v39  ;;  %v3818_v49 = vld [vmem:[#allocation9 + $0xb40] sm:$0xff]  ;;  %v3684_v39 = vld [vmem:[#allocation9 + $0x710] sm:$0xff] }
 0x349   :  { %4080 = vmatpush.msrb.mxu0 %v3483_v13  ;;  %v3398_v8 = vadd.f32 %v6565_v32, %v3397_v7  ;;  %v3810_v13 = vld [vmem:[#allocation9 + $0xb00] sm:$0xff]  ;;  %4030 = vmatpush.msra.mxu2 %v3818_v49  ;;  %v3644_v49 = vld [vmem:[#allocation9 + $0x5d0] sm:$0xff] }
 0x34a   :  { %3366 = vmatpush.msrb.mxu3 %v2695_v58  ;;  %4099 = vmatpush.msrb.mxu1 %v3619_v46  ;;  %v3508_v58 = vld [vmem:[#allocation9 + $0x190] sm:$0xff]  ;;  %v3835_v46 = vld [vmem:[#allocation9 + $0xbc8] sm:$0xff] }
 0x34b   :  { %4081 = vmatpush.msrb.mxu0 %v3475_v30  ;;  %v3402_v11 = vsel %vm3401_vm2, %v6565_v32, %v3398_v8  ;;  %4031 = vmatpush.msra.mxu2 %v3810_v13  ;;  %v3500_v32 = vld [vmem:[#allocation9 + $0x150] sm:$0xff]  ;;  %v3746_v8 = vld [vmem:[#allocation9 + $0x900] sm:$0xff]  ;;  %v3095_v13 = vpop.f32.mrf.mxu1 }
 0x34c   :  { %3367 = vmatpush.msrb.mxu3 %v2691_v36  ;;  %v3407_v50 = vsel %vm3404_vm3, %v3406_v33, %v3402_v11  ;;  %4100 = vmatpush.msrb.mxu1 %v3611_v61  ;;  %v3492_v30 = vld [vmem:[#allocation9 + $0x110] sm:$0xff]  ;;  %v3565_v11 = vld [vmem:[#allocation9 + $0x358] sm:$0xff] }
 0x34d   :  { %4082 = vmatpush.msrb.mxu0 %v3467_v35  ;;  %v7722_v20 = vmul.f32 %v3407_v50, %v7709_v18  ;;  %v3036_v18 = vadd.f32 %v3035_v28, %v3016_v26  ;;  %4032 = vmatpush.msra.mxu2 %v3802_v41  ;;  %v3708_v50 = vld [vmem:[#allocation9 + $0x7d0] sm:$0xff]  ;;  %v3549_v26 = vld [vmem:[#allocation9 + $0x2d8] sm:$0xff]  ;;  %v3714_v28 = vld [vmem:[#allocation9 + $0x800] sm:$0xff] }
 0x34e   :  { %3368 = vmatpush.msrb.mxu3 %v2687_v2  ;;  %4101 = vmatpush.msrb.mxu1 %v3603_v44  ;;  %v3468_v2 = vld [vmem:[#allocation9 + $0x50] sm:$0xff]  ;;  %v3525_v61 = vld [vmem:[#allocation9 + $0x218] sm:$0xff] }
 0x34f   :  { %4083 = vmatpush.msrb.mxu0 %v3459_v6  ;;  %4033 = vmatpush.msra.mxu2 %v3794_v19  ;;  %v3460_v6 = vld [vmem:[#allocation9 + $0x10] sm:$0xff]  ;;  %v3517_v44 = vld [vmem:[#allocation9 + $0x1d8] sm:$0xff] }
 0x350   :  { %3369 = vmatpush.msrb.mxu3 %v2683_v55  ;;  %4004 = vmatmul.f32.vlgmr.msra.gmra.mxu0 %v7722_v20  ;;  %v3754_v55 = vld [vmem:[#allocation9 + $0x940] sm:$0xff]  ;;  %v3485_v41 = vld [vmem:[#allocation9 + $0xd8] sm:$0xff] }
 0x351   :  { %4148 = vmatpush.msra.mxu0 %v3580_v5  ;;  %4102 = vmatpush.msrb.mxu1 %v3595_v43  ;;  %v3700_v5 = vld [vmem:[#allocation9 + $0x790] sm:$0xff] }
 0x352   :  { %3370 = vmatpush.msrb.mxu3 %v2679_v17  ;;  %4034 = vmatpush.msra.mxu2 %v3786_v0  ;;  %v3660_v43 = vld [vmem:[#allocation9 + $0x650] sm:$0xff]  ;;  %v3477_v0 = vld [vmem:[#allocation9 + $0x98] sm:$0xff] }
 0x353   :  { %4149 = vmatpush.msra.mxu0 %v3572_v15  ;;  %4103 = vmatpush.msrb.mxu1 %v3587_v23  ;;  %v3541_v15 = vld [vmem:[#allocation9 + $0x298] sm:$0xff]  ;;  %v3652_v23 = vld [vmem:[#allocation9 + $0x610] sm:$0xff] }
 0x354   :  { %3371 = vmatpush.msrb.mxu3 %v2675_v59  ;;  %4035 = vmatpush.msra.mxu2 %v3778_v34  ;;  %v3738_v59 = vld [vmem:[#allocation9 + $0x8c0] sm:$0xff] }
 0x355   :  { %4150 = vmatpush.msra.mxu0 %v3564_v29  ;;  %v3533_v29 = vld [vmem:[#allocation9 + $0x258] sm:$0xff] }
 0x356   :  { %3372 = vmatpush.msrb.mxu3 %v2671_v22  ;;  %v3055_v37 = vpop.f32.mrf.mxu3  ;;  %4036 = vmatpush.msra.mxu2 %v3770_v14  ;;  %v3557_v22 = vld [vmem:[#allocation9 + $0x318] sm:$0xff]  ;;  %v3771_v14 = vld [vmem:[#allocation9 + $0x9c8] sm:$0xff] }
 0x357   :  { %v7726_v45 = vadd.f32 %v3055_v37, %v3036_v18  ;;  %4151 = vmatpush.msra.mxu0 %v3556_v31  ;;  %v3676_v18 = vld [vmem:[#allocation9 + $0x6d0] sm:$0xff]  ;;  %v3827_v37 = vld [vmem:[#allocation9 + $0xb88] sm:$0xff] }
 0x358   :  { %3373 = vmatpush.msrb.mxu3 %v2667_v3  ;;  %4084 = vmatmul.f32.vlgmr.msrb.gmra.mxu0 %v7722_v20  ;;  %v3692_v3 = vld [vmem:[#allocation9 + $0x750] sm:$0xff] }
 0x359   :  { %3374 = vmatmul.f32.vlgmr.msrb.gmra.mxu3 %v7689_v47  ;;  %v6453_v40 = vmul.f32 -1.442695, %v7726_v45  ;;  %4152 = vmatpush.msra.mxu0 %v3548_v4  ;;  %v3532_v47 = vld [vmem:[#allocation9 + $0x250] sm:$0xff]  ;;  %v3819_v4 = vld [vmem:[#allocation9 + $0xb48] sm:$0xff] }
 0x35a   :  { %4037 = vmatpush.msra.mxu2 %v3762_v51  ;;  %v3668_v31 = vld [vmem:[#allocation9 + $0x690] sm:$0xff]  ;;  %v3763_v51 = vld [vmem:[#allocation9 + $0x988] sm:$0xff] }
 0x35b   :  { %6566 = vpow2.f32 %v6453_v40  ;;  %4153 = vmatpush.msra.mxu0 %v3540_v21  ;;  %v3075_v40 = vpop.f32.mrf.mxu0  ;;  %v3509_v21 = vld [vmem:[#allocation9 + $0x198] sm:$0xff] }
 0x35c   :  { %4038 = vmatpush.msra.mxu2 %v3754_v55  ;;  %v3755_v55 = vld [vmem:[#allocation9 + $0x948] sm:$0xff] }
 0x35d   :  { %4154 = vmatpush.msra.mxu0 %v3532_v47  ;;  %v3811_v47 = vld [vmem:[#allocation9 + $0xb08] sm:$0xff] }
 0x35e   :  { %4039 = vmatpush.msra.mxu2 %v3746_v8  ;;  %v3747_v8 = vld [vmem:[#allocation9 + $0x908] sm:$0xff] }
 0x35f   :  { %4155 = vmatpush.msra.mxu0 %v3524_v38  ;;  %v3803_v38 = vld [vmem:[#allocation9 + $0xac8] sm:$0xff] }
 0x360   :  { %4040 = vmatpush.msra.mxu2 %v3738_v59  ;;  %v3739_v59 = vld [vmem:[#allocation9 + $0x8c8] sm:$0xff] }
 0x361   :  { %v6567_v54 = vpop.eup %6566  ;;  %4156 = vmatpush.msra.mxu0 %v3516_v24  ;;  %v3795_v24 = vld [vmem:[#allocation9 + $0xa88] sm:$0xff] }
 0x362   :  { %v3391_v9 = vadd.f32 1.0, %v6567_v54  ;;  %4041 = vmatpush.msra.mxu2 %v3730_v63  ;;  %v3115_v54 = vpop.f32.mrf.mxu2 }
 0x363   :  { %4157 = vmatpush.msra.mxu0 %v3508_v58 }
 0x364   :  { %6568 = vrcp.f32 %v3391_v9  ;;  %v3420_v48 = vand.u32 2147483648, %v3391_v9  ;;  %v3418_v52 = vand.u32 2147483647, %v3391_v9  ;;  %vm3414_vm5 = vweird.f32 %v3391_v9  ;;  %4042 = vmatpush.msra.mxu2 %v3722_v56 }
 0x365   :  { %4158 = vmatpush.msra.mxu0 %v3500_v32  ;;  %v3787_v32 = vld [vmem:[#allocation9 + $0xa48] sm:$0xff] }
 0x366   :  { %v3421_v17 = vor.u32 1.1754944e-38, %v3420_v48  ;;  %vm3419_vm7 = vcmp.eq.f32.partialorder %v3418_v52, 8.507059e+37  ;;  %4043 = vmatpush.msra.mxu2 %v3714_v28  ;;  %v3155_v48 = vpop.f32.mrf.mxu0  ;;  %v3582_v52 = vld [vmem:[#allocation9 + $0x3e0] sm:$0xff] }
 0x367   :  { %4159 = vmatpush.msra.mxu0 %v3492_v30  ;;  %v3628_v30 = vld [vmem:[#allocation9 + $0x550] sm:$0xff] }
 0x368   :  { %4108 = vmatpush.msrb.mxu2 %v3835_v46  ;;  %v3685_v46 = vld [vmem:[#allocation9 + $0x718] sm:$0xff] }
 0x369   :  { %4160 = vmatpush.msra.mxu0 %v3484_v62 }
 0x36a   :  { %v6569_v36 = vpop.eup %6568  ;;  %4109 = vmatpush.msrb.mxu2 %v3827_v37 }
 0x36b   :  { %v3410_v35 = vmul.f32 %v6569_v36, %v3391_v9  ;;  %4161 = vmatpush.msra.mxu0 %v3476_v1  ;;  %vm3415_vm4 = vweird.f32 %v6569_v36  ;;  %v3636_v9 = vld [vmem:[#allocation9 + $0x590] sm:$0xff] }
 0x36c   :  { %vm3416_vm6 = vmor %vm3414_vm5, %vm3415_vm4  ;;  %4110 = vmatpush.msrb.mxu2 %v3819_v4  ;;  %v3620_v1 = vld [vmem:[#allocation9 + $0x510] sm:$0xff]  ;;  %v3526_v4 = vld [vmem:[#allocation9 + $0x220] sm:$0xff] }
 0x36d   :  { %v3411_v57 = vsub.f32 1.0, %v3410_v35  ;;  %4162 = vmatpush.msra.mxu0 %v3468_v2  ;;  %v3469_v35 = vld [vmem:[#allocation9 + $0x58] sm:$0xff]  ;;  %v3612_v2 = vld [vmem:[#allocation9 + $0x4d0] sm:$0xff] }
 0x36e   :  { %4111 = vmatpush.msrb.mxu2 %v3811_v47  ;;  %v3195_v63 = vpop.f32.mrf.mxu2  ;;  %v3938_v47 = vld [vmem:[#allocation9 + $0xf00] sm:$0xff] }
 0x36f   :  { %v3412_v7 = vmul.f32 %v6569_v36, %v3411_v57  ;;  %4163 = vmatpush.msra.mxu0 %v3460_v6  ;;  %v3461_v57 = vld [vmem:[#allocation9 + $0x18] sm:$0xff]  ;;  %v3604_v6 = vld [vmem:[#allocation9 + $0x490] sm:$0xff] }
 0x370   :  { %4164 = vmatmul.f32.vlgmr.msra.gmra.mxu0 %v7722_v20  ;;  %4112 = vmatpush.msrb.mxu2 %v3803_v38  ;;  %v3653_v38 = vld [vmem:[#allocation9 + $0x618] sm:$0xff] }
 0x371   :  { %v3413_v60 = vadd.f32 %v6569_v36, %v3412_v7  ;;  %4228 = vmatpush.msrb.mxu0 %v3581_v53  ;;  %v3596_v53 = vld [vmem:[#allocation9 + $0x450] sm:$0xff] }
 0x372   :  { %4113 = vmatpush.msrb.mxu2 %v3795_v24  ;;  %v3922_v24 = vld [vmem:[#allocation9 + $0xe80] sm:$0xff] }
 0x373   :  { %v3417_v33 = vsel %vm3416_vm6, %v6569_v36, %v3413_v60  ;;  %4229 = vmatpush.msrb.mxu0 %v3573_v12  ;;  %v3779_v36 = vld [vmem:[#allocation9 + $0xa08] sm:$0xff]  ;;  %v3574_v60 = vld [vmem:[#allocation9 + $0x3a0] sm:$0xff]  ;;  %v3588_v12 = vld [vmem:[#allocation9 + $0x410] sm:$0xff] }
 0x374   :  { %v3422_v10 = vsel %vm3419_vm7, %v3421_v17, %v3417_v33  ;;  %4114 = vmatpush.msrb.mxu2 %v3787_v32  ;;  %v3175_v17 = vpop.f32.mrf.mxu1  ;;  %v3486_v32 = vld [vmem:[#allocation9 + $0xe0] sm:$0xff] }
 0x375   :  { %v7732_v42 = vmul.f32 %v3422_v10, %v7726_v45  ;;  %4230 = vmatpush.msrb.mxu0 %v3565_v11  ;;  %v2732_v45 = vperm.slane %v7705_v16, 2  ;;  %v3493_v16 = vld [vmem:[#allocation9 + $0x118] sm:$0xff]  ;;  %v3566_v10 = vld [vmem:[#allocation9 + $0x360] sm:$0xff] }
 0x376   :  { %4115 = vmatpush.msrb.mxu2 %v3779_v36  ;;  %v3709_v11 = vld [vmem:[#allocation9 + $0x7d8] sm:$0xff] }
 0x377   :  { %4024 = vmatmul.f32.vlgmr.msra.gmra.mxu1 %v7732_v42  ;;  %4231 = vmatpush.msrb.mxu0 %v3557_v22  ;;  %v3076_v25 = vadd.f32 %v3075_v40, %v2732_v45  ;;  %v3701_v22 = vld [vmem:[#allocation9 + $0x798] sm:$0xff]  ;;  %v3954_v45 = vld [vmem:[#allocation9 + $0xf80] sm:$0xff] }
 0x378   :  { %4168 = vmatpush.msra.mxu1 %v3708_v50  ;;  %4116 = vmatpush.msrb.mxu2 %v3771_v14  ;;  %v3558_v50 = vld [vmem:[#allocation9 + $0x320] sm:$0xff]  ;;  %v3621_v36 = vld [vmem:[#allocation9 + $0x518] sm:$0xff] }
 0x379   :  { %4232 = vmatpush.msrb.mxu0 %v3549_v26  ;;  %v3096_v58 = vadd.f32 %v3095_v13, %v3076_v25  ;;  %v3550_v26 = vld [vmem:[#allocation9 + $0x2e0] sm:$0xff]  ;;  %v3613_v14 = vld [vmem:[#allocation9 + $0x4d8] sm:$0xff] }
 0x37a   :  { %4169 = vmatpush.msra.mxu1 %v3700_v5  ;;  %v3135_v19 = vpop.f32.mrf.mxu3  ;;  %4117 = vmatpush.msrb.mxu2 %v3763_v51  ;;  %v3731_v5 = vld [vmem:[#allocation9 + $0x888] sm:$0xff]  ;;  %v3946_v40 = vld [vmem:[#allocation9 + $0xf40] sm:$0xff] }
 0x37b   :  { %4233 = vmatpush.msrb.mxu0 %v3541_v15  ;;  %v3116_v62 = vadd.f32 %v3115_v54, %v3096_v58  ;;  %v3693_v15 = vld [vmem:[#allocation9 + $0x758] sm:$0xff]  ;;  %v3510_v25 = vld [vmem:[#allocation9 + $0x1a0] sm:$0xff] }
 0x37c   :  { %4170 = vmatpush.msra.mxu1 %v3692_v3  ;;  %4118 = vmatpush.msrb.mxu2 %v3755_v55  ;;  %v3645_v54 = vld [vmem:[#allocation9 + $0x5d8] sm:$0xff]  ;;  %v3914_v58 = vld [vmem:[#allocation9 + $0xe40] sm:$0xff] }
 0x37d   :  { %4234 = vmatpush.msrb.mxu0 %v3533_v29  ;;  %v3136_v34 = vadd.f32 %v3135_v19, %v3116_v62  ;;  %v3542_v29 = vld [vmem:[#allocation9 + $0x2a0] sm:$0xff] }
 0x37e   :  { %4171 = vmatpush.msra.mxu1 %v3684_v39  ;;  %4119 = vmatpush.msrb.mxu2 %v3747_v8  ;;  %v3723_v39 = vld [vmem:[#allocation9 + $0x848] sm:$0xff]  ;;  %v3906_v19 = vld [vmem:[#allocation9 + $0xe00] sm:$0xff] }
 0x37f   :  { %4104 = vmatmul.f32.vlgmr.msrb.gmra.mxu1 %v7732_v42  ;;  %4235 = vmatpush.msrb.mxu0 %v3525_v61  ;;  %v3156_v7 = vadd.f32 %v3155_v48, %v3136_v34  ;;  %v3962_v61 = vld [vmem:[#allocation9 + $0xfc0] sm:$0xff]  ;;  %v3605_v48 = vld [vmem:[#allocation9 + $0x498] sm:$0xff] }
 0x380   :  { %4172 = vmatpush.msra.mxu1 %v3676_v18  ;;  %4120 = vmatpush.msrb.mxu2 %v3739_v59  ;;  %v3715_v18 = vld [vmem:[#allocation9 + $0x808] sm:$0xff]  ;;  %v3478_v62 = vld [vmem:[#allocation9 + $0xa0] sm:$0xff] }
 0x381   :  { %4236 = vmatpush.msrb.mxu0 %v3517_v44  ;;  %v3176_v33 = vadd.f32 %v3175_v17, %v3156_v7  ;;  %v3677_v44 = vld [vmem:[#allocation9 + $0x6d8] sm:$0xff]  ;;  %4048 = vmatpush.msra.mxu3 %v3962_v61  ;;  %v3890_v34 = vld [vmem:[#allocation9 + $0xd80] sm:$0xff]  ;;  %v3583_v7 = vld [vmem:[#allocation9 + $0x3e8] sm:$0xff] }
 0x382   :  { %4173 = vmatpush.msra.mxu1 %v3668_v31  ;;  %4121 = vmatpush.msrb.mxu2 %v3731_v5  ;;  %v3534_v31 = vld [vmem:[#allocation9 + $0x260] sm:$0xff]  ;;  %v3575_v17 = vld [vmem:[#allocation9 + $0x3a8] sm:$0xff] }
 0x383   :  { %4237 = vmatpush.msrb.mxu0 %v3509_v21  ;;  %v3196_v56 = vadd.f32 %v3195_v63, %v3176_v33  ;;  %4049 = vmatpush.msra.mxu3 %v3954_v45  ;;  %v3518_v21 = vld [vmem:[#allocation9 + $0x1e0] sm:$0xff]  ;;  %v3589_v33 = vld [vmem:[#allocation9 + $0x418] sm:$0xff]  ;;  %v3559_v5 = vld [vmem:[#allocation9 + $0x328] sm:$0xff] }
 0x384   :  { %4174 = vmatpush.msra.mxu1 %v3660_v43  ;;  %4122 = vmatpush.msrb.mxu2 %v3723_v39  ;;  %v3669_v43 = vld [vmem:[#allocation9 + $0x698] sm:$0xff]  ;;  %v3882_v51 = vld [vmem:[#allocation9 + $0xd40] sm:$0xff]  ;;  %v3551_v39 = vld [vmem:[#allocation9 + $0x2e8] sm:$0xff] }
 0x385   :  { %4238 = vmatpush.msrb.mxu0 %v3501_v27  ;;  %4050 = vmatpush.msra.mxu3 %v3946_v40  ;;  %v3930_v27 = vld [vmem:[#allocation9 + $0xec0] sm:$0xff]  ;;  %v3543_v61 = vld [vmem:[#allocation9 + $0x2a8] sm:$0xff]  ;;  %v3820_v45 = vld [vmem:[#allocation9 + $0xb50] sm:$0xff] }
 0x386   :  { %4175 = vmatpush.msra.mxu1 %v3652_v23  ;;  %4123 = vmatpush.msrb.mxu2 %v3715_v18  ;;  %v3661_v23 = vld [vmem:[#allocation9 + $0x658] sm:$0xff]  ;;  %v3858_v63 = vld [vmem:[#allocation9 + $0xc80] sm:$0xff]  ;;  %v3828_v18 = vld [vmem:[#allocation9 + $0xb90] sm:$0xff] }
 0x387   :  { %4239 = vmatpush.msrb.mxu0 %v3493_v16  ;;  %4051 = vmatpush.msra.mxu3 %v3938_v47  ;;  %v3502_v16 = vld [vmem:[#allocation9 + $0x160] sm:$0xff]  ;;  %v3812_v40 = vld [vmem:[#allocation9 + $0xb10] sm:$0xff]  ;;  %v6751_v47 = vld [vmem:[#allocation7] sm:$0xf] }
 0x388   :  { %4176 = vmatpush.msra.mxu1 %v3644_v49 }
 0x389   :  { %4240 = vmatpush.msrb.mxu0 %v3485_v41  ;;  %4052 = vmatpush.msra.mxu3 %v3930_v27  ;;  %v3637_v41 = vld [vmem:[#allocation9 + $0x598] sm:$0xff]  ;;  %v3519_v27 = vld [vmem:[#allocation9 + $0x1e8] sm:$0xff] }
 0x38a   :  { %4177 = vmatpush.msra.mxu1 %v3636_v9  ;;  %v3494_v9 = vld [vmem:[#allocation9 + $0x120] sm:$0xff] }
 0x38b   :  { %4241 = vmatpush.msrb.mxu0 %v3477_v0  ;;  %4053 = vmatpush.msra.mxu3 %v3922_v24  ;;  %v3898_v0 = vld [vmem:[#allocation9 + $0xdc0] sm:$0xff]  ;;  %v3796_v24 = vld [vmem:[#allocation9 + $0xa90] sm:$0xff] }
 0x38c   :  { %4178 = vmatpush.msra.mxu1 %v3628_v30  ;;  %v3629_v30 = vld [vmem:[#allocation9 + $0x558] sm:$0xff] }
 0x38d   :  { %4242 = vmatpush.msrb.mxu0 %v3469_v35  ;;  %4054 = vmatpush.msra.mxu3 %v3914_v58 }
 0x38e   :  { %4179 = vmatpush.msra.mxu1 %v3620_v1  ;;  %v3470_v1 = vld [vmem:[#allocation9 + $0x60] sm:$0xff] }
 0x38f   :  { %4243 = vmatpush.msrb.mxu0 %v3461_v57  ;;  %4055 = vmatpush.msra.mxu3 %v3906_v19  ;;  %v3462_v57 = vld [vmem:[#allocation9 + $0x20] sm:$0xff] }
 0x390   :  { %4180 = vmatpush.msra.mxu1 %v3612_v2  ;;  %4244 = vmatmul.f32.vlgmr.msrb.gmra.mxu0 %v7722_v20  ;;  %v3646_v19 = vld [vmem:[#allocation9 + $0x5e0] sm:$0xff] }
 0x391   :  { %4308 = vmatpush.msra.mxu0 %v3582_v52  ;;  %4056 = vmatpush.msra.mxu3 %v3898_v0  ;;  %v3874_v52 = vld [vmem:[#allocation9 + $0xd00] sm:$0xff]  ;;  %v3495_v0 = vld [vmem:[#allocation9 + $0x128] sm:$0xff] }
 0x392   :  { %4181 = vmatpush.msra.mxu1 %v3604_v6 }
 0x393   :  { %4309 = vmatpush.msra.mxu0 %v3574_v60  ;;  %4057 = vmatpush.msra.mxu3 %v3890_v34  ;;  %v3638_v34 = vld [vmem:[#allocation9 + $0x5a0] sm:$0xff] }
 0x394   :  { %4182 = vmatpush.msra.mxu1 %v3596_v53  ;;  %v3597_v53 = vld [vmem:[#allocation9 + $0x458] sm:$0xff] }
 0x395   :  { %4310 = vmatpush.msra.mxu0 %v3566_v10  ;;  %4058 = vmatpush.msra.mxu3 %v3882_v51 }
 0x396   :  { %4183 = vmatpush.msra.mxu1 %v3588_v12  ;;  %v3866_v12 = vld [vmem:[#allocation9 + $0xcc0] sm:$0xff] }
 0x397   :  { %4184 = vmatmul.f32.vlgmr.msra.gmra.mxu1 %v7732_v42  ;;  %4311 = vmatpush.msra.mxu0 %v3558_v50  ;;  %v3710_v50 = vld [vmem:[#allocation9 + $0x7e0] sm:$0xff] }
 0x398   :  { %4248 = vmatpush.msrb.mxu1 %v3709_v11  ;;  %4059 = vmatpush.msra.mxu3 %v3874_v52  ;;  %v3567_v11 = vld [vmem:[#allocation9 + $0x368] sm:$0xff]  ;;  %v3764_v52 = vld [vmem:[#allocation9 + $0x990] sm:$0xff] }
 0x399   :  { %4312 = vmatpush.msra.mxu0 %v3550_v26  ;;  %v3702_v26 = vld [vmem:[#allocation9 + $0x7a0] sm:$0xff] }
 0x39a   :  { %4249 = vmatpush.msrb.mxu1 %v3701_v22  ;;  %4060 = vmatpush.msra.mxu3 %v3866_v12  ;;  %v3471_v12 = vld [vmem:[#allocation9 + $0x68] sm:$0xff] }
 0x39b   :  { %4313 = vmatpush.msra.mxu0 %v3542_v29  ;;  %v3694_v29 = vld [vmem:[#allocation9 + $0x760] sm:$0xff] }
 0x39c   :  { %v3215_v3 = vpop.f32.mrf.mxu3  ;;  %4250 = vmatpush.msrb.mxu1 %v3693_v15  ;;  %v3836_v15 = vld [vmem:[#allocation9 + $0xbd0] sm:$0xff]  ;;  %4061 = vmatpush.msra.mxu3 %v3858_v63  ;;  %v3606_v63 = vld [vmem:[#allocation9 + $0x4a0] sm:$0xff] }
 0x39d   :  { %v7739_v28 = vadd.f32 %v3215_v3, %v3196_v56  ;;  %4314 = vmatpush.msra.mxu0 %v3534_v31  ;;  %v3842_v31 = vld [vmem:[#allocation9 + $0xc00] sm:$0xff] }
 0x39e   :  { %4251 = vmatpush.msrb.mxu1 %v3685_v46  ;;  %v3850_v46 = vld [vmem:[#allocation9 + $0xc40] sm:$0xff] }
 0x39f   :  { %v6454_v37 = vmul.f32 -1.442695, %v7739_v28  ;;  %4315 = vmatpush.msra.mxu0 %v3526_v4  ;;  %4062 = vmatpush.msra.mxu3 %v3850_v46  ;;  %v3963_v4 = vld [vmem:[#allocation9 + $0xfc8] sm:$0xff] }
 0x3a0   :  { %4252 = vmatpush.msrb.mxu1 %v3677_v44  ;;  %v3678_v44 = vld [vmem:[#allocation9 + $0x6e0] sm:$0xff] }
 0x3a1   :  { %6570 = vpow2.f32 %v6454_v37  ;;  %4316 = vmatpush.msra.mxu0 %v3518_v21  ;;  %v3686_v37 = vld [vmem:[#allocation9 + $0x720] sm:$0xff]  ;;  %4063 = vmatpush.msra.mxu3 %v3842_v31 }
 0x3a2   :  { %4253 = vmatpush.msrb.mxu1 %v3669_v43  ;;  %v3527_v43 = vld [vmem:[#allocation9 + $0x228] sm:$0xff]  ;;  %v3670_v21 = vld [vmem:[#allocation9 + $0x6a0] sm:$0xff] }
 0x3a3   :  { %4317 = vmatpush.msra.mxu0 %v3510_v25  ;;  %v3804_v25 = vld [vmem:[#allocation9 + $0xad0] sm:$0xff]  ;;  %4128 = vmatpush.msrb.mxu3 %v3963_v4  ;;  %v3883_v4 = vld [vmem:[#allocation9 + $0xd48] sm:$0xff] }
 0x3a4   :  { %4254 = vmatpush.msrb.mxu1 %v3661_v23  ;;  %v2733_v23 = vperm.slane %v6751_v47, 3  ;;  %v3837_v47 = vld [vmem:[#allocation9 + $0xbd8] sm:$0xff] }
 0x3a5   :  { %4318 = vmatpush.msra.mxu0 %v3502_v16  ;;  %v3955_v16 = vld [vmem:[#allocation9 + $0xf88] sm:$0xff] }
 0x3a6   :  { %4255 = vmatpush.msrb.mxu1 %v3653_v38  ;;  %v3235_v38 = vpop.f32.mrf.mxu0  ;;  %4129 = vmatpush.msrb.mxu3 %v3955_v16  ;;  %v3829_v16 = vld [vmem:[#allocation9 + $0xb98] sm:$0xff] }
 0x3a7   :  { %v6571_v49 = vpop.eup %6570  ;;  %4319 = vmatpush.msra.mxu0 %v3494_v9  ;;  %v3947_v9 = vld [vmem:[#allocation9 + $0xf48] sm:$0xff]  ;;  %v3236_v58 = vadd.f32 %v3235_v38, %v2733_v23  ;;  %v3560_v23 = vld [vmem:[#allocation9 + $0x330] sm:$0xff] }
 0x3a8   :  { %v7742_v13 = vadd.f32 1.0, %v6571_v49  ;;  %4256 = vmatpush.msrb.mxu1 %v3645_v54  ;;  %v3662_v49 = vld [vmem:[#allocation9 + $0x660] sm:$0xff]  ;;  %4130 = vmatpush.msrb.mxu3 %v3947_v9  ;;  %v3875_v38 = vld [vmem:[#allocation9 + $0xd08] sm:$0xff] }
 0x3a9   :  { %4320 = vmatpush.msra.mxu0 %v3486_v32  ;;  %v3654_v54 = vld [vmem:[#allocation9 + $0x620] sm:$0xff]  ;;  %v3503_v32 = vld [vmem:[#allocation9 + $0x168] sm:$0xff] }
 0x3aa   :  { %6572 = vrcp.f32 %v7742_v13  ;;  %4257 = vmatpush.msrb.mxu1 %v3637_v41  ;;  %v3435_v55 = vand.u32 2147483648, %v7742_v13  ;;  %v3433_v8 = vand.u32 2147483647, %v7742_v13  ;;  %vm3429_vm9 = vweird.f32 %v7742_v13  ;;  %v3788_v41 = vld [vmem:[#allocation9 + $0xa50] sm:$0xff] }
 0x3ab   :  { %4321 = vmatpush.msra.mxu0 %v3478_v62  ;;  %v3780_v62 = vld [vmem:[#allocation9 + $0xa10] sm:$0xff] }
 0x3ac   :  { %4258 = vmatpush.msrb.mxu1 %v3629_v30  ;;  %v3436_v59 = vor.u32 1.1754944e-38, %v3435_v55  ;;  %vm3434_vm11 = vcmp.eq.f32.partialorder %v3433_v8, 8.507059e+37  ;;  %v3939_v30 = vld [vmem:[#allocation9 + $0xf08] sm:$0xff] }
 0x3ad   :  { %4322 = vmatpush.msra.mxu0 %v3470_v1  ;;  %v3275_v1 = vpop.f32.mrf.mxu2  ;;  %4131 = vmatpush.msrb.mxu3 %v3939_v30  ;;  %v3479_v55 = vld [vmem:[#allocation9 + $0xa8] sm:$0xff]  ;;  %v3813_v30 = vld [vmem:[#allocation9 + $0xb18] sm:$0xff] }
 0x3ae   :  { %4259 = vmatpush.msrb.mxu1 %v3621_v36  ;;  %v3255_v36 = vpop.f32.mrf.mxu1 }
 0x3af   :  { %4323 = vmatpush.msra.mxu0 %v3462_v57  ;;  %v3487_v57 = vld [vmem:[#allocation9 + $0xe8] sm:$0xff] }
 0x3b0   :  { %v6573_v35 = vpop.eup %6572  ;;  %4260 = vmatpush.msrb.mxu1 %v3613_v14  ;;  %4324 = vmatmul.f32.vlgmr.msra.gmra.mxu0 %v7722_v20  ;;  %v3256_v14 = vadd.f32 %v3255_v36, %v3236_v58  ;;  %v3821_v58 = vld [vmem:[#allocation9 + $0xb58] sm:$0xff]  ;;  %v3851_v36 = vld [vmem:[#allocation9 + $0xc48] sm:$0xff] }
 0x3b1   :  { %v3425_v2 = vmul.f32 %v6573_v35, %v7742_v13  ;;  %vm3430_vm8 = vweird.f32 %v6573_v35  ;;  %4388 = vmatpush.msrb.mxu0 %v3583_v7  ;;  %v3511_v13 = vld [vmem:[#allocation9 + $0x1a8] sm:$0xff] }
 0x3b2   :  { %4261 = vmatpush.msrb.mxu1 %v3605_v48  ;;  %vm3431_vm10 = vmor %vm3429_vm9, %vm3430_vm8  ;;  %v3630_v48 = vld [vmem:[#allocation9 + $0x560] sm:$0xff]  ;;  %v3276_v7 = vadd.f32 %v3275_v1, %v3256_v14  ;;  %v3805_v1 = vld [vmem:[#allocation9 + $0xad8] sm:$0xff] }
 0x3b3   :  { %v3426_v6 = vsub.f32 1.0, %v3425_v2  ;;  %4389 = vmatpush.msrb.mxu0 %v3575_v17  ;;  %v3772_v2 = vld [vmem:[#allocation9 + $0x9d0] sm:$0xff]  ;;  %v3843_v14 = vld [vmem:[#allocation9 + $0xc08] sm:$0xff] }
 0x3b4   :  { %4262 = vmatpush.msrb.mxu1 %v3597_v53  ;;  %v3622_v53 = vld [vmem:[#allocation9 + $0x520] sm:$0xff]  ;;  %v3756_v17 = vld [vmem:[#allocation9 + $0x950] sm:$0xff] }
 0x3b5   :  { %v3427_v60 = vmul.f32 %v6573_v35, %v3426_v6  ;;  %4390 = vmatpush.msrb.mxu0 %v3567_v11  ;;  %v3923_v6 = vld [vmem:[#allocation9 + $0xe88] sm:$0xff]  ;;  %v3748_v11 = vld [vmem:[#allocation9 + $0x910] sm:$0xff] }
 0x3b6   :  { %4263 = vmatpush.msrb.mxu1 %v3589_v33  ;;  %v3614_v33 = vld [vmem:[#allocation9 + $0x4e0] sm:$0xff]  ;;  %v3335_v46 = vpop.f32.mrf.mxu1 }
 0x3b7   :  { %v3428_v10 = vadd.f32 %v6573_v35, %v3427_v60  ;;  %4264 = vmatmul.f32.vlgmr.msrb.gmra.mxu1 %v7732_v42  ;;  %4391 = vmatpush.msrb.mxu0 %v3559_v5  ;;  %v3915_v60 = vld [vmem:[#allocation9 + $0xe48] sm:$0xff]  ;;  %v3740_v5 = vld [vmem:[#allocation9 + $0x8d0] sm:$0xff] }
 0x3b8   :  { %4328 = vmatpush.msra.mxu1 %v3710_v50  ;;  %v3315_v50 = vpop.f32.mrf.mxu0 }
 0x3b9   :  { %v3432_v22 = vsel %vm3431_vm10, %v6573_v35, %v3428_v10  ;;  %4392 = vmatpush.msrb.mxu0 %v3551_v39  ;;  %v3931_v35 = vld [vmem:[#allocation9 + $0xec8] sm:$0xff]  ;;  %v3732_v39 = vld [vmem:[#allocation9 + $0x890] sm:$0xff] }
 0x3ba   :  { %v3437_v56 = vsel %vm3434_vm11, %v3436_v59, %v3432_v22  ;;  %4329 = vmatpush.msra.mxu1 %v3702_v26  ;;  %4132 = vmatpush.msrb.mxu3 %v3931_v35  ;;  %v3907_v10 = vld [vmem:[#allocation9 + $0xe08] sm:$0xff]  ;;  %v3598_v26 = vld [vmem:[#allocation9 + $0x460] sm:$0xff] }
 0x3bb   :  { %v7752_v3 = vmul.f32 %v3437_v56, %v7739_v28  ;;  %v3535_v28 = vld [vmem:[#allocation9 + $0x268] sm:$0xff]  ;;  %4393 = vmatpush.msrb.mxu0 %v3543_v61  ;;  %v3584_v56 = vld [vmem:[#allocation9 + $0x3f0] sm:$0xff] }
 0x3bc   :  { %4330 = vmatpush.msra.mxu1 %v3694_v29  ;;  %v3295_v51 = vpop.f32.mrf.mxu3  ;;  %4133 = vmatpush.msrb.mxu3 %v3923_v6  ;;  %v3463_v59 = vld [vmem:[#allocation9 + $0x28] sm:$0xff]  ;;  %v3576_v29 = vld [vmem:[#allocation9 + $0x3b0] sm:$0xff]  ;;  %v3789_v6 = vld [vmem:[#allocation9 + $0xa58] sm:$0xff] }
 0x3bd   :  { %4044 = vmatmul.f32.vlgmr.msra.gmra.mxu2 %v7752_v3  ;;  %4394 = vmatpush.msrb.mxu0 %v3535_v28  ;;  %v3296_v8 = vadd.f32 %v3295_v51, %v3276_v7  ;;  %v3891_v61 = vld [vmem:[#allocation9 + $0xd88] sm:$0xff]  ;;  %v3568_v28 = vld [vmem:[#allocation9 + $0x370] sm:$0xff] }
 0x3be   :  { %4188 = vmatpush.msra.mxu2 %v3836_v15  ;;  %4331 = vmatpush.msra.mxu1 %v3686_v37  ;;  %v3899_v15 = vld [vmem:[#allocation9 + $0xdc8] sm:$0xff]  ;;  %v3724_v37 = vld [vmem:[#allocation9 + $0x850] sm:$0xff] }
 0x3bf   :  { %4395 = vmatpush.msrb.mxu0 %v3527_v43  ;;  %4134 = vmatpush.msrb.mxu3 %v3915_v60  ;;  %v3316_v22 = vadd.f32 %v3315_v50, %v3296_v8  ;;  %v3703_v43 = vld [vmem:[#allocation9 + $0x7a8] sm:$0xff]  ;;  %v3512_v7 = vld [vmem:[#allocation9 + $0x1b0] sm:$0xff]  ;;  %v3757_v50 = vld [vmem:[#allocation9 + $0x958] sm:$0xff] }
 0x3c0   :  { %4189 = vmatpush.msra.mxu2 %v3828_v18  ;;  %4332 = vmatpush.msra.mxu1 %v3678_v44  ;;  %v3590_v18 = vld [vmem:[#allocation9 + $0x420] sm:$0xff]  ;;  %v3716_v44 = vld [vmem:[#allocation9 + $0x810] sm:$0xff]  ;;  %v3663_v35 = vld [vmem:[#allocation9 + $0x668] sm:$0xff] }
 0x3c1   :  { %4396 = vmatpush.msrb.mxu0 %v3519_v27  ;;  %4135 = vmatpush.msrb.mxu3 %v3907_v10  ;;  %v3336_v31 = vadd.f32 %v3335_v46, %v3316_v22  ;;  %v3695_v27 = vld [vmem:[#allocation9 + $0x768] sm:$0xff]  ;;  %v3504_v60 = vld [vmem:[#allocation9 + $0x170] sm:$0xff]  ;;  %v3765_v10 = vld [vmem:[#allocation9 + $0x998] sm:$0xff] }
 0x3c2   :  { %4190 = vmatpush.msra.mxu2 %v3820_v45  ;;  %4333 = vmatpush.msra.mxu1 %v3670_v21  ;;  %v3711_v45 = vld [vmem:[#allocation9 + $0x7e8] sm:$0xff]  ;;  %v3741_v46 = vld [vmem:[#allocation9 + $0x8d8] sm:$0xff] }
 0x3c3   :  { %4397 = vmatpush.msrb.mxu0 %v3511_v13  ;;  %4136 = vmatpush.msrb.mxu3 %v3899_v15  ;;  %v3687_v13 = vld [vmem:[#allocation9 + $0x728] sm:$0xff]  ;;  %v3472_v15 = vld [vmem:[#allocation9 + $0x70] sm:$0xff] }
 0x3c4   :  { %4191 = vmatpush.msra.mxu2 %v3812_v40  ;;  %4334 = vmatpush.msra.mxu1 %v3662_v49  ;;  %v3355_v40 = vpop.f32.mrf.mxu2  ;;  %v3655_v51 = vld [vmem:[#allocation9 + $0x628] sm:$0xff] }
 0x3c5   :  { %4124 = vmatmul.f32.vlgmr.msrb.gmra.mxu2 %v7752_v3  ;;  %4398 = vmatpush.msrb.mxu0 %v3503_v32  ;;  %v3356_v21 = vadd.f32 %v3355_v40, %v3336_v31  ;;  %v3679_v32 = vld [vmem:[#allocation9 + $0x6e8] sm:$0xff] }
 0x3c6   :  { %4192 = vmatpush.msra.mxu2 %v3804_v25  ;;  %4335 = vmatpush.msra.mxu1 %v3654_v54  ;;  %v3867_v54 = vld [vmem:[#allocation9 + $0xcc8] sm:$0xff] }
 0x3c7   :  { %4399 = vmatpush.msrb.mxu0 %v3495_v0  ;;  %4137 = vmatpush.msrb.mxu3 %v3891_v61  ;;  %v3671_v0 = vld [vmem:[#allocation9 + $0x6a8] sm:$0xff] }
 0x3c8   :  { %4193 = vmatpush.msra.mxu2 %v3796_v24  ;;  %4336 = vmatpush.msra.mxu1 %v3646_v19  ;;  %v3552_v24 = vld [vmem:[#allocation9 + $0x2f0] sm:$0xff]  ;;  %v3859_v19 = vld [vmem:[#allocation9 + $0xc88] sm:$0xff] }
 0x3c9   :  { %4400 = vmatpush.msrb.mxu0 %v3487_v57  ;;  %4138 = vmatpush.msrb.mxu3 %v3883_v4  ;;  %v3520_v57 = vld [vmem:[#allocation9 + $0x1f0] sm:$0xff]  ;;  %v3639_v8 = vld [vmem:[#allocation9 + $0x5a8] sm:$0xff] }
 0x3ca   :  { %4194 = vmatpush.msra.mxu2 %v3788_v41  ;;  %4337 = vmatpush.msra.mxu1 %v3638_v34  ;;  %v3544_v41 = vld [vmem:[#allocation9 + $0x2b0] sm:$0xff]  ;;  %v3591_v4 = vld [vmem:[#allocation9 + $0x428] sm:$0xff] }
 0x3cb   :  { %4401 = vmatpush.msrb.mxu0 %v3479_v55  ;;  %4139 = vmatpush.msrb.mxu3 %v3875_v38  ;;  %v3528_v34 = vld [vmem:[#allocation9 + $0x230] sm:$0xff]  ;;  %v3647_v55 = vld [vmem:[#allocation9 + $0x5e8] sm:$0xff] }
 0x3cc   :  { %4195 = vmatpush.msra.mxu2 %v3780_v62  ;;  %4338 = vmatpush.msra.mxu1 %v3630_v48  ;;  %v3536_v62 = vld [vmem:[#allocation9 + $0x270] sm:$0xff] }
 0x3cd   :  { %4402 = vmatpush.msrb.mxu0 %v3471_v12  ;;  %4140 = vmatpush.msrb.mxu3 %v3867_v54  ;;  %v3496_v12 = vld [vmem:[#allocation9 + $0x130] sm:$0xff] }
 0x3ce   :  { %4196 = vmatpush.msra.mxu2 %v3772_v2  ;;  %4339 = vmatpush.msra.mxu1 %v3622_v53  ;;  %v3797_v2 = vld [vmem:[#allocation9 + $0xa98] sm:$0xff]  ;;  %v3704_v54 = vld [vmem:[#allocation9 + $0x7b0] sm:$0xff] }
 0x3cf   :  { %4403 = vmatpush.msrb.mxu0 %v3463_v59  ;;  %4141 = vmatpush.msrb.mxu3 %v3859_v19  ;;  %v3781_v53 = vld [vmem:[#allocation9 + $0xa18] sm:$0xff]  ;;  %v3623_v59 = vld [vmem:[#allocation9 + $0x528] sm:$0xff] }
 0x3d0   :  { %4197 = vmatpush.msra.mxu2 %v3764_v52  ;;  %4340 = vmatpush.msra.mxu1 %v3614_v33  ;;  %v3631_v33 = vld [vmem:[#allocation9 + $0x568] sm:$0xff]  ;;  %v3561_v19 = vld [vmem:[#allocation9 + $0x338] sm:$0xff] }
 0x3d1   :  { %4404 = vmatmul.f32.vlgmr.msrb.gmra.mxu0 %v7722_v20  ;;  %4142 = vmatpush.msrb.mxu3 %v3851_v36  ;;  %v3940_v36 = vld [vmem:[#allocation9 + $0xf10] sm:$0xff] }
 0x3d2   :  { %4198 = vmatpush.msra.mxu2 %v3756_v17  ;;  %4341 = vmatpush.msra.mxu1 %v3606_v63  ;;  %v3773_v17 = vld [vmem:[#allocation9 + $0x9d8] sm:$0xff]  ;;  %v3480_v63 = vld [vmem:[#allocation9 + $0xb0] sm:$0xff] }
 0x3d3   :  { %4468 = vmatpush.msra.mxu0 %v3584_v56  ;;  %4143 = vmatpush.msrb.mxu3 %v3843_v14  ;;  %v3806_v14 = vld [vmem:[#allocation9 + $0xae0] sm:$0xff] }
 0x3d4   :  { %4199 = vmatpush.msra.mxu2 %v3748_v11  ;;  %4342 = vmatpush.msra.mxu1 %v3598_v26  ;;  %v3488_v11 = vld [vmem:[#allocation9 + $0xf0] sm:$0xff]  ;;  %v3749_v26 = vld [vmem:[#allocation9 + $0x918] sm:$0xff] }
 0x3d5   :  { %4469 = vmatpush.msra.mxu0 %v3576_v29 }
 0x3d6   :  { %4200 = vmatpush.msra.mxu2 %v3740_v5  ;;  %4343 = vmatpush.msra.mxu1 %v3590_v18  ;;  %v3615_v5 = vld [vmem:[#allocation9 + $0x4e8] sm:$0xff]  ;;  %v3464_v18 = vld [vmem:[#allocation9 + $0x30] sm:$0xff] }
 0x3d7   :  { %4344 = vmatmul.f32.vlgmr.msra.gmra.mxu1 %v7732_v42  ;;  %4470 = vmatpush.msra.mxu0 %v3568_v28  ;;  %v3733_v28 = vld [vmem:[#allocation9 + $0x898] sm:$0xff] }
 0x3d8   :  { %4201 = vmatpush.msra.mxu2 %v3732_v39  ;;  %4408 = vmatpush.msrb.mxu1 %v3711_v45  ;;  %v3607_v39 = vld [vmem:[#allocation9 + $0x4a8] sm:$0xff] }
 0x3d9   :  { %4471 = vmatpush.msra.mxu0 %v3560_v23  ;;  %v3577_v23 = vld [vmem:[#allocation9 + $0x3b8] sm:$0xff] }
 0x3da   :  { %4202 = vmatpush.msra.mxu2 %v3724_v37  ;;  %4409 = vmatpush.msrb.mxu1 %v3703_v43  ;;  %v3599_v37 = vld [vmem:[#allocation9 + $0x468] sm:$0xff]  ;;  %v3725_v43 = vld [vmem:[#allocation9 + $0x858] sm:$0xff] }
 0x3db   :  { %4472 = vmatpush.msra.mxu0 %v3552_v24  ;;  %v3964_v24 = vld [vmem:[#allocation9 + $0xfd0] sm:$0xff] }
 0x3dc   :  { %v3375_v25 = vpop.f32.mrf.mxu3  ;;  %4203 = vmatpush.msra.mxu2 %v3716_v44  ;;  %4410 = vmatpush.msrb.mxu1 %v3695_v27  ;;  %v3585_v44 = vld [vmem:[#allocation9 + $0x3f8] sm:$0xff] }
 0x3dd   :  { %v7758_v49 = vadd.f32 %v3375_v25, %v3356_v21  ;;  %4204 = vmatmul.f32.vlgmr.msra.gmra.mxu2 %v7752_v3  ;;  %4473 = vmatpush.msra.mxu0 %v3544_v41  ;;  %v3717_v27 = vld [vmem:[#allocation9 + $0x818] sm:$0xff]  ;;  %v3830_v41 = vld [vmem:[#allocation9 + $0xba0] sm:$0xff] }
 0x3de   :  { %4268 = vmatpush.msrb.mxu2 %v3837_v47  ;;  %4411 = vmatpush.msrb.mxu1 %v3687_v13  ;;  %v3712_v47 = vld [vmem:[#allocation9 + $0x7f0] sm:$0xff]  ;;  %v3838_v13 = vld [vmem:[#allocation9 + $0xbe0] sm:$0xff] }
 0x3df   :  { %v6455_v9 = vmul.f32 -1.442695, %v7758_v49  ;;  %4474 = vmatpush.msra.mxu0 %v3536_v62  ;;  %v3688_v62 = vld [vmem:[#allocation9 + $0x730] sm:$0xff] }
 0x3e0   :  { %4269 = vmatpush.msrb.mxu2 %v3829_v16  ;;  %4412 = vmatpush.msrb.mxu1 %v3679_v32  ;;  %v3696_v32 = vld [vmem:[#allocation9 + $0x770] sm:$0xff] }
 0x3e1   :  { %6574 = vpow2.f32 %v6455_v9  ;;  %4475 = vmatpush.msra.mxu0 %v3528_v34  ;;  %v3569_v9 = vld [vmem:[#allocation9 + $0x378] sm:$0xff]  ;;  %v3680_v34 = vld [vmem:[#allocation9 + $0x6f0] sm:$0xff] }
 0x3e2   :  { %4270 = vmatpush.msrb.mxu2 %v3821_v58  ;;  %4413 = vmatpush.msrb.mxu1 %v3671_v0  ;;  %v3956_v58 = vld [vmem:[#allocation9 + $0xf90] sm:$0xff]  ;;  %v3553_v0 = vld [vmem:[#allocation9 + $0x2f8] sm:$0xff] }
 0x3e3   :  { %4476 = vmatpush.msra.mxu0 %v3520_v57  ;;  %v3545_v57 = vld [vmem:[#allocation9 + $0x2b8] sm:$0xff] }
 0x3e4   :  { %4271 = vmatpush.msrb.mxu2 %v3813_v30  ;;  %4414 = vmatpush.msrb.mxu1 %v3663_v35  ;;  %v3822_v30 = vld [vmem:[#allocation9 + $0xb60] sm:$0xff]  ;;  %v3932_v35 = vld [vmem:[#allocation9 + $0xed0] sm:$0xff] }
 0x3e5   :  { %4477 = vmatpush.msra.mxu0 %v3512_v7  ;;  %v3537_v7 = vld [vmem:[#allocation9 + $0x278] sm:$0xff] }
 0x3e6   :  { %4272 = vmatpush.msrb.mxu2 %v3805_v1  ;;  %4415 = vmatpush.msrb.mxu1 %v3655_v51  ;;  %v3814_v1 = vld [vmem:[#allocation9 + $0xb20] sm:$0xff]  ;;  %v3924_v51 = vld [vmem:[#allocation9 + $0xe90] sm:$0xff] }
 0x3e7   :  { %v6575_v48 = vpop.eup %6574  ;;  %4478 = vmatpush.msra.mxu0 %v3504_v60  ;;  %v3529_v60 = vld [vmem:[#allocation9 + $0x238] sm:$0xff] }
 0x3e8   :  { %v7762_v52 = vadd.f32 1.0, %v6575_v48  ;;  %4273 = vmatpush.msrb.mxu2 %v3797_v2  ;;  %4416 = vmatpush.msrb.mxu1 %v3647_v55  ;;  %v3672_v2 = vld [vmem:[#allocation9 + $0x6b0] sm:$0xff]  ;;  %v3798_v48 = vld [vmem:[#allocation9 + $0xaa0] sm:$0xff] }
 0x3e9   :  { %4479 = vmatpush.msra.mxu0 %v3496_v12  ;;  %v3790_v55 = vld [vmem:[#allocation9 + $0xa60] sm:$0xff]  ;;  %v3648_v12 = vld [vmem:[#allocation9 + $0x5f0] sm:$0xff] }
 0x3ea   :  { %6576 = vrcp.f32 %v7762_v52  ;;  %4274 = vmatpush.msrb.mxu2 %v3789_v6  ;;  %4417 = vmatpush.msrb.mxu1 %v3639_v8  ;;  %v3450_v61 = vand.u32 2147483648, %v7762_v52  ;;  %v3448_v45 = vand.u32 2147483647, %v7762_v52  ;;  %vm3444_vm13 = vweird.f32 %v7762_v52  ;;  %v3664_v6 = vld [vmem:[#allocation9 + $0x670] sm:$0xff] }
 0x3eb   :  { %4480 = vmatpush.msra.mxu0 %v3488_v11  ;;  %v3908_v8 = vld [vmem:[#allocation9 + $0xe10] sm:$0xff]  ;;  %v3774_v11 = vld [vmem:[#allocation9 + $0x9e0] sm:$0xff] }
 0x3ec   :  { %4275 = vmatpush.msrb.mxu2 %v3781_v53  ;;  %4418 = vmatpush.msrb.mxu1 %v3631_v33  ;;  %v3451_v21 = vor.u32 1.1754944e-38, %v3450_v61  ;;  %vm3449_vm15 = vcmp.eq.f32.partialorder %v3448_v45, 8.507059e+37  ;;  %v3656_v53 = vld [vmem:[#allocation9 + $0x630] sm:$0xff]  ;;  %v3521_v33 = vld [vmem:[#allocation9 + $0x1f8] sm:$0xff]  ;;  %v3742_v45 = vld [vmem:[#allocation9 + $0x8e0] sm:$0xff] }
 0x3ed   :  { %4481 = vmatpush.msra.mxu0 %v3480_v63  ;;  %v3892_v63 = vld [vmem:[#allocation9 + $0xd90] sm:$0xff] }
 0x3ee   :  { %4276 = vmatpush.msrb.mxu2 %v3773_v17  ;;  %4419 = vmatpush.msrb.mxu1 %v3623_v59  ;;  %v3782_v17 = vld [vmem:[#allocation9 + $0xa20] sm:$0xff]  ;;  %v3640_v59 = vld [vmem:[#allocation9 + $0x5b0] sm:$0xff] }
 0x3ef   :  { %4482 = vmatpush.msra.mxu0 %v3472_v15  ;;  %v3758_v15 = vld [vmem:[#allocation9 + $0x960] sm:$0xff]  ;;  %v3616_v61 = vld [vmem:[#allocation9 + $0x4f0] sm:$0xff] }
 0x3f0   :  { %v6577_v22 = vpop.eup %6576  ;;  %4277 = vmatpush.msrb.mxu2 %v3765_v10  ;;  %4420 = vmatpush.msrb.mxu1 %v3615_v5  ;;  %v3900_v10 = vld [vmem:[#allocation9 + $0xdd0] sm:$0xff] }
 0x3f1   :  { %v3440_v56 = vmul.f32 %v6577_v22, %v7762_v52  ;;  %vm3445_vm12 = vweird.f32 %v6577_v22  ;;  %4483 = vmatpush.msra.mxu0 %v3464_v18  ;;  %v3916_v52 = vld [vmem:[#allocation9 + $0xe50] sm:$0xff]  ;;  %v3750_v18 = vld [vmem:[#allocation9 + $0x920] sm:$0xff] }
 0x3f2   :  { %4278 = vmatpush.msrb.mxu2 %v3757_v50  ;;  %4421 = vmatpush.msrb.mxu1 %v3607_v39  ;;  %vm3446_vm14 = vmor %vm3444_vm13, %vm3445_vm12  ;;  %v3513_v50 = vld [vmem:[#allocation9 + $0x1b8] sm:$0xff]  ;;  %v3632_v5 = vld [vmem:[#allocation9 + $0x570] sm:$0xff] }
 0x3f3   :  { %v3441_v29 = vsub.f32 1.0, %v3440_v56  ;;  %4484 = vmatmul.f32.vlgmr.msra.gmra.mxu0 %v7722_v20  ;;  %v3505_v56 = vld [vmem:[#allocation9 + $0x178] sm:$0xff]  ;;  %v3624_v39 = vld [vmem:[#allocation9 + $0x530] sm:$0xff] }
 0x3f4   :  { %4279 = vmatpush.msrb.mxu2 %v3749_v26  ;;  %4422 = vmatpush.msrb.mxu1 %v3599_v37  ;;  %v3884_v26 = vld [vmem:[#allocation9 + $0xd50] sm:$0xff]  ;;  %v3489_v37 = vld [vmem:[#allocation9 + $0xf8] sm:$0xff] }
 0x3f5   :  { %v3442_v31 = vmul.f32 %v6577_v22, %v3441_v29  ;;  %4548 = vmatpush.msrb.mxu0 %v3585_v44  ;;  %v3497_v29 = vld [vmem:[#allocation9 + $0x138] sm:$0xff] }
 0x3f6   :  { %4280 = vmatpush.msrb.mxu2 %v3741_v46  ;;  %4423 = vmatpush.msrb.mxu1 %v3591_v4  ;;  %v3876_v46 = vld [vmem:[#allocation9 + $0xd10] sm:$0xff]  ;;  %v3481_v44 = vld [vmem:[#allocation9 + $0xb8] sm:$0xff] }
 0x3f7   :  { %v3443_v40 = vadd.f32 %v6577_v22, %v3442_v31  ;;  %4424 = vmatmul.f32.vlgmr.msrb.gmra.mxu1 %v7732_v42  ;;  %4549 = vmatpush.msrb.mxu0 %v3577_v23  ;;  %v3868_v31 = vld [vmem:[#allocation9 + $0xcd0] sm:$0xff]  ;;  %v3726_v23 = vld [vmem:[#allocation9 + $0x860] sm:$0xff] }
 0x3f8   :  { %4281 = vmatpush.msrb.mxu2 %v3733_v28  ;;  %4488 = vmatpush.msra.mxu1 %v3712_v47  ;;  %v3608_v28 = vld [vmem:[#allocation9 + $0x4b0] sm:$0xff] }
 0x3f9   :  { %v3447_v25 = vsel %vm3446_vm14, %v6577_v22, %v3443_v40  ;;  %4550 = vmatpush.msrb.mxu0 %v3569_v9  ;;  %v3766_v22 = vld [vmem:[#allocation9 + $0x9a0] sm:$0xff]  ;;  %v3860_v4 = vld [vmem:[#allocation9 + $0xc90] sm:$0xff]  ;;  %v3713_v9 = vld [vmem:[#allocation9 + $0x7f8] sm:$0xff] }
 0x3fa   :  { %v3452_v38 = vsel %vm3449_vm15, %v3451_v21, %v3447_v25  ;;  %4282 = vmatpush.msrb.mxu2 %v3725_v43  ;;  %4489 = vmatpush.msra.mxu1 %v3704_v54  ;;  %v3734_v40 = vld [vmem:[#allocation9 + $0x8a0] sm:$0xff]  ;;  %v3600_v43 = vld [vmem:[#allocation9 + $0x470] sm:$0xff]  ;;  %v3473_v21 = vld [vmem:[#allocation9 + $0x78] sm:$0xff] }
 0x3fb   :  { %v7772_v16 = vmul.f32 %v3452_v38, %v7758_v49  ;;  %v3948_v49 = vld [vmem:[#allocation9 + $0xf50] sm:$0xff]  ;;  %4551 = vmatpush.msrb.mxu0 %v3561_v19  ;;  %v3839_v54 = vld [vmem:[#allocation9 + $0xbe8] sm:$0xff]  ;;  %v3949_v19 = vld [vmem:[#allocation9 + $0xf58] sm:$0xff] }
 0x3fc   :  { %4283 = vmatpush.msrb.mxu2 %v3717_v27  ;;  %4490 = vmatpush.msra.mxu1 %v3696_v32  ;;  %v3852_v47 = vld [vmem:[#allocation9 + $0xc50] sm:$0xff]  ;;  %v3465_v27 = vld [vmem:[#allocation9 + $0x38] sm:$0xff] }
 0x3fd   :  { %4064 = vmatmul.f32.vlgmr.msra.gmra.mxu3 %v7772_v16  ;;  %4284 = vmatmul.f32.vlgmr.msrb.gmra.mxu2 %v7752_v3  ;;  %v3592_v25 = vld [vmem:[#allocation9 + $0x430] sm:$0xff]  ;;  %v3705_v32 = vld [vmem:[#allocation9 + $0x7b8] sm:$0xff] }
 0x3fe   :  { %4208 = vmatpush.msra.mxu3 %v3964_v24  ;;  %4348 = vmatpush.msra.mxu2 %v3838_v13  ;;  %v3844_v38 = vld [vmem:[#allocation9 + $0xc10] sm:$0xff]  ;;  %v3718_v24 = vld [vmem:[#allocation9 + $0x820] sm:$0xff]  ;;  %v3965_v13 = vld [vmem:[#allocation9 + $0xfd8] sm:$0xff] }
 0x3ff   :  { %4491 = vmatpush.msra.mxu1 %v3688_v62  ;;  %4552 = vmatpush.msrb.mxu0 %v3553_v0  ;;  %v3941_v62 = vld [vmem:[#allocation9 + $0xf18] sm:$0xff]  ;;  %v3815_v0 = vld [vmem:[#allocation9 + $0xb28] sm:$0xff] }
 0x400   :  { %4209 = vmatpush.msra.mxu3 %v3956_v58  ;;  %4349 = vmatpush.msra.mxu2 %v3830_v41  ;;  %v3957_v58 = vld [vmem:[#allocation9 + $0xf98] sm:$0xff]  ;;  %v3831_v41 = vld [vmem:[#allocation9 + $0xba8] sm:$0xff] }
 0x401   :  { %4492 = vmatpush.msra.mxu1 %v3680_v34  ;;  %4553 = vmatpush.msrb.mxu0 %v3545_v57  ;;  %v3807_v34 = vld [vmem:[#allocation9 + $0xae8] sm:$0xff]  ;;  %v3917_v57 = vld [vmem:[#allocation9 + $0xe58] sm:$0xff] }
 0x402   :  { %4210 = vmatpush.msra.mxu3 %v3948_v49  ;;  %4350 = vmatpush.msra.mxu2 %v3822_v30  ;;  %v3823_v49 = vld [vmem:[#allocation9 + $0xb68] sm:$0xff]  ;;  %v3697_v30 = vld [vmem:[#allocation9 + $0x778] sm:$0xff] }
 0x403   :  { %4493 = vmatpush.msra.mxu1 %v3672_v2  ;;  %4554 = vmatpush.msrb.mxu0 %v3537_v7  ;;  %v3673_v2 = vld [vmem:[#allocation9 + $0x6b8] sm:$0xff]  ;;  %v3783_v7 = vld [vmem:[#allocation9 + $0xa28] sm:$0xff] }
 0x404   :  { %4211 = vmatpush.msra.mxu3 %v3940_v36  ;;  %4351 = vmatpush.msra.mxu2 %v3814_v1  ;;  %v3689_v36 = vld [vmem:[#allocation9 + $0x738] sm:$0xff] }
 0x405   :  { %4144 = vmatmul.f32.vlgmr.msrb.gmra.mxu3 %v7772_v16  ;;  %4494 = vmatpush.msra.mxu1 %v3664_v6  ;;  %v3933_v1 = vld [vmem:[#allocation9 + $0xed8] sm:$0xff] }
 0x406   :  { %4212 = vmatpush.msra.mxu3 %v3932_v35  ;;  %4352 = vmatpush.msra.mxu2 %v3806_v14  ;;  %v3681_v35 = vld [vmem:[#allocation9 + $0x6f8] sm:$0xff]  ;;  %v3799_v14 = vld [vmem:[#allocation9 + $0xaa8] sm:$0xff] }
 0x407   :  { %4495 = vmatpush.msra.mxu1 %v3656_v53  ;;  %4555 = vmatpush.msrb.mxu0 %v3529_v60  ;;  %v3909_v6 = vld [vmem:[#allocation9 + $0xe18] sm:$0xff]  ;;  %v3775_v53 = vld [vmem:[#allocation9 + $0x9e8] sm:$0xff] }
 0x408   :  { %4213 = vmatpush.msra.mxu3 %v3924_v51  ;;  %4353 = vmatpush.msra.mxu2 %v3798_v48  ;;  %v3791_v51 = vld [vmem:[#allocation9 + $0xa68] sm:$0xff]  ;;  %v3665_v48 = vld [vmem:[#allocation9 + $0x678] sm:$0xff] }
 0x409   :  { %4496 = vmatpush.msra.mxu1 %v3648_v12  ;;  %4556 = vmatpush.msrb.mxu0 %v3521_v33  ;;  %v3649_v60 = vld [vmem:[#allocation9 + $0x5f8] sm:$0xff] }
 0x40a   :  { %4214 = vmatpush.msra.mxu3 %v3916_v52  ;;  %4354 = vmatpush.msra.mxu2 %v3790_v55  ;;  %v3657_v52 = vld [vmem:[#allocation9 + $0x638] sm:$0xff] }
 0x40b   :  { %4497 = vmatpush.msra.mxu1 %v3640_v59  ;;  %4557 = vmatpush.msrb.mxu0 %v3513_v50  ;;  %v3901_v55 = vld [vmem:[#allocation9 + $0xdd8] sm:$0xff]  ;;  %v3751_v50 = vld [vmem:[#allocation9 + $0x928] sm:$0xff] }
 0x40c   :  { %4215 = vmatpush.msra.mxu3 %v3908_v8  ;;  %4355 = vmatpush.msra.mxu2 %v3782_v17  ;;  %v3893_v8 = vld [vmem:[#allocation9 + $0xd98] sm:$0xff]  ;;  %v3767_v17 = vld [vmem:[#allocation9 + $0x9a8] sm:$0xff] }
 0x40d   :  { %4498 = vmatpush.msra.mxu1 %v3632_v5  ;;  %4558 = vmatpush.msrb.mxu0 %v3505_v56  ;;  %v3641_v12 = vld [vmem:[#allocation9 + $0x5b8] sm:$0xff]  ;;  %v3743_v5 = vld [vmem:[#allocation9 + $0x8e8] sm:$0xff] }
 0x40e   :  { %4216 = vmatpush.msra.mxu3 %v3900_v10  ;;  %4356 = vmatpush.msra.mxu2 %v3774_v11  ;;  %v3885_v33 = vld [vmem:[#allocation9 + $0xd58] sm:$0xff]  ;;  %v3759_v10 = vld [vmem:[#allocation9 + $0x968] sm:$0xff] }
 0x40f   :  { %4499 = vmatpush.msra.mxu1 %v3624_v39  ;;  %4559 = vmatpush.msrb.mxu0 %v3497_v29  ;;  %v3633_v11 = vld [vmem:[#allocation9 + $0x578] sm:$0xff] }
 0x410   :  { %4217 = vmatpush.msra.mxu3 %v3892_v63  ;;  %4357 = vmatpush.msra.mxu2 %v3766_v22  ;;  %v3877_v59 = vld [vmem:[#allocation9 + $0xd18] sm:$0xff] }
 0x411   :  { %4500 = vmatpush.msra.mxu1 %v3616_v61  ;;  %4560 = vmatpush.msrb.mxu0 %v3489_v37  ;;  %v3625_v63 = vld [vmem:[#allocation9 + $0x538] sm:$0xff]  ;;  %v3719_v37 = vld [vmem:[#allocation9 + $0x828] sm:$0xff] }
 0x412   :  { %4218 = vmatpush.msra.mxu3 %v3884_v26  ;;  %4358 = vmatpush.msra.mxu2 %v3758_v15  ;;  %v3869_v22 = vld [vmem:[#allocation9 + $0xcd8] sm:$0xff]  ;;  %v3735_v15 = vld [vmem:[#allocation9 + $0x8a8] sm:$0xff] }
 0x413   :  { %4501 = vmatpush.msra.mxu1 %v3608_v28  ;;  %4561 = vmatpush.msrb.mxu0 %v3481_v44  ;;  %v3617_v56 = vld [vmem:[#allocation9 + $0x4f8] sm:$0xff]  ;;  %v3840_v28 = vld [vmem:[#allocation9 + $0xbf0] sm:$0xff]  ;;  %v3958_v44 = vld [vmem:[#allocation9 + $0xfa0] sm:$0xff] }
 0x414   :  { %4219 = vmatpush.msra.mxu3 %v3876_v46  ;;  %4359 = vmatpush.msra.mxu2 %v3750_v18  ;;  %v3861_v26 = vld [vmem:[#allocation9 + $0xc98] sm:$0xff]  ;;  %v3727_v46 = vld [vmem:[#allocation9 + $0x868] sm:$0xff] }
 0x415   :  { %4502 = vmatpush.msra.mxu1 %v3600_v43  ;;  %4562 = vmatpush.msrb.mxu0 %v3473_v21  ;;  %v3609_v39 = vld [vmem:[#allocation9 + $0x4b8] sm:$0xff]  ;;  %v3824_v43 = vld [vmem:[#allocation9 + $0xb70] sm:$0xff]  ;;  %v3942_v21 = vld [vmem:[#allocation9 + $0xf20] sm:$0xff] }
 0x416   :  { %4220 = vmatpush.msra.mxu3 %v3868_v31  ;;  %4360 = vmatpush.msra.mxu2 %v3742_v45  ;;  %v3853_v29 = vld [vmem:[#allocation9 + $0xc58] sm:$0xff]  ;;  %v3966_v45 = vld [vmem:[#allocation9 + $0xfe0] sm:$0xff] }
 0x417   :  { %4503 = vmatpush.msra.mxu1 %v3592_v25  ;;  %4563 = vmatpush.msrb.mxu0 %v3465_v27  ;;  %v3601_v18 = vld [vmem:[#allocation9 + $0x478] sm:$0xff]  ;;  %v3808_v25 = vld [vmem:[#allocation9 + $0xaf0] sm:$0xff]  ;;  %v3926_v27 = vld [vmem:[#allocation9 + $0xea0] sm:$0xff] }
 0x418   :  { %4221 = vmatpush.msra.mxu3 %v3860_v4  ;;  %4361 = vmatpush.msra.mxu2 %v3734_v40  ;;  %v3845_v61 = vld [vmem:[#allocation9 + $0xc18] sm:$0xff]  ;;  %v3832_v4 = vld [vmem:[#allocation9 + $0xbb0] sm:$0xff]  ;;  %v3950_v40 = vld [vmem:[#allocation9 + $0xf60] sm:$0xff] }
 0x419   :  { %4504 = vmatmul.f32.vlgmr.msra.gmra.mxu1 %v7732_v42  ;;  %4564 = vmatmul.f32.vlgmr.msrb.gmra.mxu0 %v7722_v20  ;;  %v3925_v20 = vld [vmem:[#allocation9 + $0xe98] sm:$0xff] }
 0x41a   :  { %4222 = vmatpush.msra.mxu3 %v3852_v47  ;;  %4362 = vmatpush.msra.mxu2 %v3726_v23  ;;  %v3593_v31 = vld [vmem:[#allocation9 + $0x438] sm:$0xff]  ;;  %v3816_v47 = vld [vmem:[#allocation9 + $0xb30] sm:$0xff]  ;;  %v3934_v23 = vld [vmem:[#allocation9 + $0xee0] sm:$0xff] }
 0x41b   :  { %4568 = vmatpush.msrb.mxu1 %v3713_v9  ;;  %v3902_v9 = vld [vmem:[#allocation9 + $0xde0] sm:$0xff] }
 0x41c   :  { %4223 = vmatpush.msra.mxu3 %v3844_v38  ;;  %4363 = vmatpush.msra.mxu2 %v3718_v24  ;;  %v3800_v38 = vld [vmem:[#allocation9 + $0xab0] sm:$0xff]  ;;  %v3918_v24 = vld [vmem:[#allocation9 + $0xe60] sm:$0xff] }
 0x41d   :  { %4224 = vmatmul.f32.vlgmr.msra.gmra.mxu3 %v7772_v16  ;;  %4364 = vmatmul.f32.vlgmr.msra.gmra.mxu2 %v7752_v3 }
 0x41e   :  { %4288 = vmatpush.msrb.mxu3 %v3965_v13  ;;  %4428 = vmatpush.msrb.mxu2 %v3839_v54  ;;  %v3910_v13 = vld [vmem:[#allocation9 + $0xe20] sm:$0xff]  ;;  %v3784_v54 = vld [vmem:[#allocation9 + $0xa30] sm:$0xff] }
 0x41f   :  { %4569 = vmatpush.msrb.mxu1 %v3705_v32  ;;  %v3768_v32 = vld [vmem:[#allocation9 + $0x9b0] sm:$0xff] }
 0x420   :  { %4289 = vmatpush.msrb.mxu3 %v3957_v58  ;;  %4429 = vmatpush.msrb.mxu2 %v3831_v41  ;;  %v3776_v58 = vld [vmem:[#allocation9 + $0x9f0] sm:$0xff]  ;;  %v3894_v41 = vld [vmem:[#allocation9 + $0xda0] sm:$0xff] }
 0x421   :  { %4570 = vmatpush.msrb.mxu1 %v3697_v30  ;;  %v3878_v30 = vld [vmem:[#allocation9 + $0xd20] sm:$0xff] }
 0x422   :  { %4290 = vmatpush.msrb.mxu3 %v3949_v19  ;;  %4430 = vmatpush.msrb.mxu2 %v3823_v49  ;;  %v3886_v19 = vld [vmem:[#allocation9 + $0xd60] sm:$0xff]  ;;  %v3760_v49 = vld [vmem:[#allocation9 + $0x970] sm:$0xff] }
 0x423   :  { %4571 = vmatpush.msrb.mxu1 %v3689_v36  ;;  %v3744_v36 = vld [vmem:[#allocation9 + $0x8f0] sm:$0xff] }
 0x424   :  { %4291 = vmatpush.msrb.mxu3 %v3941_v62  ;;  %4431 = vmatpush.msrb.mxu2 %v3815_v0  ;;  %v3752_v62 = vld [vmem:[#allocation9 + $0x930] sm:$0xff]  ;;  %v3870_v0 = vld [vmem:[#allocation9 + $0xce0] sm:$0xff] }
 0x425   :  { %4572 = vmatpush.msrb.mxu1 %v3681_v35  ;;  %v3854_v35 = vld [vmem:[#allocation9 + $0xc60] sm:$0xff] }
 0x426   :  { %4292 = vmatpush.msrb.mxu3 %v3933_v1  ;;  %4432 = vmatpush.msrb.mxu2 %v3807_v34  ;;  %v3862_v1 = vld [vmem:[#allocation9 + $0xca0] sm:$0xff]  ;;  %v3736_v34 = vld [vmem:[#allocation9 + $0x8b0] sm:$0xff] }
 0x427   :  { %4573 = vmatpush.msrb.mxu1 %v3673_v2  ;;  %v3720_v2 = vld [vmem:[#allocation9 + $0x830] sm:$0xff] }
 0x428   :  { %4293 = vmatpush.msrb.mxu3 %v3925_v20  ;;  %4433 = vmatpush.msrb.mxu2 %v3799_v14  ;;  %v3728_v20 = vld [vmem:[#allocation9 + $0x870] sm:$0xff]  ;;  %v3846_v14 = vld [vmem:[#allocation9 + $0xc20] sm:$0xff] }
 0x429   :  { %4574 = vmatpush.msrb.mxu1 %v3665_v48  ;;  %v3959_v48 = vld [vmem:[#allocation9 + $0xfa8] sm:$0xff] }
 0x42a   :  { %4294 = vmatpush.msrb.mxu3 %v3917_v57  ;;  %4434 = vmatpush.msrb.mxu2 %v3791_v51  ;;  %v3967_v57 = vld [vmem:[#allocation9 + $0xfe8] sm:$0xff]  ;;  %v3841_v51 = vld [vmem:[#allocation9 + $0xbf8] sm:$0xff] }
 0x42b   :  { %4575 = vmatpush.msrb.mxu1 %v3657_v52  ;;  %v3825_v52 = vld [vmem:[#allocation9 + $0xb78] sm:$0xff] }
 0x42c   :  { %4295 = vmatpush.msrb.mxu3 %v3909_v6  ;;  %4435 = vmatpush.msrb.mxu2 %v3783_v7  ;;  %v3833_v6 = vld [vmem:[#allocation9 + $0xbb8] sm:$0xff]  ;;  %v3951_v7 = vld [vmem:[#allocation9 + $0xf68] sm:$0xff] }
 0x42d   :  { %4576 = vmatpush.msrb.mxu1 %v3649_v60  ;;  %v3935_v60 = vld [vmem:[#allocation9 + $0xee8] sm:$0xff] }
 0x42e   :  { %4296 = vmatpush.msrb.mxu3 %v3901_v55  ;;  %4436 = vmatpush.msrb.mxu2 %v3775_v53  ;;  %v3943_v55 = vld [vmem:[#allocation9 + $0xf28] sm:$0xff]  ;;  %v3817_v53 = vld [vmem:[#allocation9 + $0xb38] sm:$0xff] }
 0x42f   :  { %4577 = vmatpush.msrb.mxu1 %v3641_v12  ;;  %v3801_v12 = vld [vmem:[#allocation9 + $0xab8] sm:$0xff] }
 0x430   :  { %4297 = vmatpush.msrb.mxu3 %v3893_v8  ;;  %4437 = vmatpush.msrb.mxu2 %v3767_v17  ;;  %v3809_v8 = vld [vmem:[#allocation9 + $0xaf8] sm:$0xff]  ;;  %v3927_v17 = vld [vmem:[#allocation9 + $0xea8] sm:$0xff] }
 0x431   :  { %4578 = vmatpush.msrb.mxu1 %v3633_v11  ;;  %v3793_v11 = vld [vmem:[#allocation9 + $0xa78] sm:$0xff] }
 0x432   :  { %4298 = vmatpush.msrb.mxu3 %v3885_v33  ;;  %4438 = vmatpush.msrb.mxu2 %v3759_v10  ;;  %v3919_v33 = vld [vmem:[#allocation9 + $0xe68] sm:$0xff] }
 0x433   :  { %4579 = vmatpush.msrb.mxu1 %v3625_v63  ;;  %v4803_v10 = vld [vmem:[%s8606_s7 + $0x78] sm:$0xff]  ;;  %v3785_v63 = vld [vmem:[#allocation9 + $0xa38] sm:$0xff] }
 0x434   :  { %4299 = vmatpush.msrb.mxu3 %v3877_v59  ;;  %4439 = vmatpush.msrb.mxu2 %v3751_v50  ;;  %v3911_v59 = vld [vmem:[#allocation9 + $0xe28] sm:$0xff]  ;;  %v4802_v50 = vld [vmem:[%s8606_s7 + $0x70] sm:$0xff] }
 0x435   :  { %4580 = vmatpush.msrb.mxu1 %v3617_v56  ;;  %4916 = vmatpush.msra.mxu0 %v4803_v10  ;;  %v3777_v56 = vld [vmem:[#allocation9 + $0x9f8] sm:$0xff] }
 0x436   :  { %4300 = vmatpush.msrb.mxu3 %v3869_v22  ;;  %4440 = vmatpush.msrb.mxu2 %v3743_v5  ;;  %v3903_v22 = vld [vmem:[#allocation9 + $0xde8] sm:$0xff]  ;;  %v4801_v5 = vld [vmem:[%s8606_s7 + $0x68] sm:$0xff] }
 0x437   :  { %4581 = vmatpush.msrb.mxu1 %v3609_v39  ;;  %4917 = vmatpush.msra.mxu0 %v4802_v50  ;;  %v3769_v39 = vld [vmem:[#allocation9 + $0x9b8] sm:$0xff] }
 0x438   :  { %4301 = vmatpush.msrb.mxu3 %v3861_v26  ;;  %4441 = vmatpush.msrb.mxu2 %v3735_v15  ;;  %v3895_v26 = vld [vmem:[#allocation9 + $0xda8] sm:$0xff]  ;;  %v4789_v10 = vld [vmem:[%s8606_s7 + $0x8] sm:$0xff] }
 0x439   :  { %4582 = vmatpush.msrb.mxu1 %v3601_v18  ;;  %4918 = vmatpush.msra.mxu0 %v4801_v5  ;;  %v4800_v15 = vld [vmem:[%s8606_s7 + $0x60] sm:$0xff]  ;;  %v4819_v18 = vld [vmem:[%s8606_s7 + $0xf8] sm:$0xff] }
 0x43a   :  { %4302 = vmatpush.msrb.mxu3 %v3853_v29  ;;  %4442 = vmatpush.msrb.mxu2 %v3727_v46  ;;  %v3887_v29 = vld [vmem:[#allocation9 + $0xd68] sm:$0xff] }
 0x43b   :  { %4583 = vmatpush.msrb.mxu1 %v3593_v31  ;;  %4919 = vmatpush.msra.mxu0 %v4800_v15  ;;  %v4799_v46 = vld [vmem:[%s8606_s7 + $0x58] sm:$0xff]  ;;  %v4798_v31 = vld [vmem:[%s8606_s7 + $0x50] sm:$0xff]  ;;  %v4808_v5 = vld [vmem:[%s8606_s7 + $0xa0] sm:$0xff] }
 0x43c   :  { %4303 = vmatpush.msrb.mxu3 %v3845_v61  ;;  %4443 = vmatpush.msrb.mxu2 %v3719_v37  ;;  %v3761_v61 = vld [vmem:[#allocation9 + $0x978] sm:$0xff]  ;;  %v3879_v37 = vld [vmem:[#allocation9 + $0xd28] sm:$0xff]  ;;  %v3920_v15 = vld [vmem:[#allocation9 + $0xe70] sm:$0xff] }
 0x43d   :  { %4304 = vmatmul.f32.vlgmr.msrb.gmra.mxu3 %v7772_v16  ;;  %4444 = vmatmul.f32.vlgmr.msrb.gmra.mxu2 %v7752_v3 }
 0x43e   :  { %4368 = vmatpush.msra.mxu3 %v3966_v45  ;;  %4584 = vmatmul.f32.vlgmr.msrb.gmra.mxu1 %v7732_v42  ;;  %v3792_v42 = vld [vmem:[#allocation9 + $0xa70] sm:$0xff]  ;;  %v4818_v45 = vld [vmem:[%s8606_s7 + $0xf0] sm:$0xff] }
 0x43f   :  { %4508 = vmatpush.msra.mxu2 %v3840_v28  ;;  %4920 = vmatpush.msra.mxu0 %v4799_v46  ;;  %v3753_v28 = vld [vmem:[#allocation9 + $0x938] sm:$0xff] }
 0x440   :  { %4369 = vmatpush.msra.mxu3 %v3958_v44  ;;  %4936 = vmatpush.msra.mxu1 %v4819_v18  ;;  %v3871_v44 = vld [vmem:[#allocation9 + $0xce8] sm:$0xff]  ;;  %v4834_v46 = vld [vmem:[%s8606_s7 + $0x170] sm:$0xff]  ;;  %v3912_v18 = vld [vmem:[#allocation9 + $0xe30] sm:$0xff] }
 0x441   :  { %4509 = vmatpush.msra.mxu2 %v3832_v4  ;;  %4921 = vmatpush.msra.mxu0 %v4798_v31  ;;  %v4797_v4 = vld [vmem:[%s8606_s7 + $0x48] sm:$0xff] }
 0x442   :  { %4370 = vmatpush.msra.mxu3 %v3950_v40  ;;  %4937 = vmatpush.msra.mxu1 %v4818_v45  ;;  %v4817_v40 = vld [vmem:[%s8606_s7 + $0xe8] sm:$0xff] }
 0x443   :  { %4510 = vmatpush.msra.mxu2 %v3824_v43  ;;  %v7816_v43 = vld [vmem:[#allocation10] sm:$0xff]  ;;  %4922 = vmatpush.msra.mxu0 %v4797_v4  ;;  %v4833_v31 = vld [vmem:[%s8606_s7 + $0x168] sm:$0xff] }
 0x444   :  { %4371 = vmatpush.msra.mxu3 %v3942_v21  ;;  %v3745_v21 = vld [vmem:[#allocation9 + $0x8f8] sm:$0xff]  ;;  %4938 = vmatpush.msra.mxu1 %v4817_v40 }
 0x445   :  { %4511 = vmatpush.msra.mxu2 %v3816_v47  ;;  %v3863_v47 = vld [vmem:[#allocation9 + $0xca8] sm:$0xff]  ;;  %v4805_v40 = vld [vmem:[%s8606_s7 + $0x88] sm:$0xff] }
 0x446   :  { %4372 = vmatpush.msra.mxu3 %v3934_v23  ;;  %v4796_v23 = vld [vmem:[%s8606_s7 + $0x40] sm:$0xff] }
 0x447   :  { %4512 = vmatpush.msra.mxu2 %v3808_v25  ;;  %v4816_v25 = vld [vmem:[%s8606_s7 + $0xe0] sm:$0xff]  ;;  %4923 = vmatpush.msra.mxu0 %v4796_v23 }
 0x448   :  { %4373 = vmatpush.msra.mxu3 %v3926_v27  ;;  %v4005_v27 = vpop.f32.mrf.mxu0  ;;  %4939 = vmatpush.msra.mxu1 %v4816_v25  ;;  %v4804_v23 = vld [vmem:[%s8606_s7 + $0x80] sm:$0xff]  ;;  %v4831_v25 = vld [vmem:[%s8606_s7 + $0x158] sm:$0xff] }
 0x449   :  { %4513 = vmatpush.msra.mxu2 %v3800_v38  ;;  %v3737_v38 = vld [vmem:[#allocation9 + $0x8b8] sm:$0xff] }
 0x44a   :  { %4374 = vmatpush.msra.mxu3 %v3918_v24  ;;  %v3972_v24 = vperm.slane %v7816_v43, 0 }
 0x44b   :  { %4514 = vmatpush.msra.mxu2 %v3792_v42  ;;  %v3855_v42 = vld [vmem:[#allocation9 + $0xc68] sm:$0xff] }
 0x44c   :  { %4375 = vmatpush.msra.mxu3 %v3910_v13  ;;  %v4795_v13 = vld [vmem:[%s8606_s7 + $0x38] sm:$0xff] }
 0x44d   :  { %4515 = vmatpush.msra.mxu2 %v3784_v54  ;;  %v4815_v54 = vld [vmem:[%s8606_s7 + $0xd8] sm:$0xff]  ;;  %4924 = vmatpush.msra.mxu0 %v4795_v13 }
 0x44e   :  { %4376 = vmatpush.msra.mxu3 %v3902_v9  ;;  %v4025_v9 = vpop.f32.mrf.mxu1  ;;  %4940 = vmatpush.msra.mxu1 %v4815_v54  ;;  %v3872_v54 = vld [vmem:[#allocation9 + $0xcf0] sm:$0xff] }
 0x44f   :  { %4516 = vmatpush.msra.mxu2 %v3776_v58  ;;  %v3729_v58 = vld [vmem:[#allocation9 + $0x878] sm:$0xff] }
 0x450   :  { %4377 = vmatpush.msra.mxu3 %v3894_v41  ;;  %v3847_v41 = vld [vmem:[#allocation9 + $0xc28] sm:$0xff] }
 0x451   :  { %4517 = vmatpush.msra.mxu2 %v3768_v32  ;;  %v4794_v32 = vld [vmem:[%s8606_s7 + $0x30] sm:$0xff] }
 0x452   :  { %4378 = vmatpush.msra.mxu3 %v3886_v19  ;;  %v4814_v19 = vld [vmem:[%s8606_s7 + $0xd0] sm:$0xff]  ;;  %4925 = vmatpush.msra.mxu0 %v4794_v32 }
 0x453   :  { %4518 = vmatpush.msra.mxu2 %v3760_v49  ;;  %v4045_v49 = vpop.f32.mrf.mxu2  ;;  %4941 = vmatpush.msra.mxu1 %v4814_v19  ;;  %v3864_v19 = vld [vmem:[#allocation9 + $0xcb0] sm:$0xff] }
 0x454   :  { %4379 = vmatpush.msra.mxu3 %v3878_v30  ;;  %v4006_v30 = vadd.f32 %v4005_v27, %v3972_v24  ;;  %v3888_v27 = vld [vmem:[#allocation9 + $0xd70] sm:$0xff] }
 0x455   :  { %4519 = vmatpush.msra.mxu2 %v3752_v62  ;;  %v3721_v62 = vld [vmem:[#allocation9 + $0x838] sm:$0xff]  ;;  %v3880_v24 = vld [vmem:[#allocation9 + $0xd30] sm:$0xff] }
 0x456   :  { %4380 = vmatpush.msra.mxu3 %v3870_v0  ;;  %v3968_v0 = vld [vmem:[#allocation9 + $0xff0] sm:$0xff] }
 0x457   :  { %4520 = vmatpush.msra.mxu2 %v3744_v36  ;;  %v4793_v36 = vld [vmem:[%s8606_s7 + $0x28] sm:$0xff] }
 0x458   :  { %4381 = vmatpush.msra.mxu3 %v3862_v1  ;;  %v4813_v1 = vld [vmem:[%s8606_s7 + $0xc8] sm:$0xff]  ;;  %4926 = vmatpush.msra.mxu0 %v4793_v36 }
 0x459   :  { %4521 = vmatpush.msra.mxu2 %v3736_v34  ;;  %v4026_v34 = vadd.f32 %v4025_v9, %v4006_v30  ;;  %4942 = vmatpush.msra.mxu1 %v4813_v1  ;;  %v3974_v30 = vperm.slane %v7816_v43, 2 }
 0x45a   :  { %4382 = vmatpush.msra.mxu3 %v3854_v35  ;;  %v3960_v35 = vld [vmem:[#allocation9 + $0xfb0] sm:$0xff] }
 0x45b   :  { %4522 = vmatpush.msra.mxu2 %v3728_v20  ;;  %v4792_v20 = vld [vmem:[%s8606_s7 + $0x20] sm:$0xff] }
 0x45c   :  { %4383 = vmatpush.msra.mxu3 %v3846_v14  ;;  %v4812_v14 = vld [vmem:[%s8606_s7 + $0xc0] sm:$0xff]  ;;  %4927 = vmatpush.msra.mxu0 %v4792_v20 }
 0x45d   :  { %4384 = vmatmul.f32.vlgmr.msra.gmra.mxu3 %v7772_v16  ;;  %4523 = vmatpush.msra.mxu2 %v3720_v2  ;;  %v3973_v2 = vperm.slane %v7816_v43, 1 }
 0x45e   :  { %4448 = vmatpush.msrb.mxu3 %v3967_v57  ;;  %4524 = vmatmul.f32.vlgmr.msra.gmra.mxu2 %v7752_v3  ;;  %v4046_v57 = vadd.f32 %v4045_v49, %v4026_v34  ;;  %v4827_v49 = vld [vmem:[%s8606_s7 + $0x138] sm:$0xff]  ;;  %v4826_v34 = vld [vmem:[%s8606_s7 + $0x130] sm:$0xff] }
 0x45f   :  { %4588 = vmatpush.msrb.mxu2 %v3841_v51  ;;  %v3952_v51 = vld [vmem:[#allocation9 + $0xf70] sm:$0xff]  ;;  %4943 = vmatpush.msra.mxu1 %v4812_v14 }
 0x460   :  { %4449 = vmatpush.msrb.mxu3 %v3959_v48  ;;  %v4791_v48 = vld [vmem:[%s8606_s7 + $0x18] sm:$0xff]  ;;  %v3848_v14 = vld [vmem:[#allocation9 + $0xc30] sm:$0xff] }
 0x461   :  { %4589 = vmatpush.msrb.mxu2 %v3833_v6  ;;  %v4085_v6 = vpop.f32.mrf.mxu0  ;;  %4928 = vmatpush.msra.mxu0 %v4791_v48 }
 0x462   :  { %4450 = vmatpush.msrb.mxu3 %v3951_v7 }
 0x463   :  { %4590 = vmatpush.msrb.mxu2 %v3825_v52  ;;  %v4811_v52 = vld [vmem:[%s8606_s7 + $0xb8] sm:$0xff] }
 0x464   :  { %4451 = vmatpush.msrb.mxu3 %v3943_v55  ;;  %v3944_v55 = vld [vmem:[#allocation9 + $0xf30] sm:$0xff]  ;;  %4944 = vmatpush.msra.mxu1 %v4811_v52 }
 0x465   :  { %4591 = vmatpush.msrb.mxu2 %v3817_v53 }
 0x466   :  { %4452 = vmatpush.msrb.mxu3 %v3935_v60  ;;  %v4105_v60 = vpop.f32.mrf.mxu1 }
 0x467   :  { %4592 = vmatpush.msrb.mxu2 %v3809_v8  ;;  %v4810_v8 = vld [vmem:[%s8606_s7 + $0xb0] sm:$0xff] }
 0x468   :  { %4453 = vmatpush.msrb.mxu3 %v3927_v17  ;;  %v4086_v17 = vadd.f32 %v4085_v6, %v3973_v2  ;;  %4945 = vmatpush.msra.mxu1 %v4810_v8  ;;  %v3969_v6 = vld [vmem:[#allocation9 + $0xff8] sm:$0xff] }
 0x469   :  { %4593 = vmatpush.msrb.mxu2 %v3801_v12  ;;  %v4165_v36 = vpop.f32.mrf.mxu0 }
 0x46a   :  { %4454 = vmatpush.msrb.mxu3 %v3919_v33  ;;  %v3936_v33 = vld [vmem:[#allocation9 + $0xef0] sm:$0xff]  ;;  %v4106_v50 = vadd.f32 %v4105_v60, %v4086_v17 }
 0x46b   :  { %4594 = vmatpush.msrb.mxu2 %v3793_v11  ;;  %v4125_v11 = vpop.f32.mrf.mxu2 }
 0x46c   :  { %4455 = vmatpush.msrb.mxu3 %v3911_v59  ;;  %v4809_v59 = vld [vmem:[%s8606_s7 + $0xa8] sm:$0xff] }
 0x46d   :  { %4595 = vmatpush.msrb.mxu2 %v3785_v63  ;;  %v3928_v63 = vld [vmem:[#allocation9 + $0xeb0] sm:$0xff]  ;;  %4946 = vmatpush.msra.mxu1 %v4809_v59 }
 0x46e   :  { %4456 = vmatpush.msrb.mxu3 %v3903_v22  ;;  %v4788_v22 = vld [vmem:[%s8606_s7] sm:$0xff]  ;;  %v4185_v2 = vpop.f32.mrf.mxu1 }
 0x46f   :  { %4596 = vmatpush.msrb.mxu2 %v3777_v56  ;;  %v4835_v56 = vld [vmem:[%s8606_s7 + $0x178] sm:$0xff]  ;;  %4947 = vmatpush.msra.mxu1 %v4808_v5 }
 0x470   :  { %4457 = vmatpush.msrb.mxu3 %v3895_v26  ;;  %v4126_v26 = vadd.f32 %v4125_v11, %v4106_v50 }
 0x471   :  { %4597 = vmatpush.msrb.mxu2 %v3769_v39 }
 0x472   :  { %4458 = vmatpush.msrb.mxu3 %v3887_v29  ;;  %v4807_v29 = vld [vmem:[%s8606_s7 + $0x98] sm:$0xff] }
 0x473   :  { %4598 = vmatpush.msrb.mxu2 %v3761_v61  ;;  %4948 = vmatpush.msra.mxu1 %v4807_v29  ;;  %v4205_v52 = vpop.f32.mrf.mxu2 }
 0x474   :  { %4459 = vmatpush.msrb.mxu3 %v3879_v37  ;;  %v4806_v37 = vld [vmem:[%s8606_s7 + $0x90] sm:$0xff] }
 0x475   :  { %4599 = vmatpush.msrb.mxu2 %v3753_v28  ;;  %4949 = vmatpush.msra.mxu1 %v4806_v37  ;;  %v3937_v37 = vld [vmem:[#allocation9 + $0xef8] sm:$0xff] }
 0x476   :  { %4460 = vmatpush.msrb.mxu3 %v3871_v44  ;;  %v3904_v44 = vld [vmem:[#allocation9 + $0xdf0] sm:$0xff] }
 0x477   :  { %4600 = vmatpush.msrb.mxu2 %v3745_v21  ;;  %v4832_v21 = vld [vmem:[%s8606_s7 + $0x160] sm:$0xff]  ;;  %4950 = vmatpush.msra.mxu1 %v4805_v40 }
 0x478   :  { %4461 = vmatpush.msrb.mxu3 %v3863_v47  ;;  %v3896_v47 = vld [vmem:[#allocation9 + $0xdb0] sm:$0xff] }
 0x479   :  { %4601 = vmatpush.msrb.mxu2 %v3737_v38  ;;  %v4830_v38 = vld [vmem:[%s8606_s7 + $0x150] sm:$0xff]  ;;  %4951 = vmatpush.msra.mxu1 %v4804_v23 }
 0x47a   :  { %4462 = vmatpush.msrb.mxu3 %v3855_v42  ;;  %v4829_v42 = vld [vmem:[%s8606_s7 + $0x148] sm:$0xff] }
 0x47b   :  { %4602 = vmatpush.msrb.mxu2 %v3729_v58 }
 0x47c   :  { %4463 = vmatpush.msrb.mxu3 %v3847_v41  ;;  %v4828_v41 = vld [vmem:[%s8606_s7 + $0x140] sm:$0xff] }
 0x47d   :  { %4464 = vmatmul.f32.vlgmr.msrb.gmra.mxu3 %v7772_v16  ;;  %4603 = vmatpush.msrb.mxu2 %v3721_v62 }
 0x47e   :  { %4528 = vmatpush.msra.mxu3 %v3968_v0  ;;  %4604 = vmatmul.f32.vlgmr.msrb.gmra.mxu2 %v7752_v3  ;;  %v4790_v3 = vld [vmem:[%s8606_s7 + $0x10] sm:$0xff]  ;;  %v3856_v0 = vld [vmem:[#allocation9 + $0xc70] sm:$0xff] }
 0x47f   :  { %4929 = vmatpush.msra.mxu0 %v4790_v3  ;;  %4956 = vmatpush.msra.mxu2 %v4835_v56  ;;  %v4824_v3 = vld [vmem:[%s8606_s7 + $0x120] sm:$0xff] }
 0x480   :  { %4529 = vmatpush.msra.mxu3 %v3960_v35  ;;  %v4065_v7 = vpop.f32.mrf.mxu3 }
 0x481   :  { %v7858_v53 = vadd.f32 %v4065_v7, %v4046_v57  ;;  %4930 = vmatpush.msra.mxu0 %v4789_v10  ;;  %4957 = vmatpush.msra.mxu2 %v4834_v46  ;;  %v4825_v57 = vld [vmem:[%s8606_s7 + $0x128] sm:$0xff]  ;;  %v4823_v10 = vld [vmem:[%s8606_s7 + $0x118] sm:$0xff] }
 0x482   :  { %4530 = vmatpush.msra.mxu3 %v3952_v51  ;;  %v4166_v51 = vadd.f32 %v4165_v36, %v3974_v30  ;;  %v4265_v36 = vpop.f32.mrf.mxu1 }
 0x483   :  { %v6456_v12 = vmul.f32 -1.442695, %v7858_v53  ;;  %4931 = vmatpush.msra.mxu0 %v4788_v22  ;;  %4958 = vmatpush.msra.mxu2 %v4833_v31  ;;  %v4822_v22 = vld [vmem:[%s8606_s7 + $0x110] sm:$0xff] }
 0x484   :  { %4531 = vmatpush.msra.mxu3 %v3944_v55  ;;  %v4186_v60 = vadd.f32 %v4185_v2, %v4166_v51  ;;  %v4850_v51 = vld [vmem:[%s8606_s7 + $0x1f0] sm:$0xff] }
 0x485   :  { %6578 = vpow2.f32 %v6456_v12  ;;  %4959 = vmatpush.msra.mxu2 %v4832_v21  ;;  %v3961_v12 = vld [vmem:[#allocation9 + $0xfb8] sm:$0xff] }
 0x486   :  { %4532 = vmatpush.msra.mxu3 %v3936_v33  ;;  %v4206_v11 = vadd.f32 %v4205_v52, %v4186_v60  ;;  %v3921_v21 = vld [vmem:[#allocation9 + $0xe78] sm:$0xff] }
 0x487   :  { %4960 = vmatpush.msra.mxu2 %v4831_v25  ;;  %v3905_v25 = vld [vmem:[#allocation9 + $0xdf8] sm:$0xff] }
 0x488   :  { %4533 = vmatpush.msra.mxu3 %v3928_v63  ;;  %v4145_v39 = vpop.f32.mrf.mxu3  ;;  %v3953_v63 = vld [vmem:[#allocation9 + $0xf78] sm:$0xff] }
 0x489   :  { %v7888_v61 = vadd.f32 %v4145_v39, %v4126_v26  ;;  %4961 = vmatpush.msra.mxu2 %v4830_v38  ;;  %v4821_v26 = vld [vmem:[%s8606_s7 + $0x108] sm:$0xff] }
 0x48a   :  { %4534 = vmatpush.msra.mxu3 %v3920_v15  ;;  %v3897_v38 = vld [vmem:[#allocation9 + $0xdb8] sm:$0xff] }
 0x48b   :  { %v6579_v45 = vpop.eup %6578  ;;  %v6457_v28 = vmul.f32 -1.442695, %v7888_v61  ;;  %4962 = vmatpush.msra.mxu2 %v4829_v42  ;;  %v3881_v42 = vld [vmem:[#allocation9 + $0xd38] sm:$0xff] }
 0x48c   :  { %v7897_v4 = vadd.f32 1.0, %v6579_v45  ;;  %4535 = vmatpush.msra.mxu3 %v3912_v18  ;;  %v4820_v45 = vld [vmem:[%s8606_s7 + $0x100] sm:$0xff]  ;;  %v4849_v52 = vld [vmem:[%s8606_s7 + $0x1e8] sm:$0xff] }
 0x48d   :  { %6580 = vpow2.f32 %v6457_v28  ;;  %4963 = vmatpush.msra.mxu2 %v4828_v41 }
 0x48e   :  { %6582 = vrcp.f32 %v7897_v4  ;;  %4536 = vmatpush.msra.mxu3 %v3904_v44  ;;  %v4671_v1 = vand.u32 2147483648, %v7897_v4  ;;  %v4669_v20 = vand.u32 2147483647, %v7897_v4  ;;  %vm4665_vm1 = vweird.f32 %v7897_v4  ;;  %v3929_v44 = vld [vmem:[#allocation9 + $0xeb8] sm:$0xff] }
 0x48f   :  { %4964 = vmatpush.msra.mxu2 %v4827_v49 }
 0x490   :  { %4537 = vmatpush.msra.mxu3 %v3896_v47  ;;  %v4672_v55 = vor.u32 1.1754944e-38, %v4671_v1  ;;  %vm4670_vm3 = vcmp.eq.f32.partialorder %v4669_v20, 8.507059e+37  ;;  %v3913_v47 = vld [vmem:[#allocation9 + $0xe38] sm:$0xff]  ;;  %v4285_v20 = vpop.f32.mrf.mxu2 }
 0x491   :  { %4965 = vmatpush.msra.mxu2 %v4826_v34 }
 0x492   :  { %4538 = vmatpush.msra.mxu3 %v3888_v27 }
 0x493   :  { %v6581_v13 = vpop.eup %6580  ;;  %4966 = vmatpush.msra.mxu2 %v4825_v57 }
 0x494   :  { %v6583_v9 = vpop.eup %6582  ;;  %v7918_v58 = vadd.f32 1.0, %v6581_v13  ;;  %4539 = vmatpush.msra.mxu3 %v3880_v24  ;;  %v3889_v24 = vld [vmem:[#allocation9 + $0xd78] sm:$0xff] }
 0x495   :  { %v4661_v32 = vmul.f32 %v6583_v9, %v7897_v4  ;;  %vm4666_vm0 = vweird.f32 %v6583_v9  ;;  %4967 = vmatpush.msra.mxu2 %v4824_v3  ;;  %v3873_v13 = vld [vmem:[#allocation9 + $0xcf8] sm:$0xff] }
 0x496   :  { %6584 = vrcp.f32 %v7918_v58  ;;  %4540 = vmatpush.msra.mxu3 %v3872_v54  ;;  %vm4667_vm2 = vmor %vm4665_vm1, %vm4666_vm0  ;;  %v4686_v5 = vand.u32 2147483648, %v7918_v58  ;;  %v4684_v39 = vand.u32 2147483647, %v7918_v58  ;;  %vm4680_vm5 = vweird.f32 %v7918_v58 }
 0x497   :  { %v4662_v62 = vsub.f32 1.0, %v4661_v32  ;;  %4968 = vmatpush.msra.mxu2 %v4823_v10  ;;  %v3857_v32 = vld [vmem:[#allocation9 + $0xc78] sm:$0xff] }
 0x498   :  { %4541 = vmatpush.msra.mxu3 %v3864_v19  ;;  %v4687_v31 = vor.u32 1.1754944e-38, %v4686_v5  ;;  %vm4685_vm7 = vcmp.eq.f32.partialorder %v4684_v39, 8.507059e+37  ;;  %v4245_v19 = vpop.f32.mrf.mxu0  ;;  %v4845_v10 = vld [vmem:[%s8606_s7 + $0x1c8] sm:$0xff] }
 0x499   :  { %v4663_v35 = vmul.f32 %v6583_v9, %v4662_v62  ;;  %4969 = vmatpush.msra.mxu2 %v4822_v22  ;;  %v4843_v22 = vld [vmem:[%s8606_s7 + $0x1b8] sm:$0xff]  ;;  %v4841_v39 = vld [vmem:[%s8606_s7 + $0x1a8] sm:$0xff] }
 0x49a   :  { %4542 = vmatpush.msra.mxu3 %v3856_v0  ;;  %v3849_v0 = vld [vmem:[#allocation9 + $0xc38] sm:$0xff] }
 0x49b   :  { %v4664_v48 = vadd.f32 %v6583_v9, %v4663_v35  ;;  %4970 = vmatpush.msra.mxu2 %v4821_v26  ;;  %v4851_v35 = vld [vmem:[%s8606_s7 + $0x1f8] sm:$0xff]  ;;  %v4842_v26 = vld [vmem:[%s8606_s7 + $0x1b0] sm:$0xff] }
 0x49c   :  { %v6585_v7 = vpop.eup %6584  ;;  %4543 = vmatpush.msra.mxu3 %v3848_v14 }
 0x49d   :  { %v4668_v8 = vsel %vm4667_vm2, %v6583_v9, %v4664_v48  ;;  %v4676_v17 = vmul.f32 %v6585_v7, %v7918_v58  ;;  %4544 = vmatmul.f32.vlgmr.msra.gmra.mxu3 %v7772_v16  ;;  %vm4681_vm4 = vweird.f32 %v6585_v7  ;;  %4971 = vmatpush.msra.mxu2 %v4820_v45  ;;  %v3865_v9 = vld [vmem:[#allocation9 + $0xcb8] sm:$0xff]  ;;  %v3975_v58 = vperm.slane %v7816_v43, 3 }
 0x49e   :  { %v4673_v33 = vsel %vm4670_vm3, %v4672_v55, %v4668_v8  ;;  %4608 = vmatpush.msrb.mxu3 %v3969_v6  ;;  %vm4682_vm6 = vmor %vm4680_vm5, %vm4681_vm4  ;;  %v4847_v8 = vld [vmem:[%s8606_s7 + $0x1d8] sm:$0xff] }
 0x49f   :  { %v4780_v59 = vmul.f32 %v4673_v33, %v7858_v53  ;;  %v4677_v50 = vsub.f32 1.0, %v4676_v17  ;;  %v3945_v53 = vld [vmem:[#allocation9 + $0xf38] sm:$0xff]  ;;  %v4246_v1 = vadd.f32 %v4245_v19, %v3975_v58  ;;  %v4867_v17 = vld [vmem:[%s8606_s7 + $0x278] sm:$0xff] }
 0x4a0   :  { %4609 = vmatpush.msrb.mxu3 %v3961_v12  ;;  %v4225_v56 = vpop.f32.mrf.mxu3  ;;  %v4846_v12 = vld [vmem:[%s8606_s7 + $0x1d0] sm:$0xff]  ;;  %4996 = vmatpush.msrb.mxu0 %v4867_v17 }
 0x4a1   :  { %v4678_v15 = vmul.f32 %v6585_v7, %v4677_v50  ;;  %v7955_v29 = vadd.f32 %v4225_v56, %v4206_v11  ;;  %4932 = vmatmul.f32.vlgmr.msra.gmra.mxu0 %v4780_v59  ;;  %v4266_v2 = vadd.f32 %v4265_v36, %v4246_v1  ;;  %v4866_v33 = vld [vmem:[%s8606_s7 + $0x270] sm:$0xff]  ;;  %v4865_v11 = vld [vmem:[%s8606_s7 + $0x268] sm:$0xff]  ;;  %v4844_v59 = vld [vmem:[%s8606_s7 + $0x1c0] sm:$0xff] }
 0x4a2   :  { %4610 = vmatpush.msrb.mxu3 %v3953_v63  ;;  %4997 = vmatpush.msrb.mxu0 %v4866_v33  ;;  %v4864_v50 = vld [vmem:[%s8606_s7 + $0x260] sm:$0xff]  ;;  %v4863_v56 = vld [vmem:[%s8606_s7 + $0x258] sm:$0xff]  ;;  %v4853_v36 = vld [vmem:[%s8606_s7 + $0x208] sm:$0xff] }
 0x4a3   :  { %v4679_v46 = vadd.f32 %v6585_v7, %v4678_v15  ;;  %v6458_v18 = vmul.f32 -1.442695, %v7955_v29  ;;  %v4286_v6 = vadd.f32 %v4285_v20, %v4266_v2  ;;  %v4862_v15 = vld [vmem:[%s8606_s7 + $0x250] sm:$0xff] }
 0x4a4   :  { %4611 = vmatpush.msrb.mxu3 %v3945_v53  ;;  %4998 = vmatpush.msrb.mxu0 %v4865_v11  ;;  %v4861_v53 = vld [vmem:[%s8606_s7 + $0x248] sm:$0xff]  ;;  %v4882_v2 = vld [vmem:[%s8606_s7 + $0x2f0] sm:$0xff] }
 0x4a5   :  { %v4683_v28 = vsel %vm4682_vm6, %v6585_v7, %v4679_v46  ;;  %6586 = vpow2.f32 %v6458_v18  ;;  %v4860_v46 = vld [vmem:[%s8606_s7 + $0x240] sm:$0xff]  ;;  %v4839_v18 = vld [vmem:[%s8606_s7 + $0x198] sm:$0xff]  ;;  %v4874_v17 = vld [vmem:[%s8606_s7 + $0x2b0] sm:$0xff] }
 0x4a6   :  { %v4688_v4 = vsel %vm4685_vm7, %v4687_v31, %v4683_v28  ;;  %4612 = vmatpush.msrb.mxu3 %v3937_v37  ;;  %4999 = vmatpush.msrb.mxu0 %v4864_v50  ;;  %v4859_v31 = vld [vmem:[%s8606_s7 + $0x238] sm:$0xff]  ;;  %v4838_v28 = vld [vmem:[%s8606_s7 + $0x190] sm:$0xff] }
 0x4a7   :  { %v4781_v40 = vmul.f32 %v4688_v4, %v7888_v61  ;;  %v3976_v4 = vperm.slane %v7816_v43, 4 }
 0x4a8   :  { %4613 = vmatpush.msrb.mxu3 %v3929_v44  ;;  %5000 = vmatpush.msrb.mxu0 %v4863_v56  ;;  %v4858_v44 = vld [vmem:[%s8606_s7 + $0x230] sm:$0xff] }
 0x4a9   :  { %4952 = vmatmul.f32.vlgmr.msra.gmra.mxu1 %v4781_v40 }
 0x4aa   :  { %4614 = vmatpush.msrb.mxu3 %v3921_v21  ;;  %5001 = vmatpush.msrb.mxu0 %v4862_v15  ;;  %v4837_v21 = vld [vmem:[%s8606_s7 + $0x188] sm:$0xff]  ;;  %v4871_v15 = vld [vmem:[%s8606_s7 + $0x298] sm:$0xff] }
 0x4ab   :  { %v6587_v23 = vpop.eup %6586 }
 0x4ac   :  { %v4654_v27 = vadd.f32 1.0, %v6587_v23  ;;  %4615 = vmatpush.msrb.mxu3 %v3913_v47  ;;  %5002 = vmatpush.msrb.mxu0 %v4861_v53  ;;  %v4325_v47 = vpop.f32.mrf.mxu0 }
 0x4ae   :  { %6588 = vrcp.f32 %v4654_v27  ;;  %4616 = vmatpush.msrb.mxu3 %v3905_v25  ;;  %v4701_v49 = vand.u32 2147483648, %v4654_v27  ;;  %v4699_v62 = vand.u32 2147483647, %v4654_v27  ;;  %vm4695_vm9 = vweird.f32 %v4654_v27  ;;  %5003 = vmatpush.msrb.mxu0 %v4860_v46  ;;  %v4857_v25 = vld [vmem:[%s8606_s7 + $0x228] sm:$0xff] }
 0x4b0   :  { %4617 = vmatpush.msrb.mxu3 %v3897_v38  ;;  %v4702_v14 = vor.u32 1.1754944e-38, %v4701_v49  ;;  %vm4700_vm11 = vcmp.eq.f32.partialorder %v4699_v62, 8.507059e+37  ;;  %5004 = vmatpush.msrb.mxu0 %v4859_v31 }
 0x4b2   :  { %4618 = vmatpush.msrb.mxu3 %v3889_v24  ;;  %5005 = vmatpush.msrb.mxu0 %v4858_v44  ;;  %v4836_v24 = vld [vmem:[%s8606_s7 + $0x180] sm:$0xff] }
 0x4b4   :  { %v6589_v54 = vpop.eup %6588  ;;  %4619 = vmatpush.msrb.mxu3 %v3881_v42  ;;  %5006 = vmatpush.msrb.mxu0 %v4857_v25  ;;  %v4345_v42 = vpop.f32.mrf.mxu1  ;;  %v4897_v25 = vld [vmem:[%s8606_s7 + $0x368] sm:$0xff] }
 0x4b5   :  { %v4691_v61 = vmul.f32 %v6589_v54, %v4654_v27  ;;  %vm4696_vm8 = vweird.f32 %v6589_v54  ;;  %v4405_v11 = vpop.f32.mrf.mxu0 }
 0x4b6   :  { %4620 = vmatpush.msrb.mxu3 %v3873_v13  ;;  %vm4697_vm10 = vmor %vm4695_vm9, %vm4696_vm8  ;;  %v4856_v13 = vld [vmem:[%s8606_s7 + $0x220] sm:$0xff] }
 0x4b7   :  { %v4692_v41 = vsub.f32 1.0, %v4691_v61  ;;  %5007 = vmatpush.msrb.mxu0 %v4856_v13  ;;  %v4894_v13 = vld [vmem:[%s8606_s7 + $0x350] sm:$0xff] }
 0x4b8   :  { %4621 = vmatpush.msrb.mxu3 %v3865_v9  ;;  %v4365_v9 = vpop.f32.mrf.mxu2 }
 0x4b9   :  { %v4693_v30 = vmul.f32 %v6589_v54, %v4692_v41  ;;  %v4855_v41 = vld [vmem:[%s8606_s7 + $0x218] sm:$0xff] }
 0x4ba   :  { %4622 = vmatpush.msrb.mxu3 %v3857_v32  ;;  %5008 = vmatpush.msrb.mxu0 %v4855_v41  ;;  %v4890_v41 = vld [vmem:[%s8606_s7 + $0x330] sm:$0xff] }
 0x4bb   :  { %v4694_v34 = vadd.f32 %v6589_v54, %v4693_v30  ;;  %v4854_v30 = vld [vmem:[%s8606_s7 + $0x210] sm:$0xff] }
 0x4bc   :  { %4623 = vmatpush.msrb.mxu3 %v3849_v0  ;;  %5009 = vmatpush.msrb.mxu0 %v4854_v30 }
 0x4bd   :  { %v4698_v57 = vsel %vm4697_vm10, %v6589_v54, %v4694_v34  ;;  %4624 = vmatmul.f32.vlgmr.msrb.gmra.mxu3 %v7772_v16  ;;  %v4848_v16 = vld [vmem:[%s8606_s7 + $0x1e0] sm:$0xff]  ;;  %v4326_v54 = vadd.f32 %v4325_v47, %v3976_v4 }
 0x4be   :  { %v4703_v48 = vsel %vm4700_vm11, %v4702_v14, %v4698_v57  ;;  %4976 = vmatpush.msra.mxu3 %v4851_v35  ;;  %5010 = vmatpush.msrb.mxu0 %v4853_v36  ;;  %v4852_v35 = vld [vmem:[%s8606_s7 + $0x200] sm:$0xff]  ;;  %v4883_v14 = vld [vmem:[%s8606_s7 + $0x2f8] sm:$0xff]  ;;  %v4881_v57 = vld [vmem:[%s8606_s7 + $0x2e8] sm:$0xff] }
 0x4bf   :  { %v4782_v7 = vmul.f32 %v4703_v48, %v7955_v29  ;;  %v4840_v29 = vld [vmem:[%s8606_s7 + $0x1a0] sm:$0xff]  ;;  %v4346_v32 = vadd.f32 %v4345_v42, %v4326_v54  ;;  %5016 = vmatpush.msrb.mxu1 %v4883_v14  ;;  %v4893_v54 = vld [vmem:[%s8606_s7 + $0x348] sm:$0xff] }
 0x4c0   :  { %v4305_v55 = vpop.f32.mrf.mxu3  ;;  %4977 = vmatpush.msra.mxu3 %v4850_v51  ;;  %5011 = vmatpush.msrb.mxu0 %v4852_v35  ;;  %v4880_v51 = vld [vmem:[%s8606_s7 + $0x2e0] sm:$0xff] }
 0x4c1   :  { %v7975_v3 = vadd.f32 %v4305_v55, %v4286_v6  ;;  %4972 = vmatmul.f32.vlgmr.msra.gmra.mxu2 %v4782_v7  ;;  %v4366_v62 = vadd.f32 %v4365_v9, %v4346_v32  ;;  %5017 = vmatpush.msrb.mxu1 %v4882_v2  ;;  %v4879_v6 = vld [vmem:[%s8606_s7 + $0x2d8] sm:$0xff]  ;;  %v4877_v55 = vld [vmem:[%s8606_s7 + $0x2c8] sm:$0xff]  ;;  %v4888_v36 = vld [vmem:[%s8606_s7 + $0x320] sm:$0xff] }
 0x4c2   :  { %4978 = vmatpush.msra.mxu3 %v4849_v52  ;;  %v4878_v52 = vld [vmem:[%s8606_s7 + $0x2d0] sm:$0xff]  ;;  %v4891_v9 = vld [vmem:[%s8606_s7 + $0x338] sm:$0xff] }
 0x4c3   :  { %v6459_v60 = vmul.f32 -1.442695, %v7975_v3  ;;  %5018 = vmatpush.msrb.mxu1 %v4881_v57 }
 0x4c4   :  { %4979 = vmatpush.msra.mxu3 %v4848_v16  ;;  %v4875_v16 = vld [vmem:[%s8606_s7 + $0x2b8] sm:$0xff] }
 0x4c5   :  { %6590 = vpow2.f32 %v6459_v60  ;;  %5019 = vmatpush.msrb.mxu1 %v4880_v51 }
 0x4c6   :  { %4980 = vmatpush.msra.mxu3 %v4847_v8 }
 0x4c7   :  { %5020 = vmatpush.msrb.mxu1 %v4879_v6 }
 0x4c8   :  { %4981 = vmatpush.msra.mxu3 %v4846_v12  ;;  %v3977_v12 = vperm.slane %v7816_v43, 5 }
 0x4c9   :  { %5021 = vmatpush.msrb.mxu1 %v4878_v52 }
 0x4ca   :  { %4982 = vmatpush.msra.mxu3 %v4845_v10  ;;  %v4873_v10 = vld [vmem:[%s8606_s7 + $0x2a8] sm:$0xff]  ;;  %v4406_v56 = vadd.f32 %v4405_v11, %v3977_v12  ;;  %v4915_v12 = vld [vmem:[%s8606_s7 + $0x3f8] sm:$0xff] }
 0x4cb   :  { %v6591_v63 = vpop.eup %6590  ;;  %5022 = vmatpush.msrb.mxu1 %v4877_v55  ;;  %v4885_v55 = vld [vmem:[%s8606_s7 + $0x308] sm:$0xff] }
 0x4cc   :  { %v4655_v5 = vadd.f32 1.0, %v6591_v63  ;;  %4983 = vmatpush.msra.mxu3 %v4844_v59  ;;  %v4913_v11 = vld [vmem:[%s8606_s7 + $0x3e8] sm:$0xff] }
 0x4ce   :  { %6592 = vrcp.f32 %v4655_v5  ;;  %4984 = vmatpush.msra.mxu3 %v4843_v22  ;;  %v4716_v23 = vand.u32 2147483648, %v4655_v5  ;;  %v4714_v38 = vand.u32 2147483647, %v4655_v5  ;;  %vm4710_vm13 = vweird.f32 %v4655_v5  ;;  %v4872_v22 = vld [vmem:[%s8606_s7 + $0x2a0] sm:$0xff] }
 0x4d0   :  { %4985 = vmatpush.msra.mxu3 %v4842_v26  ;;  %v4717_v58 = vor.u32 1.1754944e-38, %v4716_v23  ;;  %vm4715_vm15 = vcmp.eq.f32.partialorder %v4714_v38, 8.507059e+37  ;;  %v4898_v23 = vld [vmem:[%s8606_s7 + $0x370] sm:$0xff]  ;;  %v4895_v38 = vld [vmem:[%s8606_s7 + $0x358] sm:$0xff] }
 0x4d2   :  { %4986 = vmatpush.msra.mxu3 %v4841_v39  ;;  %v4445_v39 = vpop.f32.mrf.mxu2 }
 0x4d4   :  { %v6593_v37 = vpop.eup %6592  ;;  %4987 = vmatpush.msra.mxu3 %v4840_v29 }
 0x4d5   :  { %v4706_v45 = vmul.f32 %v6593_v37, %v4655_v5  ;;  %vm4711_vm12 = vweird.f32 %v6593_v37  ;;  %v4425_v5 = vpop.f32.mrf.mxu1 }
 0x4d6   :  { %4988 = vmatpush.msra.mxu3 %v4839_v18  ;;  %vm4712_vm14 = vmor %vm4710_vm13, %vm4711_vm12  ;;  %v4426_v29 = vadd.f32 %v4425_v5, %v4406_v56  ;;  %v4870_v18 = vld [vmem:[%s8606_s7 + $0x290] sm:$0xff]  ;;  %v4909_v56 = vld [vmem:[%s8606_s7 + $0x3c8] sm:$0xff] }
 0x4d7   :  { %v4707_v40 = vsub.f32 1.0, %v4706_v45 }
 0x4d8   :  { %4989 = vmatpush.msra.mxu3 %v4838_v28  ;;  %v4446_v31 = vadd.f32 %v4445_v39, %v4426_v29  ;;  %v4869_v28 = vld [vmem:[%s8606_s7 + $0x288] sm:$0xff]  ;;  %v4906_v39 = vld [vmem:[%s8606_s7 + $0x3b0] sm:$0xff] }
 0x4d9   :  { %v4708_v27 = vmul.f32 %v6593_v37, %v4707_v40  ;;  %v4868_v40 = vld [vmem:[%s8606_s7 + $0x280] sm:$0xff] }
 0x4da   :  { %4990 = vmatpush.msra.mxu3 %v4837_v21  ;;  %v4899_v21 = vld [vmem:[%s8606_s7 + $0x378] sm:$0xff] }
 0x4db   :  { %v4709_v61 = vadd.f32 %v6593_v37, %v4708_v27  ;;  %5036 = vmatpush.msrb.mxu2 %v4899_v21  ;;  %v4896_v27 = vld [vmem:[%s8606_s7 + $0x360] sm:$0xff] }
 0x4dc   :  { %4991 = vmatpush.msra.mxu3 %v4836_v24 }
 0x4dd   :  { %v4713_v19 = vsel %vm4712_vm14, %v6593_v37, %v4709_v61  ;;  %5037 = vmatpush.msrb.mxu2 %v4898_v23  ;;  %v4892_v61 = vld [vmem:[%s8606_s7 + $0x340] sm:$0xff]  ;;  %v4505_v35 = vpop.f32.mrf.mxu1 }
 0x4de   :  { %v4718_v49 = vsel %vm4715_vm15, %v4717_v58, %v4713_v19  ;;  %v4889_v19 = vld [vmem:[%s8606_s7 + $0x328] sm:$0xff]  ;;  %5056 = vmatpush.msrb.mxu3 %v4915_v12  ;;  %v5088_v12 = vld [vmem:[#allocation12 + $0x60] sm:$0xff] }
 0x4df   :  { %v4783_v0 = vmul.f32 %v4718_v49, %v7975_v3  ;;  %v4876_v3 = vld [vmem:[%s8606_s7 + $0x2c0] sm:$0xff]  ;;  %5038 = vmatpush.msrb.mxu2 %v4897_v25  ;;  %v3978_v49 = vperm.slane %v7816_v43, 6 }
 0x4e0   :  { %v4385_v1 = vpop.f32.mrf.mxu3  ;;  %5023 = vmatpush.msrb.mxu1 %v4876_v3 }
 0x4e1   :  { %v4386_v34 = vadd.f32 %v4385_v1, %v4366_v62  ;;  %4992 = vmatmul.f32.vlgmr.msra.gmra.mxu3 %v4783_v0  ;;  %5039 = vmatpush.msrb.mxu2 %v4896_v27  ;;  %v4485_v62 = vpop.f32.mrf.mxu0  ;;  %v4525_v57 = vpop.f32.mrf.mxu2 }
 0x4e2   :  { %5024 = vmatpush.msrb.mxu1 %v4875_v16  ;;  %v4486_v14 = vadd.f32 %v4485_v62, %v3978_v49  ;;  %v8219_v49 = vld [vmem:[#allocation15 + $0x8] sm:$0xff]  ;;  %v8225_v62 = vld [vmem:[#allocation18 + $0x10] sm:$0xff] }
 0x4e3   :  { %v6460_v20 = vmul.f32 -1.442695, %v4386_v34  ;;  %5040 = vmatpush.msrb.mxu2 %v4895_v38 }
 0x4e4   :  { %5025 = vmatpush.msrb.mxu1 %v4874_v17  ;;  %v4506_v6 = vadd.f32 %v4505_v35, %v4486_v14  ;;  %v7153_v35 = vmov 0.0  }
 0x4e5   :  { %6594 = vpow2.f32 %v6460_v20  ;;  %5041 = vmatpush.msrb.mxu2 %v4894_v13  ;;  %v4887_v20 = vld [vmem:[%s8606_s7 + $0x318] sm:$0xff]  ;;  %v4585_v21 = vpop.f32.mrf.mxu1 }
 0x4e6   :  { %5026 = vmatpush.msrb.mxu1 %v4873_v10  ;;  %v4526_v3 = vadd.f32 %v4525_v57, %v4506_v6  ;;  %v4914_v10 = vld [vmem:[%s8606_s7 + $0x3f0] sm:$0xff] }
 0x4e7   :  { %5042 = vmatpush.msrb.mxu2 %v4893_v54  ;;  %5057 = vmatpush.msrb.mxu3 %v4914_v10  ;;  %v8211_v54 = vld [vmem:[#allocation15 + $0x18] sm:$0xff]  ;;  %v5086_v10 = vld [vmem:[#allocation12 + $0x50] sm:$0xff] }
 0x4e8   :  { %5027 = vmatpush.msrb.mxu1 %v4872_v22  ;;  %v4910_v22 = vld [vmem:[%s8606_s7 + $0x3d0] sm:$0xff] }
 0x4e9   :  { %5043 = vmatpush.msrb.mxu2 %v4892_v61  ;;  %5058 = vmatpush.msrb.mxu3 %v4913_v11  ;;  %v5087_v11 = vld [vmem:[#allocation12 + $0x58] sm:$0xff] }
 0x4ea   :  { %5028 = vmatpush.msrb.mxu1 %v4871_v15  ;;  %v4907_v15 = vld [vmem:[%s8606_s7 + $0x3b8] sm:$0xff] }
 0x4eb   :  { %v6595_v48 = vpop.eup %6594  ;;  %5044 = vmatpush.msrb.mxu2 %v4891_v9 }
 0x4ec   :  { %v4656_v7 = vadd.f32 1.0, %v6595_v48  ;;  %5029 = vmatpush.msrb.mxu1 %v4870_v18  ;;  %v4886_v48 = vld [vmem:[%s8606_s7 + $0x310] sm:$0xff]  ;;  %v3979_v18 = vperm.slane %v7816_v43, 7 }
 0x4ed   :  { %5045 = vmatpush.msrb.mxu2 %v4890_v41  ;;  %v4902_v43 = vld [vmem:[%s8606_s7 + $0x390] sm:$0xff] }
 0x4ee   :  { %6596 = vrcp.f32 %v4656_v7  ;;  %v4731_v59 = vand.u32 2147483648, %v4656_v7  ;;  %v4729_v63 = vand.u32 2147483647, %v4656_v7  ;;  %vm4725_vm1 = vweird.f32 %v4656_v7  ;;  %5030 = vmatpush.msrb.mxu1 %v4869_v28 }
 0x4ef   :  { %5046 = vmatpush.msrb.mxu2 %v4889_v19 }
 0x4f0   :  { %v4732_v53 = vor.u32 1.1754944e-38, %v4731_v59  ;;  %vm4730_vm3 = vcmp.eq.f32.partialorder %v4729_v63, 8.507059e+37  ;;  %5031 = vmatpush.msrb.mxu1 %v4868_v40  ;;  %v4912_v59 = vld [vmem:[%s8606_s7 + $0x3e0] sm:$0xff]  ;;  %v4903_v40 = vld [vmem:[%s8606_s7 + $0x398] sm:$0xff] }
 0x4f1   :  { %5047 = vmatpush.msrb.mxu2 %v4888_v36  ;;  %5059 = vmatpush.msrb.mxu3 %v4912_v59  ;;  %v8227_v36 = vld [vmem:[#allocation15] sm:$0xff] }
 0x4f2   :  { %v5084_v59 = vld [vmem:[#allocation12 + $0x40] sm:$0xff] }
 0x4f3   :  { %5048 = vmatpush.msrb.mxu2 %v4887_v20 }
 0x4f4   :  { %v6597_v60 = vpop.eup %6596 }
 0x4f5   :  { %v4721_v8 = vmul.f32 %v6597_v60, %v4656_v7  ;;  %vm4726_vm0 = vweird.f32 %v6597_v60  ;;  %5049 = vmatpush.msrb.mxu2 %v4886_v48 }
 0x4f6   :  { %vm4727_vm2 = vmor %vm4725_vm1, %vm4726_vm0  ;;  %vm5098_vm0 = vcmask 523264  }
 0x4f7   :  { %v4722_v33 = vsub.f32 1.0, %v4721_v8  ;;  %5050 = vmatpush.msrb.mxu2 %v4885_v55  ;;  %v4884_v8 = vld [vmem:[%s8606_s7 + $0x300] sm:$0xff] }
 0x4f9   :  { %v4723_v50 = vmul.f32 %v6597_v60, %v4722_v33  ;;  %5051 = vmatpush.msrb.mxu2 %v4884_v8  ;;  %v5090_v8 = vld [vmem:[#allocation12 + $0x70] sm:$0xff] }
 0x4fa   :  { %5110 = vmatpush.msra.mxu0 %v5090_v8 }
 0x4fb   :  { %v4724_v26 = vadd.f32 %v6597_v60, %v4723_v50  ;;  %v4911_v50 = vld [vmem:[%s8606_s7 + $0x3d8] sm:$0xff]  ;;  %5168 = vmatpush.msra.mxu2 %v8211_v54 }
 0x4fc   :  { %5060 = vmatpush.msrb.mxu3 %v4911_v50  ;;  %5111 = vmatpush.msra.mxu0 %v5088_v12  ;;  %v5085_v50 = vld [vmem:[#allocation12 + $0x48] sm:$0xff] }
 0x4fd   :  { %v4728_v46 = vsel %vm4727_vm2, %v6597_v60, %v4724_v26  ;;  %v4908_v26 = vld [vmem:[%s8606_s7 + $0x3c0] sm:$0xff] }
 0x4fe   :  { %v4733_v37 = vsel %vm4730_vm3, %v4732_v53, %v4728_v46  ;;  %5061 = vmatpush.msrb.mxu3 %v4910_v22  ;;  %v4905_v46 = vld [vmem:[%s8606_s7 + $0x3a8] sm:$0xff]  ;;  %5112 = vmatpush.msra.mxu0 %v5086_v10  ;;  %v5083_v22 = vld [vmem:[#allocation12 + $0x38] sm:$0xff] }
 0x4ff   :  { %v4784_v45 = vmul.f32 %v4733_v37, %v4386_v34 }
 0x500   :  { %v4465_v44 = vpop.f32.mrf.mxu3  ;;  %5062 = vmatpush.msrb.mxu3 %v4909_v56  ;;  %5113 = vmatpush.msra.mxu0 %v5084_v59  ;;  %v5081_v56 = vld [vmem:[#allocation12 + $0x28] sm:$0xff] }
 0x501   :  { %v4466_v4 = vadd.f32 %v4465_v44, %v4446_v31  ;;  %5012 = vmatmul.f32.vlgmr.msrb.gmra.mxu0 %v4784_v45  ;;  %v4904_v31 = vld [vmem:[%s8606_s7 + $0x3a0] sm:$0xff]  ;;  %v4565_v45 = vpop.f32.mrf.mxu0  ;;  %v4605_v25 = vpop.f32.mrf.mxu2 }
 0x502   :  { %5063 = vmatpush.msrb.mxu3 %v4908_v26 }
 0x503   :  { %v6461_v47 = vmul.f32 -1.442695, %v4466_v4 }
 0x504   :  { %5064 = vmatpush.msrb.mxu3 %v4907_v15  ;;  %v5078_v15 = vld [vmem:[#allocation12 + $0x10] sm:$0xff] }
 0x505   :  { %6598 = vpow2.f32 %v6461_v47  ;;  %v4566_v47 = vadd.f32 %v4565_v45, %v3979_v18  ;;  %v8258_v18 = vld [vmem:[#allocation16] sm:$0x1] }
 0x506   :  { %5065 = vmatpush.msrb.mxu3 %v4906_v39  ;;  %v5079_v39 = vld [vmem:[#allocation12 + $0x18] sm:$0xff] }
 0x507   :  { %v4586_v38 = vadd.f32 %v4585_v21, %v4566_v47 }
 0x508   :  { %5066 = vmatpush.msrb.mxu3 %v4905_v46  ;;  %v5077_v46 = vld [vmem:[#allocation12 + $0x8] sm:$0xff] }
 0x509   :  { %v4606_v61 = vadd.f32 %v4605_v25, %v4586_v38 }
 0x50a   :  { %5067 = vmatpush.msrb.mxu3 %v4904_v31 }
 0x50b   :  { %v6599_v24 = vpop.eup %6598 }
 0x50c   :  { %v4657_v42 = vadd.f32 1.0, %v6599_v24  ;;  %5068 = vmatpush.msrb.mxu3 %v4903_v40 }
 0x50e   :  { %6600 = vrcp.f32 %v4657_v42  ;;  %v4746_v0 = vand.u32 2147483648, %v4657_v42  ;;  %v4744_v34 = vand.u32 2147483647, %v4657_v42  ;;  %vm4740_vm5 = vweird.f32 %v4657_v42  ;;  %5069 = vmatpush.msrb.mxu3 %v4902_v43 }
 0x510   :  { %v4747_v51 = vor.u32 1.1754944e-38, %v4746_v0  ;;  %vm4745_vm7 = vcmp.eq.f32.partialorder %v4744_v34, 8.507059e+37  ;;  %v8233_v34 = vld [vmem:[#allocation18] sm:$0xff] }
 0x514   :  { %v6601_v58 = vpop.eup %6600 }
 0x515   :  { %v4736_v32 = vmul.f32 %v6601_v58, %v4657_v42  ;;  %vm4741_vm4 = vweird.f32 %v6601_v58  ;;  %v4901_v42 = vld [vmem:[%s8606_s7 + $0x388] sm:$0xff] }
 0x516   :  { %vm4742_vm6 = vmor %vm4740_vm5, %vm4741_vm4  ;;  %5070 = vmatpush.msrb.mxu3 %v4901_v42  ;;  %v8271_v42 = vld [vmem:[#allocation19] sm:$0x1] }
 0x517   :  { %v4737_v30 = vsub.f32 1.0, %v4736_v32  ;;  %v8217_v32 = vld [vmem:[#allocation15 + $0x10] sm:$0xff] }
 0x518   :  { %5169 = vmatpush.msra.mxu2 %v8217_v32 }
 0x519   :  { %v4738_v1 = vmul.f32 %v6601_v58, %v4737_v30  ;;  %v8221_v30 = vld [vmem:[#allocation18 + $0x18] sm:$0xff] }
 0x51a   :  { %5170 = vmatpush.msra.mxu2 %v8219_v49 }
 0x51b   :  { %v4739_v2 = vadd.f32 %v6601_v58, %v4738_v1  ;;  %v8231_v1 = vld [vmem:[#allocation18 + $0x8] sm:$0xff] }
 0x51c   :  { %5171 = vmatpush.msra.mxu2 %v8227_v36 }
 0x51d   :  { %v4743_v7 = vsel %vm4742_vm6, %v6601_v58, %v4739_v2  ;;  %v4900_v58 = vld [vmem:[%s8606_s7 + $0x380] sm:$0xff]  ;;  %s7154_s7 = smov 96  }
 0x51e   :  { %v4748_v52 = vsel %vm4745_vm7, %v4747_v51, %v4743_v7  ;;  %5071 = vmatpush.msrb.mxu3 %v4900_v58  ;;  %v4933_v45 = vpop.f32.mrf.mxu0  ;;  %v8284_v58 = vld [vmem:[#allocation13] sm:$0x3] }
 0x51f   :  { %v4785_v16 = vmul.f32 %v4748_v52, %v4466_v4 }
 0x520   :  { %v4545_v60 = vpop.f32.mrf.mxu3  ;;  %5188 = vmatpush.msra.mxu3 %v8221_v30 }
 0x521   :  { %v4546_v17 = vadd.f32 %v4545_v60, %v4526_v3  ;;  %5032 = vmatmul.f32.vlgmr.msrb.gmra.mxu1 %v4785_v16 }
 0x522   :  { %5189 = vmatpush.msra.mxu3 %v8225_v62 }
 0x523   :  { %v6462_v33 = vmul.f32 -1.442695, %v4546_v17 }
 0x524   :  { %5190 = vmatpush.msra.mxu3 %v8231_v1 }
 0x525   :  { %6602 = vpow2.f32 %v6462_v33  ;;  %v5089_v33 = vld [vmem:[#allocation12 + $0x68] sm:$0xff] }
 0x526   :  { %5191 = vmatpush.msra.mxu3 %v8233_v34 }
 0x52b   :  { %v6603_v63 = vpop.eup %6602 }
 0x52c   :  { %v4658_v5 = vadd.f32 1.0, %v6603_v63  ;;  %v5082_v63 = vld [vmem:[#allocation12 + $0x30] sm:$0xff] }
 0x52d   :  { %5114 = vmatpush.msra.mxu0 %v5082_v63 }
 0x52e   :  { %6604 = vrcp.f32 %v4658_v5  ;;  %v4761_v28 = vand.u32 2147483648, %v4658_v5  ;;  %v4759_v4 = vand.u32 2147483647, %v4658_v5  ;;  %vm4755_vm9 = vweird.f32 %v4658_v5 }
 0x530   :  { %v4762_v27 = vor.u32 1.1754944e-38, %v4761_v28  ;;  %vm4760_vm11 = vcmp.eq.f32.partialorder %v4759_v4, 8.507059e+37  ;;  %v4953_v28 = vpop.f32.mrf.mxu1 }
 0x534   :  { %v6605_v53 = vpop.eup %6604 }
 0x535   :  { %v4751_v29 = vmul.f32 %v6605_v53, %v4658_v5  ;;  %vm4756_vm8 = vweird.f32 %v6605_v53  ;;  %v5080_v5 = vld [vmem:[#allocation12 + $0x20] sm:$0xff] }
 0x536   :  { %vm4757_vm10 = vmor %vm4755_vm9, %vm4756_vm8  ;;  %5115 = vmatpush.msra.mxu0 %v5080_v5  ;;  %vm5152_vm9 = vcmask 261120  }
 0x537   :  { %v4752_v37 = vsub.f32 1.0, %v4751_v29  ;;  %v5076_v29 = vld [vmem:[#allocation12] sm:$0xff] }
 0x538   :  { %5116 = vmatpush.msra.mxu0 %v5078_v15 }
 0x539   :  { %v4753_v44 = vmul.f32 %v6605_v53, %v4752_v37 }
 0x53a   :  { %5117 = vmatpush.msra.mxu0 %v5076_v29 }
 0x53b   :  { %v4754_v23 = vadd.f32 %v6605_v53, %v4753_v44  ;;  %v4954_v44 = vadd.f32 %v4953_v28, %v4933_v45 }
 0x53c   :  { %5473 = vmatpush.msrb.mxu0 %v8211_v54 }
 0x53d   :  { %v4758_v24 = vsel %vm4757_vm10, %v6605_v53, %v4754_v23 }
 0x53e   :  { %v4763_v13 = vsel %vm4760_vm11, %v4762_v27, %v4758_v24  ;;  %5474 = vmatpush.msrb.mxu0 %v8217_v32 }
 0x53f   :  { %v4786_v9 = vmul.f32 %v4763_v13, %v4546_v17  ;;  %v5091_v17 = vld [vmem:[#allocation12 + $0x78] sm:$0xff] }
 0x540   :  { %v4625_v41 = vpop.f32.mrf.mxu3  ;;  %5130 = vmatpush.msra.mxu1 %v5091_v17  ;;  %5475 = vmatpush.msrb.mxu0 %v8219_v49 }
 0x541   :  { %v4626_v19 = vadd.f32 %v4625_v41, %v4606_v61  ;;  %5052 = vmatmul.f32.vlgmr.msrb.gmra.mxu2 %v4786_v9  ;;  %v5094_v41 = vperm.slane %v8284_v58, 0 }
 0x542   :  { %5315 = vmatpush.msrb.mxu2 %v8211_v54  ;;  %5131 = vmatpush.msra.mxu1 %v5089_v33 }
 0x543   :  { %v6463_v0 = vmul.f32 -1.442695, %v4626_v19  ;;  %5476 = vmatpush.msrb.mxu0 %v8227_v36 }
 0x544   :  { %5316 = vmatpush.msrb.mxu2 %v8217_v32  ;;  %5132 = vmatpush.msra.mxu1 %v5087_v11  ;;  %v4973_v26 = vpop.f32.mrf.mxu2 }
 0x545   :  { %6606 = vpow2.f32 %v6463_v0  ;;  %v4974_v40 = vadd.f32 %v4973_v26, %v4954_v44 }
 0x546   :  { %5317 = vmatpush.msrb.mxu2 %v8219_v49  ;;  %5133 = vmatpush.msra.mxu1 %v5085_v50 }
 0x548   :  { %5318 = vmatpush.msrb.mxu2 %v8227_v36  ;;  %5134 = vmatpush.msra.mxu1 %v5083_v22 }
 0x549   :  { %5172 = vmatmul.f32.vlgmr.msra.gmra.mxu2 %v7153_v35 }
 0x54a   :  { %5631 = vmatpush.msra.mxu2 %v8211_v54  ;;  %5135 = vmatpush.msra.mxu1 %v5081_v56 }
 0x54b   :  { %v6607_v20 = vpop.eup %6606 }
 0x54c   :  { %v4659_v14 = vadd.f32 1.0, %v6607_v20  ;;  %5632 = vmatpush.msra.mxu2 %v8217_v32  ;;  %5136 = vmatpush.msra.mxu1 %v5079_v39 }
 0x54e   :  { %6608 = vrcp.f32 %v4659_v14  ;;  %5633 = vmatpush.msra.mxu2 %v8219_v49  ;;  %v4776_v48 = vand.u32 2147483648, %v4659_v14  ;;  %v4774_v7 = vand.u32 2147483647, %v4659_v14  ;;  %vm4770_vm13 = vweird.f32 %v4659_v14  ;;  %5137 = vmatpush.msra.mxu1 %v5077_v46 }
 0x550   :  { %5634 = vmatpush.msra.mxu2 %v8227_v36  ;;  %v4777_v55 = vor.u32 1.1754944e-38, %v4776_v48  ;;  %vm4775_vm15 = vcmp.eq.f32.partialorder %v4774_v7, 8.507059e+37  ;;  %5497 = vmatpush.msrb.mxu1 %v8221_v30 }
 0x552   :  { %5498 = vmatpush.msrb.mxu1 %v8225_v62 }
 0x554   :  { %v6609_v2 = vpop.eup %6608  ;;  %5499 = vmatpush.msrb.mxu1 %v8231_v1 }
 0x555   :  { %v4766_v57 = vmul.f32 %v6609_v2, %v4659_v14  ;;  %vm4771_vm12 = vweird.f32 %v6609_v2 }
 0x556   :  { %vm4772_vm14 = vmor %vm4770_vm13, %vm4771_vm12  ;;  %5500 = vmatpush.msrb.mxu1 %v8233_v34 }
 0x557   :  { %v4767_v51 = vsub.f32 1.0, %v4766_v57 }
 0x559   :  { %v4768_v6 = vmul.f32 %v6609_v2, %v4767_v51 }
 0x55b   :  { %v4769_v52 = vadd.f32 %v6609_v2, %v4768_v6 }
 0x55d   :  { %v4773_v3 = vsel %vm4772_vm14, %v6609_v2, %v4769_v52 }
 0x55e   :  { %v4778_v16 = vsel %vm4775_vm15, %v4777_v55, %v4773_v3 }
 0x55f   :  { %v4787_v60 = vmul.f32 %v4778_v16, %v4626_v19 }
 0x561   :  { %5072 = vmatmul.f32.vlgmr.msrb.gmra.mxu3 %v4787_v60 }
 0x562   :  { %5339 = vmatpush.msrb.mxu3 %v8221_v30 }
 0x564   :  { %5340 = vmatpush.msrb.mxu3 %v8225_v62  ;;  %v4993_v4 = vpop.f32.mrf.mxu3 }
 0x565   :  { %v4994_v47 = vadd.f32 %v4993_v4, %v4974_v40 }
 0x566   :  { %5341 = vmatpush.msrb.mxu3 %v8231_v1 }
 0x568   :  { %5342 = vmatpush.msrb.mxu3 %v8233_v34 }
 0x569   :  { %5192 = vmatmul.f32.vlgmr.msra.gmra.mxu3 %v7153_v35 }
 0x56a   :  { %5655 = vmatpush.msra.mxu3 %v8221_v30 }
 0x56c   :  { %5656 = vmatpush.msra.mxu3 %v8225_v62 }
 0x56e   :  { %5657 = vmatpush.msra.mxu3 %v8231_v1 }
 0x570   :  { %5658 = vmatpush.msra.mxu3 %v8233_v34 }
 0x57e   :  { %v5013_v21 = vpop.f32.mrf.mxu0 }
 0x57f   :  { %v5014_v43 = vadd.f32 %v5013_v21, %v4994_v47 }
 0x59e   :  { %v5033_v23 = vpop.f32.mrf.mxu1 }
 0x59f   :  { %v5034_v25 = vadd.f32 %v5033_v23, %v5014_v43  ;;  %v5095_v23 = vperm.slane %v8284_v58, 1 }
 0x5c4   :  { %v5053_v53 = vpop.f32.mrf.mxu2 }
 0x5c5   :  { %v5054_v27 = vadd.f32 %v5053_v53, %v5034_v25 }
 0x5cc   :  { %v5173_v37 = vpop.f32.mrf.mxu2 }
 0x5cd   :  { %v8263_v31 = vadd.f32 %v5173_v37, %v8258_v18 }
 0x5cf   :  { %5217 = vrot.lane.b32.xlu0 %v8263_v31, %s7141_s15 }
 0x5e4   :  { %v5073_v38 = vpop.f32.mrf.mxu3 }
 0x5e5   :  { %v5074_v24 = vadd.f32 %v5073_v38, %v5054_v27 }
 0x5e7   :  { %6464 = vmatmul.msk.f32.vlgmr.msra.gmra.mxu0 %vm5098_vm0, %v5074_v24  ;;  %6465 = vmatmul.msk.f32.vlgmr.msra.gmra.mxu1 %vm5098_vm0, %v5074_v24 }
 0x5e8   :  { %5889 = vmatpush.msra.mxu0 %v8211_v54  ;;  %5913 = vmatpush.msra.mxu1 %v8221_v30 }
 0x5ea   :  { %5890 = vmatpush.msra.mxu0 %v8217_v32  ;;  %5914 = vmatpush.msra.mxu1 %v8225_v62 }
 0x5ec   :  { %v5193_v13 = vpop.f32.mrf.mxu3  ;;  %5891 = vmatpush.msra.mxu0 %v8219_v49  ;;  %5915 = vmatpush.msra.mxu1 %v8231_v1 }
 0x5ed   :  { %v8278_v61 = vadd.f32 %v5193_v13, %v8271_v42  ;;  %v5769_v13 = vrot.slane %v8263_v31, 4 }
 0x5ee   :  { %5892 = vmatpush.msra.mxu0 %v8227_v36  ;;  %5916 = vmatpush.msra.mxu1 %v8233_v34 }
 0x5ef   :  { %v5236_v9 = vrot.slane %v8278_v61, 5  ;;  %v5809_v58 = vrot.slane %v8278_v61, 1 }
 0x5f1   :  { %5237 = vrot.lane.b32.xlu0 %v5236_v9, %s7154_s7 }
 0x641   :  { %v5218_v60 = vpop.permute.xlu0 %5217 }
 0x663   :  { %v5238_v12 = vpop.permute.xlu0 %5237 }
 0x664   :  { %v5119_v19 = vpop.f32.mrf.mxu0  ;;  %v5139_v25 = vpop.f32.mrf.mxu1 }
 0x665   :  { %v8287_v0 = vadd.f32 %v5119_v19, %v5094_v41  ;;  %v8302_v27 = vadd.f32 %v5139_v25, %v5095_v23 }
 0x667   :  { %v5196_v35 = vadd.f32 %v8263_v31, %v8287_v0  ;;  %v5240_v33 = vadd.f32 %v5238_v12, %v8287_v0  ;;  %v5260_v41 = vadd.f32 %v5238_v12, %v8302_v27 }
 0x669   :  { %v6466_v20 = vmul.f32 -1.442695, %v5196_v35  ;;  %v6467_v10 = vmul.f32 -1.442695, %v5240_v33  ;;  %v6468_v19 = vmul.f32 -1.442695, %v5260_v41  ;;  %v5771_v33 = vadd.f32 %v5769_v13, %v8287_v0 }
 0x66b   :  { %6610 = vpow2.f32 %v6466_v20 }
 0x671   :  { %v6611_v14 = vpop.eup %6610 }
 0x672   :  { %v5200_v2 = vadd.f32 1.0, %v6611_v14 }
 0x674   :  { %6612 = vrcp.f32 %v5200_v2  ;;  %v5212_v6 = vand.u32 2147483648, %v5200_v2  ;;  %v5210_v52 = vand.u32 2147483647, %v5200_v2  ;;  %vm5206_vm2 = vweird.f32 %v5200_v2 }
 0x675   :  { %6614 = vpow2.f32 %v6467_v10  ;;  %v6484_v10 = vmul.f32 -1.442695, %v5771_v33 }
 0x676   :  { %v5213_v3 = vor.u32 1.1754944e-38, %v5212_v6  ;;  %vm5211_vm4 = vcmp.eq.f32.partialorder %v5210_v52, 8.507059e+37 }
 0x67a   :  { %v6613_v57 = vpop.eup %6612 }
 0x67b   :  { %v5202_v51 = vmul.f32 %v6613_v57, %v5200_v2  ;;  %vm5207_vm1 = vweird.f32 %v6613_v57  ;;  %v6615_v11 = vpop.eup %6614 }
 0x67c   :  { %vm5208_vm3 = vmor %vm5206_vm2, %vm5207_vm1  ;;  %v5244_v59 = vadd.f32 1.0, %v6615_v11 }
 0x67d   :  { %v5203_v48 = vsub.f32 1.0, %v5202_v51 }
 0x67e   :  { %6616 = vrcp.f32 %v5244_v59  ;;  %v5256_v53 = vand.u32 2147483648, %v5244_v59  ;;  %vm5250_vm6 = vweird.f32 %v5244_v59  ;;  %v5254_v29 = vand.u32 2147483647, %v5244_v59 }
 0x67f   :  { %v5204_v7 = vmul.f32 %v6613_v57, %v5203_v48 }
 0x680   :  { %v5257_v37 = vor.u32 1.1754944e-38, %v5256_v53  ;;  %vm5255_vm8 = vcmp.eq.f32.partialorder %v5254_v29, 8.507059e+37 }
 0x681   :  { %v5205_v55 = vadd.f32 %v6613_v57, %v5204_v7 }
 0x683   :  { %v5209_v16 = vsel %vm5208_vm3, %v6613_v57, %v5205_v55 }
 0x684   :  { %v5214_v8 = vsel %vm5211_vm4, %v5213_v3, %v5209_v16  ;;  %v6617_v50 = vpop.eup %6616 }
 0x685   :  { %v5220_v17 = vmul.f32 %v5218_v60, %v5214_v8  ;;  %v5246_v63 = vmul.f32 %v6617_v50, %v5244_v59  ;;  %vm5251_vm5 = vweird.f32 %v6617_v50  ;;  %v5227_v4 = vsub.f32 1.0, %v5214_v8 }
 0x686   :  { %vm5252_vm7 = vmor %vm5250_vm6, %vm5251_vm5  ;;  %v5233_v21 = vmul.f32 0.0, %v5214_v8 }
 0x687   :  { %5222 = vrot.lane.b32.xlu1 %v5220_v17, %s7141_s15  ;;  %v5247_v5 = vsub.f32 1.0, %v5246_v63 }
 0x689   :  { %v5248_v26 = vmul.f32 %v6617_v50, %v5247_v5 }
 0x68b   :  { %v5249_v15 = vadd.f32 %v6617_v50, %v5248_v26 }
 0x68d   :  { %v5253_v46 = vsel %vm5252_vm7, %v6617_v50, %v5249_v15 }
 0x68e   :  { %v5258_v28 = vsel %vm5255_vm8, %v5257_v37, %v5253_v46 }
 0x68f   :  { %5280 = vrot.lane.b32.xlu1 %v5236_v9, %s7144_s11 }
 0x6f9   :  { %v5223_v22 = vpop.permute.xlu1 %5222 }
 0x6fa   :  { %v5225_v56 = vadd.f32 %v5223_v22, %v8287_v0 }
 0x6fc   :  { %6618 = vtanh.f32 %v5225_v56 }
 0x701   :  { %v5281_v45 = vpop.permute.xlu1 %5280 }
 0x702   :  { %v6619_v39 = vpop.eup %6618  ;;  %v5283_v44 = vmul.f32 %v5281_v45, %v5258_v28 }
 0x703   :  { %5229 = vrot.lane.b32.xlu2 %v6619_v39, %s7154_s7 }
 0x70b   :  { %5285 = vrot.lane.b32.xlu2 %v5283_v44, %s7141_s15 }
 0x75d   :  { %v5230_v40 = vpop.permute.xlu2 %5229 }
 0x75e   :  { %v5232_v47 = vmul.f32 %v5230_v40, %v5227_v4 }
 0x760   :  { %v8298_v43 = vadd.f32 %v5233_v21, %v5232_v47 }
 0x762   :  { %5299 = vrot.lane.b32.xlu0 %v8298_v43, %s7154_s7 }
 0x765   :  { %v5286_v38 = vpop.permute.xlu2 %5285 }
 0x766   :  { %v5288_v24 = vadd.f32 %v5286_v38, %v8302_v27 }
 0x768   :  { %6620 = vtanh.f32 %v5288_v24 }
 0x769   :  { %6622 = vpow2.f32 %v6468_v19 }
 0x76a   :  { %5791 = vrot.lane.b32.xlu0 %v5769_v13, %s7141_s15 }
 0x76e   :  { %v6621_v9 = vpop.eup %6620 }
 0x76f   :  { %5292 = vrot.lane.b32.xlu1 %v6621_v9, %s7154_s7  ;;  %v6623_v35 = vpop.eup %6622 }
 0x770   :  { %v5264_v20 = vadd.f32 1.0, %v6623_v35 }
 0x772   :  { %5810 = vrot.lane.b32.xlu0 %v5809_v58, %s7154_s7  ;;  %6624 = vrcp.f32 %v5264_v20  ;;  %v5276_v48 = vand.u32 2147483648, %v5264_v20  ;;  %vm5270_vm11 = vweird.f32 %v5264_v20  ;;  %v5274_v6 = vand.u32 2147483647, %v5264_v20 }
 0x773   :  { %6626 = vpow2.f32 %v6484_v10 }
 0x774   :  { %v5277_v52 = vor.u32 1.1754944e-38, %v5276_v48  ;;  %vm5275_vm13 = vcmp.eq.f32.partialorder %v5274_v6, 8.507059e+37 }
 0x778   :  { %v6625_v14 = vpop.eup %6624 }
 0x779   :  { %v5266_v31 = vmul.f32 %v6625_v14, %v5264_v20  ;;  %vm5271_vm10 = vweird.f32 %v6625_v14  ;;  %v6627_v11 = vpop.eup %6626 }
 0x77a   :  { %5853 = vrot.lane.b32.xlu0 %v5809_v58, %s7144_s11  ;;  %vm5272_vm12 = vmor %vm5270_vm11, %vm5271_vm10  ;;  %v5775_v59 = vadd.f32 1.0, %v6627_v11 }
 0x77b   :  { %v5267_v2 = vsub.f32 1.0, %v5266_v31 }
 0x77c   :  { %6628 = vrcp.f32 %v5775_v59  ;;  %v5787_v37 = vand.u32 2147483648, %v5775_v59  ;;  %vm5781_vm15 = vweird.f32 %v5775_v59  ;;  %v5785_v45 = vand.u32 2147483647, %v5775_v59 }
 0x77d   :  { %v5268_v57 = vmul.f32 %v6625_v14, %v5267_v2 }
 0x77e   :  { %v5788_v44 = vor.u32 1.1754944e-38, %v5787_v37  ;;  %vm5786_vm1 = vcmp.eq.f32.partialorder %v5785_v45, 8.507059e+37 }
 0x77f   :  { %v5269_v61 = vadd.f32 %v6625_v14, %v5268_v57 }
 0x781   :  { %v5273_v7 = vsel %vm5272_vm12, %v6625_v14, %v5269_v61 }
 0x782   :  { %v5278_v55 = vsel %vm5275_vm13, %v5277_v52, %v5273_v7  ;;  %v6629_v5 = vpop.eup %6628 }
 0x783   :  { %v5290_v3 = vsub.f32 1.0, %v5278_v55  ;;  %v5296_v60 = vmul.f32 0.0, %v5278_v55  ;;  %v5777_v56 = vmul.f32 %v6629_v5, %v5775_v59  ;;  %vm5782_vm14 = vweird.f32 %v6629_v5 }
 0x784   :  { %vm5783_vm0 = vmor %vm5781_vm15, %vm5782_vm14 }
 0x785   :  { %v5778_v26 = vsub.f32 1.0, %v5777_v56 }
 0x787   :  { %v5779_v15 = vmul.f32 %v6629_v5, %v5778_v26 }
 0x789   :  { %v5780_v29 = vadd.f32 %v6629_v5, %v5779_v15 }
 0x78b   :  { %v5784_v28 = vsel %vm5783_vm0, %v6629_v5, %v5780_v29 }
 0x78c   :  { %v8330_v40 = vsel %vm5786_vm1, %v5788_v44, %v5784_v28 }
 0x7d4   :  { %v5300_v51 = vpop.permute.xlu0 %5299 }
 0x7d5   :  { %6469 = vmatmul.msk.f32.vlgmr.msrb.gmra.mxu2 %vm5152_vm9, %v5300_v51 }
 0x7d6   :  { %6047 = vmatpush.msrb.mxu2 %v8211_v54 }
 0x7d8   :  { %6048 = vmatpush.msrb.mxu2 %v8217_v32 }
 0x7da   :  { %6049 = vmatpush.msrb.mxu2 %v8219_v49 }
 0x7dc   :  { %6050 = vmatpush.msrb.mxu2 %v8227_v36  ;;  %v5792_v4 = vpop.permute.xlu0 %5791 }
 0x7dd   :  { %v5794_v21 = vmul.f32 %v5792_v4, %v8330_v40 }
 0x7e1   :  { %v5293_v16 = vpop.permute.xlu1 %5292 }
 0x7e2   :  { %v5295_v8 = vmul.f32 %v5293_v16, %v5290_v3 }
 0x7e4   :  { %v8317_v17 = vadd.f32 %v5296_v60, %v5295_v8  ;;  %v8345_v7 = vpop.permute.xlu0 %5810 }
 0x7e5   :  { %v5813_v55 = vadd.f32 %v8345_v7, %v8287_v0 }
 0x7e6   :  { %v5324_v12 = vrot.slane %v8317_v17, 3 }
 0x7e7   :  { %v6485_v16 = vmul.f32 -1.442695, %v5813_v55 }
 0x7e8   :  { %6470 = vmatmul.msk.f32.vlgmr.msrb.gmra.mxu3 %vm5152_vm9, %v5324_v12 }
 0x7e9   :  { %6071 = vmatpush.msrb.mxu3 %v8221_v30 }
 0x7eb   :  { %6072 = vmatpush.msrb.mxu3 %v8225_v62 }
 0x7ed   :  { %6073 = vmatpush.msrb.mxu3 %v8231_v1 }
 0x7ef   :  { %6074 = vmatpush.msrb.mxu3 %v8233_v34 }
 0x858   :  { %v5320_v50 = vpop.f32.mrf.mxu2 }
 0x859   :  { %v5321_v63 = vadd.f32 %v5320_v50, %v8258_v18 }
 0x85b   :  { %v5348_v22 = vrot.slane %v5321_v63, 7 }
 0x85d   :  { %5370 = vrot.lane.b32.xlu2 %v5348_v22, %s7141_s15  ;;  %v5350_v47 = vadd.f32 %v5348_v22, %v8287_v0 }
 0x85f   :  { %v6471_v23 = vmul.f32 -1.442695, %v5350_v47 }
 0x861   :  { %6630 = vpow2.f32 %v6471_v23 }
 0x867   :  { %v6631_v25 = vpop.eup %6630 }
 0x868   :  { %v5354_v38 = vadd.f32 1.0, %v6631_v25 }
 0x86a   :  { %6632 = vrcp.f32 %v5354_v38  ;;  %v5366_v19 = vand.u32 2147483648, %v5354_v38  ;;  %vm5360_vm3 = vweird.f32 %v5354_v38  ;;  %v5364_v35 = vand.u32 2147483647, %v5354_v38 }
 0x86b   :  { %v5344_v39 = vpop.f32.mrf.mxu3 }
 0x86c   :  { %v5345_v53 = vadd.f32 %v5344_v39, %v8271_v42  ;;  %v5367_v14 = vor.u32 1.1754944e-38, %v5366_v19  ;;  %vm5365_vm5 = vcmp.eq.f32.partialorder %v5364_v35, 8.507059e+37  ;;  %v5807_v19 = vmul.f32 0.0, %v8330_v40 }
 0x86e   :  { %v5391_v46 = vrot.slane %v5345_v53, 6 }
 0x870   :  { %5392 = vrot.lane.b32.xlu1 %v5391_v46, %s7154_s7  ;;  %v6633_v24 = vpop.eup %6632 }
 0x871   :  { %v5356_v13 = vmul.f32 %v6633_v24, %v5354_v38  ;;  %vm5361_vm2 = vweird.f32 %v6633_v24 }
 0x872   :  { %vm5362_vm4 = vmor %vm5360_vm3, %vm5361_vm2 }
 0x873   :  { %v5357_v9 = vsub.f32 1.0, %v5356_v13  ;;  %v5854_v13 = vpop.permute.xlu0 %5853 }
 0x875   :  { %v5358_v58 = vmul.f32 %v6633_v24, %v5357_v9 }
 0x877   :  { %v5359_v41 = vadd.f32 %v6633_v24, %v5358_v58  ;;  %v5801_v58 = vsub.f32 1.0, %v8330_v40 }
 0x878   :  { %5796 = vrot.lane.b32.xlu1 %v5794_v21, %s7141_s15 }
 0x879   :  { %v5363_v20 = vsel %vm5362_vm4, %v6633_v24, %v5359_v41 }
 0x87a   :  { %v8335_v31 = vsel %vm5365_vm5, %v5367_v14, %v5363_v20 }
 0x8b7   :  { %v5371_v2 = vpop.permute.xlu2 %5370 }
 0x8b8   :  { %v5373_v57 = vmul.f32 %v5371_v2, %v8335_v31  ;;  %v5380_v2 = vsub.f32 1.0, %v8335_v31 }
 0x8ba   :  { %5375 = vrot.lane.b32.xlu2 %v5373_v57, %s7141_s15  ;;  %v5386_v57 = vrot.slane %v8298_v43, 7 }
 0x8c2   :  { %5435 = vrot.lane.b32.xlu2 %v5391_v46, %s7144_s11 }
 0x8e2   :  { %v8340_v51 = vpop.permute.xlu1 %5392 }
 0x8e3   :  { %v5395_v48 = vadd.f32 %v8340_v51, %v8287_v0 }
 0x8e5   :  { %v6472_v52 = vmul.f32 -1.442695, %v5395_v48  ;;  %v5388_v48 = vmul.f32 %v5386_v57, %v8335_v31  ;;  %v5415_v31 = vadd.f32 %v8340_v51, %v8302_v27 }
 0x8ea   :  { %v5797_v61 = vpop.permute.xlu1 %5796 }
 0x8eb   :  { %v5799_v6 = vadd.f32 %v5797_v61, %v8287_v0 }
 0x8ed   :  { %6634 = vtanh.f32 %v5799_v6 }
 0x8ee   :  { %6636 = vpow2.f32 %v6472_v52 }
 0x8ef   :  { %6638 = vpow2.f32 %v6485_v16 }
 0x8f3   :  { %v6635_v3 = vpop.eup %6634 }
 0x8f4   :  { %5803 = vrot.lane.b32.xlu2 %v6635_v3, %s7154_s7  ;;  %v6637_v60 = vpop.eup %6636 }
 0x8f5   :  { %v5399_v8 = vadd.f32 1.0, %v6637_v60  ;;  %v6639_v12 = vpop.eup %6638 }
 0x8f6   :  { %v5817_v33 = vadd.f32 1.0, %v6639_v12 }
 0x8f7   :  { %6640 = vrcp.f32 %v5399_v8  ;;  %v5411_v53 = vand.u32 2147483648, %v5399_v8  ;;  %vm5405_vm7 = vweird.f32 %v5399_v8  ;;  %v5409_v29 = vand.u32 2147483647, %v5399_v8 }
 0x8f8   :  { %6642 = vrcp.f32 %v5817_v33  ;;  %v5829_v28 = vand.u32 2147483648, %v5817_v33  ;;  %vm5823_vm12 = vweird.f32 %v5817_v33  ;;  %v5827_v44 = vand.u32 2147483647, %v5817_v33 }
 0x8f9   :  { %v5412_v45 = vor.u32 1.1754944e-38, %v5411_v53  ;;  %vm5410_vm11 = vcmp.eq.f32.partialorder %v5409_v29, 8.507059e+37 }
 0x8fa   :  { %v5830_v38 = vor.u32 1.1754944e-38, %v5829_v28  ;;  %vm5828_vm14 = vcmp.eq.f32.partialorder %v5827_v44, 8.507059e+37 }
 0x8fd   :  { %v6641_v10 = vpop.eup %6640 }
 0x8fe   :  { %v5401_v11 = vmul.f32 %v6641_v10, %v5399_v8  ;;  %v6643_v59 = vpop.eup %6642  ;;  %vm5406_vm6 = vweird.f32 %v6641_v10 }
 0x8ff   :  { %v5819_v63 = vmul.f32 %v6643_v59, %v5817_v33  ;;  %vm5407_vm8 = vmor %vm5405_vm7, %vm5406_vm6  ;;  %vm5824_vm10 = vweird.f32 %v6643_v59  ;;  %v5833_v33 = vadd.f32 %v8345_v7, %v8302_v27 }
 0x900   :  { %v5402_v50 = vsub.f32 1.0, %v5401_v11  ;;  %vm5825_vm13 = vmor %vm5823_vm12, %vm5824_vm10 }
 0x901   :  { %v5820_v5 = vsub.f32 1.0, %v5819_v63  ;;  %v6486_v11 = vmul.f32 -1.442695, %v5833_v33 }
 0x902   :  { %v5403_v22 = vmul.f32 %v6641_v10, %v5402_v50 }
 0x903   :  { %v5821_v39 = vmul.f32 %v6643_v59, %v5820_v5 }
 0x904   :  { %v5404_v15 = vadd.f32 %v6641_v10, %v5403_v22 }
 0x905   :  { %v5822_v37 = vadd.f32 %v6643_v59, %v5821_v39 }
 0x906   :  { %v5408_v46 = vsel %vm5407_vm8, %v6641_v10, %v5404_v15  ;;  %v6473_v10 = vmul.f32 -1.442695, %v5415_v31 }
 0x907   :  { %v5413_v4 = vsel %vm5410_vm11, %v5412_v45, %v5408_v46  ;;  %v5826_v25 = vsel %vm5825_vm13, %v6643_v59, %v5822_v37 }
 0x908   :  { %v5831_v24 = vsel %vm5828_vm14, %v5830_v38, %v5826_v25  ;;  %v5451_v25 = vrot.slane %v8317_v17, 1 }
 0x909   :  { %v5856_v9 = vmul.f32 %v5854_v13, %v5831_v24 }
 0x914   :  { %v5376_v56 = vpop.permute.xlu2 %5375 }
 0x915   :  { %v5378_v26 = vadd.f32 %v5376_v56, %v8287_v0 }
 0x917   :  { %6644 = vtanh.f32 %v5378_v26 }
 0x91c   :  { %v5436_v21 = vpop.permute.xlu2 %5435 }
 0x91d   :  { %v6645_v47 = vpop.eup %6644  ;;  %v5438_v23 = vmul.f32 %v5436_v21, %v5413_v4 }
 0x91e   :  { %5382 = vrot.lane.b32.xlu1 %v6645_v47, %s7154_s7 }
 0x91f   :  { %5440 = vrot.lane.b32.xlu0 %v5438_v23, %s7141_s15 }
 0x926   :  { %5858 = vrot.lane.b32.xlu1 %v5856_v9, %s7141_s15 }
 0x94e   :  { %v5804_v41 = vpop.permute.xlu2 %5803 }
 0x94f   :  { %v5806_v35 = vmul.f32 %v5804_v41, %v5801_v58 }
 0x951   :  { %v8356_v20 = vadd.f32 %v5807_v19, %v5806_v35 }
 0x953   :  { %v5872_v14 = vrot.slane %v8356_v20, 4 }
 0x955   :  { %5873 = vrot.lane.b32.xlu0 %v5872_v14, %s7154_s7 }
 0x990   :  { %v5383_v61 = vpop.permute.xlu1 %5382 }
 0x991   :  { %v5385_v6 = vmul.f32 %v5383_v61, %v5380_v2  ;;  %v5441_v52 = vpop.permute.xlu0 %5440 }
 0x992   :  { %v5443_v55 = vadd.f32 %v5441_v52, %v8302_v27 }
 0x993   :  { %v8364_v3 = vadd.f32 %v5388_v48, %v5385_v6 }
 0x994   :  { %6646 = vtanh.f32 %v5443_v55 }
 0x995   :  { %v5456_v40 = vrot.slane %v8364_v3, 1 }
 0x997   :  { %5457 = vrot.lane.b32.xlu2 %v5456_v40, %s7154_s7 }
 0x998   :  { %v5859_v16 = vpop.permute.xlu1 %5858 }
 0x999   :  { %v5861_v60 = vadd.f32 %v5859_v16, %v8302_v27 }
 0x99a   :  { %v6647_v8 = vpop.eup %6646 }
 0x99b   :  { %6648 = vtanh.f32 %v5861_v60  ;;  %5447 = vrot.lane.b32.xlu1 %v6647_v8, %s7154_s7 }
 0x99c   :  { %6650 = vpow2.f32 %v6473_v10 }
 0x99d   :  { %6652 = vpow2.f32 %v6486_v11 }
 0x9a1   :  { %v6649_v12 = vpop.eup %6648 }
 0x9a2   :  { %5865 = vrot.lane.b32.xlu2 %v6649_v12, %s7154_s7  ;;  %v6651_v59 = vpop.eup %6650 }
 0x9a3   :  { %v5419_v50 = vadd.f32 1.0, %v6651_v59  ;;  %v6653_v63 = vpop.eup %6652 }
 0x9a4   :  { %v5837_v22 = vadd.f32 1.0, %v6653_v63 }
 0x9a5   :  { %6654 = vrcp.f32 %v5419_v50  ;;  %v5431_v45 = vand.u32 2147483648, %v5419_v50  ;;  %vm5425_vm0 = vweird.f32 %v5419_v50 }
 0x9a6   :  { %6656 = vrcp.f32 %v5837_v22  ;;  %vm5843_vm3 = vweird.f32 %v5837_v22 }
 0x9a7   :  { %v5432_v44 = vor.u32 1.1754944e-38, %v5431_v45 }
 0x9ab   :  { %v6655_v56 = vpop.eup %6654 }
 0x9ac   :  { %v5421_v51 = vmul.f32 %v6655_v56, %v5419_v50  ;;  %v6657_v7 = vpop.eup %6656  ;;  %vm5426_vm15 = vweird.f32 %v6655_v56 }
 0x9ad   :  { %v5839_v15 = vmul.f32 %v6657_v7, %v5837_v22  ;;  %vm5427_vm1 = vmor %vm5425_vm0, %vm5426_vm15  ;;  %vm5844_vm2 = vweird.f32 %v6657_v7 }
 0x9ae   :  { %v5422_v39 = vsub.f32 1.0, %v5421_v51  ;;  %vm5845_vm5 = vmor %vm5843_vm3, %vm5844_vm2 }
 0x9af   :  { %v5840_v53 = vsub.f32 1.0, %v5839_v15 }
 0x9b0   :  { %v5423_v29 = vmul.f32 %v6655_v56, %v5422_v39 }
 0x9b1   :  { %v5841_v46 = vmul.f32 %v6657_v7, %v5840_v53 }
 0x9b2   :  { %v5424_v37 = vadd.f32 %v6655_v56, %v5423_v29 }
 0x9b4   :  { %v5428_v28 = vsel %vm5427_vm1, %v6655_v56, %v5424_v37 }
 0x9c7   :  { %v5874_v26 = vpop.permute.xlu0 %5873 }
 0x9f1   :  { %v5458_v5 = vpop.permute.xlu2 %5457 }
 0x9f2   :  { %6474 = vmatmul.msk.f32.vlgmr.msrb.gmra.mxu0 %vm5152_vm9, %v5458_v5 }
 0x9f3   :  { %6205 = vmatpush.msrb.mxu0 %v8211_v54  ;;  %v5429_v54 = vand.u32 2147483647, %v5419_v50 }
 0x9f5   :  { %6206 = vmatpush.msrb.mxu0 %v8217_v32  ;;  %v5842_v32 = vadd.f32 %v6657_v7, %v5841_v46  ;;  %vm5430_vm4 = vcmp.eq.f32.partialorder %v5429_v54, 8.507059e+37 }
 0x9f6   :  { %v5433_v4 = vsel %vm5430_vm4, %v5432_v44, %v5428_v28 }
 0x9f7   :  { %6207 = vmatpush.msrb.mxu0 %v8219_v49  ;;  %v5849_v49 = vand.u32 2147483648, %v5837_v22  ;;  %v5846_v21 = vsel %vm5845_vm5, %v6657_v7, %v5842_v32  ;;  %v5445_v23 = vsub.f32 1.0, %v5433_v4  ;;  %v5453_v13 = vmul.f32 %v5451_v25, %v5433_v4 }
 0x9f9   :  { %6208 = vmatpush.msrb.mxu0 %v8227_v36  ;;  %v5847_v36 = vand.u32 2147483647, %v5837_v22  ;;  %v5850_v47 = vor.u32 1.1754944e-38, %v5849_v49 }
 0x9fa   :  { %6487 = vmatmul.msk.f32.vlgmr.msra.gmra.mxu0 %vm5152_vm9, %v5874_v26 }
 0x9fb   :  { %vm5848_vm6 = vcmp.eq.f32.partialorder %v5847_v36, 8.507059e+37 }
 0x9fc   :  { %v5851_v38 = vsel %vm5848_vm6, %v5850_v47, %v5846_v21  ;;  %v5866_v58 = vpop.permute.xlu2 %5865 }
 0x9fd   :  { %v5863_v41 = vsub.f32 1.0, %v5851_v38  ;;  %v5869_v2 = vmul.f32 0.0, %v5851_v38 }
 0x9ff   :  { %v5868_v35 = vmul.f32 %v5866_v58, %v5863_v41 }
 0xa01   :  { %v8387_v57 = vadd.f32 %v5869_v2, %v5868_v35 }
 0xa03   :  { %v5898_v61 = vrot.slane %v8387_v57, 7 }
 0xa0d   :  { %v5448_v24 = vpop.permute.xlu1 %5447 }
 0xa0e   :  { %v5450_v9 = vmul.f32 %v5448_v24, %v5445_v23 }
 0xa10   :  { %v8382_v19 = vadd.f32 %v5453_v13, %v5450_v9 }
 0xa12   :  { %v5482_v14 = vrot.slane %v8382_v19, 2 }
 0xa14   :  { %6475 = vmatmul.msk.f32.vlgmr.msrb.gmra.mxu1 %vm5152_vm9, %v5482_v14 }
 0xa15   :  { %6229 = vmatpush.msrb.mxu1 %v8221_v30 }
 0xa17   :  { %6230 = vmatpush.msrb.mxu1 %v8225_v62 }
 0xa19   :  { %6231 = vmatpush.msrb.mxu1 %v8231_v1 }
 0xa1b   :  { %6232 = vmatpush.msrb.mxu1 %v8233_v34 }
 0xa1c   :  { %6488 = vmatmul.msk.f32.vlgmr.msra.gmra.mxu1 %vm5152_vm9, %v5898_v61 }
 0xa6f   :  { %v5478_v48 = vpop.f32.mrf.mxu0 }
 0xa70   :  { %v5479_v6 = vadd.f32 %v5478_v48, %v8258_v18 }
 0xa72   :  { %v5506_v52 = vrot.slane %v5479_v6, 6 }
 0xa74   :  { %5528 = vrot.lane.b32.xlu0 %v5506_v52, %s7141_s15  ;;  %v5508_v12 = vadd.f32 %v5506_v52, %v8287_v0 }
 0xa77   :  { %v5894_v55 = vpop.f32.mrf.mxu0 }
 0xa78   :  { %v5895_v30 = vadd.f32 %v5894_v55, %v8258_v18  ;;  %v6476_v18 = vmul.f32 -1.442695, %v5508_v12 }
 0xa7a   :  { %v5922_v40 = vrot.slane %v5895_v30, 3  ;;  %6658 = vpow2.f32 %v6476_v18 }
 0xa7c   :  { %5944 = vrot.lane.b32.xlu1 %v5922_v40, %s7141_s15  ;;  %v5924_v31 = vadd.f32 %v5922_v40, %v8287_v0 }
 0xa7e   :  { %v6489_v33 = vmul.f32 -1.442695, %v5924_v31 }
 0xa80   :  { %v6659_v10 = vpop.eup %6658  ;;  %6660 = vpow2.f32 %v6489_v33 }
 0xa81   :  { %v5512_v11 = vadd.f32 1.0, %v6659_v10 }
 0xa83   :  { %6662 = vrcp.f32 %v5512_v11  ;;  %v5524_v15 = vand.u32 2147483648, %v5512_v11  ;;  %vm5518_vm8 = vweird.f32 %v5512_v11  ;;  %v5522_v39 = vand.u32 2147483647, %v5512_v11 }
 0xa85   :  { %v5525_v46 = vor.u32 1.1754944e-38, %v5524_v15  ;;  %vm5523_vm11 = vcmp.eq.f32.partialorder %v5522_v39, 8.507059e+37 }
 0xa86   :  { %v6661_v59 = vpop.eup %6660 }
 0xa87   :  { %v5928_v50 = vadd.f32 1.0, %v6661_v59 }
 0xa89   :  { %v6663_v63 = vpop.eup %6662  ;;  %6664 = vrcp.f32 %v5928_v50  ;;  %v5940_v28 = vand.u32 2147483648, %v5928_v50  ;;  %vm5934_vm13 = vweird.f32 %v5928_v50  ;;  %v5938_v49 = vand.u32 2147483647, %v5928_v50 }
 0xa8a   :  { %vm5519_vm7 = vweird.f32 %v6663_v63 }
 0xa8b   :  { %vm5520_vm10 = vmor %vm5518_vm8, %vm5519_vm7  ;;  %v5941_v36 = vor.u32 1.1754944e-38, %v5940_v28  ;;  %vm5939_vm15 = vcmp.eq.f32.partialorder %v5938_v49, 8.507059e+37  ;;  %vm6345_vm8 = vcmask 1040384  }
 0xa8f   :  { %v6665_v5 = vpop.eup %6664 }
 0xa90   :  { %v5930_v51 = vmul.f32 %v6665_v5, %v5928_v50  ;;  %vm5935_vm12 = vweird.f32 %v6665_v5 }
 0xa91   :  { %v5502_v62 = vpop.f32.mrf.mxu1  ;;  %vm5936_vm14 = vmor %vm5934_vm13, %vm5935_vm12 }
 0xa92   :  { %v5503_v1 = vadd.f32 %v5502_v62, %v8271_v42  ;;  %v5931_v26 = vsub.f32 1.0, %v5930_v51 }
 0xa94   :  { %v5549_v16 = vrot.slane %v5503_v1, 7  ;;  %v5932_v29 = vmul.f32 %v6665_v5, %v5931_v26 }
 0xa96   :  { %5550 = vrot.lane.b32.xlu2 %v5549_v16, %s7154_s7  ;;  %v5933_v32 = vadd.f32 %v6665_v5, %v5932_v29 }
 0xa98   :  { %v5937_v44 = vsel %vm5936_vm14, %v6665_v5, %v5933_v32 }
 0xa99   :  { %v5918_v34 = vpop.f32.mrf.mxu1  ;;  %v8409_v21 = vsel %vm5939_vm15, %v5941_v36, %v5937_v44  ;;  %v6346_v36 = vsel %vm6345_vm8, %v8298_v43, %v8364_v3 }
 0xa9a   :  { %v5919_v60 = vadd.f32 %v5918_v34, %v8271_v42  ;;  %v5514_v42 = vmul.f32 %v6663_v63, %v5512_v11 }
 0xa9c   :  { %v5965_v8 = vrot.slane %v5919_v60, 2  ;;  %v5515_v22 = vsub.f32 1.0, %v5514_v42 }
 0xa9e   :  { %5966 = vrot.lane.b32.xlu0 %v5965_v8, %s7154_s7  ;;  %v5516_v56 = vmul.f32 %v6663_v63, %v5515_v22 }
 0xaa0   :  { %v5517_v7 = vadd.f32 %v6663_v63, %v5516_v56 }
 0xaa2   :  { %v5521_v53 = vsel %vm5520_vm10, %v6663_v63, %v5517_v7  ;;  %vm6347_vm10 = vcmask 1041408  }
 0xaa3   :  { %v8405_v45 = vsel %vm5523_vm11, %v5525_v46, %v5521_v53 }
 0xaa4   :  { %v5538_v46 = vsub.f32 1.0, %v8405_v45 }
 0xaa6   :  { %5593 = vrot.lane.b32.xlu0 %v5549_v16, %s7144_s11 }
 0xae6   :  { %v5529_v37 = vpop.permute.xlu0 %5528 }
 0xae7   :  { %v5531_v54 = vmul.f32 %v5529_v37, %v8405_v45  ;;  %v5544_v37 = vrot.slane %v8364_v3, 7 }
 0xae9   :  { %5533 = vrot.lane.b32.xlu1 %v5531_v54, %s7141_s15  ;;  %v5546_v28 = vmul.f32 %v5544_v37, %v8405_v45  ;;  %v5960_v45 = vrot.slane %v8356_v20, 7 }
 0xaee   :  { %v5945_v4 = vpop.permute.xlu1 %5944 }
 0xaef   :  { %v5947_v47 = vmul.f32 %v5945_v4, %v8409_v21 }
 0xaf0   :  { %v8412_v23 = vpop.permute.xlu2 %5550 }
 0xaf1   :  { %v5553_v25 = vadd.f32 %v8412_v23, %v8287_v0  ;;  %5949 = vrot.lane.b32.xlu2 %v5947_v47, %s7141_s15  ;;  %6009 = vrot.lane.b32.xlu1 %v5965_v8, %s7144_s11  ;;  %v5573_v29 = vadd.f32 %v8412_v23, %v8302_v27  ;;  %v5954_v23 = vsub.f32 1.0, %v8409_v21 }
 0xaf3   :  { %v6477_v38 = vmul.f32 -1.442695, %v5553_v25  ;;  %v6478_v32 = vmul.f32 -1.442695, %v5573_v29 }
 0xaf5   :  { %6666 = vpow2.f32 %v6477_v38 }
 0xafb   :  { %v6667_v24 = vpop.eup %6666 }
 0xafc   :  { %v5557_v13 = vadd.f32 1.0, %v6667_v24  ;;  %v5962_v24 = vmul.f32 %v5960_v45, %v8409_v21 }
 0xafe   :  { %6668 = vrcp.f32 %v5557_v13  ;;  %v5569_v61 = vand.u32 2147483648, %v5557_v13  ;;  %vm5563_vm1 = vweird.f32 %v5557_v13  ;;  %v5567_v48 = vand.u32 2147483647, %v5557_v13 }
 0xb00   :  { %v5570_v52 = vor.u32 1.1754944e-38, %v5569_v61  ;;  %vm5568_vm3 = vcmp.eq.f32.partialorder %v5567_v48, 8.507059e+37 }
 0xb04   :  { %v6669_v9 = vpop.eup %6668 }
 0xb05   :  { %v5559_v58 = vmul.f32 %v6669_v9, %v5557_v13  ;;  %vm5564_vm0 = vweird.f32 %v6669_v9 }
 0xb06   :  { %vm5565_vm2 = vmor %vm5563_vm1, %vm5564_vm0 }
 0xb07   :  { %v5560_v41 = vsub.f32 1.0, %v5559_v58 }
 0xb09   :  { %v5561_v35 = vmul.f32 %v6669_v9, %v5560_v41 }
 0xb0b   :  { %v5562_v2 = vadd.f32 %v6669_v9, %v5561_v35 }
 0xb0d   :  { %v5566_v6 = vsel %vm5565_vm2, %v6669_v9, %v5562_v2 }
 0xb0e   :  { %v5571_v30 = vsel %vm5568_vm3, %v5570_v52, %v5566_v6 }
 0xb10   :  { %v8418_v14 = vpop.permute.xlu0 %5966 }
 0xb11   :  { %v5969_v62 = vadd.f32 %v8418_v14, %v8287_v0 }
 0xb13   :  { %v6490_v1 = vmul.f32 -1.442695, %v5969_v62 }
 0xb15   :  { %6670 = vpow2.f32 %v6490_v1 }
 0xb18   :  { %v5594_v55 = vpop.permute.xlu0 %5593 }
 0xb19   :  { %v5596_v40 = vmul.f32 %v5594_v55, %v5571_v30 }
 0xb1b   :  { %5598 = vrot.lane.b32.xlu0 %v5596_v40, %s7141_s15  ;;  %v6671_v16 = vpop.eup %6670 }
 0xb1c   :  { %v5973_v34 = vadd.f32 1.0, %v6671_v16  ;;  %v5609_v16 = vrot.slane %v8382_v19, 1 }
 0xb1e   :  { %6672 = vrcp.f32 %v5973_v34  ;;  %v5985_v42 = vand.u32 2147483648, %v5973_v34  ;;  %vm5979_vm5 = vweird.f32 %v5973_v34  ;;  %v5983_v22 = vand.u32 2147483647, %v5973_v34 }
 0xb20   :  { %v5986_v51 = vor.u32 1.1754944e-38, %v5985_v42  ;;  %vm5984_vm7 = vcmp.eq.f32.partialorder %v5983_v22, 8.507059e+37 }
 0xb24   :  { %v6673_v12 = vpop.eup %6672 }
 0xb25   :  { %v5975_v31 = vmul.f32 %v6673_v12, %v5973_v34  ;;  %vm5980_vm4 = vweird.f32 %v6673_v12 }
 0xb26   :  { %vm5981_vm6 = vmor %vm5979_vm5, %vm5980_vm4 }
 0xb27   :  { %v5976_v10 = vsub.f32 1.0, %v5975_v31  ;;  %v5989_v31 = vadd.f32 %v8418_v14, %v8302_v27 }
 0xb29   :  { %v5977_v59 = vmul.f32 %v6673_v12, %v5976_v10 }
 0xb2b   :  { %v5978_v50 = vadd.f32 %v6673_v12, %v5977_v59 }
 0xb2d   :  { %v5982_v5 = vsel %vm5981_vm6, %v6673_v12, %v5978_v50 }
 0xb2e   :  { %v5987_v7 = vsel %vm5984_vm7, %v5986_v51, %v5982_v5 }
 0xb4b   :  { %v5950_v60 = vpop.permute.xlu2 %5949 }
 0xb4c   :  { %v5952_v8 = vadd.f32 %v5950_v60, %v8287_v0 }
 0xb4e   :  { %6674 = vtanh.f32 %v5952_v8 }
 0xb54   :  { %v6675_v18 = vpop.eup %6674 }
 0xb55   :  { %5956 = vrot.lane.b32.xlu1 %v6675_v18, %s7154_s7 }
 0xb5b   :  { %v5534_v33 = vpop.permute.xlu1 %5533 }
 0xb5c   :  { %v5536_v11 = vadd.f32 %v5534_v33, %v8287_v0  ;;  %v6491_v33 = vmul.f32 -1.442695, %v5989_v31 }
 0xb5e   :  { %6676 = vtanh.f32 %v5536_v11 }
 0xb63   :  { %v6010_v56 = vpop.permute.xlu1 %6009 }
 0xb64   :  { %v6677_v63 = vpop.eup %6676  ;;  %v6012_v26 = vmul.f32 %v6010_v56, %v5987_v7 }
 0xb65   :  { %5540 = vrot.lane.b32.xlu2 %v6677_v63, %s7154_s7 }
 0xb6d   :  { %6014 = vrot.lane.b32.xlu2 %v6012_v26, %s7141_s15 }
 0xb8d   :  { %v5599_v15 = vpop.permute.xlu0 %5598 }
 0xb8e   :  { %v5601_v39 = vadd.f32 %v5599_v15, %v8302_v27 }
 0xb90   :  { %6678 = vtanh.f32 %v5601_v39 }
 0xb91   :  { %6680 = vpow2.f32 %v6478_v32 }
 0xb96   :  { %v6679_v53 = vpop.eup %6678 }
 0xb97   :  { %5605 = vrot.lane.b32.xlu2 %v6679_v53, %s7154_s7  ;;  %v6681_v3 = vpop.eup %6680  ;;  %v6025_v53 = vrot.slane %v8387_v57, 1 }
 0xb98   :  { %v5577_v41 = vadd.f32 1.0, %v6681_v3 }
 0xb9a   :  { %v5589_v52 = vand.u32 2147483648, %v5577_v41  ;;  %vm5583_vm12 = vweird.f32 %v5577_v41  ;;  %v5587_v55 = vand.u32 2147483647, %v5577_v41 }
 0xb9c   :  { %v5590_v40 = vor.u32 1.1754944e-38, %v5589_v52  ;;  %vm5588_vm14 = vcmp.eq.f32.partialorder %v5587_v55, 8.507059e+37 }
 0xbbf   :  { %v5541_v54 = vpop.permute.xlu2 %5540 }
 0xbc0   :  { %v5543_v49 = vmul.f32 %v5541_v54, %v5538_v46 }
 0xbc2   :  { %v8435_v44 = vadd.f32 %v5546_v28, %v5543_v49 }
 0xbc4   :  { %v8442_v4 = vsel %vm6347_vm10, %v6346_v36, %v8435_v44  ;;  %v5614_v47 = vrot.slane %v8435_v44, 2 }
 0xbc6   :  { %5615 = vrot.lane.b32.xlu0 %v5614_v47, %s7154_s7  ;;  %v8475_v47 = vld [vmem:[#allocation16] sm:$0x1] }
 0xbc7   :  { %v5957_v25 = vpop.permute.xlu1 %5956  ;;  %v6015_v38 = vpop.permute.xlu2 %6014 }
 0xbc8   :  { %v5959_v13 = vmul.f32 %v5957_v25, %v5954_v23  ;;  %v6017_v43 = vadd.f32 %v6015_v38, %v8302_v27  ;;  %v8479_v38 = vld [vmem:[#allocation19] sm:$0x1] }
 0xbca   :  { %v8450_v9 = vadd.f32 %v5962_v24, %v5959_v13  ;;  %6682 = vtanh.f32 %v6017_v43 }
 0xbcb   :  { %6684 = vrcp.f32 %v5577_v41 }
 0xbcc   :  { %v6030_v58 = vrot.slane %v8450_v9, 5  ;;  %6686 = vpow2.f32 %v6491_v33 }
 0xbce   :  { %6031 = vrot.lane.b32.xlu1 %v6030_v58, %s7154_s7 }
 0xbd0   :  { %v6683_v35 = vpop.eup %6682 }
 0xbd1   :  { %6021 = vrot.lane.b32.xlu0 %v6683_v35, %s7154_s7  ;;  %v6685_v2 = vpop.eup %6684 }
 0xbd2   :  { %v5579_v61 = vmul.f32 %v6685_v2, %v5577_v41  ;;  %vm5584_vm11 = vweird.f32 %v6685_v2  ;;  %v6687_v10 = vpop.eup %6686 }
 0xbd3   :  { %vm5585_vm13 = vmor %vm5583_vm12, %vm5584_vm11  ;;  %v5993_v11 = vadd.f32 1.0, %v6687_v10 }
 0xbd4   :  { %v5580_v48 = vsub.f32 1.0, %v5579_v61 }
 0xbd5   :  { %6688 = vrcp.f32 %v5993_v11  ;;  %v6005_v56 = vand.u32 2147483648, %v5993_v11  ;;  %vm5999_vm0 = vweird.f32 %v5993_v11  ;;  %v6003_v51 = vand.u32 2147483647, %v5993_v11 }
 0xbd6   :  { %v5581_v21 = vmul.f32 %v6685_v2, %v5580_v48 }
 0xbd7   :  { %v6006_v14 = vor.u32 1.1754944e-38, %v6005_v56  ;;  %vm6004_vm2 = vcmp.eq.f32.partialorder %v6003_v51, 8.507059e+37 }
 0xbd8   :  { %v5582_v6 = vadd.f32 %v6685_v2, %v5581_v21 }
 0xbda   :  { %v5586_v30 = vsel %vm5585_vm13, %v6685_v2, %v5582_v6 }
 0xbdb   :  { %v5591_v62 = vsel %vm5588_vm14, %v5590_v40, %v5586_v30  ;;  %v6689_v59 = vpop.eup %6688 }
 0xbdc   :  { %v5603_v1 = vsub.f32 1.0, %v5591_v62  ;;  %v5611_v60 = vmul.f32 %v5609_v16, %v5591_v62  ;;  %v5995_v50 = vmul.f32 %v6689_v59, %v5993_v11  ;;  %vm6000_vm15 = vweird.f32 %v6689_v59 }
 0xbdd   :  { %vm6001_vm1 = vmor %vm5999_vm0, %vm6000_vm15 }
 0xbde   :  { %v5996_v63 = vsub.f32 1.0, %v5995_v50 }
 0xbe0   :  { %v5997_v42 = vmul.f32 %v6689_v59, %v5996_v63 }
 0xbe2   :  { %v5998_v5 = vadd.f32 %v6689_v59, %v5997_v42 }
 0xbe4   :  { %v6002_v7 = vsel %vm6001_vm1, %v6689_v59, %v5998_v5 }
 0xbe5   :  { %v6007_v26 = vsel %vm6004_vm2, %v6006_v14, %v6002_v7 }
 0xbe6   :  { %v6019_v39 = vsub.f32 1.0, %v6007_v26  ;;  %v6027_v46 = vmul.f32 %v6025_v53, %v6007_v26 }
 0xbf1   :  { %v5606_v34 = vpop.permute.xlu2 %5605 }
 0xbf2   :  { %v5608_v8 = vmul.f32 %v5606_v34, %v5603_v1 }
 0xbf4   :  { %v8456_v12 = vadd.f32 %v5611_v60, %v5608_v8 }
 0xbf6   :  { %v5640_v18 = vrot.slane %v8456_v12, 1 }
 0xbf8   :  { %6480 = vmatmul.msk.f32.vlgmr.msra.gmra.mxu3 %vm5152_vm9, %v5640_v18 }
 0xc38   :  { %v5616_v22 = vpop.permute.xlu0 %5615 }
 0xc39   :  { %6479 = vmatmul.msk.f32.vlgmr.msra.gmra.mxu2 %vm5152_vm9, %v5616_v22 }
 0xc40   :  { %v6032_v15 = vpop.permute.xlu1 %6031 }
 0xc41   :  { %6492 = vmatmul.msk.f32.vlgmr.msrb.gmra.mxu2 %vm5152_vm9, %v6032_v15 }
 0xc43   :  { %v6022_v29 = vpop.permute.xlu0 %6021 }
 0xc44   :  { %v6024_v37 = vmul.f32 %v6022_v29, %v6019_v39 }
 0xc46   :  { %v8467_v54 = vadd.f32 %v6027_v46, %v6024_v37 }
 0xc48   :  { %v6056_v32 = vrot.slane %v8467_v54, 6 }
 0xc4a   :  { %6493 = vmatmul.msk.f32.vlgmr.msrb.gmra.mxu3 %vm5152_vm9, %v6056_v32 }
 0xc7b   :  { %v8473_v36 = vpop.f32.mrf.mxu3 }
 0xcbc   :  { %v8471_v28 = vpop.f32.mrf.mxu2 }
 0xcbd   :  { %v5637_v46 = vadd.f32 %v8475_v47, %v8471_v28 }
 0xcbf   :  { %v5664_v37 = vrot.slane %v5637_v46, 5 }
 0xcc4   :  { %v6052_v49 = vpop.f32.mrf.mxu2 }
 0xcc5   :  { %v6053_v23 = vadd.f32 %v8475_v47, %v6052_v49 }
 0xcc7   :  { %v6080_v45 = vrot.slane %v6053_v23, 2 }
 0xcc9   :  { %6102 = vrot.lane.b32.xlu1 %v6080_v45, %s7141_s15  ;;  %v6082_v43 = vadd.f32 %v6080_v45, %v8287_v0 }
 0xccb   :  { %v6494_v3 = vmul.f32 -1.442695, %v6082_v43 }
 0xccd   :  { %v6076_v25 = vpop.f32.mrf.mxu3  ;;  %6690 = vpow2.f32 %v6494_v3 }
 0xcce   :  { %v6077_v24 = vadd.f32 %v8479_v38, %v6076_v25 }
 0xcd0   :  { %v6123_v13 = vrot.slane %v6077_v24, 3 }
 0xcd2   :  { %6167 = vrot.lane.b32.xlu1 %v6123_v13, %s7144_s11  ;;  %6124 = vrot.lane.b32.xlu2 %v6123_v13, %s7154_s7 }
 0xcd3   :  { %v6691_v58 = vpop.eup %6690 }
 0xcd4   :  { %v6086_v41 = vadd.f32 1.0, %v6691_v58 }
 0xcd6   :  { %6692 = vrcp.f32 %v6086_v41  ;;  %v6098_v30 = vand.u32 2147483648, %v6086_v41  ;;  %vm6092_vm4 = vweird.f32 %v6086_v41  ;;  %v6096_v40 = vand.u32 2147483647, %v6086_v41 }
 0xcd8   :  { %v6099_v34 = vor.u32 1.1754944e-38, %v6098_v30  ;;  %vm6097_vm6 = vcmp.eq.f32.partialorder %v6096_v40, 8.507059e+37 }
 0xcdc   :  { %v6693_v35 = vpop.eup %6692 }
 0xcdd   :  { %v6088_v2 = vmul.f32 %v6693_v35, %v6086_v41  ;;  %vm6093_vm3 = vweird.f32 %v6693_v35 }
 0xcde   :  { %vm6094_vm5 = vmor %vm6092_vm4, %vm6093_vm3 }
 0xcdf   :  { %v6089_v48 = vsub.f32 1.0, %v6088_v2 }
 0xce1   :  { %v6090_v52 = vmul.f32 %v6693_v35, %v6089_v48  ;;  %v6183_v48 = vrot.slane %v8467_v54, 1 }
 0xce3   :  { %v6091_v55 = vadd.f32 %v6693_v35, %v6090_v52 }
 0xce5   :  { %v6095_v16 = vsel %vm6094_vm5, %v6693_v35, %v6091_v55 }
 0xce6   :  { %v8486_v8 = vsel %vm6097_vm6, %v6099_v34, %v6095_v16 }
 0xce7   :  { %v6112_v40 = vsub.f32 1.0, %v8486_v8 }
 0xd2c   :  { %v6125_v61 = vpop.permute.xlu2 %6124 }
 0xd2d   :  { %v6127_v21 = vadd.f32 %v6125_v61, %v8287_v0  ;;  %v6147_v32 = vadd.f32 %v6125_v61, %v8302_v27 }
 0xd2f   :  { %v6495_v6 = vmul.f32 -1.442695, %v6127_v21  ;;  %v6496_v49 = vmul.f32 -1.442695, %v6147_v32 }
 0xd31   :  { %6694 = vpow2.f32 %v6495_v6 }
 0xd37   :  { %v6695_v62 = vpop.eup %6694 }
 0xd38   :  { %v6131_v1 = vadd.f32 1.0, %v6695_v62  ;;  %v6118_v62 = vrot.slane %v8450_v9, 7 }
 0xd3a   :  { %6696 = vrcp.f32 %v6131_v1  ;;  %v6143_v59 = vand.u32 2147483648, %v6131_v1  ;;  %v6141_v63 = vand.u32 2147483647, %v6131_v1  ;;  %vm6137_vm11 = vweird.f32 %v6131_v1 }
 0xd3b   :  { %v6103_v60 = vpop.permute.xlu1 %6102  ;;  %v6120_v16 = vmul.f32 %v6118_v62, %v8486_v8 }
 0xd3c   :  { %v6105_v31 = vmul.f32 %v6103_v60, %v8486_v8  ;;  %v6144_v22 = vor.u32 1.1754944e-38, %v6143_v59  ;;  %vm6142_vm13 = vcmp.eq.f32.partialorder %v6141_v63, 8.507059e+37 }
 0xd3e   :  { %6107 = vrot.lane.b32.xlu0 %v6105_v31, %s7141_s15 }
 0xd40   :  { %v6697_v33 = vpop.eup %6696 }
 0xd41   :  { %v6133_v10 = vmul.f32 %v6697_v33, %v6131_v1  ;;  %vm6138_vm7 = vweird.f32 %v6697_v33 }
 0xd42   :  { %vm6139_vm12 = vmor %vm6137_vm11, %vm6138_vm7 }
 0xd43   :  { %v6134_v11 = vsub.f32 1.0, %v6133_v10  ;;  %v5666_v10 = vadd.f32 %v5664_v37, %v8287_v0 }
 0xd44   :  { %v6168_v56 = vpop.permute.xlu1 %6167 }
 0xd45   :  { %v6135_v50 = vmul.f32 %v6697_v33, %v6134_v11  ;;  %v6481_v11 = vmul.f32 -1.442695, %v5666_v10 }
 0xd47   :  { %v6136_v42 = vadd.f32 %v6697_v33, %v6135_v50 }
 0xd49   :  { %v6140_v5 = vsel %vm6139_vm12, %v6697_v33, %v6136_v42  ;;  %v5661_v33 = vadd.f32 %v8479_v38, %v8473_v36 }
 0xd4a   :  { %v6145_v51 = vsel %vm6142_vm13, %v6144_v22, %v6140_v5 }
 0xd4b   :  { %v6170_v7 = vmul.f32 %v6168_v56, %v6145_v51 }
 0xd4d   :  { %6172 = vrot.lane.b32.xlu2 %v6170_v7, %s7141_s15 }
 0xda7   :  { %v6173_v14 = vpop.permute.xlu2 %6172 }
 0xda8   :  { %v6175_v26 = vadd.f32 %v6173_v14, %v8302_v27 }
 0xdaa   :  { %6698 = vtanh.f32 %v6175_v26 }
 0xdb0   :  { %v6699_v15 = vpop.eup %6698  ;;  %v6108_v39 = vpop.permute.xlu0 %6107 }
 0xdb1   :  { %v6110_v53 = vadd.f32 %v6108_v39, %v8287_v0  ;;  %6179 = vrot.lane.b32.xlu1 %v6699_v15, %s7154_s7 }
 0xdb3   :  { %6700 = vtanh.f32 %v6110_v53 }
 0xdb4   :  { %6702 = vpow2.f32 %v6496_v49 }
 0xdb9   :  { %v6701_v29 = vpop.eup %6700 }
 0xdba   :  { %6114 = vrot.lane.b32.xlu0 %v6701_v29, %s7154_s7  ;;  %v6703_v23 = vpop.eup %6702 }
 0xdbb   :  { %v6151_v45 = vadd.f32 1.0, %v6703_v23 }
 0xdbd   :  { %6704 = vrcp.f32 %v6151_v45  ;;  %v6163_v58 = vand.u32 2147483648, %v6151_v45  ;;  %vm6157_vm15 = vweird.f32 %v6151_v45  ;;  %v6161_v41 = vand.u32 2147483647, %v6151_v45 }
 0xdbe   :  { %6706 = vpow2.f32 %v6481_v11 }
 0xdbf   :  { %v6164_v35 = vor.u32 1.1754944e-38, %v6163_v58  ;;  %vm6162_vm1 = vcmp.eq.f32.partialorder %v6161_v41, 8.507059e+37 }
 0xdc2   :  { %5686 = vrot.lane.b32.xlu0 %v5664_v37, %s7141_s15 }
 0xdc3   :  { %v6705_v25 = vpop.eup %6704 }
 0xdc4   :  { %v6153_v24 = vmul.f32 %v6705_v25, %v6151_v45  ;;  %vm6158_vm14 = vweird.f32 %v6705_v25  ;;  %v6707_v50 = vpop.eup %6706 }
 0xdc5   :  { %vm6159_vm0 = vmor %vm6157_vm15, %vm6158_vm14  ;;  %v5670_v8 = vadd.f32 1.0, %v6707_v50 }
 0xdc6   :  { %v6154_v13 = vsub.f32 1.0, %v6153_v24 }
 0xdc7   :  { %6708 = vrcp.f32 %v5670_v8  ;;  %v5682_v14 = vand.u32 2147483648, %v5670_v8  ;;  %vm5676_vm3 = vweird.f32 %v5670_v8  ;;  %v5680_v26 = vand.u32 2147483647, %v5670_v8 }
 0xdc8   :  { %v6155_v43 = vmul.f32 %v6705_v25, %v6154_v13 }
 0xdc9   :  { %v5683_v39 = vor.u32 1.1754944e-38, %v5682_v14  ;;  %vm5681_vm5 = vcmp.eq.f32.partialorder %v5680_v26, 8.507059e+37 }
 0xdca   :  { %v6156_v3 = vadd.f32 %v6705_v25, %v6155_v43 }
 0xdcc   :  { %v6160_v28 = vsel %vm6159_vm0, %v6705_v25, %v6156_v3 }
 0xdcd   :  { %v6165_v2 = vsel %vm6162_vm1, %v6164_v35, %v6160_v28  ;;  %v6709_v63 = vpop.eup %6708 }
 0xdce   :  { %v6177_v61 = vsub.f32 1.0, %v6165_v2  ;;  %v6185_v6 = vmul.f32 %v6183_v48, %v6165_v2  ;;  %v5672_v42 = vmul.f32 %v6709_v63, %v5670_v8  ;;  %vm5677_vm2 = vweird.f32 %v6709_v63 }
 0xdcf   :  { %vm5678_vm4 = vmor %vm5676_vm3, %vm5677_vm2 }
 0xdd0   :  { %v5673_v22 = vsub.f32 1.0, %v5672_v42 }
 0xdd2   :  { %v5674_v5 = vmul.f32 %v6709_v63, %v5673_v22 }
 0xdd4   :  { %v5675_v36 = vadd.f32 %v6709_v63, %v5674_v5 }
 0xdd6   :  { %v5679_v15 = vsel %vm5678_vm4, %v6709_v63, %v5675_v36 }
 0xdd7   :  { %v8519_v29 = vsel %vm5681_vm5, %v5683_v39, %v5679_v15  ;;  %vm6349_vm5 = vcmask 1042432  }
 0xe23   :  { %v6180_v21 = vpop.permute.xlu1 %6179 }
 0xe24   :  { %v6182_v52 = vmul.f32 %v6180_v21, %v6177_v61 }
 0xe26   :  { %v8500_v55 = vadd.f32 %v6185_v6, %v6182_v52 }
 0xe28   :  { %v6214_v30 = vrot.slane %v8500_v55, 5 }
 0xe2a   :  { %6498 = vmatmul.msk.f32.vlgmr.msrb.gmra.mxu1 %vm5152_vm9, %v6214_v30 }
 0xe2c   :  { %v6115_v1 = vpop.permute.xlu0 %6114 }
 0xe2d   :  { %v6117_v34 = vmul.f32 %v6115_v1, %v6112_v40 }
 0xe2f   :  { %v8507_v60 = vadd.f32 %v6120_v16, %v6117_v34 }
 0xe31   :  { %v6188_v31 = vrot.slane %v8507_v60, 6 }
 0xe33   :  { %6189 = vrot.lane.b32.xlu2 %v6188_v31, %s7154_s7 }
 0xe34   :  { %v5687_v53 = vpop.permute.xlu0 %5686 }
 0xe35   :  { %v5689_v46 = vmul.f32 %v5687_v53, %v8519_v29 }
 0xe3b   :  { %5707 = vrot.lane.b32.xlu2 %v5661_v33, %s7154_s7 }
 0xe8d   :  { %v6190_v59 = vpop.permute.xlu2 %6189 }
 0xe8e   :  { %6497 = vmatmul.msk.f32.vlgmr.msrb.gmra.mxu0 %vm5152_vm9, %v6190_v59 }
 0xe95   :  { %v8530_v3 = vpop.permute.xlu2 %5707 }
 0xe96   :  { %v5710_v40 = vadd.f32 %v8530_v3, %v8287_v0 }
 0xe98   :  { %v6482_v62 = vmul.f32 -1.442695, %v5710_v40 }
 0xea7   :  { %v6234_v56 = vpop.f32.mrf.mxu1 }
 0xea8   :  { %v6235_v51 = vadd.f32 %v8479_v38, %v6234_v56 }
 0xeaa   :  { %v6281_v7 = vrot.slane %v6235_v51, 4 }
 0xeac   :  { %6282 = vrot.lane.b32.xlu0 %v6281_v7, %s7154_s7  ;;  %6325 = vrot.lane.b32.xlu2 %v6281_v7, %s7144_s11 }
 0xeb4   :  { %5691 = vrot.lane.b32.xlu0 %v5689_v46, %s7141_s15 }
 0xf06   :  { %v6326_v48 = vpop.permute.xlu2 %6325 }
 0xf0b   :  { %v6210_v38 = vpop.f32.mrf.mxu0 }
 0xf0c   :  { %v6211_v37 = vadd.f32 %v8475_v47, %v6210_v38 }
 0xf0e   :  { %v6238_v32 = vrot.slane %v6211_v37, 1 }
 0xf10   :  { %6260 = vrot.lane.b32.xlu1 %v6238_v32, %s7141_s15  ;;  %v6240_v52 = vadd.f32 %v6238_v32, %v8287_v0 }
 0xf12   :  { %v6499_v30 = vmul.f32 -1.442695, %v6240_v52 }
 0xf18   :  { %5750 = vrot.lane.b32.xlu1 %v5661_v33, %s7144_s11 }
 0xf1e   :  { %v8526_v49 = vpop.permute.xlu0 %6282 }
 0xf1f   :  { %v6285_v23 = vadd.f32 %v8526_v49, %v8287_v0 }
 0xf21   :  { %v6500_v45 = vmul.f32 -1.442695, %v6285_v23 }
 0xf23   :  { %6710 = vpow2.f32 %v6500_v45 }
 0xf26   :  { %v5692_v56 = vpop.permute.xlu0 %5691 }
 0xf27   :  { %v5694_v14 = vadd.f32 %v5692_v56, %v8287_v0 }
 0xf29   :  { %v6711_v25 = vpop.eup %6710 }
 0xf2a   :  { %v6289_v24 = vadd.f32 1.0, %v6711_v25 }
 0xf2c   :  { %6712 = vrcp.f32 %v6289_v24  ;;  %v6301_v58 = vand.u32 2147483648, %v6289_v24  ;;  %v6299_v28 = vand.u32 2147483647, %v6289_v24  ;;  %vm6295_vm7 = vweird.f32 %v6289_v24 }
 0xf2d   :  { %6714 = vpow2.f32 %v6499_v30 }
 0xf2e   :  { %v6302_v2 = vor.u32 1.1754944e-38, %v6301_v58  ;;  %vm6300_vm12 = vcmp.eq.f32.partialorder %v6299_v28, 8.507059e+37  ;;  %6716 = vpow2.f32 %v6482_v62 }
 0xf32   :  { %v6713_v13 = vpop.eup %6712 }
 0xf33   :  { %v6291_v43 = vmul.f32 %v6713_v13, %v6289_v24  ;;  %vm6296_vm6 = vweird.f32 %v6713_v13  ;;  %v6715_v1 = vpop.eup %6714 }
 0xf34   :  { %vm6297_vm11 = vmor %vm6295_vm7, %vm6296_vm6  ;;  %v6244_v16 = vadd.f32 1.0, %v6715_v1  ;;  %v6717_v34 = vpop.eup %6716  ;;  %v6305_v1 = vadd.f32 %v8526_v49, %v8302_v27  ;;  %vm6351_vm6 = vcmask 1043456  }
 0xf35   :  { %v6292_v47 = vsub.f32 1.0, %v6291_v43  ;;  %v5714_v31 = vadd.f32 1.0, %v6717_v34 }
 0xf36   :  { %6718 = vrcp.f32 %v6244_v16  ;;  %v6256_v22 = vand.u32 2147483648, %v6244_v16  ;;  %vm6250_vm14 = vweird.f32 %v6244_v16  ;;  %v6254_v5 = vand.u32 2147483647, %v6244_v16 }
 0xf37   :  { %v6293_v41 = vmul.f32 %v6713_v13, %v6292_v47  ;;  %6720 = vrcp.f32 %v5714_v31  ;;  %v5726_v46 = vand.u32 2147483648, %v5714_v31  ;;  %vm5720_vm2 = vweird.f32 %v5714_v31 }
 0xf38   :  { %v6257_v7 = vor.u32 1.1754944e-38, %v6256_v22  ;;  %vm6255_vm0 = vcmp.eq.f32.partialorder %v6254_v5, 8.507059e+37  ;;  %v5724_v38 = vand.u32 2147483647, %v5714_v31  ;;  %6722 = vtanh.f32 %v5694_v14  ;;  %v6367_v5 = vld [vmem:[#allocation21 + $0x8] sm:$0xff] }
 0xf39   :  { %v6294_v35 = vadd.f32 %v6713_v13, %v6293_v41  ;;  %v5727_v32 = vor.u32 1.1754944e-38, %v5726_v46 }
 0xf3a   :  { %vm5725_vm4 = vcmp.eq.f32.partialorder %v5724_v38, 8.507059e+37  ;;  %v6276_v38 = vrot.slane %v8507_v60, 7 }
 0xf3b   :  { %v6298_v61 = vsel %vm6297_vm11, %v6713_v13, %v6294_v35 }
 0xf3c   :  { %v6303_v21 = vsel %vm6300_vm12, %v6302_v2, %v6298_v61  ;;  %v6719_v33 = vpop.eup %6718  ;;  %v5696_v61 = vsub.f32 1.0, %v8519_v29 }
 0xf3d   :  { %v6328_v6 = vmul.f32 %v6326_v48, %v6303_v21  ;;  %v6246_v10 = vmul.f32 %v6719_v33, %v6244_v16  ;;  %v6721_v59 = vpop.eup %6720  ;;  %vm6251_vm13 = vweird.f32 %v6719_v33  ;;  %v5702_v48 = vrot.slane %v8435_v44, 7 }
 0xf3e   :  { %v5716_v8 = vmul.f32 %v6721_v59, %v5714_v31  ;;  %vm6252_vm15 = vmor %vm6250_vm14, %vm6251_vm13  ;;  %vm5721_vm1 = vweird.f32 %v6721_v59  ;;  %v6723_v24 = vpop.eup %6722  ;;  %v6501_v44 = vmul.f32 -1.442695, %v6305_v1  ;;  %vm6353_vm13 = vcmask 1044480  }
 0xf3f   :  { %6330 = vrot.lane.b32.xlu0 %v6328_v6, %s7141_s15  ;;  %v6247_v11 = vsub.f32 1.0, %v6246_v10  ;;  %vm5722_vm3 = vmor %vm5720_vm2, %vm5721_vm1  ;;  %v5704_v52 = vmul.f32 %v5702_v48, %v8519_v29  ;;  %vm6355_vm1 = vcmask 1045504   ;;  %vm6357_vm2 = vcmask 1046528  }
 0xf40   :  { %v5717_v42 = vsub.f32 1.0, %v5716_v8 }
 0xf41   :  { %v6248_v50 = vmul.f32 %v6719_v33, %v6247_v11 }
 0xf42   :  { %v5718_v36 = vmul.f32 %v6721_v59, %v5717_v42  ;;  %v6368_v42 = vld [vmem:[#allocation21 + $0x10] sm:$0xff] }
 0xf43   :  { %v6249_v63 = vadd.f32 %v6719_v33, %v6248_v50  ;;  %v6372_v50 = vld [vmem:[#allocation22 + $0x10] sm:$0xff] }
 0xf44   :  { %v5719_v53 = vadd.f32 %v6721_v59, %v5718_v36 }
 0xf45   :  { %v6253_v51 = vsel %vm6252_vm15, %v6719_v33, %v6249_v63  ;;  %v6369_v63 = vld [vmem:[#allocation21 + $0x18] sm:$0xff] }
 0xf46   :  { %v8537_v15 = vsel %vm6255_vm0, %v6257_v7, %v6253_v51  ;;  %v5723_v37 = vsel %vm5722_vm3, %v6721_v59, %v5719_v53  ;;  %v6373_v59 = vld [vmem:[#allocation22 + $0x18] sm:$0xff]  ;;  %6414 = vmatpush.msra.mxu3 %v6369_v63  ;;  %v6366_v51 = vld [vmem:[#allocation21] sm:$0xff] }
 0xf47   :  { %v5728_v45 = vsel %vm5725_vm4, %v5727_v32, %v5723_v37  ;;  %6389 = vmatpush.msra.mxu2 %v6373_v59  ;;  %v6270_v46 = vsub.f32 1.0, %v8537_v15 }
 0xf48   :  { %6415 = vmatpush.msra.mxu3 %v6368_v42 }
 0xf49   :  { %6390 = vmatpush.msra.mxu2 %v6372_v50 }
 0xf4a   :  { %6416 = vmatpush.msra.mxu3 %v6367_v5 }
 0xf4c   :  { %6417 = vmatpush.msra.mxu3 %v6366_v51 }
 0xf82   :  { %v6261_v26 = vpop.permute.xlu1 %6260 }
 0xf83   :  { %v6263_v39 = vmul.f32 %v6261_v26, %v8537_v15 }
 0xf85   :  { %6265 = vrot.lane.b32.xlu1 %v6263_v39, %s7141_s15 }
 0xf8a   :  { %v5751_v23 = vpop.permute.xlu1 %5750 }
 0xf8b   :  { %v5753_v25 = vmul.f32 %v5751_v23, %v5728_v45 }
 0xf8d   :  { %5698 = vrot.lane.b32.xlu1 %v6723_v24, %s7154_s7  ;;  %5755 = vrot.lane.b32.xlu2 %v5753_v25, %s7141_s15 }
 0xfb1   :  { %v6331_v13 = vpop.permute.xlu0 %6330 }
 0xfb2   :  { %v6333_v43 = vadd.f32 %v6331_v13, %v8302_v27 }
 0xfb4   :  { %6724 = vtanh.f32 %v6333_v43 }
 0xfba   :  { %v6725_v47 = vpop.eup %6724 }
 0xfbb   :  { %6337 = vrot.lane.b32.xlu1 %v6725_v47, %s7154_s7 }
 0xfe7   :  { %v5756_v58 = vpop.permute.xlu2 %5755 }
 0xfe8   :  { %v5758_v41 = vadd.f32 %v5756_v58, %v8302_v27 }
 0xfea   :  { %6726 = vtanh.f32 %v5758_v41 }
 0xff0   :  { %v6727_v28 = vpop.eup %6726 }
 0xff1   :  { %5762 = vrot.lane.b32.xlu0 %v6727_v28, %s7154_s7 }
 0xff7   :  { %v6266_v35 = vpop.permute.xlu1 %6265 }
 0xff8   :  { %v6268_v2 = vadd.f32 %v6266_v35, %v8287_v0  ;;  %v5730_v0 = vadd.f32 %v8530_v3, %v8302_v27  ;;  %v6371_v3 = vld [vmem:[#allocation22 + $0x8] sm:$0xff]  ;;  %v6370_v27 = vld [vmem:[#allocation22] sm:$0xff] }
 0xff9   :  { %6391 = vmatpush.msra.mxu2 %v6371_v3 }
 0xffa   :  { %6728 = vtanh.f32 %v6268_v2  ;;  %v6483_v16 = vmul.f32 -1.442695, %v5730_v0 }
 0xffb   :  { %6392 = vmatpush.msra.mxu2 %v6370_v27 }
 0xffc   :  { %6730 = vpow2.f32 %v6483_v16 }
 0xffd   :  { %6732 = vpow2.f32 %v6501_v44 }
 0xfff   :  { %v5699_v21 = vpop.permute.xlu1 %5698 }
0x1000   :  { %v6729_v6 = vpop.eup %6728  ;;  %v5701_v30 = vmul.f32 %v5699_v21, %v5696_v61 }
0x1001   :  { %6272 = vrot.lane.b32.xlu2 %v6729_v6, %s7154_s7 }
0x1002   :  { %v5705_v40 = vadd.f32 %v5704_v52, %v5701_v30  ;;  %v6731_v34 = vpop.eup %6730  ;;  %v6341_v30 = vrot.slane %v8500_v55, 1 }
0x1003   :  { %v6733_v29 = vpop.eup %6732  ;;  %v5734_v31 = vadd.f32 1.0, %v6731_v34 }
0x1004   :  { %v6350_v62 = vsel %vm6349_vm5, %v8442_v4, %v5705_v40  ;;  %v6309_v33 = vadd.f32 1.0, %v6733_v29 }
0x1005   :  { %6734 = vrcp.f32 %v5734_v31  ;;  %vm5740_vm11 = vweird.f32 %v5734_v31  ;;  %v5746_v14 = vand.u32 2147483648, %v5734_v31  ;;  %v6352_v39 = vsel %vm6351_vm6, %v6350_v62, %v8356_v20 }
0x1006   :  { %6736 = vrcp.f32 %v6309_v33  ;;  %v6321_v53 = vand.u32 2147483648, %v6309_v33  ;;  %v5744_v32 = vand.u32 2147483647, %v5734_v31  ;;  %vm6315_vm15 = vweird.f32 %v6309_v33 }
0x1007   :  { %v6319_v23 = vand.u32 2147483647, %v6309_v33  ;;  %v6278_v20 = vmul.f32 %v6276_v38, %v8537_v15  ;;  %v6354_v13 = vsel %vm6353_vm13, %v6352_v39, %v8450_v9  ;;  %v5747_v47 = vor.u32 1.1754944e-38, %v5746_v14 }
0x1008   :  { %v6322_v58 = vor.u32 1.1754944e-38, %v6321_v53  ;;  %vm5745_vm3 = vcmp.eq.f32.partialorder %v5744_v32, 8.507059e+37  ;;  %v6356_v28 = vsel %vm6355_vm1, %v6354_v13, %v8507_v60 }
0x1009   :  { %vm6320_vm4 = vcmp.eq.f32.partialorder %v6319_v23, 8.507059e+37 }
0x100b   :  { %v6735_v10 = vpop.eup %6734 }
0x100c   :  { %v6737_v11 = vpop.eup %6736  ;;  %v5736_v4 = vmul.f32 %v6735_v10, %v5734_v31  ;;  %vm5741_vm7 = vweird.f32 %v6735_v10 }
0x100d   :  { %v6311_v8 = vmul.f32 %v6737_v11, %v6309_v33  ;;  %vm6316_vm12 = vweird.f32 %v6737_v11  ;;  %vm8562_vm14 = vmor %vm5740_vm11, %vm5741_vm7 }
0x100e   :  { %v5737_v49 = vsub.f32 1.0, %v5736_v4  ;;  %vm6317_vm0 = vmor %vm6315_vm15, %vm6316_vm12 }
0x100f   :  { %v6312_v22 = vsub.f32 1.0, %v6311_v8 }
0x1010   :  { %v5738_v56 = vmul.f32 %v6735_v10, %v5737_v49 }
0x1011   :  { %v6313_v36 = vmul.f32 %v6737_v11, %v6312_v22 }
0x1012   :  { %v5739_v7 = vadd.f32 %v6735_v10, %v5738_v56 }
0x1013   :  { %v6314_v26 = vadd.f32 %v6737_v11, %v6313_v36 }
0x1014   :  { %v5743_v25 = vsel %vm8562_vm14, %v6735_v10, %v5739_v7 }
0x1015   :  { %v6318_v43 = vsel %vm6317_vm0, %v6737_v11, %v6314_v26  ;;  %v5748_v35 = vsel %vm5745_vm3, %v5747_v47, %v5743_v25 }
0x1016   :  { %v6323_v2 = vsel %vm6320_vm4, %v6322_v58, %v6318_v43  ;;  %v5760_v48 = vsub.f32 1.0, %v5748_v35  ;;  %v5767_v6 = vmul.f32 %v5748_v35, %v5640_v18 }
0x1017   :  { %v6335_v9 = vsub.f32 1.0, %v6323_v2  ;;  %v6343_v0 = vmul.f32 %v6341_v30, %v6323_v2 }
0x102d   :  { %v6338_v15 = vpop.permute.xlu1 %6337 }
0x102e   :  { %v6340_v40 = vmul.f32 %v6338_v15, %v6335_v9 }
0x1030   :  { %v6344_v1 = vadd.f32 %v6343_v0, %v6340_v40 }
0x105b   :  { %v6273_v45 = vpop.permute.xlu2 %6272 }
0x105c   :  { %v6275_v24 = vmul.f32 %v6273_v45, %v6270_v46 }
0x105e   :  { %v6279_v41 = vadd.f32 %v6278_v20, %v6275_v24 }
0x1060   :  { %v6358_v61 = vsel %vm6357_vm2, %v6356_v28, %v6279_v41 }
0x1061   :  { %6398 = vrot.lane.b32.xlu2 %v6358_v61, %s7154_s7 }
0x1063   :  { %v5763_v21 = vpop.permute.xlu0 %5762 }
0x1064   :  { %v5765_v52 = vmul.f32 %v5763_v21, %v5760_v48 }
0x1066   :  { %v5768_v62 = vadd.f32 %v5767_v6, %v5765_v52 }
0x1068   :  { %v6359_v60 = vsel %vm6345_vm8, %v5768_v62, %v8456_v12 }
0x1069   :  { %v6360_v16 = vsel %vm6347_vm10, %v6359_v60, %v8382_v19  ;;  %v6529_v19 = vld [vmem:[#allocation24] ss:$0 sm:$0xff] }
0x106a   :  { %v6361_v44 = vsel %vm6349_vm5, %v6360_v16, %v8317_v17 }
0x106b   :  { %v6362_v34 = vsel %vm6351_vm6, %v6361_v44, %v6344_v1 }
0x106c   :  { %v6363_v18 = vsel %vm6353_vm13, %v6362_v34, %v8500_v55 }
0x106d   :  { %v6364_v29 = vsel %vm6355_vm1, %v6363_v18, %v8467_v54 }
0x106e   :  { %v6365_v31 = vsel %vm6357_vm2, %v6364_v29, %v8387_v57 }
0x106f   :  { %6502 = vmatmul.msk.f32.vlgmr.msra.gmra.mxu2 %vm5152_vm9, %v6365_v31 }
0x10bb   :  { %v6399_v12 = vpop.permute.xlu2 %6398 }
0x10bc   :  { %6503 = vmatmul.msk.f32.vlgmr.msra.gmra.mxu3 %vm5152_vm9, %v6399_v12 }
0x10f2   :  { %v6394_v33 = vpop.f32.mrf.mxu2 }
0x113f   :  { %v6419_v10 = vpop.f32.mrf.mxu3 }
0x1140   :  { %v6420_v17 = vadd.f32 %v6419_v10, %v6394_v33 }
0x1142   :  { %v6426_v11 = vadd.f32 %v6529_v19, %v6420_v17 }
0x1144   :  { %v6428_v59 = vrot.slane %v6426_v11, 4  ;;  %6430 = vst [vmem:[%s8616_s17] sm:$0xf] %v6426_v11 }
0x1146   :  { %6431 = vst [vmem:[%s8616_s17 + $0x4] sm:$0xf] %v6428_v59 }
0x1147   :  { %6436 = vsyncpa [#allocation3], 1 }
0x1148   :  { %6437 = vsyncpa [#allocation5], 1 }
0x1149   :  { %6438 = vsyncpa [#allocation8], 1 }
0x114a   :  { %6439 = vsyncpa [#allocation11], 1 }
0x114b   :  { %6440 = vsyncpa [#allocation14], 1 }
0x114c   :  { %6441 = vsyncpa [#allocation17], 1 }
0x114d   :  { %6442 = vsyncpa [#allocation20], 1 }
0x114e   :  { %6443 = vsyncpa [#allocation23], 1 }

</bundles_post_ra>
